<compile_context>
chip_gen: v7x
topology: tpu7x:2x2x1
jax: 0.10.0
libtpu: 0.0.40
codegen_flags: <defaults>
</compile_context>

<pallas_src>
import functools

import jax
import jax.numpy as jnp
from jax.experimental import pallas as pl
from jax.experimental.pallas import tpu as pltpu

BN_EPS = 1e-5
BLOCKS = [32, (64, 1, 1), (128, 2, 2), (256, 2, 2), (512, 6, 2), (1024, 2, 2)]

# Static per-block strides (independent of width multiplier).  Kept OUT of the
# traced params pytree so they stay Python ints at trace time.
BLOCK_STRIDES = tuple(
    s
    for (_, num_blocks, strides) in BLOCKS[1:]
    for s in [strides] + [1] * (num_blocks - 1)
)


def make_divisible(v, divisor, min_value=None):
    if min_value is None:
        min_value = divisor
    new_v = max(min_value, int(v + divisor / 2) // divisor * divisor)
    if new_v < 0.9 * v:
        new_v += divisor
    return new_v


# ----------------------------- Pallas kernels -----------------------------

def _matmul_bias_relu_kernel(x_ref, w_ref, b_ref, o_ref):
    # x: (tm, K) bf16, w: (K, N) bf16, b: (1, N) f32 -> o: (tm, N) f32
    acc = jnp.dot(x_ref[...], w_ref[...], preferred_element_type=jnp.float32)
    o_ref[...] = jnp.maximum(acc + b_ref[...], 0.0)


def matmul_bias_relu(x, w, bias):
    """(M, K) @ (K, N) + bias, ReLU.  bf16 MXU operands, f32 accumulate/output."""
    M, K = x.shape
    N = w.shape[1]
    # One big M tile when possible (per-grid-step overhead dominates at these sizes).
    if M % 512 == 0:
        tm = 512
    elif M % 128 == 0:
        tm = 128
    else:
        tm = M
    return pl.pallas_call(
        _matmul_bias_relu_kernel,
        out_shape=jax.ShapeDtypeStruct((M, N), jnp.float32),
        grid=(M // tm,),
        in_specs=[
            pl.BlockSpec((tm, K), lambda i: (i, 0)),
            pl.BlockSpec((K, N), lambda i: (0, 0)),
            pl.BlockSpec((1, N), lambda i: (0, 0)),
        ],
        out_specs=pl.BlockSpec((tm, N), lambda i: (i, 0)),
        compiler_params=pltpu.CompilerParams(dimension_semantics=("parallel",)),
    )(x.astype(jnp.bfloat16), w.astype(jnp.bfloat16), bias.reshape(1, -1))


def _dw_pw_body(x_ref, dw_w_ref, dw_b_ref, pw_w_ref, pw_b_ref, xpad_ref, *,
                stride, Ho, Wo):
    """Depthwise 3x3 (+bias, ReLU) followed by pointwise 1x1 (+bias, ReLU).

    Returns the pointwise output of shape (Ho*Wo, Cout), all in VMEM/vregs.
    """
    H, W, Cin = x_ref.shape[1], x_ref.shape[2], x_ref.shape[3]

    # Build the 1-pixel zero halo inside VMEM (no HBM jnp.pad round trip).
    xpad_ref[...] = jnp.zeros(xpad_ref.shape, xpad_ref.dtype)
    xpad_ref[1:H + 1, 1:W + 1, :] = x_ref[0]

    dw_w = dw_w_ref[...]                       # (3, 3, Cin), BN scale already folded in
    acc = jnp.zeros((Ho, Wo, Cin), jnp.float32)
    for kh in range(3):
        for kw in range(3):
            if stride == 1:
                tap = xpad_ref[kh:kh + Ho, kw:kw + Wo, :]
            else:
                # stride-2 decimation at the taps (no dense intermediate).
                tap = xpad_ref[pl.ds(kh, Ho, stride=stride),
                               pl.ds(kw, Wo, stride=stride), :]
            acc = acc + tap * dw_w[kh, kw][None, None, :]

    z = jnp.maximum(acc + dw_b_ref[...], 0.0)                  # (Ho, Wo, Cin) f32
    z2 = z.reshape(Ho * Wo, Cin).astype(jnp.bfloat16)
    y = jnp.dot(z2, pw_w_ref[...], preferred_element_type=jnp.float32)
    return jnp.maximum(y + pw_b_ref[...], 0.0)                 # (Ho*Wo, Cout) f32


def _fused_block_kernel(x_ref, dw_w_ref, dw_b_ref, pw_w_ref, pw_b_ref,
                        o_ref, xpad_ref, *, stride, Ho, Wo):
    y = _dw_pw_body(x_ref, dw_w_ref, dw_b_ref, pw_w_ref, pw_b_ref, xpad_ref,
                    stride=stride, Ho=Ho, Wo=Wo)
    o_ref[0] = y


def _fused_final_kernel(x_ref, dw_w_ref, dw_b_ref, pw_w_ref, pw_b_ref,
                        fc_w_ref, fc_b_ref, o_ref, xpad_ref, *, stride, Ho, Wo):
    y = _dw_pw_body(x_ref, dw_w_ref, dw_b_ref, pw_w_ref, pw_b_ref, xpad_ref,
                    stride=stride, Ho=Ho, Wo=Wo)
    pooled = jnp.mean(y, axis=0, keepdims=True)                # global average pool
    logits = jnp.dot(pooled.astype(jnp.bfloat16), fc_w_ref[...],
                     preferred_element_type=jnp.float32) + fc_b_ref[...]
    o_ref[0] = logits                                          # (1, 1, K) block


def fused_block(x, dw_w, dw_b, pw_w, pw_b, stride):
    """One MobileBlockV1 as a single pallas_call (grid over batch)."""
    N, H, W, Cin = x.shape
    Cout = pw_w.shape[1]
    Ho = (H - 1) // stride + 1
    Wo = (W - 1) // stride + 1
    kernel = functools.partial(_fused_block_kernel, stride=stride, Ho=Ho, Wo=Wo)
    out = pl.pallas_call(
        kernel,
        out_shape=jax.ShapeDtypeStruct((N, Ho * Wo, Cout), jnp.float32),
        grid=(N,),
        in_specs=[
            pl.BlockSpec((1, H, W, Cin), lambda n: (n, 0, 0, 0)),
            pl.BlockSpec((3, 3, Cin), lambda n: (0, 0, 0)),
            pl.BlockSpec((1, Cin), lambda n: (0, 0)),
            pl.BlockSpec((Cin, Cout), lambda n: (0, 0)),
            pl.BlockSpec((1, Cout), lambda n: (0, 0)),
        ],
        out_specs=pl.BlockSpec((1, Ho * Wo, Cout), lambda n: (n, 0, 0)),
        scratch_shapes=[pltpu.VMEM((H + 2, W + 2, Cin), jnp.float32)],
        compiler_params=pltpu.CompilerParams(dimension_semantics=("parallel",)),
    )(x, dw_w, dw_b.reshape(1, -1), pw_w, pw_b.reshape(1, -1))
    return out.reshape(N, Ho, Wo, Cout)


def fused_final_block(x, dw_w, dw_b, pw_w, pw_b, fc_w, fc_b, stride):
    """Last block + global average pool + classifier in one pallas_call."""
    N, H, W, Cin = x.shape
    Cout = pw_w.shape[1]
    K = fc_w.shape[1]
    Ho = (H - 1) // stride + 1
    Wo = (W - 1) // stride + 1
    kernel = functools.partial(_fused_final_kernel, stride=stride, Ho=Ho, Wo=Wo)
    out = pl.pallas_call(
        kernel,
        out_shape=jax.ShapeDtypeStruct((N, 1, K), jnp.float32),
        grid=(N,),
        in_specs=[
            pl.BlockSpec((1, H, W, Cin), lambda n: (n, 0, 0, 0)),
            pl.BlockSpec((3, 3, Cin), lambda n: (0, 0, 0)),
            pl.BlockSpec((1, Cin), lambda n: (0, 0)),
            pl.BlockSpec((Cin, Cout), lambda n: (0, 0)),
            pl.BlockSpec((1, Cout), lambda n: (0, 0)),
            pl.BlockSpec((Cout, K), lambda n: (0, 0)),
            pl.BlockSpec((1, K), lambda n: (0, 0)),
        ],
        out_specs=pl.BlockSpec((1, 1, K), lambda n: (n, 0, 0)),
        scratch_shapes=[pltpu.VMEM((H + 2, W + 2, Cin), jnp.float32)],
        compiler_params=pltpu.CompilerParams(dimension_semantics=("parallel",)),
    )(x, dw_w, dw_b.reshape(1, -1), pw_w, pw_b.reshape(1, -1),
      fc_w, fc_b.reshape(1, -1))
    return out.reshape(N, K)


# ----------------------------- model glue -----------------------------

def _bn_scale(c):
    # Inference-mode BatchNorm with init values (gamma=1, beta=0, mean=0, var=1)
    # -> y = x / sqrt(1 + eps); bias is 0.
    return jnp.full((c,), 1.0 / jnp.sqrt(1.0 + BN_EPS), jnp.float32)


def init_params(key, num_classes=10, width_multiplier=0.25):
    params = {}
    c_in = make_divisible(BLOCKS[0] * width_multiplier, 8)

    key, k = jax.random.split(key)
    # kaiming_normal_, mode='fan_out', relu  ->  std = sqrt(2 / (C_out * kh * kw))
    stem_w = jax.random.normal(k, (3, 3, 3, c_in), jnp.float32) * jnp.sqrt(2.0 / (c_in * 9))
    stem_w = stem_w * _bn_scale(c_in)[None, None, None, :]          # fold BN scale
    params["stem_w"] = stem_w.reshape(27, c_in).astype(jnp.bfloat16)  # (kh,kw,cin) x cout
    params["stem_b"] = jnp.zeros((c_in,), jnp.float32)

    blocks = []
    for out_c, num_blocks, strides in BLOCKS[1:]:
        out_c = make_divisible(out_c * width_multiplier, 8)
        for _stride in [strides] + [1] * (num_blocks - 1):
            key, k1, k2 = jax.random.split(key, 3)
            dw_w = jax.random.normal(k1, (3, 3, c_in), jnp.float32) * jnp.sqrt(2.0 / (c_in * 9))
            pw_w = jax.random.normal(k2, (c_in, out_c), jnp.float32) * jnp.sqrt(2.0 / out_c)
            blocks.append(dict(
                dw_w=dw_w * _bn_scale(c_in)[None, None, :],          # BN folded, f32 (VPU)
                dw_b=jnp.zeros((c_in,), jnp.float32),
                pw_w=(pw_w * _bn_scale(out_c)[None, :]).astype(jnp.bfloat16),  # BN folded, bf16 (MXU)
                pw_b=jnp.zeros((out_c,), jnp.float32),
            ))
            c_in = out_c
    params["blocks"] = blocks

    key, k = jax.random.split(key)
    params["fc_w"] = (jax.random.normal(k, (c_in, num_classes), jnp.float32) * 0.01).astype(jnp.bfloat16)
    params["fc_b"] = jnp.zeros((num_classes,), jnp.float32)
    return params


def stem_conv(x, w2, bias, stride=2):
    # x: (N, H, W, 3) NHWC; w2: (27, C_out) bf16, BN scale folded.
    # im2col (cheap XLA glue on the tiny 3-channel input), matmul fused in Pallas.
    N, H, W, Cin = x.shape
    Cout = w2.shape[1]
    xp = jnp.pad(x, ((0, 0), (1, 1), (1, 1), (0, 0)))
    Ho = (H - 1) // stride + 1
    Wo = (W - 1) // stride + 1
    cols = []
    for kh in range(3):
        for kw in range(3):
            cols.append(xp[:, kh:kh + (Ho - 1) * stride + 1:stride,
                           kw:kw + (Wo - 1) * stride + 1:stride, :])
    patches = jnp.concatenate(cols, axis=-1).reshape(N * Ho * Wo, 9 * Cin)
    y = matmul_bias_relu(patches, w2, bias)
    return y.reshape(N, Ho, Wo, Cout)


@jax.jit
def mobilenet_v1_forward(params, x_nchw):
    x = jnp.transpose(x_nchw, (0, 2, 3, 1)).astype(jnp.float32)     # NCHW -> NHWC
    x = stem_conv(x, params["stem_w"], params["stem_b"], stride=2)
    blocks = params["blocks"]
    assert len(blocks) == len(BLOCK_STRIDES)
    logits = None
    for i, (blk, stride) in enumerate(zip(blocks, BLOCK_STRIDES)):
        if i < len(blocks) - 1:
            x = fused_block(x, blk["dw_w"], blk["dw_b"], blk["pw_w"], blk["pw_b"], stride)
        else:
            # last block: depthwise + pointwise + global avg pool + fc, fused.
            logits = fused_final_block(x, blk["dw_w"], blk["dw_b"], blk["pw_w"],
                                       blk["pw_b"], params["fc_w"], params["fc_b"], stride)
    return logits


if __name__ == "__main__":
    key = jax.random.PRNGKey(0)
    pkey, xkey = jax.random.split(key)
    num_classes = 10
    params = init_params(pkey, num_classes=num_classes, width_multiplier=0.25)
    x = jax.random.normal(xkey, (2, 3, 32, 32), jnp.float32)  # NCHW like PyTorch
    logits = mobilenet_v1_forward(params, x)
    jax.block_until_ready(logits)
    assert logits.shape == (2, num_classes)
    assert bool(jnp.all(jnp.isfinite(logits)))
    print("KERNEL_OK")
</pallas_src>

<mosaic_0001>
module attributes {stable_mosaic.version = 11 : i64} {
  func.func @_matmul_bias_relu_kernel(%arg0: i32, %arg1: memref<512x27xbf16, #tpu.memory_space<vmem>>, %arg2: memref<27x8xbf16, #tpu.memory_space<vmem>>, %arg3: memref<1x8xf32, #tpu.memory_space<vmem>>, %arg4: memref<512x8xf32, #tpu.memory_space<vmem>>) attributes {dimension_semantics = [#tpu.dimension_semantics<parallel>], iteration_bounds = array<i64: 1>, scalar_prefetch = 0 : i64, scratch_operands = 0 : i64, tpu.core_type = #tpu.core_type<tc>, window_params = [{transform_indices = @transform_0, window_bounds = array<i64: 512, 27>}, {pipeline_mode = #tpu.pipeline_mode<synchronous>, transform_indices = @transform_1, window_bounds = array<i64: 27, 8>}, {pipeline_mode = #tpu.pipeline_mode<synchronous>, transform_indices = @transform_2, window_bounds = array<i64: 1, 8>}, {transform_indices = @transform_3, window_bounds = array<i64: 512, 8>}]} {
    %c0 = arith.constant 0 : index
    %c0_0 = arith.constant 0 : index
    %0 = vector.load %arg1[%c0, %c0_0] : memref<512x27xbf16, #tpu.memory_space<vmem>>, vector<512x27xbf16>
    %c0_1 = arith.constant 0 : index
    %c0_2 = arith.constant 0 : index
    %1 = vector.load %arg2[%c0_1, %c0_2] : memref<27x8xbf16, #tpu.memory_space<vmem>>, vector<27x8xbf16>
    %cst = arith.constant dense<0.000000e+00> : vector<512x8xf32>
    %2 = tpu.matmul %0, %1, %cst {dimension_numbers = #tpu.dot_dimension_numbers<[1], [0], [0], [1], [0, 0, 1, 1], [], []>} : vector<512x27xbf16>, vector<27x8xbf16>, vector<512x8xf32> -> vector<512x8xf32>
    %c0_3 = arith.constant 0 : index
    %c0_4 = arith.constant 0 : index
    %3 = vector.load %arg3[%c0_3, %c0_4] : memref<1x8xf32, #tpu.memory_space<vmem>>, vector<1x8xf32>
    %4 = vector.broadcast %3 : vector<1x8xf32> to vector<512x8xf32>
    %5 = arith.addf %2, %4 : vector<512x8xf32>
    %cst_5 = arith.constant 0.000000e+00 : f32
    %6 = vector.broadcast %cst_5 : f32 to vector<512x8xf32>
    %7 = arith.maximumf %5, %6 : vector<512x8xf32>
    %c0_6 = arith.constant 0 : index
    %c0_7 = arith.constant 0 : index
    %8 = vector.load %arg4[%c0_6, %c0_7] : memref<512x8xf32, #tpu.memory_space<vmem>>, vector<512x8xf32>
    tpu.vector_store %arg4[%c0_6, %c0_7], %7 {strides = array<i32>} : memref<512x8xf32, #tpu.memory_space<vmem>>, vector<512x8xf32>,
    return
  }
  func.func @transform_0(%arg0: i32) -> (i32, i32) {
    %c0_i32 = arith.constant 0 : i32
    %c0_i32_0 = arith.constant 0 : i32
    return %arg0, %c0_i32 : i32, i32
  }
  func.func @transform_1(%arg0: i32) -> (i32, i32) {
    %c0_i32 = arith.constant 0 : i32
    %c0_i32_0 = arith.constant 0 : i32
    %c0_i32_1 = arith.constant 0 : i32
    return %c0_i32, %c0_i32_0 : i32, i32
  }
  func.func @transform_2(%arg0: i32) -> (i32, i32) {
    %c0_i32 = arith.constant 0 : i32
    %c0_i32_0 = arith.constant 0 : i32
    %c0_i32_1 = arith.constant 0 : i32
    return %c0_i32, %c0_i32_0 : i32, i32
  }
  func.func @transform_3(%arg0: i32) -> (i32, i32) {
    %c0_i32 = arith.constant 0 : i32
    %c0_i32_0 = arith.constant 0 : i32
    return %arg0, %c0_i32 : i32, i32
  }
}

module attributes {stable_mosaic.version = 11 : i64} {
  func.func @_fused_block_kernel(%arg0: i32, %arg1: memref<1x16x16x16xf32, #tpu.memory_space<vmem>>, %arg2: memref<3x3x16xf32, #tpu.memory_space<vmem>>, %arg3: memref<1x16xf32, #tpu.memory_space<vmem>>, %arg4: memref<16x32xbf16, #tpu.memory_space<vmem>>, %arg5: memref<1x32xf32, #tpu.memory_space<vmem>>, %arg6: memref<1x64x32xf32, #tpu.memory_space<vmem>>, %arg7: memref<18x18x16xf32, #tpu.memory_space<vmem>>) attributes {dimension_semantics = [#tpu.dimension_semantics<parallel>], iteration_bounds = array<i64: 2>, scalar_prefetch = 0 : i64, scratch_operands = 1 : i64, tpu.core_type = #tpu.core_type<tc>, window_params = [{transform_indices = @transform_0, window_bounds = array<i64: 1, 16, 16, 16>}, {pipeline_mode = #tpu.pipeline_mode<synchronous>, transform_indices = @transform_1, window_bounds = array<i64: 3, 3, 16>}, {pipeline_mode = #tpu.pipeline_mode<synchronous>, transform_indices = @transform_2, window_bounds = array<i64: 1, 16>}, {pipeline_mode = #tpu.pipeline_mode<synchronous>, transform_indices = @transform_3, window_bounds = array<i64: 16, 32>}, {pipeline_mode = #tpu.pipeline_mode<synchronous>, transform_indices = @transform_4, window_bounds = array<i64: 1, 32>}, {transform_indices = @transform_5, window_bounds = array<i64: 1, 64, 32>}]} {
    %cst = arith.constant 0.000000e+00 : f32
    %0 = vector.broadcast %cst : f32 to vector<18x18x16xf32>
    %c0 = arith.constant 0 : index
    %c0_0 = arith.constant 0 : index
    %c0_1 = arith.constant 0 : index
    %1 = vector.load %arg7[%c0, %c0_0, %c0_1] : memref<18x18x16xf32, #tpu.memory_space<vmem>>, vector<18x18x16xf32>
    tpu.vector_store %arg7[%c0, %c0_0, %c0_1], %0 {strides = array<i32>} : memref<18x18x16xf32, #tpu.memory_space<vmem>>, vector<18x18x16xf32>,
    %c0_2 = arith.constant 0 : index
    %c0_3 = arith.constant 0 : index
    %c0_4 = arith.constant 0 : index
    %c0_5 = arith.constant 0 : index
    %2 = vector.load %arg1[%c0_2, %c0_3, %c0_4, %c0_5] : memref<1x16x16x16xf32, #tpu.memory_space<vmem>>, vector<1x16x16x16xf32>
    %3 = vector.shape_cast %2 : vector<1x16x16x16xf32> to vector<16x16x16xf32>
    %c1 = arith.constant 1 : index
    %c1_6 = arith.constant 1 : index
    %c0_7 = arith.constant 0 : index
    %4 = vector.load %arg7[%c1, %c1_6, %c0_7] : memref<18x18x16xf32, #tpu.memory_space<vmem>>, vector<16x16x16xf32>
    tpu.vector_store %arg7[%c1, %c1_6, %c0_7], %3 {strides = array<i32>} : memref<18x18x16xf32, #tpu.memory_space<vmem>>, vector<16x16x16xf32>,
    %c0_8 = arith.constant 0 : index
    %c0_9 = arith.constant 0 : index
    %c0_10 = arith.constant 0 : index
    %5 = vector.load %arg2[%c0_8, %c0_9, %c0_10] : memref<3x3x16xf32, #tpu.memory_space<vmem>>, vector<3x3x16xf32>
    %cst_11 = arith.constant 0.000000e+00 : f32
    %6 = vector.broadcast %cst_11 : f32 to vector<8x8x16xf32>
    %c0_12 = arith.constant 0 : index
    %c0_13 = arith.constant 0 : index
    %c0_14 = arith.constant 0 : index
    %7 = tpu.strided_load %arg7[%c0_12, %c0_13, %c0_14] {strides = array<i32: 2, 2, 1>} : memref<18x18x16xf32, #tpu.memory_space<vmem>>, vector<8x8x16xf32>
    %8 = vector.extract_strided_slice %5 {offsets = [0, 0, 0], sizes = [1, 1, 16], strides = [1, 1, 1]} : vector<3x3x16xf32> to vector<1x1x16xf32>
    %9 = vector.shape_cast %8 : vector<1x1x16xf32> to vector<16xf32>
    %10 = vector.shape_cast %9 : vector<16xf32> to vector<1x1x16xf32>
    %11 = vector.broadcast %10 : vector<1x1x16xf32> to vector<8x8x16xf32>
    %12 = arith.mulf %7, %11 : vector<8x8x16xf32>
    %13 = arith.addf %6, %12 : vector<8x8x16xf32>
    %c0_15 = arith.constant 0 : index
    %c1_16 = arith.constant 1 : index
    %c0_17 = arith.constant 0 : index
    %14 = tpu.strided_load %arg7[%c0_15, %c1_16, %c0_17] {strides = array<i32: 2, 2, 1>} : memref<18x18x16xf32, #tpu.memory_space<vmem>>, vector<8x8x16xf32>
    %15 = vector.extract_strided_slice %5 {offsets = [0, 1, 0], sizes = [1, 1, 16], strides = [1, 1, 1]} : vector<3x3x16xf32> to vector<1x1x16xf32>
    %16 = vector.shape_cast %15 : vector<1x1x16xf32> to vector<16xf32>
    %17 = vector.shape_cast %16 : vector<16xf32> to vector<1x1x16xf32>
    %18 = vector.broadcast %17 : vector<1x1x16xf32> to vector<8x8x16xf32>
    %19 = arith.mulf %14, %18 : vector<8x8x16xf32>
    %20 = arith.addf %13, %19 : vector<8x8x16xf32>
    %c0_18 = arith.constant 0 : index
    %c2 = arith.constant 2 : index
    %c0_19 = arith.constant 0 : index
    %21 = tpu.strided_load %arg7[%c0_18, %c2, %c0_19] {strides = array<i32: 2, 2, 1>} : memref<18x18x16xf32, #tpu.memory_space<vmem>>, vector<8x8x16xf32>
    %22 = vector.extract_strided_slice %5 {offsets = [0, 2, 0], sizes = [1, 1, 16], strides = [1, 1, 1]} : vector<3x3x16xf32> to vector<1x1x16xf32>
    %23 = vector.shape_cast %22 : vector<1x1x16xf32> to vector<16xf32>
    %24 = vector.shape_cast %23 : vector<16xf32> to vector<1x1x16xf32>
    %25 = vector.broadcast %24 : vector<1x1x16xf32> to vector<8x8x16xf32>
    %26 = arith.mulf %21, %25 : vector<8x8x16xf32>
    %27 = arith.addf %20, %26 : vector<8x8x16xf32>
    %c1_20 = arith.constant 1 : index
    %c0_21 = arith.constant 0 : index
    %c0_22 = arith.constant 0 : index
    %28 = tpu.strided_load %arg7[%c1_20, %c0_21, %c0_22] {strides = array<i32: 2, 2, 1>} : memref<18x18x16xf32, #tpu.memory_space<vmem>>, vector<8x8x16xf32>
    %29 = vector.extract_strided_slice %5 {offsets = [1, 0, 0], sizes = [1, 1, 16], strides = [1, 1, 1]} : vector<3x3x16xf32> to vector<1x1x16xf32>
    %30 = vector.shape_cast %29 : vector<1x1x16xf32> to vector<16xf32>
    %31 = vector.shape_cast %30 : vector<16xf32> to vector<1x1x16xf32>
    %32 = vector.broadcast %31 : vector<1x1x16xf32> to vector<8x8x16xf32>
    %33 = arith.mulf %28, %32 : vector<8x8x16xf32>
    %34 = arith.addf %27, %33 : vector<8x8x16xf32>
    %c1_23 = arith.constant 1 : index
    %c1_24 = arith.constant 1 : index
    %c0_25 = arith.constant 0 : index
    %35 = tpu.strided_load %arg7[%c1_23, %c1_24, %c0_25] {strides = array<i32: 2, 2, 1>} : memref<18x18x16xf32, #tpu.memory_space<vmem>>, vector<8x8x16xf32>
    %36 = vector.extract_strided_slice %5 {offsets = [1, 1, 0], sizes = [1, 1, 16], strides = [1, 1, 1]} : vector<3x3x16xf32> to vector<1x1x16xf32>
    %37 = vector.shape_cast %36 : vector<1x1x16xf32> to vector<16xf32>
    %38 = vector.shape_cast %37 : vector<16xf32> to vector<1x1x16xf32>
    %39 = vector.broadcast %38 : vector<1x1x16xf32> to vector<8x8x16xf32>
    %40 = arith.mulf %35, %39 : vector<8x8x16xf32>
    %41 = arith.addf %34, %40 : vector<8x8x16xf32>
    %c1_26 = arith.constant 1 : index
    %c2_27 = arith.constant 2 : index
    %c0_28 = arith.constant 0 : index
    %42 = tpu.strided_load %arg7[%c1_26, %c2_27, %c0_28] {strides = array<i32: 2, 2, 1>} : memref<18x18x16xf32, #tpu.memory_space<vmem>>, vector<8x8x16xf32>
    %43 = vector.extract_strided_slice %5 {offsets = [1, 2, 0], sizes = [1, 1, 16], strides = [1, 1, 1]} : vector<3x3x16xf32> to vector<1x1x16xf32>
    %44 = vector.shape_cast %43 : vector<1x1x16xf32> to vector<16xf32>
    %45 = vector.shape_cast %44 : vector<16xf32> to vector<1x1x16xf32>
    %46 = vector.broadcast %45 : vector<1x1x16xf32> to vector<8x8x16xf32>
    %47 = arith.mulf %42, %46 : vector<8x8x16xf32>
    %48 = arith.addf %41, %47 : vector<8x8x16xf32>
    %c2_29 = arith.constant 2 : index
    %c0_30 = arith.constant 0 : index
    %c0_31 = arith.constant 0 : index
    %49 = tpu.strided_load %arg7[%c2_29, %c0_30, %c0_31] {strides = array<i32: 2, 2, 1>} : memref<18x18x16xf32, #tpu.memory_space<vmem>>, vector<8x8x16xf32>
    %50 = vector.extract_strided_slice %5 {offsets = [2, 0, 0], sizes = [1, 1, 16], strides = [1, 1, 1]} : vector<3x3x16xf32> to vector<1x1x16xf32>
    %51 = vector.shape_cast %50 : vector<1x1x16xf32> to vector<16xf32>
    %52 = vector.shape_cast %51 : vector<16xf32> to vector<1x1x16xf32>
    %53 = vector.broadcast %52 : vector<1x1x16xf32> to vector<8x8x16xf32>
    %54 = arith.mulf %49, %53 : vector<8x8x16xf32>
    %55 = arith.addf %48, %54 : vector<8x8x16xf32>
    %c2_32 = arith.constant 2 : index
    %c1_33 = arith.constant 1 : index
    %c0_34 = arith.constant 0 : index
    %56 = tpu.strided_load %arg7[%c2_32, %c1_33, %c0_34] {strides = array<i32: 2, 2, 1>} : memref<18x18x16xf32, #tpu.memory_space<vmem>>, vector<8x8x16xf32>
    %57 = vector.extract_strided_slice %5 {offsets = [2, 1, 0], sizes = [1, 1, 16], strides = [1, 1, 1]} : vector<3x3x16xf32> to vector<1x1x16xf32>
    %58 = vector.shape_cast %57 : vector<1x1x16xf32> to vector<16xf32>
    %59 = vector.shape_cast %58 : vector<16xf32> to vector<1x1x16xf32>
    %60 = vector.broadcast %59 : vector<1x1x16xf32> to vector<8x8x16xf32>
    %61 = arith.mulf %56, %60 : vector<8x8x16xf32>
    %62 = arith.addf %55, %61 : vector<8x8x16xf32>
    %c2_35 = arith.constant 2 : index
    %c2_36 = arith.constant 2 : index
    %c0_37 = arith.constant 0 : index
    %63 = tpu.strided_load %arg7[%c2_35, %c2_36, %c0_37] {strides = array<i32: 2, 2, 1>} : memref<18x18x16xf32, #tpu.memory_space<vmem>>, vector<8x8x16xf32>
    %64 = vector.extract_strided_slice %5 {offsets = [2, 2, 0], sizes = [1, 1, 16], strides = [1, 1, 1]} : vector<3x3x16xf32> to vector<1x1x16xf32>
    %65 = vector.shape_cast %64 : vector<1x1x16xf32> to vector<16xf32>
    %66 = vector.shape_cast %65 : vector<16xf32> to vector<1x1x16xf32>
    %67 = vector.broadcast %66 : vector<1x1x16xf32> to vector<8x8x16xf32>
    %68 = arith.mulf %63, %67 : vector<8x8x16xf32>
    %69 = arith.addf %62, %68 : vector<8x8x16xf32>
    %c0_38 = arith.constant 0 : index
    %c0_39 = arith.constant 0 : index
    %70 = vector.load %arg3[%c0_38, %c0_39] : memref<1x16xf32, #tpu.memory_space<vmem>>, vector<1x16xf32>
    %71 = vector.shape_cast %70 : vector<1x16xf32> to vector<1x1x16xf32>
    %72 = vector.broadcast %71 : vector<1x1x16xf32> to vector<8x8x16xf32>
    %73 = arith.addf %69, %72 : vector<8x8x16xf32>
    %cst_40 = arith.constant 0.000000e+00 : f32
    %74 = vector.broadcast %cst_40 : f32 to vector<8x8x16xf32>
    %75 = arith.maximumf %73, %74 : vector<8x8x16xf32>
    %76 = vector.shape_cast %75 : vector<8x8x16xf32> to vector<64x16xf32>
    %77 = arith.truncf %76 : vector<64x16xf32> to vector<64x16xbf16>
    %c0_41 = arith.constant 0 : index
    %c0_42 = arith.constant 0 : index
    %78 = vector.load %arg4[%c0_41, %c0_42] : memref<16x32xbf16, #tpu.memory_space<vmem>>, vector<16x32xbf16>
    %cst_43 = arith.constant dense<0.000000e+00> : vector<64x32xf32>
    %79 = tpu.matmul %77, %78, %cst_43 {dimension_numbers = #tpu.dot_dimension_numbers<[1], [0], [0], [1], [0, 0, 1, 1], [], []>} : vector<64x16xbf16>, vector<16x32xbf16>, vector<64x32xf32> -> vector<64x32xf32>
    %c0_44 = arith.constant 0 : index
    %c0_45 = arith.constant 0 : index
    %80 = vector.load %arg5[%c0_44, %c0_45] : memref<1x32xf32, #tpu.memory_space<vmem>>, vector<1x32xf32>
    %81 = vector.broadcast %80 : vector<1x32xf32> to vector<64x32xf32>
    %82 = arith.addf %79, %81 : vector<64x32xf32>
    %cst_46 = arith.constant 0.000000e+00 : f32
    %83 = vector.broadcast %cst_46 : f32 to vector<64x32xf32>
    %84 = arith.maximumf %82, %83 : vector<64x32xf32>
    %c0_47 = arith.constant 0 : index
    %c0_48 = arith.constant 0 : index
    %c0_49 = arith.constant 0 : index
    %85 = vector.load %arg6[%c0_47, %c0_48, %c0_49] : memref<1x64x32xf32, #tpu.memory_space<vmem>>, vector<1x64x32xf32>
    %86 = vector.shape_cast %85 : vector<1x64x32xf32> to vector<64x32xf32>
    %87 = vector.shape_cast %84 : vector<64x32xf32> to vector<1x64x32xf32>
    tpu.vector_store %arg6[%c0_47, %c0_48, %c0_49], %87 {strides = array<i32>} : memref<1x64x32xf32, #tpu.memory_space<vmem>>, vector<1x64x32xf32>,
    return
  }
  func.func @transform_0(%arg0: i32) -> (i32, i32, i32, i32) {
    %c0_i32 = arith.constant 0 : i32
    %c0_i32_0 = arith.constant 0 : i32
    %c0_i32_1 = arith.constant 0 : i32
    %c0_i32_2 = arith.constant 0 : i32
    return %arg0, %c0_i32, %c0_i32_0, %c0_i32_1 : i32, i32, i32, i32
  }
  func.func @transform_1(%arg0: i32) -> (i32, i32, i32) {
    %c0_i32 = arith.constant 0 : i32
    %c0_i32_0 = arith.constant 0 : i32
    %c0_i32_1 = arith.constant 0 : i32
    %c0_i32_2 = arith.constant 0 : i32
    return %c0_i32, %c0_i32_0, %c0_i32_1 : i32, i32, i32
  }
  func.func @transform_2(%arg0: i32) -> (i32, i32) {
    %c0_i32 = arith.constant 0 : i32
    %c0_i32_0 = arith.constant 0 : i32
    %c0_i32_1 = arith.constant 0 : i32
    return %c0_i32, %c0_i32_0 : i32, i32
  }
  func.func @transform_3(%arg0: i32) -> (i32, i32) {
    %c0_i32 = arith.constant 0 : i32
    %c0_i32_0 = arith.constant 0 : i32
    %c0_i32_1 = arith.constant 0 : i32
    return %c0_i32, %c0_i32_0 : i32, i32
  }
  func.func @transform_4(%arg0: i32) -> (i32, i32) {
    %c0_i32 = arith.constant 0 : i32
    %c0_i32_0 = arith.constant 0 : i32
    %c0_i32_1 = arith.constant 0 : i32
    return %c0_i32, %c0_i32_0 : i32, i32
  }
  func.func @transform_5(%arg0: i32) -> (i32, i32, i32) {
    %c0_i32 = arith.constant 0 : i32
    %c0_i32_0 = arith.constant 0 : i32
    %c0_i32_1 = arith.constant 0 : i32
    return %arg0, %c0_i32, %c0_i32_0 : i32, i32, i32
  }
}

module attributes {stable_mosaic.version = 11 : i64} {
  func.func @_fused_block_kernel(%arg0: i32, %arg1: memref<1x16x16x8xf32, #tpu.memory_space<vmem>>, %arg2: memref<3x3x8xf32, #tpu.memory_space<vmem>>, %arg3: memref<1x8xf32, #tpu.memory_space<vmem>>, %arg4: memref<8x16xbf16, #tpu.memory_space<vmem>>, %arg5: memref<1x16xf32, #tpu.memory_space<vmem>>, %arg6: memref<1x256x16xf32, #tpu.memory_space<vmem>>, %arg7: memref<18x18x8xf32, #tpu.memory_space<vmem>>) attributes {dimension_semantics = [#tpu.dimension_semantics<parallel>], iteration_bounds = array<i64: 2>, scalar_prefetch = 0 : i64, scratch_operands = 1 : i64, tpu.core_type = #tpu.core_type<tc>, window_params = [{transform_indices = @transform_0, window_bounds = array<i64: 1, 16, 16, 8>}, {pipeline_mode = #tpu.pipeline_mode<synchronous>, transform_indices = @transform_1, window_bounds = array<i64: 3, 3, 8>}, {pipeline_mode = #tpu.pipeline_mode<synchronous>, transform_indices = @transform_2, window_bounds = array<i64: 1, 8>}, {pipeline_mode = #tpu.pipeline_mode<synchronous>, transform_indices = @transform_3, window_bounds = array<i64: 8, 16>}, {pipeline_mode = #tpu.pipeline_mode<synchronous>, transform_indices = @transform_4, window_bounds = array<i64: 1, 16>}, {transform_indices = @transform_5, window_bounds = array<i64: 1, 256, 16>}]} {
    %cst = arith.constant 0.000000e+00 : f32
    %0 = vector.broadcast %cst : f32 to vector<18x18x8xf32>
    %c0 = arith.constant 0 : index
    %c0_0 = arith.constant 0 : index
    %c0_1 = arith.constant 0 : index
    %1 = vector.load %arg7[%c0, %c0_0, %c0_1] : memref<18x18x8xf32, #tpu.memory_space<vmem>>, vector<18x18x8xf32>
    tpu.vector_store %arg7[%c0, %c0_0, %c0_1], %0 {strides = array<i32>} : memref<18x18x8xf32, #tpu.memory_space<vmem>>, vector<18x18x8xf32>,
    %c0_2 = arith.constant 0 : index
    %c0_3 = arith.constant 0 : index
    %c0_4 = arith.constant 0 : index
    %c0_5 = arith.constant 0 : index
    %2 = vector.load %arg1[%c0_2, %c0_3, %c0_4, %c0_5] : memref<1x16x16x8xf32, #tpu.memory_space<vmem>>, vector<1x16x16x8xf32>
    %3 = vector.shape_cast %2 : vector<1x16x16x8xf32> to vector<16x16x8xf32>
    %c1 = arith.constant 1 : index
    %c1_6 = arith.constant 1 : index
    %c0_7 = arith.constant 0 : index
    %4 = vector.load %arg7[%c1, %c1_6, %c0_7] : memref<18x18x8xf32, #tpu.memory_space<vmem>>, vector<16x16x8xf32>
    tpu.vector_store %arg7[%c1, %c1_6, %c0_7], %3 {strides = array<i32>} : memref<18x18x8xf32, #tpu.memory_space<vmem>>, vector<16x16x8xf32>,
    %c0_8 = arith.constant 0 : index
    %c0_9 = arith.constant 0 : index
    %c0_10 = arith.constant 0 : index
    %5 = vector.load %arg2[%c0_8, %c0_9, %c0_10] : memref<3x3x8xf32, #tpu.memory_space<vmem>>, vector<3x3x8xf32>
    %cst_11 = arith.constant 0.000000e+00 : f32
    %6 = vector.broadcast %cst_11 : f32 to vector<16x16x8xf32>
    %c0_12 = arith.constant 0 : index
    %c0_13 = arith.constant 0 : index
    %c0_14 = arith.constant 0 : index
    %7 = vector.load %arg7[%c0_12, %c0_13, %c0_14] : memref<18x18x8xf32, #tpu.memory_space<vmem>>, vector<16x16x8xf32>
    %8 = vector.extract_strided_slice %5 {offsets = [0, 0, 0], sizes = [1, 1, 8], strides = [1, 1, 1]} : vector<3x3x8xf32> to vector<1x1x8xf32>
    %9 = vector.shape_cast %8 : vector<1x1x8xf32> to vector<8xf32>
    %10 = vector.shape_cast %9 : vector<8xf32> to vector<1x1x8xf32>
    %11 = vector.broadcast %10 : vector<1x1x8xf32> to vector<16x16x8xf32>
    %12 = arith.mulf %7, %11 : vector<16x16x8xf32>
    %13 = arith.addf %6, %12 : vector<16x16x8xf32>
    %c0_15 = arith.constant 0 : index
    %c1_16 = arith.constant 1 : index
    %c0_17 = arith.constant 0 : index
    %14 = vector.load %arg7[%c0_15, %c1_16, %c0_17] : memref<18x18x8xf32, #tpu.memory_space<vmem>>, vector<16x16x8xf32>
    %15 = vector.extract_strided_slice %5 {offsets = [0, 1, 0], sizes = [1, 1, 8], strides = [1, 1, 1]} : vector<3x3x8xf32> to vector<1x1x8xf32>
    %16 = vector.shape_cast %15 : vector<1x1x8xf32> to vector<8xf32>
    %17 = vector.shape_cast %16 : vector<8xf32> to vector<1x1x8xf32>
    %18 = vector.broadcast %17 : vector<1x1x8xf32> to vector<16x16x8xf32>
    %19 = arith.mulf %14, %18 : vector<16x16x8xf32>
    %20 = arith.addf %13, %19 : vector<16x16x8xf32>
    %c0_18 = arith.constant 0 : index
    %c2 = arith.constant 2 : index
    %c0_19 = arith.constant 0 : index
    %21 = vector.load %arg7[%c0_18, %c2, %c0_19] : memref<18x18x8xf32, #tpu.memory_space<vmem>>, vector<16x16x8xf32>
    %22 = vector.extract_strided_slice %5 {offsets = [0, 2, 0], sizes = [1, 1, 8], strides = [1, 1, 1]} : vector<3x3x8xf32> to vector<1x1x8xf32>
    %23 = vector.shape_cast %22 : vector<1x1x8xf32> to vector<8xf32>
    %24 = vector.shape_cast %23 : vector<8xf32> to vector<1x1x8xf32>
    %25 = vector.broadcast %24 : vector<1x1x8xf32> to vector<16x16x8xf32>
    %26 = arith.mulf %21, %25 : vector<16x16x8xf32>
    %27 = arith.addf %20, %26 : vector<16x16x8xf32>
    %c1_20 = arith.constant 1 : index
    %c0_21 = arith.constant 0 : index
    %c0_22 = arith.constant 0 : index
    %28 = vector.load %arg7[%c1_20, %c0_21, %c0_22] : memref<18x18x8xf32, #tpu.memory_space<vmem>>, vector<16x16x8xf32>
    %29 = vector.extract_strided_slice %5 {offsets = [1, 0, 0], sizes = [1, 1, 8], strides = [1, 1, 1]} : vector<3x3x8xf32> to vector<1x1x8xf32>
    %30 = vector.shape_cast %29 : vector<1x1x8xf32> to vector<8xf32>
    %31 = vector.shape_cast %30 : vector<8xf32> to vector<1x1x8xf32>
    %32 = vector.broadcast %31 : vector<1x1x8xf32> to vector<16x16x8xf32>
    %33 = arith.mulf %28, %32 : vector<16x16x8xf32>
    %34 = arith.addf %27, %33 : vector<16x16x8xf32>
    %c1_23 = arith.constant 1 : index
    %c1_24 = arith.constant 1 : index
    %c0_25 = arith.constant 0 : index
    %35 = vector.load %arg7[%c1_23, %c1_24, %c0_25] : memref<18x18x8xf32, #tpu.memory_space<vmem>>, vector<16x16x8xf32>
    %36 = vector.extract_strided_slice %5 {offsets = [1, 1, 0], sizes = [1, 1, 8], strides = [1, 1, 1]} : vector<3x3x8xf32> to vector<1x1x8xf32>
    %37 = vector.shape_cast %36 : vector<1x1x8xf32> to vector<8xf32>
    %38 = vector.shape_cast %37 : vector<8xf32> to vector<1x1x8xf32>
    %39 = vector.broadcast %38 : vector<1x1x8xf32> to vector<16x16x8xf32>
    %40 = arith.mulf %35, %39 : vector<16x16x8xf32>
    %41 = arith.addf %34, %40 : vector<16x16x8xf32>
    %c1_26 = arith.constant 1 : index
    %c2_27 = arith.constant 2 : index
    %c0_28 = arith.constant 0 : index
    %42 = vector.load %arg7[%c1_26, %c2_27, %c0_28] : memref<18x18x8xf32, #tpu.memory_space<vmem>>, vector<16x16x8xf32>
    %43 = vector.extract_strided_slice %5 {offsets = [1, 2, 0], sizes = [1, 1, 8], strides = [1, 1, 1]} : vector<3x3x8xf32> to vector<1x1x8xf32>
    %44 = vector.shape_cast %43 : vector<1x1x8xf32> to vector<8xf32>
    %45 = vector.shape_cast %44 : vector<8xf32> to vector<1x1x8xf32>
    %46 = vector.broadcast %45 : vector<1x1x8xf32> to vector<16x16x8xf32>
    %47 = arith.mulf %42, %46 : vector<16x16x8xf32>
    %48 = arith.addf %41, %47 : vector<16x16x8xf32>
    %c2_29 = arith.constant 2 : index
    %c0_30 = arith.constant 0 : index
    %c0_31 = arith.constant 0 : index
    %49 = vector.load %arg7[%c2_29, %c0_30, %c0_31] : memref<18x18x8xf32, #tpu.memory_space<vmem>>, vector<16x16x8xf32>
    %50 = vector.extract_strided_slice %5 {offsets = [2, 0, 0], sizes = [1, 1, 8], strides = [1, 1, 1]} : vector<3x3x8xf32> to vector<1x1x8xf32>
    %51 = vector.shape_cast %50 : vector<1x1x8xf32> to vector<8xf32>
    %52 = vector.shape_cast %51 : vector<8xf32> to vector<1x1x8xf32>
    %53 = vector.broadcast %52 : vector<1x1x8xf32> to vector<16x16x8xf32>
    %54 = arith.mulf %49, %53 : vector<16x16x8xf32>
    %55 = arith.addf %48, %54 : vector<16x16x8xf32>
    %c2_32 = arith.constant 2 : index
    %c1_33 = arith.constant 1 : index
    %c0_34 = arith.constant 0 : index
    %56 = vector.load %arg7[%c2_32, %c1_33, %c0_34] : memref<18x18x8xf32, #tpu.memory_space<vmem>>, vector<16x16x8xf32>
    %57 = vector.extract_strided_slice %5 {offsets = [2, 1, 0], sizes = [1, 1, 8], strides = [1, 1, 1]} : vector<3x3x8xf32> to vector<1x1x8xf32>
    %58 = vector.shape_cast %57 : vector<1x1x8xf32> to vector<8xf32>
    %59 = vector.shape_cast %58 : vector<8xf32> to vector<1x1x8xf32>
    %60 = vector.broadcast %59 : vector<1x1x8xf32> to vector<16x16x8xf32>
    %61 = arith.mulf %56, %60 : vector<16x16x8xf32>
    %62 = arith.addf %55, %61 : vector<16x16x8xf32>
    %c2_35 = arith.constant 2 : index
    %c2_36 = arith.constant 2 : index
    %c0_37 = arith.constant 0 : index
    %63 = vector.load %arg7[%c2_35, %c2_36, %c0_37] : memref<18x18x8xf32, #tpu.memory_space<vmem>>, vector<16x16x8xf32>
    %64 = vector.extract_strided_slice %5 {offsets = [2, 2, 0], sizes = [1, 1, 8], strides = [1, 1, 1]} : vector<3x3x8xf32> to vector<1x1x8xf32>
    %65 = vector.shape_cast %64 : vector<1x1x8xf32> to vector<8xf32>
    %66 = vector.shape_cast %65 : vector<8xf32> to vector<1x1x8xf32>
    %67 = vector.broadcast %66 : vector<1x1x8xf32> to vector<16x16x8xf32>
    %68 = arith.mulf %63, %67 : vector<16x16x8xf32>
    %69 = arith.addf %62, %68 : vector<16x16x8xf32>
    %c0_38 = arith.constant 0 : index
    %c0_39 = arith.constant 0 : index
    %70 = vector.load %arg3[%c0_38, %c0_39] : memref<1x8xf32, #tpu.memory_space<vmem>>, vector<1x8xf32>
    %71 = vector.shape_cast %70 : vector<1x8xf32> to vector<1x1x8xf32>
    %72 = vector.broadcast %71 : vector<1x1x8xf32> to vector<16x16x8xf32>
    %73 = arith.addf %69, %72 : vector<16x16x8xf32>
    %cst_40 = arith.constant 0.000000e+00 : f32
    %74 = vector.broadcast %cst_40 : f32 to vector<16x16x8xf32>
    %75 = arith.maximumf %73, %74 : vector<16x16x8xf32>
    %76 = vector.shape_cast %75 : vector<16x16x8xf32> to vector<256x8xf32>
    %77 = arith.truncf %76 : vector<256x8xf32> to vector<256x8xbf16>
    %c0_41 = arith.constant 0 : index
    %c0_42 = arith.constant 0 : index
    %78 = vector.load %arg4[%c0_41, %c0_42] : memref<8x16xbf16, #tpu.memory_space<vmem>>, vector<8x16xbf16>
    %cst_43 = arith.constant dense<0.000000e+00> : vector<256x16xf32>
    %79 = tpu.matmul %77, %78, %cst_43 {dimension_numbers = #tpu.dot_dimension_numbers<[1], [0], [0], [1], [0, 0, 1, 1], [], []>} : vector<256x8xbf16>, vector<8x16xbf16>, vector<256x16xf32> -> vector<256x16xf32>
    %c0_44 = arith.constant 0 : index
    %c0_45 = arith.constant 0 : index
    %80 = vector.load %arg5[%c0_44, %c0_45] : memref<1x16xf32, #tpu.memory_space<vmem>>, vector<1x16xf32>
    %81 = vector.broadcast %80 : vector<1x16xf32> to vector<256x16xf32>
    %82 = arith.addf %79, %81 : vector<256x16xf32>
    %cst_46 = arith.constant 0.000000e+00 : f32
    %83 = vector.broadcast %cst_46 : f32 to vector<256x16xf32>
    %84 = arith.maximumf %82, %83 : vector<256x16xf32>
    %c0_47 = arith.constant 0 : index
    %c0_48 = arith.constant 0 : index
    %c0_49 = arith.constant 0 : index
    %85 = vector.load %arg6[%c0_47, %c0_48, %c0_49] : memref<1x256x16xf32, #tpu.memory_space<vmem>>, vector<1x256x16xf32>
    %86 = vector.shape_cast %85 : vector<1x256x16xf32> to vector<256x16xf32>
    %87 = vector.shape_cast %84 : vector<256x16xf32> to vector<1x256x16xf32>
    tpu.vector_store %arg6[%c0_47, %c0_48, %c0_49], %87 {strides = array<i32>} : memref<1x256x16xf32, #tpu.memory_space<vmem>>, vector<1x256x16xf32>,
    return
  }
  func.func @transform_0(%arg0: i32) -> (i32, i32, i32, i32) {
    %c0_i32 = arith.constant 0 : i32
    %c0_i32_0 = arith.constant 0 : i32
    %c0_i32_1 = arith.constant 0 : i32
    %c0_i32_2 = arith.constant 0 : i32
    return %arg0, %c0_i32, %c0_i32_0, %c0_i32_1 : i32, i32, i32, i32
  }
  func.func @transform_1(%arg0: i32) -> (i32, i32, i32) {
    %c0_i32 = arith.constant 0 : i32
    %c0_i32_0 = arith.constant 0 : i32
    %c0_i32_1 = arith.constant 0 : i32
    %c0_i32_2 = arith.constant 0 : i32
    return %c0_i32, %c0_i32_0, %c0_i32_1 : i32, i32, i32
  }
  func.func @transform_2(%arg0: i32) -> (i32, i32) {
    %c0_i32 = arith.constant 0 : i32
    %c0_i32_0 = arith.constant 0 : i32
    %c0_i32_1 = arith.constant 0 : i32
    return %c0_i32, %c0_i32_0 : i32, i32
  }
  func.func @transform_3(%arg0: i32) -> (i32, i32) {
    %c0_i32 = arith.constant 0 : i32
    %c0_i32_0 = arith.constant 0 : i32
    %c0_i32_1 = arith.constant 0 : i32
    return %c0_i32, %c0_i32_0 : i32, i32
  }
  func.func @transform_4(%arg0: i32) -> (i32, i32) {
    %c0_i32 = arith.constant 0 : i32
    %c0_i32_0 = arith.constant 0 : i32
    %c0_i32_1 = arith.constant 0 : i32
    return %c0_i32, %c0_i32_0 : i32, i32
  }
  func.func @transform_5(%arg0: i32) -> (i32, i32, i32) {
    %c0_i32 = arith.constant 0 : i32
    %c0_i32_0 = arith.constant 0 : i32
    %c0_i32_1 = arith.constant 0 : i32
    return %arg0, %c0_i32, %c0_i32_0 : i32, i32, i32
  }
}

module attributes {stable_mosaic.version = 11 : i64} {
  func.func @_fused_block_kernel(%arg0: i32, %arg1: memref<1x8x8x32xf32, #tpu.memory_space<vmem>>, %arg2: memref<3x3x32xf32, #tpu.memory_space<vmem>>, %arg3: memref<1x32xf32, #tpu.memory_space<vmem>>, %arg4: memref<32x32xbf16, #tpu.memory_space<vmem>>, %arg5: memref<1x32xf32, #tpu.memory_space<vmem>>, %arg6: memref<1x64x32xf32, #tpu.memory_space<vmem>>, %arg7: memref<10x10x32xf32, #tpu.memory_space<vmem>>) attributes {dimension_semantics = [#tpu.dimension_semantics<parallel>], iteration_bounds = array<i64: 2>, scalar_prefetch = 0 : i64, scratch_operands = 1 : i64, tpu.core_type = #tpu.core_type<tc>, window_params = [{transform_indices = @transform_0, window_bounds = array<i64: 1, 8, 8, 32>}, {pipeline_mode = #tpu.pipeline_mode<synchronous>, transform_indices = @transform_1, window_bounds = array<i64: 3, 3, 32>}, {pipeline_mode = #tpu.pipeline_mode<synchronous>, transform_indices = @transform_2, window_bounds = array<i64: 1, 32>}, {pipeline_mode = #tpu.pipeline_mode<synchronous>, transform_indices = @transform_3, window_bounds = array<i64: 32, 32>}, {pipeline_mode = #tpu.pipeline_mode<synchronous>, transform_indices = @transform_4, window_bounds = array<i64: 1, 32>}, {transform_indices = @transform_5, window_bounds = array<i64: 1, 64, 32>}]} {
    %cst = arith.constant 0.000000e+00 : f32
    %0 = vector.broadcast %cst : f32 to vector<10x10x32xf32>
    %c0 = arith.constant 0 : index
    %c0_0 = arith.constant 0 : index
    %c0_1 = arith.constant 0 : index
    %1 = vector.load %arg7[%c0, %c0_0, %c0_1] : memref<10x10x32xf32, #tpu.memory_space<vmem>>, vector<10x10x32xf32>
    tpu.vector_store %arg7[%c0, %c0_0, %c0_1], %0 {strides = array<i32>} : memref<10x10x32xf32, #tpu.memory_space<vmem>>, vector<10x10x32xf32>,
    %c0_2 = arith.constant 0 : index
    %c0_3 = arith.constant 0 : index
    %c0_4 = arith.constant 0 : index
    %c0_5 = arith.constant 0 : index
    %2 = vector.load %arg1[%c0_2, %c0_3, %c0_4, %c0_5] : memref<1x8x8x32xf32, #tpu.memory_space<vmem>>, vector<1x8x8x32xf32>
    %3 = vector.shape_cast %2 : vector<1x8x8x32xf32> to vector<8x8x32xf32>
    %c1 = arith.constant 1 : index
    %c1_6 = arith.constant 1 : index
    %c0_7 = arith.constant 0 : index
    %4 = vector.load %arg7[%c1, %c1_6, %c0_7] : memref<10x10x32xf32, #tpu.memory_space<vmem>>, vector<8x8x32xf32>
    tpu.vector_store %arg7[%c1, %c1_6, %c0_7], %3 {strides = array<i32>} : memref<10x10x32xf32, #tpu.memory_space<vmem>>, vector<8x8x32xf32>,
    %c0_8 = arith.constant 0 : index
    %c0_9 = arith.constant 0 : index
    %c0_10 = arith.constant 0 : index
    %5 = vector.load %arg2[%c0_8, %c0_9, %c0_10] : memref<3x3x32xf32, #tpu.memory_space<vmem>>, vector<3x3x32xf32>
    %cst_11 = arith.constant 0.000000e+00 : f32
    %6 = vector.broadcast %cst_11 : f32 to vector<8x8x32xf32>
    %c0_12 = arith.constant 0 : index
    %c0_13 = arith.constant 0 : index
    %c0_14 = arith.constant 0 : index
    %7 = vector.load %arg7[%c0_12, %c0_13, %c0_14] : memref<10x10x32xf32, #tpu.memory_space<vmem>>, vector<8x8x32xf32>
    %8 = vector.extract_strided_slice %5 {offsets = [0, 0, 0], sizes = [1, 1, 32], strides = [1, 1, 1]} : vector<3x3x32xf32> to vector<1x1x32xf32>
    %9 = vector.shape_cast %8 : vector<1x1x32xf32> to vector<32xf32>
    %10 = vector.shape_cast %9 : vector<32xf32> to vector<1x1x32xf32>
    %11 = vector.broadcast %10 : vector<1x1x32xf32> to vector<8x8x32xf32>
    %12 = arith.mulf %7, %11 : vector<8x8x32xf32>
    %13 = arith.addf %6, %12 : vector<8x8x32xf32>
    %c0_15 = arith.constant 0 : index
    %c1_16 = arith.constant 1 : index
    %c0_17 = arith.constant 0 : index
    %14 = vector.load %arg7[%c0_15, %c1_16, %c0_17] : memref<10x10x32xf32, #tpu.memory_space<vmem>>, vector<8x8x32xf32>
    %15 = vector.extract_strided_slice %5 {offsets = [0, 1, 0], sizes = [1, 1, 32], strides = [1, 1, 1]} : vector<3x3x32xf32> to vector<1x1x32xf32>
    %16 = vector.shape_cast %15 : vector<1x1x32xf32> to vector<32xf32>
    %17 = vector.shape_cast %16 : vector<32xf32> to vector<1x1x32xf32>
    %18 = vector.broadcast %17 : vector<1x1x32xf32> to vector<8x8x32xf32>
    %19 = arith.mulf %14, %18 : vector<8x8x32xf32>
    %20 = arith.addf %13, %19 : vector<8x8x32xf32>
    %c0_18 = arith.constant 0 : index
    %c2 = arith.constant 2 : index
    %c0_19 = arith.constant 0 : index
    %21 = vector.load %arg7[%c0_18, %c2, %c0_19] : memref<10x10x32xf32, #tpu.memory_space<vmem>>, vector<8x8x32xf32>
    %22 = vector.extract_strided_slice %5 {offsets = [0, 2, 0], sizes = [1, 1, 32], strides = [1, 1, 1]} : vector<3x3x32xf32> to vector<1x1x32xf32>
    %23 = vector.shape_cast %22 : vector<1x1x32xf32> to vector<32xf32>
    %24 = vector.shape_cast %23 : vector<32xf32> to vector<1x1x32xf32>
    %25 = vector.broadcast %24 : vector<1x1x32xf32> to vector<8x8x32xf32>
    %26 = arith.mulf %21, %25 : vector<8x8x32xf32>
    %27 = arith.addf %20, %26 : vector<8x8x32xf32>
    %c1_20 = arith.constant 1 : index
    %c0_21 = arith.constant 0 : index
    %c0_22 = arith.constant 0 : index
    %28 = vector.load %arg7[%c1_20, %c0_21, %c0_22] : memref<10x10x32xf32, #tpu.memory_space<vmem>>, vector<8x8x32xf32>
    %29 = vector.extract_strided_slice %5 {offsets = [1, 0, 0], sizes = [1, 1, 32], strides = [1, 1, 1]} : vector<3x3x32xf32> to vector<1x1x32xf32>
    %30 = vector.shape_cast %29 : vector<1x1x32xf32> to vector<32xf32>
    %31 = vector.shape_cast %30 : vector<32xf32> to vector<1x1x32xf32>
    %32 = vector.broadcast %31 : vector<1x1x32xf32> to vector<8x8x32xf32>
    %33 = arith.mulf %28, %32 : vector<8x8x32xf32>
    %34 = arith.addf %27, %33 : vector<8x8x32xf32>
    %c1_23 = arith.constant 1 : index
    %c1_24 = arith.constant 1 : index
    %c0_25 = arith.constant 0 : index
    %35 = vector.load %arg7[%c1_23, %c1_24, %c0_25] : memref<10x10x32xf32, #tpu.memory_space<vmem>>, vector<8x8x32xf32>
    %36 = vector.extract_strided_slice %5 {offsets = [1, 1, 0], sizes = [1, 1, 32], strides = [1, 1, 1]} : vector<3x3x32xf32> to vector<1x1x32xf32>
    %37 = vector.shape_cast %36 : vector<1x1x32xf32> to vector<32xf32>
    %38 = vector.shape_cast %37 : vector<32xf32> to vector<1x1x32xf32>
    %39 = vector.broadcast %38 : vector<1x1x32xf32> to vector<8x8x32xf32>
    %40 = arith.mulf %35, %39 : vector<8x8x32xf32>
    %41 = arith.addf %34, %40 : vector<8x8x32xf32>
    %c1_26 = arith.constant 1 : index
    %c2_27 = arith.constant 2 : index
    %c0_28 = arith.constant 0 : index
    %42 = vector.load %arg7[%c1_26, %c2_27, %c0_28] : memref<10x10x32xf32, #tpu.memory_space<vmem>>, vector<8x8x32xf32>
    %43 = vector.extract_strided_slice %5 {offsets = [1, 2, 0], sizes = [1, 1, 32], strides = [1, 1, 1]} : vector<3x3x32xf32> to vector<1x1x32xf32>
    %44 = vector.shape_cast %43 : vector<1x1x32xf32> to vector<32xf32>
    %45 = vector.shape_cast %44 : vector<32xf32> to vector<1x1x32xf32>
    %46 = vector.broadcast %45 : vector<1x1x32xf32> to vector<8x8x32xf32>
    %47 = arith.mulf %42, %46 : vector<8x8x32xf32>
    %48 = arith.addf %41, %47 : vector<8x8x32xf32>
    %c2_29 = arith.constant 2 : index
    %c0_30 = arith.constant 0 : index
    %c0_31 = arith.constant 0 : index
    %49 = vector.load %arg7[%c2_29, %c0_30, %c0_31] : memref<10x10x32xf32, #tpu.memory_space<vmem>>, vector<8x8x32xf32>
    %50 = vector.extract_strided_slice %5 {offsets = [2, 0, 0], sizes = [1, 1, 32], strides = [1, 1, 1]} : vector<3x3x32xf32> to vector<1x1x32xf32>
    %51 = vector.shape_cast %50 : vector<1x1x32xf32> to vector<32xf32>
    %52 = vector.shape_cast %51 : vector<32xf32> to vector<1x1x32xf32>
    %53 = vector.broadcast %52 : vector<1x1x32xf32> to vector<8x8x32xf32>
    %54 = arith.mulf %49, %53 : vector<8x8x32xf32>
    %55 = arith.addf %48, %54 : vector<8x8x32xf32>
    %c2_32 = arith.constant 2 : index
    %c1_33 = arith.constant 1 : index
    %c0_34 = arith.constant 0 : index
    %56 = vector.load %arg7[%c2_32, %c1_33, %c0_34] : memref<10x10x32xf32, #tpu.memory_space<vmem>>, vector<8x8x32xf32>
    %57 = vector.extract_strided_slice %5 {offsets = [2, 1, 0], sizes = [1, 1, 32], strides = [1, 1, 1]} : vector<3x3x32xf32> to vector<1x1x32xf32>
    %58 = vector.shape_cast %57 : vector<1x1x32xf32> to vector<32xf32>
    %59 = vector.shape_cast %58 : vector<32xf32> to vector<1x1x32xf32>
    %60 = vector.broadcast %59 : vector<1x1x32xf32> to vector<8x8x32xf32>
    %61 = arith.mulf %56, %60 : vector<8x8x32xf32>
    %62 = arith.addf %55, %61 : vector<8x8x32xf32>
    %c2_35 = arith.constant 2 : index
    %c2_36 = arith.constant 2 : index
    %c0_37 = arith.constant 0 : index
    %63 = vector.load %arg7[%c2_35, %c2_36, %c0_37] : memref<10x10x32xf32, #tpu.memory_space<vmem>>, vector<8x8x32xf32>
    %64 = vector.extract_strided_slice %5 {offsets = [2, 2, 0], sizes = [1, 1, 32], strides = [1, 1, 1]} : vector<3x3x32xf32> to vector<1x1x32xf32>
    %65 = vector.shape_cast %64 : vector<1x1x32xf32> to vector<32xf32>
    %66 = vector.shape_cast %65 : vector<32xf32> to vector<1x1x32xf32>
    %67 = vector.broadcast %66 : vector<1x1x32xf32> to vector<8x8x32xf32>
    %68 = arith.mulf %63, %67 : vector<8x8x32xf32>
    %69 = arith.addf %62, %68 : vector<8x8x32xf32>
    %c0_38 = arith.constant 0 : index
    %c0_39 = arith.constant 0 : index
    %70 = vector.load %arg3[%c0_38, %c0_39] : memref<1x32xf32, #tpu.memory_space<vmem>>, vector<1x32xf32>
    %71 = vector.shape_cast %70 : vector<1x32xf32> to vector<1x1x32xf32>
    %72 = vector.broadcast %71 : vector<1x1x32xf32> to vector<8x8x32xf32>
    %73 = arith.addf %69, %72 : vector<8x8x32xf32>
    %cst_40 = arith.constant 0.000000e+00 : f32
    %74 = vector.broadcast %cst_40 : f32 to vector<8x8x32xf32>
    %75 = arith.maximumf %73, %74 : vector<8x8x32xf32>
    %76 = vector.shape_cast %75 : vector<8x8x32xf32> to vector<64x32xf32>
    %77 = arith.truncf %76 : vector<64x32xf32> to vector<64x32xbf16>
    %c0_41 = arith.constant 0 : index
    %c0_42 = arith.constant 0 : index
    %78 = vector.load %arg4[%c0_41, %c0_42] : memref<32x32xbf16, #tpu.memory_space<vmem>>, vector<32x32xbf16>
    %cst_43 = arith.constant dense<0.000000e+00> : vector<64x32xf32>
    %79 = tpu.matmul %77, %78, %cst_43 {dimension_numbers = #tpu.dot_dimension_numbers<[1], [0], [0], [1], [0, 0, 1, 1], [], []>} : vector<64x32xbf16>, vector<32x32xbf16>, vector<64x32xf32> -> vector<64x32xf32>
    %c0_44 = arith.constant 0 : index
    %c0_45 = arith.constant 0 : index
    %80 = vector.load %arg5[%c0_44, %c0_45] : memref<1x32xf32, #tpu.memory_space<vmem>>, vector<1x32xf32>
    %81 = vector.broadcast %80 : vector<1x32xf32> to vector<64x32xf32>
    %82 = arith.addf %79, %81 : vector<64x32xf32>
    %cst_46 = arith.constant 0.000000e+00 : f32
    %83 = vector.broadcast %cst_46 : f32 to vector<64x32xf32>
    %84 = arith.maximumf %82, %83 : vector<64x32xf32>
    %c0_47 = arith.constant 0 : index
    %c0_48 = arith.constant 0 : index
    %c0_49 = arith.constant 0 : index
    %85 = vector.load %arg6[%c0_47, %c0_48, %c0_49] : memref<1x64x32xf32, #tpu.memory_space<vmem>>, vector<1x64x32xf32>
    %86 = vector.shape_cast %85 : vector<1x64x32xf32> to vector<64x32xf32>
    %87 = vector.shape_cast %84 : vector<64x32xf32> to vector<1x64x32xf32>
    tpu.vector_store %arg6[%c0_47, %c0_48, %c0_49], %87 {strides = array<i32>} : memref<1x64x32xf32, #tpu.memory_space<vmem>>, vector<1x64x32xf32>,
    return
  }
  func.func @transform_0(%arg0: i32) -> (i32, i32, i32, i32) {
    %c0_i32 = arith.constant 0 : i32
    %c0_i32_0 = arith.constant 0 : i32
    %c0_i32_1 = arith.constant 0 : i32
    %c0_i32_2 = arith.constant 0 : i32
    return %arg0, %c0_i32, %c0_i32_0, %c0_i32_1 : i32, i32, i32, i32
  }
  func.func @transform_1(%arg0: i32) -> (i32, i32, i32) {
    %c0_i32 = arith.constant 0 : i32
    %c0_i32_0 = arith.constant 0 : i32
    %c0_i32_1 = arith.constant 0 : i32
    %c0_i32_2 = arith.constant 0 : i32
    return %c0_i32, %c0_i32_0, %c0_i32_1 : i32, i32, i32
  }
  func.func @transform_2(%arg0: i32) -> (i32, i32) {
    %c0_i32 = arith.constant 0 : i32
    %c0_i32_0 = arith.constant 0 : i32
    %c0_i32_1 = arith.constant 0 : i32
    return %c0_i32, %c0_i32_0 : i32, i32
  }
  func.func @transform_3(%arg0: i32) -> (i32, i32) {
    %c0_i32 = arith.constant 0 : i32
    %c0_i32_0 = arith.constant 0 : i32
    %c0_i32_1 = arith.constant 0 : i32
    return %c0_i32, %c0_i32_0 : i32, i32
  }
  func.func @transform_4(%arg0: i32) -> (i32, i32) {
    %c0_i32 = arith.constant 0 : i32
    %c0_i32_0 = arith.constant 0 : i32
    %c0_i32_1 = arith.constant 0 : i32
    return %c0_i32, %c0_i32_0 : i32, i32
  }
  func.func @transform_5(%arg0: i32) -> (i32, i32, i32) {
    %c0_i32 = arith.constant 0 : i32
    %c0_i32_0 = arith.constant 0 : i32
    %c0_i32_1 = arith.constant 0 : i32
    return %arg0, %c0_i32, %c0_i32_0 : i32, i32, i32
  }
}

module attributes {stable_mosaic.version = 11 : i64} {
  func.func @_fused_block_kernel(%arg0: i32, %arg1: memref<1x8x8x32xf32, #tpu.memory_space<vmem>>, %arg2: memref<3x3x32xf32, #tpu.memory_space<vmem>>, %arg3: memref<1x32xf32, #tpu.memory_space<vmem>>, %arg4: memref<32x64xbf16, #tpu.memory_space<vmem>>, %arg5: memref<1x64xf32, #tpu.memory_space<vmem>>, %arg6: memref<1x16x64xf32, #tpu.memory_space<vmem>>, %arg7: memref<10x10x32xf32, #tpu.memory_space<vmem>>) attributes {dimension_semantics = [#tpu.dimension_semantics<parallel>], iteration_bounds = array<i64: 2>, scalar_prefetch = 0 : i64, scratch_operands = 1 : i64, tpu.core_type = #tpu.core_type<tc>, window_params = [{transform_indices = @transform_0, window_bounds = array<i64: 1, 8, 8, 32>}, {pipeline_mode = #tpu.pipeline_mode<synchronous>, transform_indices = @transform_1, window_bounds = array<i64: 3, 3, 32>}, {pipeline_mode = #tpu.pipeline_mode<synchronous>, transform_indices = @transform_2, window_bounds = array<i64: 1, 32>}, {pipeline_mode = #tpu.pipeline_mode<synchronous>, transform_indices = @transform_3, window_bounds = array<i64: 32, 64>}, {pipeline_mode = #tpu.pipeline_mode<synchronous>, transform_indices = @transform_4, window_bounds = array<i64: 1, 64>}, {transform_indices = @transform_5, window_bounds = array<i64: 1, 16, 64>}]} {
    %cst = arith.constant 0.000000e+00 : f32
    %0 = vector.broadcast %cst : f32 to vector<10x10x32xf32>
    %c0 = arith.constant 0 : index
    %c0_0 = arith.constant 0 : index
    %c0_1 = arith.constant 0 : index
    %1 = vector.load %arg7[%c0, %c0_0, %c0_1] : memref<10x10x32xf32, #tpu.memory_space<vmem>>, vector<10x10x32xf32>
    tpu.vector_store %arg7[%c0, %c0_0, %c0_1], %0 {strides = array<i32>} : memref<10x10x32xf32, #tpu.memory_space<vmem>>, vector<10x10x32xf32>,
    %c0_2 = arith.constant 0 : index
    %c0_3 = arith.constant 0 : index
    %c0_4 = arith.constant 0 : index
    %c0_5 = arith.constant 0 : index
    %2 = vector.load %arg1[%c0_2, %c0_3, %c0_4, %c0_5] : memref<1x8x8x32xf32, #tpu.memory_space<vmem>>, vector<1x8x8x32xf32>
    %3 = vector.shape_cast %2 : vector<1x8x8x32xf32> to vector<8x8x32xf32>
    %c1 = arith.constant 1 : index
    %c1_6 = arith.constant 1 : index
    %c0_7 = arith.constant 0 : index
    %4 = vector.load %arg7[%c1, %c1_6, %c0_7] : memref<10x10x32xf32, #tpu.memory_space<vmem>>, vector<8x8x32xf32>
    tpu.vector_store %arg7[%c1, %c1_6, %c0_7], %3 {strides = array<i32>} : memref<10x10x32xf32, #tpu.memory_space<vmem>>, vector<8x8x32xf32>,
    %c0_8 = arith.constant 0 : index
    %c0_9 = arith.constant 0 : index
    %c0_10 = arith.constant 0 : index
    %5 = vector.load %arg2[%c0_8, %c0_9, %c0_10] : memref<3x3x32xf32, #tpu.memory_space<vmem>>, vector<3x3x32xf32>
    %cst_11 = arith.constant 0.000000e+00 : f32
    %6 = vector.broadcast %cst_11 : f32 to vector<4x4x32xf32>
    %c0_12 = arith.constant 0 : index
    %c0_13 = arith.constant 0 : index
    %c0_14 = arith.constant 0 : index
    %7 = tpu.strided_load %arg7[%c0_12, %c0_13, %c0_14] {strides = array<i32: 2, 2, 1>} : memref<10x10x32xf32, #tpu.memory_space<vmem>>, vector<4x4x32xf32>
    %8 = vector.extract_strided_slice %5 {offsets = [0, 0, 0], sizes = [1, 1, 32], strides = [1, 1, 1]} : vector<3x3x32xf32> to vector<1x1x32xf32>
    %9 = vector.shape_cast %8 : vector<1x1x32xf32> to vector<32xf32>
    %10 = vector.shape_cast %9 : vector<32xf32> to vector<1x1x32xf32>
    %11 = vector.broadcast %10 : vector<1x1x32xf32> to vector<4x4x32xf32>
    %12 = arith.mulf %7, %11 : vector<4x4x32xf32>
    %13 = arith.addf %6, %12 : vector<4x4x32xf32>
    %c0_15 = arith.constant 0 : index
    %c1_16 = arith.constant 1 : index
    %c0_17 = arith.constant 0 : index
    %14 = tpu.strided_load %arg7[%c0_15, %c1_16, %c0_17] {strides = array<i32: 2, 2, 1>} : memref<10x10x32xf32, #tpu.memory_space<vmem>>, vector<4x4x32xf32>
    %15 = vector.extract_strided_slice %5 {offsets = [0, 1, 0], sizes = [1, 1, 32], strides = [1, 1, 1]} : vector<3x3x32xf32> to vector<1x1x32xf32>
    %16 = vector.shape_cast %15 : vector<1x1x32xf32> to vector<32xf32>
    %17 = vector.shape_cast %16 : vector<32xf32> to vector<1x1x32xf32>
    %18 = vector.broadcast %17 : vector<1x1x32xf32> to vector<4x4x32xf32>
    %19 = arith.mulf %14, %18 : vector<4x4x32xf32>
    %20 = arith.addf %13, %19 : vector<4x4x32xf32>
    %c0_18 = arith.constant 0 : index
    %c2 = arith.constant 2 : index
    %c0_19 = arith.constant 0 : index
    %21 = tpu.strided_load %arg7[%c0_18, %c2, %c0_19] {strides = array<i32: 2, 2, 1>} : memref<10x10x32xf32, #tpu.memory_space<vmem>>, vector<4x4x32xf32>
    %22 = vector.extract_strided_slice %5 {offsets = [0, 2, 0], sizes = [1, 1, 32], strides = [1, 1, 1]} : vector<3x3x32xf32> to vector<1x1x32xf32>
    %23 = vector.shape_cast %22 : vector<1x1x32xf32> to vector<32xf32>
    %24 = vector.shape_cast %23 : vector<32xf32> to vector<1x1x32xf32>
    %25 = vector.broadcast %24 : vector<1x1x32xf32> to vector<4x4x32xf32>
    %26 = arith.mulf %21, %25 : vector<4x4x32xf32>
    %27 = arith.addf %20, %26 : vector<4x4x32xf32>
    %c1_20 = arith.constant 1 : index
    %c0_21 = arith.constant 0 : index
    %c0_22 = arith.constant 0 : index
    %28 = tpu.strided_load %arg7[%c1_20, %c0_21, %c0_22] {strides = array<i32: 2, 2, 1>} : memref<10x10x32xf32, #tpu.memory_space<vmem>>, vector<4x4x32xf32>
    %29 = vector.extract_strided_slice %5 {offsets = [1, 0, 0], sizes = [1, 1, 32], strides = [1, 1, 1]} : vector<3x3x32xf32> to vector<1x1x32xf32>
    %30 = vector.shape_cast %29 : vector<1x1x32xf32> to vector<32xf32>
    %31 = vector.shape_cast %30 : vector<32xf32> to vector<1x1x32xf32>
    %32 = vector.broadcast %31 : vector<1x1x32xf32> to vector<4x4x32xf32>
    %33 = arith.mulf %28, %32 : vector<4x4x32xf32>
    %34 = arith.addf %27, %33 : vector<4x4x32xf32>
    %c1_23 = arith.constant 1 : index
    %c1_24 = arith.constant 1 : index
    %c0_25 = arith.constant 0 : index
    %35 = tpu.strided_load %arg7[%c1_23, %c1_24, %c0_25] {strides = array<i32: 2, 2, 1>} : memref<10x10x32xf32, #tpu.memory_space<vmem>>, vector<4x4x32xf32>
    %36 = vector.extract_strided_slice %5 {offsets = [1, 1, 0], sizes = [1, 1, 32], strides = [1, 1, 1]} : vector<3x3x32xf32> to vector<1x1x32xf32>
    %37 = vector.shape_cast %36 : vector<1x1x32xf32> to vector<32xf32>
    %38 = vector.shape_cast %37 : vector<32xf32> to vector<1x1x32xf32>
    %39 = vector.broadcast %38 : vector<1x1x32xf32> to vector<4x4x32xf32>
    %40 = arith.mulf %35, %39 : vector<4x4x32xf32>
    %41 = arith.addf %34, %40 : vector<4x4x32xf32>
    %c1_26 = arith.constant 1 : index
    %c2_27 = arith.constant 2 : index
    %c0_28 = arith.constant 0 : index
    %42 = tpu.strided_load %arg7[%c1_26, %c2_27, %c0_28] {strides = array<i32: 2, 2, 1>} : memref<10x10x32xf32, #tpu.memory_space<vmem>>, vector<4x4x32xf32>
    %43 = vector.extract_strided_slice %5 {offsets = [1, 2, 0], sizes = [1, 1, 32], strides = [1, 1, 1]} : vector<3x3x32xf32> to vector<1x1x32xf32>
    %44 = vector.shape_cast %43 : vector<1x1x32xf32> to vector<32xf32>
    %45 = vector.shape_cast %44 : vector<32xf32> to vector<1x1x32xf32>
    %46 = vector.broadcast %45 : vector<1x1x32xf32> to vector<4x4x32xf32>
    %47 = arith.mulf %42, %46 : vector<4x4x32xf32>
    %48 = arith.addf %41, %47 : vector<4x4x32xf32>
    %c2_29 = arith.constant 2 : index
    %c0_30 = arith.constant 0 : index
    %c0_31 = arith.constant 0 : index
    %49 = tpu.strided_load %arg7[%c2_29, %c0_30, %c0_31] {strides = array<i32: 2, 2, 1>} : memref<10x10x32xf32, #tpu.memory_space<vmem>>, vector<4x4x32xf32>
    %50 = vector.extract_strided_slice %5 {offsets = [2, 0, 0], sizes = [1, 1, 32], strides = [1, 1, 1]} : vector<3x3x32xf32> to vector<1x1x32xf32>
    %51 = vector.shape_cast %50 : vector<1x1x32xf32> to vector<32xf32>
    %52 = vector.shape_cast %51 : vector<32xf32> to vector<1x1x32xf32>
    %53 = vector.broadcast %52 : vector<1x1x32xf32> to vector<4x4x32xf32>
    %54 = arith.mulf %49, %53 : vector<4x4x32xf32>
    %55 = arith.addf %48, %54 : vector<4x4x32xf32>
    %c2_32 = arith.constant 2 : index
    %c1_33 = arith.constant 1 : index
    %c0_34 = arith.constant 0 : index
    %56 = tpu.strided_load %arg7[%c2_32, %c1_33, %c0_34] {strides = array<i32: 2, 2, 1>} : memref<10x10x32xf32, #tpu.memory_space<vmem>>, vector<4x4x32xf32>
    %57 = vector.extract_strided_slice %5 {offsets = [2, 1, 0], sizes = [1, 1, 32], strides = [1, 1, 1]} : vector<3x3x32xf32> to vector<1x1x32xf32>
    %58 = vector.shape_cast %57 : vector<1x1x32xf32> to vector<32xf32>
    %59 = vector.shape_cast %58 : vector<32xf32> to vector<1x1x32xf32>
    %60 = vector.broadcast %59 : vector<1x1x32xf32> to vector<4x4x32xf32>
    %61 = arith.mulf %56, %60 : vector<4x4x32xf32>
    %62 = arith.addf %55, %61 : vector<4x4x32xf32>
    %c2_35 = arith.constant 2 : index
    %c2_36 = arith.constant 2 : index
    %c0_37 = arith.constant 0 : index
    %63 = tpu.strided_load %arg7[%c2_35, %c2_36, %c0_37] {strides = array<i32: 2, 2, 1>} : memref<10x10x32xf32, #tpu.memory_space<vmem>>, vector<4x4x32xf32>
    %64 = vector.extract_strided_slice %5 {offsets = [2, 2, 0], sizes = [1, 1, 32], strides = [1, 1, 1]} : vector<3x3x32xf32> to vector<1x1x32xf32>
    %65 = vector.shape_cast %64 : vector<1x1x32xf32> to vector<32xf32>
    %66 = vector.shape_cast %65 : vector<32xf32> to vector<1x1x32xf32>
    %67 = vector.broadcast %66 : vector<1x1x32xf32> to vector<4x4x32xf32>
    %68 = arith.mulf %63, %67 : vector<4x4x32xf32>
    %69 = arith.addf %62, %68 : vector<4x4x32xf32>
    %c0_38 = arith.constant 0 : index
    %c0_39 = arith.constant 0 : index
    %70 = vector.load %arg3[%c0_38, %c0_39] : memref<1x32xf32, #tpu.memory_space<vmem>>, vector<1x32xf32>
    %71 = vector.shape_cast %70 : vector<1x32xf32> to vector<1x1x32xf32>
    %72 = vector.broadcast %71 : vector<1x1x32xf32> to vector<4x4x32xf32>
    %73 = arith.addf %69, %72 : vector<4x4x32xf32>
    %cst_40 = arith.constant 0.000000e+00 : f32
    %74 = vector.broadcast %cst_40 : f32 to vector<4x4x32xf32>
    %75 = arith.maximumf %73, %74 : vector<4x4x32xf32>
    %76 = vector.shape_cast %75 : vector<4x4x32xf32> to vector<16x32xf32>
    %77 = arith.truncf %76 : vector<16x32xf32> to vector<16x32xbf16>
    %c0_41 = arith.constant 0 : index
    %c0_42 = arith.constant 0 : index
    %78 = vector.load %arg4[%c0_41, %c0_42] : memref<32x64xbf16, #tpu.memory_space<vmem>>, vector<32x64xbf16>
    %cst_43 = arith.constant dense<0.000000e+00> : vector<16x64xf32>
    %79 = tpu.matmul %77, %78, %cst_43 {dimension_numbers = #tpu.dot_dimension_numbers<[1], [0], [0], [1], [0, 0, 1, 1], [], []>} : vector<16x32xbf16>, vector<32x64xbf16>, vector<16x64xf32> -> vector<16x64xf32>
    %c0_44 = arith.constant 0 : index
    %c0_45 = arith.constant 0 : index
    %80 = vector.load %arg5[%c0_44, %c0_45] : memref<1x64xf32, #tpu.memory_space<vmem>>, vector<1x64xf32>
    %81 = vector.broadcast %80 : vector<1x64xf32> to vector<16x64xf32>
    %82 = arith.addf %79, %81 : vector<16x64xf32>
    %cst_46 = arith.constant 0.000000e+00 : f32
    %83 = vector.broadcast %cst_46 : f32 to vector<16x64xf32>
    %84 = arith.maximumf %82, %83 : vector<16x64xf32>
    %c0_47 = arith.constant 0 : index
    %c0_48 = arith.constant 0 : index
    %c0_49 = arith.constant 0 : index
    %85 = vector.load %arg6[%c0_47, %c0_48, %c0_49] : memref<1x16x64xf32, #tpu.memory_space<vmem>>, vector<1x16x64xf32>
    %86 = vector.shape_cast %85 : vector<1x16x64xf32> to vector<16x64xf32>
    %87 = vector.shape_cast %84 : vector<16x64xf32> to vector<1x16x64xf32>
    tpu.vector_store %arg6[%c0_47, %c0_48, %c0_49], %87 {strides = array<i32>} : memref<1x16x64xf32, #tpu.memory_space<vmem>>, vector<1x16x64xf32>,
    return
  }
  func.func @transform_0(%arg0: i32) -> (i32, i32, i32, i32) {
    %c0_i32 = arith.constant 0 : i32
    %c0_i32_0 = arith.constant 0 : i32
    %c0_i32_1 = arith.constant 0 : i32
    %c0_i32_2 = arith.constant 0 : i32
    return %arg0, %c0_i32, %c0_i32_0, %c0_i32_1 : i32, i32, i32, i32
  }
  func.func @transform_1(%arg0: i32) -> (i32, i32, i32) {
    %c0_i32 = arith.constant 0 : i32
    %c0_i32_0 = arith.constant 0 : i32
    %c0_i32_1 = arith.constant 0 : i32
    %c0_i32_2 = arith.constant 0 : i32
    return %c0_i32, %c0_i32_0, %c0_i32_1 : i32, i32, i32
  }
  func.func @transform_2(%arg0: i32) -> (i32, i32) {
    %c0_i32 = arith.constant 0 : i32
    %c0_i32_0 = arith.constant 0 : i32
    %c0_i32_1 = arith.constant 0 : i32
    return %c0_i32, %c0_i32_0 : i32, i32
  }
  func.func @transform_3(%arg0: i32) -> (i32, i32) {
    %c0_i32 = arith.constant 0 : i32
    %c0_i32_0 = arith.constant 0 : i32
    %c0_i32_1 = arith.constant 0 : i32
    return %c0_i32, %c0_i32_0 : i32, i32
  }
  func.func @transform_4(%arg0: i32) -> (i32, i32) {
    %c0_i32 = arith.constant 0 : i32
    %c0_i32_0 = arith.constant 0 : i32
    %c0_i32_1 = arith.constant 0 : i32
    return %c0_i32, %c0_i32_0 : i32, i32
  }
  func.func @transform_5(%arg0: i32) -> (i32, i32, i32) {
    %c0_i32 = arith.constant 0 : i32
    %c0_i32_0 = arith.constant 0 : i32
    %c0_i32_1 = arith.constant 0 : i32
    return %arg0, %c0_i32, %c0_i32_0 : i32, i32, i32
  }
}

module attributes {stable_mosaic.version = 11 : i64} {
  func.func @_fused_block_kernel(%arg0: i32, %arg1: memref<1x4x4x64xf32, #tpu.memory_space<vmem>>, %arg2: memref<3x3x64xf32, #tpu.memory_space<vmem>>, %arg3: memref<1x64xf32, #tpu.memory_space<vmem>>, %arg4: memref<64x64xbf16, #tpu.memory_space<vmem>>, %arg5: memref<1x64xf32, #tpu.memory_space<vmem>>, %arg6: memref<1x16x64xf32, #tpu.memory_space<vmem>>, %arg7: memref<6x6x64xf32, #tpu.memory_space<vmem>>) attributes {dimension_semantics = [#tpu.dimension_semantics<parallel>], iteration_bounds = array<i64: 2>, scalar_prefetch = 0 : i64, scratch_operands = 1 : i64, tpu.core_type = #tpu.core_type<tc>, window_params = [{transform_indices = @transform_0, window_bounds = array<i64: 1, 4, 4, 64>}, {pipeline_mode = #tpu.pipeline_mode<synchronous>, transform_indices = @transform_1, window_bounds = array<i64: 3, 3, 64>}, {pipeline_mode = #tpu.pipeline_mode<synchronous>, transform_indices = @transform_2, window_bounds = array<i64: 1, 64>}, {pipeline_mode = #tpu.pipeline_mode<synchronous>, transform_indices = @transform_3, window_bounds = array<i64: 64, 64>}, {pipeline_mode = #tpu.pipeline_mode<synchronous>, transform_indices = @transform_4, window_bounds = array<i64: 1, 64>}, {transform_indices = @transform_5, window_bounds = array<i64: 1, 16, 64>}]} {
    %cst = arith.constant 0.000000e+00 : f32
    %0 = vector.broadcast %cst : f32 to vector<6x6x64xf32>
    %c0 = arith.constant 0 : index
    %c0_0 = arith.constant 0 : index
    %c0_1 = arith.constant 0 : index
    %1 = vector.load %arg7[%c0, %c0_0, %c0_1] : memref<6x6x64xf32, #tpu.memory_space<vmem>>, vector<6x6x64xf32>
    tpu.vector_store %arg7[%c0, %c0_0, %c0_1], %0 {strides = array<i32>} : memref<6x6x64xf32, #tpu.memory_space<vmem>>, vector<6x6x64xf32>,
    %c0_2 = arith.constant 0 : index
    %c0_3 = arith.constant 0 : index
    %c0_4 = arith.constant 0 : index
    %c0_5 = arith.constant 0 : index
    %2 = vector.load %arg1[%c0_2, %c0_3, %c0_4, %c0_5] : memref<1x4x4x64xf32, #tpu.memory_space<vmem>>, vector<1x4x4x64xf32>
    %3 = vector.shape_cast %2 : vector<1x4x4x64xf32> to vector<4x4x64xf32>
    %c1 = arith.constant 1 : index
    %c1_6 = arith.constant 1 : index
    %c0_7 = arith.constant 0 : index
    %4 = vector.load %arg7[%c1, %c1_6, %c0_7] : memref<6x6x64xf32, #tpu.memory_space<vmem>>, vector<4x4x64xf32>
    tpu.vector_store %arg7[%c1, %c1_6, %c0_7], %3 {strides = array<i32>} : memref<6x6x64xf32, #tpu.memory_space<vmem>>, vector<4x4x64xf32>,
    %c0_8 = arith.constant 0 : index
    %c0_9 = arith.constant 0 : index
    %c0_10 = arith.constant 0 : index
    %5 = vector.load %arg2[%c0_8, %c0_9, %c0_10] : memref<3x3x64xf32, #tpu.memory_space<vmem>>, vector<3x3x64xf32>
    %cst_11 = arith.constant 0.000000e+00 : f32
    %6 = vector.broadcast %cst_11 : f32 to vector<4x4x64xf32>
    %c0_12 = arith.constant 0 : index
    %c0_13 = arith.constant 0 : index
    %c0_14 = arith.constant 0 : index
    %7 = vector.load %arg7[%c0_12, %c0_13, %c0_14] : memref<6x6x64xf32, #tpu.memory_space<vmem>>, vector<4x4x64xf32>
    %8 = vector.extract_strided_slice %5 {offsets = [0, 0, 0], sizes = [1, 1, 64], strides = [1, 1, 1]} : vector<3x3x64xf32> to vector<1x1x64xf32>
    %9 = vector.shape_cast %8 : vector<1x1x64xf32> to vector<64xf32>
    %10 = vector.shape_cast %9 : vector<64xf32> to vector<1x1x64xf32>
    %11 = vector.broadcast %10 : vector<1x1x64xf32> to vector<4x4x64xf32>
    %12 = arith.mulf %7, %11 : vector<4x4x64xf32>
    %13 = arith.addf %6, %12 : vector<4x4x64xf32>
    %c0_15 = arith.constant 0 : index
    %c1_16 = arith.constant 1 : index
    %c0_17 = arith.constant 0 : index
    %14 = vector.load %arg7[%c0_15, %c1_16, %c0_17] : memref<6x6x64xf32, #tpu.memory_space<vmem>>, vector<4x4x64xf32>
    %15 = vector.extract_strided_slice %5 {offsets = [0, 1, 0], sizes = [1, 1, 64], strides = [1, 1, 1]} : vector<3x3x64xf32> to vector<1x1x64xf32>
    %16 = vector.shape_cast %15 : vector<1x1x64xf32> to vector<64xf32>
    %17 = vector.shape_cast %16 : vector<64xf32> to vector<1x1x64xf32>
    %18 = vector.broadcast %17 : vector<1x1x64xf32> to vector<4x4x64xf32>
    %19 = arith.mulf %14, %18 : vector<4x4x64xf32>
    %20 = arith.addf %13, %19 : vector<4x4x64xf32>
    %c0_18 = arith.constant 0 : index
    %c2 = arith.constant 2 : index
    %c0_19 = arith.constant 0 : index
    %21 = vector.load %arg7[%c0_18, %c2, %c0_19] : memref<6x6x64xf32, #tpu.memory_space<vmem>>, vector<4x4x64xf32>
    %22 = vector.extract_strided_slice %5 {offsets = [0, 2, 0], sizes = [1, 1, 64], strides = [1, 1, 1]} : vector<3x3x64xf32> to vector<1x1x64xf32>
    %23 = vector.shape_cast %22 : vector<1x1x64xf32> to vector<64xf32>
    %24 = vector.shape_cast %23 : vector<64xf32> to vector<1x1x64xf32>
    %25 = vector.broadcast %24 : vector<1x1x64xf32> to vector<4x4x64xf32>
    %26 = arith.mulf %21, %25 : vector<4x4x64xf32>
    %27 = arith.addf %20, %26 : vector<4x4x64xf32>
    %c1_20 = arith.constant 1 : index
    %c0_21 = arith.constant 0 : index
    %c0_22 = arith.constant 0 : index
    %28 = vector.load %arg7[%c1_20, %c0_21, %c0_22] : memref<6x6x64xf32, #tpu.memory_space<vmem>>, vector<4x4x64xf32>
    %29 = vector.extract_strided_slice %5 {offsets = [1, 0, 0], sizes = [1, 1, 64], strides = [1, 1, 1]} : vector<3x3x64xf32> to vector<1x1x64xf32>
    %30 = vector.shape_cast %29 : vector<1x1x64xf32> to vector<64xf32>
    %31 = vector.shape_cast %30 : vector<64xf32> to vector<1x1x64xf32>
    %32 = vector.broadcast %31 : vector<1x1x64xf32> to vector<4x4x64xf32>
    %33 = arith.mulf %28, %32 : vector<4x4x64xf32>
    %34 = arith.addf %27, %33 : vector<4x4x64xf32>
    %c1_23 = arith.constant 1 : index
    %c1_24 = arith.constant 1 : index
    %c0_25 = arith.constant 0 : index
    %35 = vector.load %arg7[%c1_23, %c1_24, %c0_25] : memref<6x6x64xf32, #tpu.memory_space<vmem>>, vector<4x4x64xf32>
    %36 = vector.extract_strided_slice %5 {offsets = [1, 1, 0], sizes = [1, 1, 64], strides = [1, 1, 1]} : vector<3x3x64xf32> to vector<1x1x64xf32>
    %37 = vector.shape_cast %36 : vector<1x1x64xf32> to vector<64xf32>
    %38 = vector.shape_cast %37 : vector<64xf32> to vector<1x1x64xf32>
    %39 = vector.broadcast %38 : vector<1x1x64xf32> to vector<4x4x64xf32>
    %40 = arith.mulf %35, %39 : vector<4x4x64xf32>
    %41 = arith.addf %34, %40 : vector<4x4x64xf32>
    %c1_26 = arith.constant 1 : index
    %c2_27 = arith.constant 2 : index
    %c0_28 = arith.constant 0 : index
    %42 = vector.load %arg7[%c1_26, %c2_27, %c0_28] : memref<6x6x64xf32, #tpu.memory_space<vmem>>, vector<4x4x64xf32>
    %43 = vector.extract_strided_slice %5 {offsets = [1, 2, 0], sizes = [1, 1, 64], strides = [1, 1, 1]} : vector<3x3x64xf32> to vector<1x1x64xf32>
    %44 = vector.shape_cast %43 : vector<1x1x64xf32> to vector<64xf32>
    %45 = vector.shape_cast %44 : vector<64xf32> to vector<1x1x64xf32>
    %46 = vector.broadcast %45 : vector<1x1x64xf32> to vector<4x4x64xf32>
    %47 = arith.mulf %42, %46 : vector<4x4x64xf32>
    %48 = arith.addf %41, %47 : vector<4x4x64xf32>
    %c2_29 = arith.constant 2 : index
    %c0_30 = arith.constant 0 : index
    %c0_31 = arith.constant 0 : index
    %49 = vector.load %arg7[%c2_29, %c0_30, %c0_31] : memref<6x6x64xf32, #tpu.memory_space<vmem>>, vector<4x4x64xf32>
    %50 = vector.extract_strided_slice %5 {offsets = [2, 0, 0], sizes = [1, 1, 64], strides = [1, 1, 1]} : vector<3x3x64xf32> to vector<1x1x64xf32>
    %51 = vector.shape_cast %50 : vector<1x1x64xf32> to vector<64xf32>
    %52 = vector.shape_cast %51 : vector<64xf32> to vector<1x1x64xf32>
    %53 = vector.broadcast %52 : vector<1x1x64xf32> to vector<4x4x64xf32>
    %54 = arith.mulf %49, %53 : vector<4x4x64xf32>
    %55 = arith.addf %48, %54 : vector<4x4x64xf32>
    %c2_32 = arith.constant 2 : index
    %c1_33 = arith.constant 1 : index
    %c0_34 = arith.constant 0 : index
    %56 = vector.load %arg7[%c2_32, %c1_33, %c0_34] : memref<6x6x64xf32, #tpu.memory_space<vmem>>, vector<4x4x64xf32>
    %57 = vector.extract_strided_slice %5 {offsets = [2, 1, 0], sizes = [1, 1, 64], strides = [1, 1, 1]} : vector<3x3x64xf32> to vector<1x1x64xf32>
    %58 = vector.shape_cast %57 : vector<1x1x64xf32> to vector<64xf32>
    %59 = vector.shape_cast %58 : vector<64xf32> to vector<1x1x64xf32>
    %60 = vector.broadcast %59 : vector<1x1x64xf32> to vector<4x4x64xf32>
    %61 = arith.mulf %56, %60 : vector<4x4x64xf32>
    %62 = arith.addf %55, %61 : vector<4x4x64xf32>
    %c2_35 = arith.constant 2 : index
    %c2_36 = arith.constant 2 : index
    %c0_37 = arith.constant 0 : index
    %63 = vector.load %arg7[%c2_35, %c2_36, %c0_37] : memref<6x6x64xf32, #tpu.memory_space<vmem>>, vector<4x4x64xf32>
    %64 = vector.extract_strided_slice %5 {offsets = [2, 2, 0], sizes = [1, 1, 64], strides = [1, 1, 1]} : vector<3x3x64xf32> to vector<1x1x64xf32>
    %65 = vector.shape_cast %64 : vector<1x1x64xf32> to vector<64xf32>
    %66 = vector.shape_cast %65 : vector<64xf32> to vector<1x1x64xf32>
    %67 = vector.broadcast %66 : vector<1x1x64xf32> to vector<4x4x64xf32>
    %68 = arith.mulf %63, %67 : vector<4x4x64xf32>
    %69 = arith.addf %62, %68 : vector<4x4x64xf32>
    %c0_38 = arith.constant 0 : index
    %c0_39 = arith.constant 0 : index
    %70 = vector.load %arg3[%c0_38, %c0_39] : memref<1x64xf32, #tpu.memory_space<vmem>>, vector<1x64xf32>
    %71 = vector.shape_cast %70 : vector<1x64xf32> to vector<1x1x64xf32>
    %72 = vector.broadcast %71 : vector<1x1x64xf32> to vector<4x4x64xf32>
    %73 = arith.addf %69, %72 : vector<4x4x64xf32>
    %cst_40 = arith.constant 0.000000e+00 : f32
    %74 = vector.broadcast %cst_40 : f32 to vector<4x4x64xf32>
    %75 = arith.maximumf %73, %74 : vector<4x4x64xf32>
    %76 = vector.shape_cast %75 : vector<4x4x64xf32> to vector<16x64xf32>
    %77 = arith.truncf %76 : vector<16x64xf32> to vector<16x64xbf16>
    %c0_41 = arith.constant 0 : index
    %c0_42 = arith.constant 0 : index
    %78 = vector.load %arg4[%c0_41, %c0_42] : memref<64x64xbf16, #tpu.memory_space<vmem>>, vector<64x64xbf16>
    %cst_43 = arith.constant dense<0.000000e+00> : vector<16x64xf32>
    %79 = tpu.matmul %77, %78, %cst_43 {dimension_numbers = #tpu.dot_dimension_numbers<[1], [0], [0], [1], [0, 0, 1, 1], [], []>} : vector<16x64xbf16>, vector<64x64xbf16>, vector<16x64xf32> -> vector<16x64xf32>
    %c0_44 = arith.constant 0 : index
    %c0_45 = arith.constant 0 : index
    %80 = vector.load %arg5[%c0_44, %c0_45] : memref<1x64xf32, #tpu.memory_space<vmem>>, vector<1x64xf32>
    %81 = vector.broadcast %80 : vector<1x64xf32> to vector<16x64xf32>
    %82 = arith.addf %79, %81 : vector<16x64xf32>
    %cst_46 = arith.constant 0.000000e+00 : f32
    %83 = vector.broadcast %cst_46 : f32 to vector<16x64xf32>
    %84 = arith.maximumf %82, %83 : vector<16x64xf32>
    %c0_47 = arith.constant 0 : index
    %c0_48 = arith.constant 0 : index
    %c0_49 = arith.constant 0 : index
    %85 = vector.load %arg6[%c0_47, %c0_48, %c0_49] : memref<1x16x64xf32, #tpu.memory_space<vmem>>, vector<1x16x64xf32>
    %86 = vector.shape_cast %85 : vector<1x16x64xf32> to vector<16x64xf32>
    %87 = vector.shape_cast %84 : vector<16x64xf32> to vector<1x16x64xf32>
    tpu.vector_store %arg6[%c0_47, %c0_48, %c0_49], %87 {strides = array<i32>} : memref<1x16x64xf32, #tpu.memory_space<vmem>>, vector<1x16x64xf32>,
    return
  }
  func.func @transform_0(%arg0: i32) -> (i32, i32, i32, i32) {
    %c0_i32 = arith.constant 0 : i32
    %c0_i32_0 = arith.constant 0 : i32
    %c0_i32_1 = arith.constant 0 : i32
    %c0_i32_2 = arith.constant 0 : i32
    return %arg0, %c0_i32, %c0_i32_0, %c0_i32_1 : i32, i32, i32, i32
  }
  func.func @transform_1(%arg0: i32) -> (i32, i32, i32) {
    %c0_i32 = arith.constant 0 : i32
    %c0_i32_0 = arith.constant 0 : i32
    %c0_i32_1 = arith.constant 0 : i32
    %c0_i32_2 = arith.constant 0 : i32
    return %c0_i32, %c0_i32_0, %c0_i32_1 : i32, i32, i32
  }
  func.func @transform_2(%arg0: i32) -> (i32, i32) {
    %c0_i32 = arith.constant 0 : i32
    %c0_i32_0 = arith.constant 0 : i32
    %c0_i32_1 = arith.constant 0 : i32
    return %c0_i32, %c0_i32_0 : i32, i32
  }
  func.func @transform_3(%arg0: i32) -> (i32, i32) {
    %c0_i32 = arith.constant 0 : i32
    %c0_i32_0 = arith.constant 0 : i32
    %c0_i32_1 = arith.constant 0 : i32
    return %c0_i32, %c0_i32_0 : i32, i32
  }
  func.func @transform_4(%arg0: i32) -> (i32, i32) {
    %c0_i32 = arith.constant 0 : i32
    %c0_i32_0 = arith.constant 0 : i32
    %c0_i32_1 = arith.constant 0 : i32
    return %c0_i32, %c0_i32_0 : i32, i32
  }
  func.func @transform_5(%arg0: i32) -> (i32, i32, i32) {
    %c0_i32 = arith.constant 0 : i32
    %c0_i32_0 = arith.constant 0 : i32
    %c0_i32_1 = arith.constant 0 : i32
    return %arg0, %c0_i32, %c0_i32_0 : i32, i32, i32
  }
}

module attributes {stable_mosaic.version = 11 : i64} {
  func.func @_fused_block_kernel(%arg0: i32, %arg1: memref<1x4x4x64xf32, #tpu.memory_space<vmem>>, %arg2: memref<3x3x64xf32, #tpu.memory_space<vmem>>, %arg3: memref<1x64xf32, #tpu.memory_space<vmem>>, %arg4: memref<64x128xbf16, #tpu.memory_space<vmem>>, %arg5: memref<1x128xf32, #tpu.memory_space<vmem>>, %arg6: memref<1x4x128xf32, #tpu.memory_space<vmem>>, %arg7: memref<6x6x64xf32, #tpu.memory_space<vmem>>) attributes {dimension_semantics = [#tpu.dimension_semantics<parallel>], iteration_bounds = array<i64: 2>, scalar_prefetch = 0 : i64, scratch_operands = 1 : i64, tpu.core_type = #tpu.core_type<tc>, window_params = [{transform_indices = @transform_0, window_bounds = array<i64: 1, 4, 4, 64>}, {pipeline_mode = #tpu.pipeline_mode<synchronous>, transform_indices = @transform_1, window_bounds = array<i64: 3, 3, 64>}, {pipeline_mode = #tpu.pipeline_mode<synchronous>, transform_indices = @transform_2, window_bounds = array<i64: 1, 64>}, {pipeline_mode = #tpu.pipeline_mode<synchronous>, transform_indices = @transform_3, window_bounds = array<i64: 64, 128>}, {pipeline_mode = #tpu.pipeline_mode<synchronous>, transform_indices = @transform_4, window_bounds = array<i64: 1, 128>}, {transform_indices = @transform_5, window_bounds = array<i64: 1, 4, 128>}]} {
    %cst = arith.constant 0.000000e+00 : f32
    %0 = vector.broadcast %cst : f32 to vector<6x6x64xf32>
    %c0 = arith.constant 0 : index
    %c0_0 = arith.constant 0 : index
    %c0_1 = arith.constant 0 : index
    %1 = vector.load %arg7[%c0, %c0_0, %c0_1] : memref<6x6x64xf32, #tpu.memory_space<vmem>>, vector<6x6x64xf32>
    tpu.vector_store %arg7[%c0, %c0_0, %c0_1], %0 {strides = array<i32>} : memref<6x6x64xf32, #tpu.memory_space<vmem>>, vector<6x6x64xf32>,
    %c0_2 = arith.constant 0 : index
    %c0_3 = arith.constant 0 : index
    %c0_4 = arith.constant 0 : index
    %c0_5 = arith.constant 0 : index
    %2 = vector.load %arg1[%c0_2, %c0_3, %c0_4, %c0_5] : memref<1x4x4x64xf32, #tpu.memory_space<vmem>>, vector<1x4x4x64xf32>
    %3 = vector.shape_cast %2 : vector<1x4x4x64xf32> to vector<4x4x64xf32>
    %c1 = arith.constant 1 : index
    %c1_6 = arith.constant 1 : index
    %c0_7 = arith.constant 0 : index
    %4 = vector.load %arg7[%c1, %c1_6, %c0_7] : memref<6x6x64xf32, #tpu.memory_space<vmem>>, vector<4x4x64xf32>
    tpu.vector_store %arg7[%c1, %c1_6, %c0_7], %3 {strides = array<i32>} : memref<6x6x64xf32, #tpu.memory_space<vmem>>, vector<4x4x64xf32>,
    %c0_8 = arith.constant 0 : index
    %c0_9 = arith.constant 0 : index
    %c0_10 = arith.constant 0 : index
    %5 = vector.load %arg2[%c0_8, %c0_9, %c0_10] : memref<3x3x64xf32, #tpu.memory_space<vmem>>, vector<3x3x64xf32>
    %cst_11 = arith.constant 0.000000e+00 : f32
    %6 = vector.broadcast %cst_11 : f32 to vector<2x2x64xf32>
    %c0_12 = arith.constant 0 : index
    %c0_13 = arith.constant 0 : index
    %c0_14 = arith.constant 0 : index
    %7 = tpu.strided_load %arg7[%c0_12, %c0_13, %c0_14] {strides = array<i32: 2, 2, 1>} : memref<6x6x64xf32, #tpu.memory_space<vmem>>, vector<2x2x64xf32>
    %8 = vector.extract_strided_slice %5 {offsets = [0, 0, 0], sizes = [1, 1, 64], strides = [1, 1, 1]} : vector<3x3x64xf32> to vector<1x1x64xf32>
    %9 = vector.shape_cast %8 : vector<1x1x64xf32> to vector<64xf32>
    %10 = vector.shape_cast %9 : vector<64xf32> to vector<1x1x64xf32>
    %11 = vector.broadcast %10 : vector<1x1x64xf32> to vector<2x2x64xf32>
    %12 = arith.mulf %7, %11 : vector<2x2x64xf32>
    %13 = arith.addf %6, %12 : vector<2x2x64xf32>
    %c0_15 = arith.constant 0 : index
    %c1_16 = arith.constant 1 : index
    %c0_17 = arith.constant 0 : index
    %14 = tpu.strided_load %arg7[%c0_15, %c1_16, %c0_17] {strides = array<i32: 2, 2, 1>} : memref<6x6x64xf32, #tpu.memory_space<vmem>>, vector<2x2x64xf32>
    %15 = vector.extract_strided_slice %5 {offsets = [0, 1, 0], sizes = [1, 1, 64], strides = [1, 1, 1]} : vector<3x3x64xf32> to vector<1x1x64xf32>
    %16 = vector.shape_cast %15 : vector<1x1x64xf32> to vector<64xf32>
    %17 = vector.shape_cast %16 : vector<64xf32> to vector<1x1x64xf32>
    %18 = vector.broadcast %17 : vector<1x1x64xf32> to vector<2x2x64xf32>
    %19 = arith.mulf %14, %18 : vector<2x2x64xf32>
    %20 = arith.addf %13, %19 : vector<2x2x64xf32>
    %c0_18 = arith.constant 0 : index
    %c2 = arith.constant 2 : index
    %c0_19 = arith.constant 0 : index
    %21 = tpu.strided_load %arg7[%c0_18, %c2, %c0_19] {strides = array<i32: 2, 2, 1>} : memref<6x6x64xf32, #tpu.memory_space<vmem>>, vector<2x2x64xf32>
    %22 = vector.extract_strided_slice %5 {offsets = [0, 2, 0], sizes = [1, 1, 64], strides = [1, 1, 1]} : vector<3x3x64xf32> to vector<1x1x64xf32>
    %23 = vector.shape_cast %22 : vector<1x1x64xf32> to vector<64xf32>
    %24 = vector.shape_cast %23 : vector<64xf32> to vector<1x1x64xf32>
    %25 = vector.broadcast %24 : vector<1x1x64xf32> to vector<2x2x64xf32>
    %26 = arith.mulf %21, %25 : vector<2x2x64xf32>
    %27 = arith.addf %20, %26 : vector<2x2x64xf32>
    %c1_20 = arith.constant 1 : index
    %c0_21 = arith.constant 0 : index
    %c0_22 = arith.constant 0 : index
    %28 = tpu.strided_load %arg7[%c1_20, %c0_21, %c0_22] {strides = array<i32: 2, 2, 1>} : memref<6x6x64xf32, #tpu.memory_space<vmem>>, vector<2x2x64xf32>
    %29 = vector.extract_strided_slice %5 {offsets = [1, 0, 0], sizes = [1, 1, 64], strides = [1, 1, 1]} : vector<3x3x64xf32> to vector<1x1x64xf32>
    %30 = vector.shape_cast %29 : vector<1x1x64xf32> to vector<64xf32>
    %31 = vector.shape_cast %30 : vector<64xf32> to vector<1x1x64xf32>
    %32 = vector.broadcast %31 : vector<1x1x64xf32> to vector<2x2x64xf32>
    %33 = arith.mulf %28, %32 : vector<2x2x64xf32>
    %34 = arith.addf %27, %33 : vector<2x2x64xf32>
    %c1_23 = arith.constant 1 : index
    %c1_24 = arith.constant 1 : index
    %c0_25 = arith.constant 0 : index
    %35 = tpu.strided_load %arg7[%c1_23, %c1_24, %c0_25] {strides = array<i32: 2, 2, 1>} : memref<6x6x64xf32, #tpu.memory_space<vmem>>, vector<2x2x64xf32>
    %36 = vector.extract_strided_slice %5 {offsets = [1, 1, 0], sizes = [1, 1, 64], strides = [1, 1, 1]} : vector<3x3x64xf32> to vector<1x1x64xf32>
    %37 = vector.shape_cast %36 : vector<1x1x64xf32> to vector<64xf32>
    %38 = vector.shape_cast %37 : vector<64xf32> to vector<1x1x64xf32>
    %39 = vector.broadcast %38 : vector<1x1x64xf32> to vector<2x2x64xf32>
    %40 = arith.mulf %35, %39 : vector<2x2x64xf32>
    %41 = arith.addf %34, %40 : vector<2x2x64xf32>
    %c1_26 = arith.constant 1 : index
    %c2_27 = arith.constant 2 : index
    %c0_28 = arith.constant 0 : index
    %42 = tpu.strided_load %arg7[%c1_26, %c2_27, %c0_28] {strides = array<i32: 2, 2, 1>} : memref<6x6x64xf32, #tpu.memory_space<vmem>>, vector<2x2x64xf32>
    %43 = vector.extract_strided_slice %5 {offsets = [1, 2, 0], sizes = [1, 1, 64], strides = [1, 1, 1]} : vector<3x3x64xf32> to vector<1x1x64xf32>
    %44 = vector.shape_cast %43 : vector<1x1x64xf32> to vector<64xf32>
    %45 = vector.shape_cast %44 : vector<64xf32> to vector<1x1x64xf32>
    %46 = vector.broadcast %45 : vector<1x1x64xf32> to vector<2x2x64xf32>
    %47 = arith.mulf %42, %46 : vector<2x2x64xf32>
    %48 = arith.addf %41, %47 : vector<2x2x64xf32>
    %c2_29 = arith.constant 2 : index
    %c0_30 = arith.constant 0 : index
    %c0_31 = arith.constant 0 : index
    %49 = tpu.strided_load %arg7[%c2_29, %c0_30, %c0_31] {strides = array<i32: 2, 2, 1>} : memref<6x6x64xf32, #tpu.memory_space<vmem>>, vector<2x2x64xf32>
    %50 = vector.extract_strided_slice %5 {offsets = [2, 0, 0], sizes = [1, 1, 64], strides = [1, 1, 1]} : vector<3x3x64xf32> to vector<1x1x64xf32>
    %51 = vector.shape_cast %50 : vector<1x1x64xf32> to vector<64xf32>
    %52 = vector.shape_cast %51 : vector<64xf32> to vector<1x1x64xf32>
    %53 = vector.broadcast %52 : vector<1x1x64xf32> to vector<2x2x64xf32>
    %54 = arith.mulf %49, %53 : vector<2x2x64xf32>
    %55 = arith.addf %48, %54 : vector<2x2x64xf32>
    %c2_32 = arith.constant 2 : index
    %c1_33 = arith.constant 1 : index
    %c0_34 = arith.constant 0 : index
    %56 = tpu.strided_load %arg7[%c2_32, %c1_33, %c0_34] {strides = array<i32: 2, 2, 1>} : memref<6x6x64xf32, #tpu.memory_space<vmem>>, vector<2x2x64xf32>
    %57 = vector.extract_strided_slice %5 {offsets = [2, 1, 0], sizes = [1, 1, 64], strides = [1, 1, 1]} : vector<3x3x64xf32> to vector<1x1x64xf32>
    %58 = vector.shape_cast %57 : vector<1x1x64xf32> to vector<64xf32>
    %59 = vector.shape_cast %58 : vector<64xf32> to vector<1x1x64xf32>
    %60 = vector.broadcast %59 : vector<1x1x64xf32> to vector<2x2x64xf32>
    %61 = arith.mulf %56, %60 : vector<2x2x64xf32>
    %62 = arith.addf %55, %61 : vector<2x2x64xf32>
    %c2_35 = arith.constant 2 : index
    %c2_36 = arith.constant 2 : index
    %c0_37 = arith.constant 0 : index
    %63 = tpu.strided_load %arg7[%c2_35, %c2_36, %c0_37] {strides = array<i32: 2, 2, 1>} : memref<6x6x64xf32, #tpu.memory_space<vmem>>, vector<2x2x64xf32>
    %64 = vector.extract_strided_slice %5 {offsets = [2, 2, 0], sizes = [1, 1, 64], strides = [1, 1, 1]} : vector<3x3x64xf32> to vector<1x1x64xf32>
    %65 = vector.shape_cast %64 : vector<1x1x64xf32> to vector<64xf32>
    %66 = vector.shape_cast %65 : vector<64xf32> to vector<1x1x64xf32>
    %67 = vector.broadcast %66 : vector<1x1x64xf32> to vector<2x2x64xf32>
    %68 = arith.mulf %63, %67 : vector<2x2x64xf32>
    %69 = arith.addf %62, %68 : vector<2x2x64xf32>
    %c0_38 = arith.constant 0 : index
    %c0_39 = arith.constant 0 : index
    %70 = vector.load %arg3[%c0_38, %c0_39] : memref<1x64xf32, #tpu.memory_space<vmem>>, vector<1x64xf32>
    %71 = vector.shape_cast %70 : vector<1x64xf32> to vector<1x1x64xf32>
    %72 = vector.broadcast %71 : vector<1x1x64xf32> to vector<2x2x64xf32>
    %73 = arith.addf %69, %72 : vector<2x2x64xf32>
    %cst_40 = arith.constant 0.000000e+00 : f32
    %74 = vector.broadcast %cst_40 : f32 to vector<2x2x64xf32>
    %75 = arith.maximumf %73, %74 : vector<2x2x64xf32>
    %76 = vector.shape_cast %75 : vector<2x2x64xf32> to vector<4x64xf32>
    %77 = arith.truncf %76 : vector<4x64xf32> to vector<4x64xbf16>
    %c0_41 = arith.constant 0 : index
    %c0_42 = arith.constant 0 : index
    %78 = vector.load %arg4[%c0_41, %c0_42] : memref<64x128xbf16, #tpu.memory_space<vmem>>, vector<64x128xbf16>
    %cst_43 = arith.constant dense<0.000000e+00> : vector<4x128xf32>
    %79 = tpu.matmul %77, %78, %cst_43 {dimension_numbers = #tpu.dot_dimension_numbers<[1], [0], [0], [1], [0, 0, 1, 1], [], []>} : vector<4x64xbf16>, vector<64x128xbf16>, vector<4x128xf32> -> vector<4x128xf32>
    %c0_44 = arith.constant 0 : index
    %c0_45 = arith.constant 0 : index
    %80 = vector.load %arg5[%c0_44, %c0_45] : memref<1x128xf32, #tpu.memory_space<vmem>>, vector<1x128xf32>
    %81 = vector.broadcast %80 : vector<1x128xf32> to vector<4x128xf32>
    %82 = arith.addf %79, %81 : vector<4x128xf32>
    %cst_46 = arith.constant 0.000000e+00 : f32
    %83 = vector.broadcast %cst_46 : f32 to vector<4x128xf32>
    %84 = arith.maximumf %82, %83 : vector<4x128xf32>
    %c0_47 = arith.constant 0 : index
    %c0_48 = arith.constant 0 : index
    %c0_49 = arith.constant 0 : index
    %85 = vector.load %arg6[%c0_47, %c0_48, %c0_49] : memref<1x4x128xf32, #tpu.memory_space<vmem>>, vector<1x4x128xf32>
    %86 = vector.shape_cast %85 : vector<1x4x128xf32> to vector<4x128xf32>
    %87 = vector.shape_cast %84 : vector<4x128xf32> to vector<1x4x128xf32>
    tpu.vector_store %arg6[%c0_47, %c0_48, %c0_49], %87 {strides = array<i32>} : memref<1x4x128xf32, #tpu.memory_space<vmem>>, vector<1x4x128xf32>,
    return
  }
  func.func @transform_0(%arg0: i32) -> (i32, i32, i32, i32) {
    %c0_i32 = arith.constant 0 : i32
    %c0_i32_0 = arith.constant 0 : i32
    %c0_i32_1 = arith.constant 0 : i32
    %c0_i32_2 = arith.constant 0 : i32
    return %arg0, %c0_i32, %c0_i32_0, %c0_i32_1 : i32, i32, i32, i32
  }
  func.func @transform_1(%arg0: i32) -> (i32, i32, i32) {
    %c0_i32 = arith.constant 0 : i32
    %c0_i32_0 = arith.constant 0 : i32
    %c0_i32_1 = arith.constant 0 : i32
    %c0_i32_2 = arith.constant 0 : i32
    return %c0_i32, %c0_i32_0, %c0_i32_1 : i32, i32, i32
  }
  func.func @transform_2(%arg0: i32) -> (i32, i32) {
    %c0_i32 = arith.constant 0 : i32
    %c0_i32_0 = arith.constant 0 : i32
    %c0_i32_1 = arith.constant 0 : i32
    return %c0_i32, %c0_i32_0 : i32, i32
  }
  func.func @transform_3(%arg0: i32) -> (i32, i32) {
    %c0_i32 = arith.constant 0 : i32
    %c0_i32_0 = arith.constant 0 : i32
    %c0_i32_1 = arith.constant 0 : i32
    return %c0_i32, %c0_i32_0 : i32, i32
  }
  func.func @transform_4(%arg0: i32) -> (i32, i32) {
    %c0_i32 = arith.constant 0 : i32
    %c0_i32_0 = arith.constant 0 : i32
    %c0_i32_1 = arith.constant 0 : i32
    return %c0_i32, %c0_i32_0 : i32, i32
  }
  func.func @transform_5(%arg0: i32) -> (i32, i32, i32) {
    %c0_i32 = arith.constant 0 : i32
    %c0_i32_0 = arith.constant 0 : i32
    %c0_i32_1 = arith.constant 0 : i32
    return %arg0, %c0_i32, %c0_i32_0 : i32, i32, i32
  }
}

module attributes {stable_mosaic.version = 11 : i64} {
  func.func @_fused_block_kernel(%arg0: i32, %arg1: memref<1x2x2x128xf32, #tpu.memory_space<vmem>>, %arg2: memref<3x3x128xf32, #tpu.memory_space<vmem>>, %arg3: memref<1x128xf32, #tpu.memory_space<vmem>>, %arg4: memref<128x128xbf16, #tpu.memory_space<vmem>>, %arg5: memref<1x128xf32, #tpu.memory_space<vmem>>, %arg6: memref<1x4x128xf32, #tpu.memory_space<vmem>>, %arg7: memref<4x4x128xf32, #tpu.memory_space<vmem>>) attributes {dimension_semantics = [#tpu.dimension_semantics<parallel>], iteration_bounds = array<i64: 2>, scalar_prefetch = 0 : i64, scratch_operands = 1 : i64, tpu.core_type = #tpu.core_type<tc>, window_params = [{transform_indices = @transform_0, window_bounds = array<i64: 1, 2, 2, 128>}, {pipeline_mode = #tpu.pipeline_mode<synchronous>, transform_indices = @transform_1, window_bounds = array<i64: 3, 3, 128>}, {pipeline_mode = #tpu.pipeline_mode<synchronous>, transform_indices = @transform_2, window_bounds = array<i64: 1, 128>}, {pipeline_mode = #tpu.pipeline_mode<synchronous>, transform_indices = @transform_3, window_bounds = array<i64: 128, 128>}, {pipeline_mode = #tpu.pipeline_mode<synchronous>, transform_indices = @transform_4, window_bounds = array<i64: 1, 128>}, {transform_indices = @transform_5, window_bounds = array<i64: 1, 4, 128>}]} {
    %cst = arith.constant 0.000000e+00 : f32
    %0 = vector.broadcast %cst : f32 to vector<4x4x128xf32>
    %c0 = arith.constant 0 : index
    %c0_0 = arith.constant 0 : index
    %c0_1 = arith.constant 0 : index
    %1 = vector.load %arg7[%c0, %c0_0, %c0_1] : memref<4x4x128xf32, #tpu.memory_space<vmem>>, vector<4x4x128xf32>
    tpu.vector_store %arg7[%c0, %c0_0, %c0_1], %0 {strides = array<i32>} : memref<4x4x128xf32, #tpu.memory_space<vmem>>, vector<4x4x128xf32>,
    %c0_2 = arith.constant 0 : index
    %c0_3 = arith.constant 0 : index
    %c0_4 = arith.constant 0 : index
    %c0_5 = arith.constant 0 : index
    %2 = vector.load %arg1[%c0_2, %c0_3, %c0_4, %c0_5] : memref<1x2x2x128xf32, #tpu.memory_space<vmem>>, vector<1x2x2x128xf32>
    %3 = vector.shape_cast %2 : vector<1x2x2x128xf32> to vector<2x2x128xf32>
    %c1 = arith.constant 1 : index
    %c1_6 = arith.constant 1 : index
    %c0_7 = arith.constant 0 : index
    %4 = vector.load %arg7[%c1, %c1_6, %c0_7] : memref<4x4x128xf32, #tpu.memory_space<vmem>>, vector<2x2x128xf32>
    tpu.vector_store %arg7[%c1, %c1_6, %c0_7], %3 {strides = array<i32>} : memref<4x4x128xf32, #tpu.memory_space<vmem>>, vector<2x2x128xf32>,
    %c0_8 = arith.constant 0 : index
    %c0_9 = arith.constant 0 : index
    %c0_10 = arith.constant 0 : index
    %5 = vector.load %arg2[%c0_8, %c0_9, %c0_10] : memref<3x3x128xf32, #tpu.memory_space<vmem>>, vector<3x3x128xf32>
    %cst_11 = arith.constant 0.000000e+00 : f32
    %6 = vector.broadcast %cst_11 : f32 to vector<2x2x128xf32>
    %c0_12 = arith.constant 0 : index
    %c0_13 = arith.constant 0 : index
    %c0_14 = arith.constant 0 : index
    %7 = vector.load %arg7[%c0_12, %c0_13, %c0_14] : memref<4x4x128xf32, #tpu.memory_space<vmem>>, vector<2x2x128xf32>
    %8 = vector.extract_strided_slice %5 {offsets = [0, 0, 0], sizes = [1, 1, 128], strides = [1, 1, 1]} : vector<3x3x128xf32> to vector<1x1x128xf32>
    %9 = vector.shape_cast %8 : vector<1x1x128xf32> to vector<128xf32>
    %10 = vector.shape_cast %9 : vector<128xf32> to vector<1x1x128xf32>
    %11 = vector.broadcast %10 : vector<1x1x128xf32> to vector<2x2x128xf32>
    %12 = arith.mulf %7, %11 : vector<2x2x128xf32>
    %13 = arith.addf %6, %12 : vector<2x2x128xf32>
    %c0_15 = arith.constant 0 : index
    %c1_16 = arith.constant 1 : index
    %c0_17 = arith.constant 0 : index
    %14 = vector.load %arg7[%c0_15, %c1_16, %c0_17] : memref<4x4x128xf32, #tpu.memory_space<vmem>>, vector<2x2x128xf32>
    %15 = vector.extract_strided_slice %5 {offsets = [0, 1, 0], sizes = [1, 1, 128], strides = [1, 1, 1]} : vector<3x3x128xf32> to vector<1x1x128xf32>
    %16 = vector.shape_cast %15 : vector<1x1x128xf32> to vector<128xf32>
    %17 = vector.shape_cast %16 : vector<128xf32> to vector<1x1x128xf32>
    %18 = vector.broadcast %17 : vector<1x1x128xf32> to vector<2x2x128xf32>
    %19 = arith.mulf %14, %18 : vector<2x2x128xf32>
    %20 = arith.addf %13, %19 : vector<2x2x128xf32>
    %c0_18 = arith.constant 0 : index
    %c2 = arith.constant 2 : index
    %c0_19 = arith.constant 0 : index
    %21 = vector.load %arg7[%c0_18, %c2, %c0_19] : memref<4x4x128xf32, #tpu.memory_space<vmem>>, vector<2x2x128xf32>
    %22 = vector.extract_strided_slice %5 {offsets = [0, 2, 0], sizes = [1, 1, 128], strides = [1, 1, 1]} : vector<3x3x128xf32> to vector<1x1x128xf32>
    %23 = vector.shape_cast %22 : vector<1x1x128xf32> to vector<128xf32>
    %24 = vector.shape_cast %23 : vector<128xf32> to vector<1x1x128xf32>
    %25 = vector.broadcast %24 : vector<1x1x128xf32> to vector<2x2x128xf32>
    %26 = arith.mulf %21, %25 : vector<2x2x128xf32>
    %27 = arith.addf %20, %26 : vector<2x2x128xf32>
    %c1_20 = arith.constant 1 : index
    %c0_21 = arith.constant 0 : index
    %c0_22 = arith.constant 0 : index
    %28 = vector.load %arg7[%c1_20, %c0_21, %c0_22] : memref<4x4x128xf32, #tpu.memory_space<vmem>>, vector<2x2x128xf32>
    %29 = vector.extract_strided_slice %5 {offsets = [1, 0, 0], sizes = [1, 1, 128], strides = [1, 1, 1]} : vector<3x3x128xf32> to vector<1x1x128xf32>
    %30 = vector.shape_cast %29 : vector<1x1x128xf32> to vector<128xf32>
    %31 = vector.shape_cast %30 : vector<128xf32> to vector<1x1x128xf32>
    %32 = vector.broadcast %31 : vector<1x1x128xf32> to vector<2x2x128xf32>
    %33 = arith.mulf %28, %32 : vector<2x2x128xf32>
    %34 = arith.addf %27, %33 : vector<2x2x128xf32>
    %c1_23 = arith.constant 1 : index
    %c1_24 = arith.constant 1 : index
    %c0_25 = arith.constant 0 : index
    %35 = vector.load %arg7[%c1_23, %c1_24, %c0_25] : memref<4x4x128xf32, #tpu.memory_space<vmem>>, vector<2x2x128xf32>
    %36 = vector.extract_strided_slice %5 {offsets = [1, 1, 0], sizes = [1, 1, 128], strides = [1, 1, 1]} : vector<3x3x128xf32> to vector<1x1x128xf32>
    %37 = vector.shape_cast %36 : vector<1x1x128xf32> to vector<128xf32>
    %38 = vector.shape_cast %37 : vector<128xf32> to vector<1x1x128xf32>
    %39 = vector.broadcast %38 : vector<1x1x128xf32> to vector<2x2x128xf32>
    %40 = arith.mulf %35, %39 : vector<2x2x128xf32>
    %41 = arith.addf %34, %40 : vector<2x2x128xf32>
    %c1_26 = arith.constant 1 : index
    %c2_27 = arith.constant 2 : index
    %c0_28 = arith.constant 0 : index
    %42 = vector.load %arg7[%c1_26, %c2_27, %c0_28] : memref<4x4x128xf32, #tpu.memory_space<vmem>>, vector<2x2x128xf32>
    %43 = vector.extract_strided_slice %5 {offsets = [1, 2, 0], sizes = [1, 1, 128], strides = [1, 1, 1]} : vector<3x3x128xf32> to vector<1x1x128xf32>
    %44 = vector.shape_cast %43 : vector<1x1x128xf32> to vector<128xf32>
    %45 = vector.shape_cast %44 : vector<128xf32> to vector<1x1x128xf32>
    %46 = vector.broadcast %45 : vector<1x1x128xf32> to vector<2x2x128xf32>
    %47 = arith.mulf %42, %46 : vector<2x2x128xf32>
    %48 = arith.addf %41, %47 : vector<2x2x128xf32>
    %c2_29 = arith.constant 2 : index
    %c0_30 = arith.constant 0 : index
    %c0_31 = arith.constant 0 : index
    %49 = vector.load %arg7[%c2_29, %c0_30, %c0_31] : memref<4x4x128xf32, #tpu.memory_space<vmem>>, vector<2x2x128xf32>
    %50 = vector.extract_strided_slice %5 {offsets = [2, 0, 0], sizes = [1, 1, 128], strides = [1, 1, 1]} : vector<3x3x128xf32> to vector<1x1x128xf32>
    %51 = vector.shape_cast %50 : vector<1x1x128xf32> to vector<128xf32>
    %52 = vector.shape_cast %51 : vector<128xf32> to vector<1x1x128xf32>
    %53 = vector.broadcast %52 : vector<1x1x128xf32> to vector<2x2x128xf32>
    %54 = arith.mulf %49, %53 : vector<2x2x128xf32>
    %55 = arith.addf %48, %54 : vector<2x2x128xf32>
    %c2_32 = arith.constant 2 : index
    %c1_33 = arith.constant 1 : index
    %c0_34 = arith.constant 0 : index
    %56 = vector.load %arg7[%c2_32, %c1_33, %c0_34] : memref<4x4x128xf32, #tpu.memory_space<vmem>>, vector<2x2x128xf32>
    %57 = vector.extract_strided_slice %5 {offsets = [2, 1, 0], sizes = [1, 1, 128], strides = [1, 1, 1]} : vector<3x3x128xf32> to vector<1x1x128xf32>
    %58 = vector.shape_cast %57 : vector<1x1x128xf32> to vector<128xf32>
    %59 = vector.shape_cast %58 : vector<128xf32> to vector<1x1x128xf32>
    %60 = vector.broadcast %59 : vector<1x1x128xf32> to vector<2x2x128xf32>
    %61 = arith.mulf %56, %60 : vector<2x2x128xf32>
    %62 = arith.addf %55, %61 : vector<2x2x128xf32>
    %c2_35 = arith.constant 2 : index
    %c2_36 = arith.constant 2 : index
    %c0_37 = arith.constant 0 : index
    %63 = vector.load %arg7[%c2_35, %c2_36, %c0_37] : memref<4x4x128xf32, #tpu.memory_space<vmem>>, vector<2x2x128xf32>
    %64 = vector.extract_strided_slice %5 {offsets = [2, 2, 0], sizes = [1, 1, 128], strides = [1, 1, 1]} : vector<3x3x128xf32> to vector<1x1x128xf32>
    %65 = vector.shape_cast %64 : vector<1x1x128xf32> to vector<128xf32>
    %66 = vector.shape_cast %65 : vector<128xf32> to vector<1x1x128xf32>
    %67 = vector.broadcast %66 : vector<1x1x128xf32> to vector<2x2x128xf32>
    %68 = arith.mulf %63, %67 : vector<2x2x128xf32>
    %69 = arith.addf %62, %68 : vector<2x2x128xf32>
    %c0_38 = arith.constant 0 : index
    %c0_39 = arith.constant 0 : index
    %70 = vector.load %arg3[%c0_38, %c0_39] : memref<1x128xf32, #tpu.memory_space<vmem>>, vector<1x128xf32>
    %71 = vector.shape_cast %70 : vector<1x128xf32> to vector<1x1x128xf32>
    %72 = vector.broadcast %71 : vector<1x1x128xf32> to vector<2x2x128xf32>
    %73 = arith.addf %69, %72 : vector<2x2x128xf32>
    %cst_40 = arith.constant 0.000000e+00 : f32
    %74 = vector.broadcast %cst_40 : f32 to vector<2x2x128xf32>
    %75 = arith.maximumf %73, %74 : vector<2x2x128xf32>
    %76 = vector.shape_cast %75 : vector<2x2x128xf32> to vector<4x128xf32>
    %77 = arith.truncf %76 : vector<4x128xf32> to vector<4x128xbf16>
    %c0_41 = arith.constant 0 : index
    %c0_42 = arith.constant 0 : index
    %78 = vector.load %arg4[%c0_41, %c0_42] : memref<128x128xbf16, #tpu.memory_space<vmem>>, vector<128x128xbf16>
    %cst_43 = arith.constant dense<0.000000e+00> : vector<4x128xf32>
    %79 = tpu.matmul %77, %78, %cst_43 {dimension_numbers = #tpu.dot_dimension_numbers<[1], [0], [0], [1], [0, 0, 1, 1], [], []>} : vector<4x128xbf16>, vector<128x128xbf16>, vector<4x128xf32> -> vector<4x128xf32>
    %c0_44 = arith.constant 0 : index
    %c0_45 = arith.constant 0 : index
    %80 = vector.load %arg5[%c0_44, %c0_45] : memref<1x128xf32, #tpu.memory_space<vmem>>, vector<1x128xf32>
    %81 = vector.broadcast %80 : vector<1x128xf32> to vector<4x128xf32>
    %82 = arith.addf %79, %81 : vector<4x128xf32>
    %cst_46 = arith.constant 0.000000e+00 : f32
    %83 = vector.broadcast %cst_46 : f32 to vector<4x128xf32>
    %84 = arith.maximumf %82, %83 : vector<4x128xf32>
    %c0_47 = arith.constant 0 : index
    %c0_48 = arith.constant 0 : index
    %c0_49 = arith.constant 0 : index
    %85 = vector.load %arg6[%c0_47, %c0_48, %c0_49] : memref<1x4x128xf32, #tpu.memory_space<vmem>>, vector<1x4x128xf32>
    %86 = vector.shape_cast %85 : vector<1x4x128xf32> to vector<4x128xf32>
    %87 = vector.shape_cast %84 : vector<4x128xf32> to vector<1x4x128xf32>
    tpu.vector_store %arg6[%c0_47, %c0_48, %c0_49], %87 {strides = array<i32>} : memref<1x4x128xf32, #tpu.memory_space<vmem>>, vector<1x4x128xf32>,
    return
  }
  func.func @transform_0(%arg0: i32) -> (i32, i32, i32, i32) {
    %c0_i32 = arith.constant 0 : i32
    %c0_i32_0 = arith.constant 0 : i32
    %c0_i32_1 = arith.constant 0 : i32
    %c0_i32_2 = arith.constant 0 : i32
    return %arg0, %c0_i32, %c0_i32_0, %c0_i32_1 : i32, i32, i32, i32
  }
  func.func @transform_1(%arg0: i32) -> (i32, i32, i32) {
    %c0_i32 = arith.constant 0 : i32
    %c0_i32_0 = arith.constant 0 : i32
    %c0_i32_1 = arith.constant 0 : i32
    %c0_i32_2 = arith.constant 0 : i32
    return %c0_i32, %c0_i32_0, %c0_i32_1 : i32, i32, i32
  }
  func.func @transform_2(%arg0: i32) -> (i32, i32) {
    %c0_i32 = arith.constant 0 : i32
    %c0_i32_0 = arith.constant 0 : i32
    %c0_i32_1 = arith.constant 0 : i32
    return %c0_i32, %c0_i32_0 : i32, i32
  }
  func.func @transform_3(%arg0: i32) -> (i32, i32) {
    %c0_i32 = arith.constant 0 : i32
    %c0_i32_0 = arith.constant 0 : i32
    %c0_i32_1 = arith.constant 0 : i32
    return %c0_i32, %c0_i32_0 : i32, i32
  }
  func.func @transform_4(%arg0: i32) -> (i32, i32) {
    %c0_i32 = arith.constant 0 : i32
    %c0_i32_0 = arith.constant 0 : i32
    %c0_i32_1 = arith.constant 0 : i32
    return %c0_i32, %c0_i32_0 : i32, i32
  }
  func.func @transform_5(%arg0: i32) -> (i32, i32, i32) {
    %c0_i32 = arith.constant 0 : i32
    %c0_i32_0 = arith.constant 0 : i32
    %c0_i32_1 = arith.constant 0 : i32
    return %arg0, %c0_i32, %c0_i32_0 : i32, i32, i32
  }
}

module attributes {stable_mosaic.version = 11 : i64} {
  func.func @_fused_block_kernel(%arg0: i32, %arg1: memref<1x2x2x128xf32, #tpu.memory_space<vmem>>, %arg2: memref<3x3x128xf32, #tpu.memory_space<vmem>>, %arg3: memref<1x128xf32, #tpu.memory_space<vmem>>, %arg4: memref<128x256xbf16, #tpu.memory_space<vmem>>, %arg5: memref<1x256xf32, #tpu.memory_space<vmem>>, %arg6: memref<1x1x256xf32, #tpu.memory_space<vmem>>, %arg7: memref<4x4x128xf32, #tpu.memory_space<vmem>>) attributes {dimension_semantics = [#tpu.dimension_semantics<parallel>], iteration_bounds = array<i64: 2>, scalar_prefetch = 0 : i64, scratch_operands = 1 : i64, tpu.core_type = #tpu.core_type<tc>, window_params = [{transform_indices = @transform_0, window_bounds = array<i64: 1, 2, 2, 128>}, {pipeline_mode = #tpu.pipeline_mode<synchronous>, transform_indices = @transform_1, window_bounds = array<i64: 3, 3, 128>}, {pipeline_mode = #tpu.pipeline_mode<synchronous>, transform_indices = @transform_2, window_bounds = array<i64: 1, 128>}, {pipeline_mode = #tpu.pipeline_mode<synchronous>, transform_indices = @transform_3, window_bounds = array<i64: 128, 256>}, {pipeline_mode = #tpu.pipeline_mode<synchronous>, transform_indices = @transform_4, window_bounds = array<i64: 1, 256>}, {transform_indices = @transform_5, window_bounds = array<i64: 1, 1, 256>}]} {
    %cst = arith.constant 0.000000e+00 : f32
    %0 = vector.broadcast %cst : f32 to vector<4x4x128xf32>
    %c0 = arith.constant 0 : index
    %c0_0 = arith.constant 0 : index
    %c0_1 = arith.constant 0 : index
    %1 = vector.load %arg7[%c0, %c0_0, %c0_1] : memref<4x4x128xf32, #tpu.memory_space<vmem>>, vector<4x4x128xf32>
    tpu.vector_store %arg7[%c0, %c0_0, %c0_1], %0 {strides = array<i32>} : memref<4x4x128xf32, #tpu.memory_space<vmem>>, vector<4x4x128xf32>,
    %c0_2 = arith.constant 0 : index
    %c0_3 = arith.constant 0 : index
    %c0_4 = arith.constant 0 : index
    %c0_5 = arith.constant 0 : index
    %2 = vector.load %arg1[%c0_2, %c0_3, %c0_4, %c0_5] : memref<1x2x2x128xf32, #tpu.memory_space<vmem>>, vector<1x2x2x128xf32>
    %3 = vector.shape_cast %2 : vector<1x2x2x128xf32> to vector<2x2x128xf32>
    %c1 = arith.constant 1 : index
    %c1_6 = arith.constant 1 : index
    %c0_7 = arith.constant 0 : index
    %4 = vector.load %arg7[%c1, %c1_6, %c0_7] : memref<4x4x128xf32, #tpu.memory_space<vmem>>, vector<2x2x128xf32>
    tpu.vector_store %arg7[%c1, %c1_6, %c0_7], %3 {strides = array<i32>} : memref<4x4x128xf32, #tpu.memory_space<vmem>>, vector<2x2x128xf32>,
    %c0_8 = arith.constant 0 : index
    %c0_9 = arith.constant 0 : index
    %c0_10 = arith.constant 0 : index
    %5 = vector.load %arg2[%c0_8, %c0_9, %c0_10] : memref<3x3x128xf32, #tpu.memory_space<vmem>>, vector<3x3x128xf32>
    %cst_11 = arith.constant 0.000000e+00 : f32
    %6 = vector.broadcast %cst_11 : f32 to vector<1x1x128xf32>
    %c0_12 = arith.constant 0 : index
    %c0_13 = arith.constant 0 : index
    %c0_14 = arith.constant 0 : index
    %7 = tpu.strided_load %arg7[%c0_12, %c0_13, %c0_14] {strides = array<i32: 2, 2, 1>} : memref<4x4x128xf32, #tpu.memory_space<vmem>>, vector<1x1x128xf32>
    %8 = vector.extract_strided_slice %5 {offsets = [0, 0, 0], sizes = [1, 1, 128], strides = [1, 1, 1]} : vector<3x3x128xf32> to vector<1x1x128xf32>
    %9 = vector.shape_cast %8 : vector<1x1x128xf32> to vector<128xf32>
    %10 = vector.shape_cast %9 : vector<128xf32> to vector<1x1x128xf32>
    %11 = arith.mulf %7, %10 : vector<1x1x128xf32>
    %12 = arith.addf %6, %11 : vector<1x1x128xf32>
    %c0_15 = arith.constant 0 : index
    %c1_16 = arith.constant 1 : index
    %c0_17 = arith.constant 0 : index
    %13 = tpu.strided_load %arg7[%c0_15, %c1_16, %c0_17] {strides = array<i32: 2, 2, 1>} : memref<4x4x128xf32, #tpu.memory_space<vmem>>, vector<1x1x128xf32>
    %14 = vector.extract_strided_slice %5 {offsets = [0, 1, 0], sizes = [1, 1, 128], strides = [1, 1, 1]} : vector<3x3x128xf32> to vector<1x1x128xf32>
    %15 = vector.shape_cast %14 : vector<1x1x128xf32> to vector<128xf32>
    %16 = vector.shape_cast %15 : vector<128xf32> to vector<1x1x128xf32>
    %17 = arith.mulf %13, %16 : vector<1x1x128xf32>
    %18 = arith.addf %12, %17 : vector<1x1x128xf32>
    %c0_18 = arith.constant 0 : index
    %c2 = arith.constant 2 : index
    %c0_19 = arith.constant 0 : index
    %19 = tpu.strided_load %arg7[%c0_18, %c2, %c0_19] {strides = array<i32: 2, 2, 1>} : memref<4x4x128xf32, #tpu.memory_space<vmem>>, vector<1x1x128xf32>
    %20 = vector.extract_strided_slice %5 {offsets = [0, 2, 0], sizes = [1, 1, 128], strides = [1, 1, 1]} : vector<3x3x128xf32> to vector<1x1x128xf32>
    %21 = vector.shape_cast %20 : vector<1x1x128xf32> to vector<128xf32>
    %22 = vector.shape_cast %21 : vector<128xf32> to vector<1x1x128xf32>
    %23 = arith.mulf %19, %22 : vector<1x1x128xf32>
    %24 = arith.addf %18, %23 : vector<1x1x128xf32>
    %c1_20 = arith.constant 1 : index
    %c0_21 = arith.constant 0 : index
    %c0_22 = arith.constant 0 : index
    %25 = tpu.strided_load %arg7[%c1_20, %c0_21, %c0_22] {strides = array<i32: 2, 2, 1>} : memref<4x4x128xf32, #tpu.memory_space<vmem>>, vector<1x1x128xf32>
    %26 = vector.extract_strided_slice %5 {offsets = [1, 0, 0], sizes = [1, 1, 128], strides = [1, 1, 1]} : vector<3x3x128xf32> to vector<1x1x128xf32>
    %27 = vector.shape_cast %26 : vector<1x1x128xf32> to vector<128xf32>
    %28 = vector.shape_cast %27 : vector<128xf32> to vector<1x1x128xf32>
    %29 = arith.mulf %25, %28 : vector<1x1x128xf32>
    %30 = arith.addf %24, %29 : vector<1x1x128xf32>
    %c1_23 = arith.constant 1 : index
    %c1_24 = arith.constant 1 : index
    %c0_25 = arith.constant 0 : index
    %31 = tpu.strided_load %arg7[%c1_23, %c1_24, %c0_25] {strides = array<i32: 2, 2, 1>} : memref<4x4x128xf32, #tpu.memory_space<vmem>>, vector<1x1x128xf32>
    %32 = vector.extract_strided_slice %5 {offsets = [1, 1, 0], sizes = [1, 1, 128], strides = [1, 1, 1]} : vector<3x3x128xf32> to vector<1x1x128xf32>
    %33 = vector.shape_cast %32 : vector<1x1x128xf32> to vector<128xf32>
    %34 = vector.shape_cast %33 : vector<128xf32> to vector<1x1x128xf32>
    %35 = arith.mulf %31, %34 : vector<1x1x128xf32>
    %36 = arith.addf %30, %35 : vector<1x1x128xf32>
    %c1_26 = arith.constant 1 : index
    %c2_27 = arith.constant 2 : index
    %c0_28 = arith.constant 0 : index
    %37 = tpu.strided_load %arg7[%c1_26, %c2_27, %c0_28] {strides = array<i32: 2, 2, 1>} : memref<4x4x128xf32, #tpu.memory_space<vmem>>, vector<1x1x128xf32>
    %38 = vector.extract_strided_slice %5 {offsets = [1, 2, 0], sizes = [1, 1, 128], strides = [1, 1, 1]} : vector<3x3x128xf32> to vector<1x1x128xf32>
    %39 = vector.shape_cast %38 : vector<1x1x128xf32> to vector<128xf32>
    %40 = vector.shape_cast %39 : vector<128xf32> to vector<1x1x128xf32>
    %41 = arith.mulf %37, %40 : vector<1x1x128xf32>
    %42 = arith.addf %36, %41 : vector<1x1x128xf32>
    %c2_29 = arith.constant 2 : index
    %c0_30 = arith.constant 0 : index
    %c0_31 = arith.constant 0 : index
    %43 = tpu.strided_load %arg7[%c2_29, %c0_30, %c0_31] {strides = array<i32: 2, 2, 1>} : memref<4x4x128xf32, #tpu.memory_space<vmem>>, vector<1x1x128xf32>
    %44 = vector.extract_strided_slice %5 {offsets = [2, 0, 0], sizes = [1, 1, 128], strides = [1, 1, 1]} : vector<3x3x128xf32> to vector<1x1x128xf32>
    %45 = vector.shape_cast %44 : vector<1x1x128xf32> to vector<128xf32>
    %46 = vector.shape_cast %45 : vector<128xf32> to vector<1x1x128xf32>
    %47 = arith.mulf %43, %46 : vector<1x1x128xf32>
    %48 = arith.addf %42, %47 : vector<1x1x128xf32>
    %c2_32 = arith.constant 2 : index
    %c1_33 = arith.constant 1 : index
    %c0_34 = arith.constant 0 : index
    %49 = tpu.strided_load %arg7[%c2_32, %c1_33, %c0_34] {strides = array<i32: 2, 2, 1>} : memref<4x4x128xf32, #tpu.memory_space<vmem>>, vector<1x1x128xf32>
    %50 = vector.extract_strided_slice %5 {offsets = [2, 1, 0], sizes = [1, 1, 128], strides = [1, 1, 1]} : vector<3x3x128xf32> to vector<1x1x128xf32>
    %51 = vector.shape_cast %50 : vector<1x1x128xf32> to vector<128xf32>
    %52 = vector.shape_cast %51 : vector<128xf32> to vector<1x1x128xf32>
    %53 = arith.mulf %49, %52 : vector<1x1x128xf32>
    %54 = arith.addf %48, %53 : vector<1x1x128xf32>
    %c2_35 = arith.constant 2 : index
    %c2_36 = arith.constant 2 : index
    %c0_37 = arith.constant 0 : index
    %55 = tpu.strided_load %arg7[%c2_35, %c2_36, %c0_37] {strides = array<i32: 2, 2, 1>} : memref<4x4x128xf32, #tpu.memory_space<vmem>>, vector<1x1x128xf32>
    %56 = vector.extract_strided_slice %5 {offsets = [2, 2, 0], sizes = [1, 1, 128], strides = [1, 1, 1]} : vector<3x3x128xf32> to vector<1x1x128xf32>
    %57 = vector.shape_cast %56 : vector<1x1x128xf32> to vector<128xf32>
    %58 = vector.shape_cast %57 : vector<128xf32> to vector<1x1x128xf32>
    %59 = arith.mulf %55, %58 : vector<1x1x128xf32>
    %60 = arith.addf %54, %59 : vector<1x1x128xf32>
    %c0_38 = arith.constant 0 : index
    %c0_39 = arith.constant 0 : index
    %61 = vector.load %arg3[%c0_38, %c0_39] : memref<1x128xf32, #tpu.memory_space<vmem>>, vector<1x128xf32>
    %62 = vector.shape_cast %61 : vector<1x128xf32> to vector<1x1x128xf32>
    %63 = arith.addf %60, %62 : vector<1x1x128xf32>
    %cst_40 = arith.constant 0.000000e+00 : f32
    %64 = vector.broadcast %cst_40 : f32 to vector<1x1x128xf32>
    %65 = arith.maximumf %63, %64 : vector<1x1x128xf32>
    %66 = vector.shape_cast %65 : vector<1x1x128xf32> to vector<1x128xf32>
    %67 = arith.truncf %66 : vector<1x128xf32> to vector<1x128xbf16>
    %c0_41 = arith.constant 0 : index
    %c0_42 = arith.constant 0 : index
    %68 = vector.load %arg4[%c0_41, %c0_42] : memref<128x256xbf16, #tpu.memory_space<vmem>>, vector<128x256xbf16>
    %cst_43 = arith.constant dense<0.000000e+00> : vector<1x256xf32>
    %69 = tpu.matmul %67, %68, %cst_43 {dimension_numbers = #tpu.dot_dimension_numbers<[1], [0], [0], [1], [0, 0, 1, 1], [], []>} : vector<1x128xbf16>, vector<128x256xbf16>, vector<1x256xf32> -> vector<1x256xf32>
    %c0_44 = arith.constant 0 : index
    %c0_45 = arith.constant 0 : index
    %70 = vector.load %arg5[%c0_44, %c0_45] : memref<1x256xf32, #tpu.memory_space<vmem>>, vector<1x256xf32>
    %71 = arith.addf %69, %70 : vector<1x256xf32>
    %cst_46 = arith.constant 0.000000e+00 : f32
    %72 = vector.broadcast %cst_46 : f32 to vector<1x256xf32>
    %73 = arith.maximumf %71, %72 : vector<1x256xf32>
    %c0_47 = arith.constant 0 : index
    %c0_48 = arith.constant 0 : index
    %c0_49 = arith.constant 0 : index
    %74 = vector.load %arg6[%c0_47, %c0_48, %c0_49] : memref<1x1x256xf32, #tpu.memory_space<vmem>>, vector<1x1x256xf32>
    %75 = vector.shape_cast %74 : vector<1x1x256xf32> to vector<1x256xf32>
    %76 = vector.shape_cast %73 : vector<1x256xf32> to vector<1x1x256xf32>
    tpu.vector_store %arg6[%c0_47, %c0_48, %c0_49], %76 {strides = array<i32>} : memref<1x1x256xf32, #tpu.memory_space<vmem>>, vector<1x1x256xf32>,
    return
  }
  func.func @transform_0(%arg0: i32) -> (i32, i32, i32, i32) {
    %c0_i32 = arith.constant 0 : i32
    %c0_i32_0 = arith.constant 0 : i32
    %c0_i32_1 = arith.constant 0 : i32
    %c0_i32_2 = arith.constant 0 : i32
    return %arg0, %c0_i32, %c0_i32_0, %c0_i32_1 : i32, i32, i32, i32
  }
  func.func @transform_1(%arg0: i32) -> (i32, i32, i32) {
    %c0_i32 = arith.constant 0 : i32
    %c0_i32_0 = arith.constant 0 : i32
    %c0_i32_1 = arith.constant 0 : i32
    %c0_i32_2 = arith.constant 0 : i32
    return %c0_i32, %c0_i32_0, %c0_i32_1 : i32, i32, i32
  }
  func.func @transform_2(%arg0: i32) -> (i32, i32) {
    %c0_i32 = arith.constant 0 : i32
    %c0_i32_0 = arith.constant 0 : i32
    %c0_i32_1 = arith.constant 0 : i32
    return %c0_i32, %c0_i32_0 : i32, i32
  }
  func.func @transform_3(%arg0: i32) -> (i32, i32) {
    %c0_i32 = arith.constant 0 : i32
    %c0_i32_0 = arith.constant 0 : i32
    %c0_i32_1 = arith.constant 0 : i32
    return %c0_i32, %c0_i32_0 : i32, i32
  }
  func.func @transform_4(%arg0: i32) -> (i32, i32) {
    %c0_i32 = arith.constant 0 : i32
    %c0_i32_0 = arith.constant 0 : i32
    %c0_i32_1 = arith.constant 0 : i32
    return %c0_i32, %c0_i32_0 : i32, i32
  }
  func.func @transform_5(%arg0: i32) -> (i32, i32, i32) {
    %c0_i32 = arith.constant 0 : i32
    %c0_i32_0 = arith.constant 0 : i32
    %c0_i32_1 = arith.constant 0 : i32
    return %arg0, %c0_i32, %c0_i32_0 : i32, i32, i32
  }
}

module attributes {stable_mosaic.version = 11 : i64} {
  func.func @_fused_final_kernel(%arg0: i32, %arg1: memref<1x1x1x256xf32, #tpu.memory_space<vmem>>, %arg2: memref<3x3x256xf32, #tpu.memory_space<vmem>>, %arg3: memref<1x256xf32, #tpu.memory_space<vmem>>, %arg4: memref<256x256xbf16, #tpu.memory_space<vmem>>, %arg5: memref<1x256xf32, #tpu.memory_space<vmem>>, %arg6: memref<256x10xbf16, #tpu.memory_space<vmem>>, %arg7: memref<1x10xf32, #tpu.memory_space<vmem>>, %arg8: memref<1x1x10xf32, #tpu.memory_space<vmem>>, %arg9: memref<3x3x256xf32, #tpu.memory_space<vmem>>) attributes {dimension_semantics = [#tpu.dimension_semantics<parallel>], iteration_bounds = array<i64: 2>, scalar_prefetch = 0 : i64, scratch_operands = 1 : i64, tpu.core_type = #tpu.core_type<tc>, window_params = [{transform_indices = @transform_0, window_bounds = array<i64: 1, 1, 1, 256>}, {pipeline_mode = #tpu.pipeline_mode<synchronous>, transform_indices = @transform_1, window_bounds = array<i64: 3, 3, 256>}, {pipeline_mode = #tpu.pipeline_mode<synchronous>, transform_indices = @transform_2, window_bounds = array<i64: 1, 256>}, {pipeline_mode = #tpu.pipeline_mode<synchronous>, transform_indices = @transform_3, window_bounds = array<i64: 256, 256>}, {pipeline_mode = #tpu.pipeline_mode<synchronous>, transform_indices = @transform_4, window_bounds = array<i64: 1, 256>}, {pipeline_mode = #tpu.pipeline_mode<synchronous>, transform_indices = @transform_5, window_bounds = array<i64: 256, 10>}, {pipeline_mode = #tpu.pipeline_mode<synchronous>, transform_indices = @transform_6, window_bounds = array<i64: 1, 10>}, {transform_indices = @transform_7, window_bounds = array<i64: 1, 1, 10>}]} {
    %cst = arith.constant 0.000000e+00 : f32
    %0 = vector.broadcast %cst : f32 to vector<3x3x256xf32>
    %c0 = arith.constant 0 : index
    %c0_0 = arith.constant 0 : index
    %c0_1 = arith.constant 0 : index
    %1 = vector.load %arg9[%c0, %c0_0, %c0_1] : memref<3x3x256xf32, #tpu.memory_space<vmem>>, vector<3x3x256xf32>
    tpu.vector_store %arg9[%c0, %c0_0, %c0_1], %0 {strides = array<i32>} : memref<3x3x256xf32, #tpu.memory_space<vmem>>, vector<3x3x256xf32>,
    %c0_2 = arith.constant 0 : index
    %c0_3 = arith.constant 0 : index
    %c0_4 = arith.constant 0 : index
    %c0_5 = arith.constant 0 : index
    %2 = vector.load %arg1[%c0_2, %c0_3, %c0_4, %c0_5] : memref<1x1x1x256xf32, #tpu.memory_space<vmem>>, vector<1x1x1x256xf32>
    %3 = vector.shape_cast %2 : vector<1x1x1x256xf32> to vector<1x1x256xf32>
    %c1 = arith.constant 1 : index
    %c1_6 = arith.constant 1 : index
    %c0_7 = arith.constant 0 : index
    %4 = vector.load %arg9[%c1, %c1_6, %c0_7] : memref<3x3x256xf32, #tpu.memory_space<vmem>>, vector<1x1x256xf32>
    tpu.vector_store %arg9[%c1, %c1_6, %c0_7], %3 {strides = array<i32>} : memref<3x3x256xf32, #tpu.memory_space<vmem>>, vector<1x1x256xf32>,
    %c0_8 = arith.constant 0 : index
    %c0_9 = arith.constant 0 : index
    %c0_10 = arith.constant 0 : index
    %5 = vector.load %arg2[%c0_8, %c0_9, %c0_10] : memref<3x3x256xf32, #tpu.memory_space<vmem>>, vector<3x3x256xf32>
    %cst_11 = arith.constant 0.000000e+00 : f32
    %6 = vector.broadcast %cst_11 : f32 to vector<1x1x256xf32>
    %c0_12 = arith.constant 0 : index
    %c0_13 = arith.constant 0 : index
    %c0_14 = arith.constant 0 : index
    %7 = vector.load %arg9[%c0_12, %c0_13, %c0_14] : memref<3x3x256xf32, #tpu.memory_space<vmem>>, vector<1x1x256xf32>
    %8 = vector.extract_strided_slice %5 {offsets = [0, 0, 0], sizes = [1, 1, 256], strides = [1, 1, 1]} : vector<3x3x256xf32> to vector<1x1x256xf32>
    %9 = vector.shape_cast %8 : vector<1x1x256xf32> to vector<256xf32>
    %10 = vector.shape_cast %9 : vector<256xf32> to vector<1x1x256xf32>
    %11 = arith.mulf %7, %10 : vector<1x1x256xf32>
    %12 = arith.addf %6, %11 : vector<1x1x256xf32>
    %c0_15 = arith.constant 0 : index
    %c1_16 = arith.constant 1 : index
    %c0_17 = arith.constant 0 : index
    %13 = vector.load %arg9[%c0_15, %c1_16, %c0_17] : memref<3x3x256xf32, #tpu.memory_space<vmem>>, vector<1x1x256xf32>
    %14 = vector.extract_strided_slice %5 {offsets = [0, 1, 0], sizes = [1, 1, 256], strides = [1, 1, 1]} : vector<3x3x256xf32> to vector<1x1x256xf32>
    %15 = vector.shape_cast %14 : vector<1x1x256xf32> to vector<256xf32>
    %16 = vector.shape_cast %15 : vector<256xf32> to vector<1x1x256xf32>
    %17 = arith.mulf %13, %16 : vector<1x1x256xf32>
    %18 = arith.addf %12, %17 : vector<1x1x256xf32>
    %c0_18 = arith.constant 0 : index
    %c2 = arith.constant 2 : index
    %c0_19 = arith.constant 0 : index
    %19 = vector.load %arg9[%c0_18, %c2, %c0_19] : memref<3x3x256xf32, #tpu.memory_space<vmem>>, vector<1x1x256xf32>
    %20 = vector.extract_strided_slice %5 {offsets = [0, 2, 0], sizes = [1, 1, 256], strides = [1, 1, 1]} : vector<3x3x256xf32> to vector<1x1x256xf32>
    %21 = vector.shape_cast %20 : vector<1x1x256xf32> to vector<256xf32>
    %22 = vector.shape_cast %21 : vector<256xf32> to vector<1x1x256xf32>
    %23 = arith.mulf %19, %22 : vector<1x1x256xf32>
    %24 = arith.addf %18, %23 : vector<1x1x256xf32>
    %c1_20 = arith.constant 1 : index
    %c0_21 = arith.constant 0 : index
    %c0_22 = arith.constant 0 : index
    %25 = vector.load %arg9[%c1_20, %c0_21, %c0_22] : memref<3x3x256xf32, #tpu.memory_space<vmem>>, vector<1x1x256xf32>
    %26 = vector.extract_strided_slice %5 {offsets = [1, 0, 0], sizes = [1, 1, 256], strides = [1, 1, 1]} : vector<3x3x256xf32> to vector<1x1x256xf32>
    %27 = vector.shape_cast %26 : vector<1x1x256xf32> to vector<256xf32>
    %28 = vector.shape_cast %27 : vector<256xf32> to vector<1x1x256xf32>
    %29 = arith.mulf %25, %28 : vector<1x1x256xf32>
    %30 = arith.addf %24, %29 : vector<1x1x256xf32>
    %c1_23 = arith.constant 1 : index
    %c1_24 = arith.constant 1 : index
    %c0_25 = arith.constant 0 : index
    %31 = vector.load %arg9[%c1_23, %c1_24, %c0_25] : memref<3x3x256xf32, #tpu.memory_space<vmem>>, vector<1x1x256xf32>
    %32 = vector.extract_strided_slice %5 {offsets = [1, 1, 0], sizes = [1, 1, 256], strides = [1, 1, 1]} : vector<3x3x256xf32> to vector<1x1x256xf32>
    %33 = vector.shape_cast %32 : vector<1x1x256xf32> to vector<256xf32>
    %34 = vector.shape_cast %33 : vector<256xf32> to vector<1x1x256xf32>
    %35 = arith.mulf %31, %34 : vector<1x1x256xf32>
    %36 = arith.addf %30, %35 : vector<1x1x256xf32>
    %c1_26 = arith.constant 1 : index
    %c2_27 = arith.constant 2 : index
    %c0_28 = arith.constant 0 : index
    %37 = vector.load %arg9[%c1_26, %c2_27, %c0_28] : memref<3x3x256xf32, #tpu.memory_space<vmem>>, vector<1x1x256xf32>
    %38 = vector.extract_strided_slice %5 {offsets = [1, 2, 0], sizes = [1, 1, 256], strides = [1, 1, 1]} : vector<3x3x256xf32> to vector<1x1x256xf32>
    %39 = vector.shape_cast %38 : vector<1x1x256xf32> to vector<256xf32>
    %40 = vector.shape_cast %39 : vector<256xf32> to vector<1x1x256xf32>
    %41 = arith.mulf %37, %40 : vector<1x1x256xf32>
    %42 = arith.addf %36, %41 : vector<1x1x256xf32>
    %c2_29 = arith.constant 2 : index
    %c0_30 = arith.constant 0 : index
    %c0_31 = arith.constant 0 : index
    %43 = vector.load %arg9[%c2_29, %c0_30, %c0_31] : memref<3x3x256xf32, #tpu.memory_space<vmem>>, vector<1x1x256xf32>
    %44 = vector.extract_strided_slice %5 {offsets = [2, 0, 0], sizes = [1, 1, 256], strides = [1, 1, 1]} : vector<3x3x256xf32> to vector<1x1x256xf32>
    %45 = vector.shape_cast %44 : vector<1x1x256xf32> to vector<256xf32>
    %46 = vector.shape_cast %45 : vector<256xf32> to vector<1x1x256xf32>
    %47 = arith.mulf %43, %46 : vector<1x1x256xf32>
    %48 = arith.addf %42, %47 : vector<1x1x256xf32>
    %c2_32 = arith.constant 2 : index
    %c1_33 = arith.constant 1 : index
    %c0_34 = arith.constant 0 : index
    %49 = vector.load %arg9[%c2_32, %c1_33, %c0_34] : memref<3x3x256xf32, #tpu.memory_space<vmem>>, vector<1x1x256xf32>
    %50 = vector.extract_strided_slice %5 {offsets = [2, 1, 0], sizes = [1, 1, 256], strides = [1, 1, 1]} : vector<3x3x256xf32> to vector<1x1x256xf32>
    %51 = vector.shape_cast %50 : vector<1x1x256xf32> to vector<256xf32>
    %52 = vector.shape_cast %51 : vector<256xf32> to vector<1x1x256xf32>
    %53 = arith.mulf %49, %52 : vector<1x1x256xf32>
    %54 = arith.addf %48, %53 : vector<1x1x256xf32>
    %c2_35 = arith.constant 2 : index
    %c2_36 = arith.constant 2 : index
    %c0_37 = arith.constant 0 : index
    %55 = vector.load %arg9[%c2_35, %c2_36, %c0_37] : memref<3x3x256xf32, #tpu.memory_space<vmem>>, vector<1x1x256xf32>
    %56 = vector.extract_strided_slice %5 {offsets = [2, 2, 0], sizes = [1, 1, 256], strides = [1, 1, 1]} : vector<3x3x256xf32> to vector<1x1x256xf32>
    %57 = vector.shape_cast %56 : vector<1x1x256xf32> to vector<256xf32>
    %58 = vector.shape_cast %57 : vector<256xf32> to vector<1x1x256xf32>
    %59 = arith.mulf %55, %58 : vector<1x1x256xf32>
    %60 = arith.addf %54, %59 : vector<1x1x256xf32>
    %c0_38 = arith.constant 0 : index
    %c0_39 = arith.constant 0 : index
    %61 = vector.load %arg3[%c0_38, %c0_39] : memref<1x256xf32, #tpu.memory_space<vmem>>, vector<1x256xf32>
    %62 = vector.shape_cast %61 : vector<1x256xf32> to vector<1x1x256xf32>
    %63 = arith.addf %60, %62 : vector<1x1x256xf32>
    %cst_40 = arith.constant 0.000000e+00 : f32
    %64 = vector.broadcast %cst_40 : f32 to vector<1x1x256xf32>
    %65 = arith.maximumf %63, %64 : vector<1x1x256xf32>
    %66 = vector.shape_cast %65 : vector<1x1x256xf32> to vector<1x256xf32>
    %67 = arith.truncf %66 : vector<1x256xf32> to vector<1x256xbf16>
    %c0_41 = arith.constant 0 : index
    %c0_42 = arith.constant 0 : index
    %68 = vector.load %arg4[%c0_41, %c0_42] : memref<256x256xbf16, #tpu.memory_space<vmem>>, vector<256x256xbf16>
    %cst_43 = arith.constant dense<0.000000e+00> : vector<1x256xf32>
    %69 = tpu.matmul %67, %68, %cst_43 {dimension_numbers = #tpu.dot_dimension_numbers<[1], [0], [0], [1], [0, 0, 1, 1], [], []>} : vector<1x256xbf16>, vector<256x256xbf16>, vector<1x256xf32> -> vector<1x256xf32>
    %c0_44 = arith.constant 0 : index
    %c0_45 = arith.constant 0 : index
    %70 = vector.load %arg5[%c0_44, %c0_45] : memref<1x256xf32, #tpu.memory_space<vmem>>, vector<1x256xf32>
    %71 = arith.addf %69, %70 : vector<1x256xf32>
    %cst_46 = arith.constant 0.000000e+00 : f32
    %72 = vector.broadcast %cst_46 : f32 to vector<1x256xf32>
    %73 = arith.maximumf %71, %72 : vector<1x256xf32>
    %cst_47 = arith.constant dense<0.000000e+00> : vector<256xf32>
    %74 = vector.multi_reduction <add>, %73, %cst_47 [0] : vector<1x256xf32> to vector<256xf32>
    %75 = vector.shape_cast %74 : vector<256xf32> to vector<1x256xf32>
    %cst_48 = arith.constant 1.000000e+00 : f32
    %76 = vector.broadcast %cst_48 : f32 to vector<1x256xf32>
    %77 = arith.divf %75, %76 : vector<1x256xf32>
    %78 = arith.truncf %77 : vector<1x256xf32> to vector<1x256xbf16>
    %c0_49 = arith.constant 0 : index
    %c0_50 = arith.constant 0 : index
    %79 = vector.load %arg6[%c0_49, %c0_50] : memref<256x10xbf16, #tpu.memory_space<vmem>>, vector<256x10xbf16>
    %cst_51 = arith.constant dense<0.000000e+00> : vector<1x10xf32>
    %80 = tpu.matmul %78, %79, %cst_51 {dimension_numbers = #tpu.dot_dimension_numbers<[1], [0], [0], [1], [0, 0, 1, 1], [], []>} : vector<1x256xbf16>, vector<256x10xbf16>, vector<1x10xf32> -> vector<1x10xf32>
    %c0_52 = arith.constant 0 : index
    %c0_53 = arith.constant 0 : index
    %81 = vector.load %arg7[%c0_52, %c0_53] : memref<1x10xf32, #tpu.memory_space<vmem>>, vector<1x10xf32>
    %82 = arith.addf %80, %81 : vector<1x10xf32>
    %c0_54 = arith.constant 0 : index
    %c0_55 = arith.constant 0 : index
    %c0_56 = arith.constant 0 : index
    %83 = vector.load %arg8[%c0_54, %c0_55, %c0_56] : memref<1x1x10xf32, #tpu.memory_space<vmem>>, vector<1x1x10xf32>
    %84 = vector.shape_cast %83 : vector<1x1x10xf32> to vector<1x10xf32>
    %85 = vector.shape_cast %82 : vector<1x10xf32> to vector<1x1x10xf32>
    tpu.vector_store %arg8[%c0_54, %c0_55, %c0_56], %85 {strides = array<i32>} : memref<1x1x10xf32, #tpu.memory_space<vmem>>, vector<1x1x10xf32>,
    return
  }
  func.func @transform_0(%arg0: i32) -> (i32, i32, i32, i32) {
    %c0_i32 = arith.constant 0 : i32
    %c0_i32_0 = arith.constant 0 : i32
    %c0_i32_1 = arith.constant 0 : i32
    %c0_i32_2 = arith.constant 0 : i32
    return %arg0, %c0_i32, %c0_i32_0, %c0_i32_1 : i32, i32, i32, i32
  }
  func.func @transform_1(%arg0: i32) -> (i32, i32, i32) {
    %c0_i32 = arith.constant 0 : i32
    %c0_i32_0 = arith.constant 0 : i32
    %c0_i32_1 = arith.constant 0 : i32
    %c0_i32_2 = arith.constant 0 : i32
    return %c0_i32, %c0_i32_0, %c0_i32_1 : i32, i32, i32
  }
  func.func @transform_2(%arg0: i32) -> (i32, i32) {
    %c0_i32 = arith.constant 0 : i32
    %c0_i32_0 = arith.constant 0 : i32
    %c0_i32_1 = arith.constant 0 : i32
    return %c0_i32, %c0_i32_0 : i32, i32
  }
  func.func @transform_3(%arg0: i32) -> (i32, i32) {
    %c0_i32 = arith.constant 0 : i32
    %c0_i32_0 = arith.constant 0 : i32
    %c0_i32_1 = arith.constant 0 : i32
    return %c0_i32, %c0_i32_0 : i32, i32
  }
  func.func @transform_4(%arg0: i32) -> (i32, i32) {
    %c0_i32 = arith.constant 0 : i32
    %c0_i32_0 = arith.constant 0 : i32
    %c0_i32_1 = arith.constant 0 : i32
    return %c0_i32, %c0_i32_0 : i32, i32
  }
  func.func @transform_5(%arg0: i32) -> (i32, i32) {
    %c0_i32 = arith.constant 0 : i32
    %c0_i32_0 = arith.constant 0 : i32
    %c0_i32_1 = arith.constant 0 : i32
    return %c0_i32, %c0_i32_0 : i32, i32
  }
  func.func @transform_6(%arg0: i32) -> (i32, i32) {
    %c0_i32 = arith.constant 0 : i32
    %c0_i32_0 = arith.constant 0 : i32
    %c0_i32_1 = arith.constant 0 : i32
    return %c0_i32, %c0_i32_0 : i32, i32
  }
  func.func @transform_7(%arg0: i32) -> (i32, i32, i32) {
    %c0_i32 = arith.constant 0 : i32
    %c0_i32_0 = arith.constant 0 : i32
    %c0_i32_1 = arith.constant 0 : i32
    return %arg0, %c0_i32, %c0_i32_0 : i32, i32, i32
  }
}

</mosaic_0001>

<bundles_post_ra>
// kernel: mobilenet_v1_forward.16
= control target key start
LH: loop header
LB: loop body
LE: loop exit
PB: predicated region body
PF: predicated region fallthrough
CT: control target
= control target key end

     0   :  { %s995_s18 = smov 0   ;;  %s1288_s0 = inlined_call_operand.vmem [shape: f32[2,16,16,16], index: 0, kind: input, shape index: {}]   ;;  %s1289_s1 = inlined_call_operand.vmem [shape: f32[3,3,16], index: 1, kind: input, shape index: {}]   ;;  %s1290_s2 = inlined_call_operand.vmem [shape: f32[1,16], index: 2, kind: input, shape index: {}]   ;;  %s1291_s3 = inlined_call_operand.vmem [shape: bf16[16,32], index: 3, kind: input, shape index: {}]   ;;  %s1292_s4 = inlined_call_operand.vmem [shape: f32[1,32], index: 4, kind: input, shape index: {}]   ;;  %s1293_s5 = inlined_call_operand.vmem [shape: f32[2,64,32], index: 5, kind: output, shape index: {}]  }
   0x1 LB: > { %s909_s19 = sadd.s32 4294967295, %s962_s18   ;;  %p913_p0 = scmp.ge.s32.totalorder %s962_s18, 1  ;;  %s962_s18 = sphi %s995_s18, %s15_s18  }
   0x2   : > { %p187_p1 = scmp.lt.s32.totalorder %s962_s18, 3 }
   0x4   : > { %p188_p2 = pnand %p913_p0, %p187_p1 }
   0x5   : > { %v955_v0 = vld [vmem:[%s1291_s3] sm:$0xff] (!%p188_p2)   ;;  %p215_p3 = scmp.lt.s32.totalorder (!%p188_p2), %s909_s19, 1  ;;  %v365_v1 = vlaneseq (!%p188_p2)  ;;  %vm226_vm0 = vcmask (!%p188_p2), 130048   ;;  %vm229_vm1 = vcmask (!%p188_p2), 123904   ;;  %v964_v2 = vmov (!%p188_p2), 0.0  }
   0x6   : > { %191 = sbr.rel (%p188_p2) target bundleno = 313 (0x139), region = 40  ;;  %934 = vmatprep.subr.bf16.mxu0 (!%p188_p2), %v955_v0  ;;  %944 = vmatprep.subr.bf16.mxu1 (!%p188_p2), %v955_v0  ;;  %227 = vst.msk [vmem:[#allocation2] sm:$0xff] (!%p188_p2), %vm226_vm0, %v964_v2  ;;  %228 = vst.msk [vmem:[#allocation2 + $0x8] sm:$0xff] (!%p188_p2), %vm226_vm0, %v964_v2  ;;  %v347_v4 = vld [vmem:[%s1289_s1] sm:$0x7] (!%p188_p2)  ;;  %vm799_vm2 = vcmask (!%p188_p2), 261120  }
   0x7   : > { %230 = vst.msk [vmem:[#allocation2 + $0x10] sm:$0x3] (!%p188_p2), %vm229_vm1, %v964_v2  ;;  %233 = vst.msk [vmem:[#allocation2 + $0x28] sm:$0x3] (!%p188_p2), %vm229_vm1, %v964_v2  ;;  %v366_v3 = vshrl.u32 (!%p188_p2), %v365_v1, 7  ;;  %935 = vmatpush3.bf16.msra.mxu0 (!%p188_p2), %v955_v0  ;;  %945 = vmatpush3.bf16.msra.mxu1 (!%p188_p2), %v955_v0 }
   0x8   : > { %231 = vst.msk [vmem:[#allocation2 + $0x18] sm:$0xff] (!%p188_p2), %vm226_vm0, %v964_v2  ;;  %232 = vst.msk [vmem:[#allocation2 + $0x20] sm:$0xff] (!%p188_p2), %vm226_vm0, %v964_v2  ;;  %v348_v11 = vld [vmem:[%s1289_s1 + $0x4] sm:$0x7] (!%p188_p2)  ;;  %v349_v21 = vld [vmem:[%s1289_s1 + $0x8] sm:$0x7] (!%p188_p2) }
   0x9   : > { %234 = vst.msk [vmem:[#allocation2 + $0x30] sm:$0xff] (!%p188_p2), %vm226_vm0, %v964_v2  ;;  %235 = vst.msk [vmem:[#allocation2 + $0x38] sm:$0xff] (!%p188_p2), %vm226_vm0, %v964_v2  ;;  %v367_v5 = vsub.s32 (!%p188_p2), 0, %v366_v3  ;;  %v1063_v6 = vsub.s32 (!%p188_p2), 1, %v366_v3  ;;  %v1065_v7 = vsub.s32 (!%p188_p2), 2, %v366_v3 }
   0xa   : > { %236 = vst.msk [vmem:[#allocation2 + $0x40] sm:$0x3] (!%p188_p2), %vm229_vm1, %v964_v2  ;;  %239 = vst.msk [vmem:[#allocation2 + $0x58] sm:$0x3] (!%p188_p2), %vm229_vm1, %v964_v2 }
   0xb   : > { %237 = vst.msk [vmem:[#allocation2 + $0x48] sm:$0xff] (!%p188_p2), %vm226_vm0, %v964_v2  ;;  %238 = vst.msk [vmem:[#allocation2 + $0x50] sm:$0xff] (!%p188_p2), %vm226_vm0, %v964_v2  ;;  %v1078_v12 = vrot.slane (!%p188_p2), %v347_v4, %v367_v5  ;;  %v1081_v13 = vrot.slane (!%p188_p2), %v347_v4, %v1063_v6  ;;  %v1084_v14 = vrot.slane (!%p188_p2), %v347_v4, %v1065_v7 }
   0xc   : > { %240 = vst.msk [vmem:[#allocation2 + $0x60] sm:$0xff] (!%p188_p2), %vm226_vm0, %v964_v2  ;;  %241 = vst.msk [vmem:[#allocation2 + $0x68] sm:$0xff] (!%p188_p2), %vm226_vm0, %v964_v2  ;;  %v1110_v31 = vrot.slane (!%p188_p2), %v348_v11, %v367_v5  ;;  %v1113_v32 = vrot.slane (!%p188_p2), %v348_v11, %v1063_v6  ;;  %v1128_v40 = vrot.slane (!%p188_p2), %v348_v11, %v1065_v7 }
   0xd   : > { %s1295_s19 = smov (!%p215_p3, %s909_s19), 1  ;;  %242 = vst.msk [vmem:[#allocation2 + $0x70] sm:$0x3] %vm229_vm1, %v964_v2  ;;  %245 = vst.msk [vmem:[#allocation2 + $0x88] sm:$0x3] %vm229_vm1, %v964_v2  ;;  %v1136_v48 = vrot.slane %v349_v21, %v367_v5  ;;  %v1144_v54 = vrot.slane %v349_v21, %v1063_v6  ;;  %v1152_v3 = vrot.slane %v349_v21, %v1065_v7 }
   0xe   : > { %243 = vst.msk [vmem:[#allocation2 + $0x78] sm:$0xff] %vm226_vm0, %v964_v2  ;;  %244 = vst.msk [vmem:[#allocation2 + $0x80] sm:$0xff] %vm226_vm0, %v964_v2  ;;  %s927_s24 = sshll.u32 %s1295_s19, 8  ;;  %v350_v22 = vld [vmem:[#allocation2] ss:$2 sm:$0xff]  ;;  %s928_s11 = sshll.u32 %s1295_s19, 6 }
   0xf   : > { %246 = vst.msk [vmem:[#allocation2 + $0x90] sm:$0xff] %vm226_vm0, %v964_v2  ;;  %247 = vst.msk [vmem:[#allocation2 + $0x98] sm:$0xff] %vm226_vm0, %v964_v2  ;;  %s1070_s27 = scalar_lea.vmem %s1288_s0, %s927_s24  ;;  %v386_v23 = vld [vmem:[#allocation2 + $0x1] ss:$2 sm:$0xff]  ;;  %v422_v24 = vld [vmem:[#allocation2 + $0x2] ss:$2 sm:$0xff]  ;;  %v369_v25 = vmul.f32 %v1078_v12, %v350_v22  ;;  %s224_s14 = scalar_lea.vmem %s1293_s5, %s928_s11 }
  0x10   : > { %248 = vst.msk [vmem:[#allocation2 + $0xa0] sm:$0x3] %vm229_vm1, %v964_v2  ;;  %251 = vst.msk [vmem:[#allocation2 + $0xb8] sm:$0x3] %vm229_vm1, %v964_v2  ;;  %v282_v8 = vld [vmem:[%s1070_s27] sm:$0xff]  ;;  %v283_v9 = vld [vmem:[%s1070_s27 + $0x8] sm:$0xff]  ;;  %v405_v26 = vmul.f32 %v1081_v13, %v386_v23  ;;  %v441_v27 = vmul.f32 %v1084_v14, %v422_v24 }
  0x11   : > { %249 = vst.msk [vmem:[#allocation2 + $0xa8] sm:$0xff] %vm226_vm0, %v964_v2  ;;  %250 = vst.msk [vmem:[#allocation2 + $0xb0] sm:$0xff] %vm226_vm0, %v964_v2  ;;  %v284_v10 = vld [vmem:[%s1070_s27 + $0x10] sm:$0xff]  ;;  %v285_v15 = vld [vmem:[%s1070_s27 + $0x18] sm:$0xff] }
  0x12   : > { %252 = vst.msk [vmem:[#allocation2 + $0xc0] sm:$0xff] %vm226_vm0, %v964_v2  ;;  %253 = vst.msk [vmem:[#allocation2 + $0xc8] sm:$0xff] %vm226_vm0, %v964_v2  ;;  %v286_v16 = vld [vmem:[%s1070_s27 + $0x20] sm:$0xff]  ;;  %v287_v17 = vld [vmem:[%s1070_s27 + $0x28] sm:$0xff]  ;;  %v413_v36 = vadd.f32 %v405_v26, %v369_v25 }
  0x13   : > { %254 = vst.msk [vmem:[#allocation2 + $0xd0] sm:$0x3] %vm229_vm1, %v964_v2  ;;  %257 = vst.msk [vmem:[#allocation2 + $0xe8] sm:$0x3] %vm229_vm1, %v964_v2  ;;  %v288_v18 = vld [vmem:[%s1070_s27 + $0x30] sm:$0xff]  ;;  %v289_v19 = vld [vmem:[%s1070_s27 + $0x38] sm:$0xff] }
  0x14   : > { %255 = vst.msk [vmem:[#allocation2 + $0xd8] sm:$0xff] %vm226_vm0, %v964_v2  ;;  %256 = vst.msk [vmem:[#allocation2 + $0xe0] sm:$0xff] %vm226_vm0, %v964_v2  ;;  %v296_v20 = vld [vmem:[%s1070_s27 + $0x70] sm:$0xff]  ;;  %v297_v28 = vld [vmem:[%s1070_s27 + $0x78] sm:$0xff]  ;;  %v449_v44 = vadd.f32 %v441_v27, %v413_v36 }
  0x15   : > { %258 = vst.msk [vmem:[#allocation2 + $0xf0] sm:$0xff] %vm226_vm0, %v964_v2  ;;  %259 = vst.msk [vmem:[#allocation2 + $0xf8] sm:$0xff] %vm226_vm0, %v964_v2  ;;  %v298_v29 = vld [vmem:[%s1070_s27 + $0x80] sm:$0xff]  ;;  %v299_v30 = vld [vmem:[%s1070_s27 + $0x88] sm:$0xff] }
  0x16   : > { %260 = vst.msk [vmem:[#allocation2 + $0x100] sm:$0x3] %vm229_vm1, %v964_v2  ;;  %263 = vst.msk [vmem:[#allocation2 + $0x118] sm:$0x3] %vm229_vm1, %v964_v2  ;;  %v300_v33 = vld [vmem:[%s1070_s27 + $0x90] sm:$0xff]  ;;  %v301_v34 = vld [vmem:[%s1070_s27 + $0x98] sm:$0xff] }
  0x17   : > { %261 = vst.msk [vmem:[#allocation2 + $0x108] sm:$0xff] %vm226_vm0, %v964_v2  ;;  %262 = vst.msk [vmem:[#allocation2 + $0x110] sm:$0xff] %vm226_vm0, %v964_v2  ;;  %v302_v35 = vld [vmem:[%s1070_s27 + $0xa0] sm:$0xff]  ;;  %v303_v37 = vld [vmem:[%s1070_s27 + $0xa8] sm:$0xff] }
  0x18   : > { %264 = vst.msk [vmem:[#allocation2 + $0x120] sm:$0xff] %vm226_vm0, %v964_v2  ;;  %265 = vst.msk [vmem:[#allocation2 + $0x128] sm:$0xff] %vm226_vm0, %v964_v2  ;;  %v304_v38 = vld [vmem:[%s1070_s27 + $0xb0] sm:$0xff]  ;;  %v305_v39 = vld [vmem:[%s1070_s27 + $0xb8] sm:$0xff] }
  0x19   : > { %266 = vst.msk [vmem:[#allocation2 + $0x130] sm:$0x3] %vm229_vm1, %v964_v2  ;;  %269 = vst.msk [vmem:[#allocation2 + $0x148] sm:$0x3] %vm229_vm1, %v964_v2  ;;  %v290_v41 = vld [vmem:[%s1070_s27 + $0x40] sm:$0xff]  ;;  %v291_v42 = vld [vmem:[%s1070_s27 + $0x48] sm:$0xff] }
  0x1a   : > { %267 = vst.msk [vmem:[#allocation2 + $0x138] sm:$0xff] %vm226_vm0, %v964_v2  ;;  %268 = vst.msk [vmem:[#allocation2 + $0x140] sm:$0xff] %vm226_vm0, %v964_v2  ;;  %v292_v43 = vld [vmem:[%s1070_s27 + $0x50] sm:$0xff] }
  0x1b   : > { %270 = vst.msk [vmem:[#allocation2 + $0x150] sm:$0xff] %vm226_vm0, %v964_v2  ;;  %271 = vst.msk [vmem:[#allocation2 + $0x158] sm:$0xff] %vm226_vm0, %v964_v2 }
  0x1c   : > { %272 = vst.msk [vmem:[#allocation2 + $0x160] sm:$0x3] %vm229_vm1, %v964_v2  ;;  %275 = vst.msk [vmem:[#allocation2 + $0x178] sm:$0x3] %vm229_vm1, %v964_v2 }
  0x1d   : > { %273 = vst.msk [vmem:[#allocation2 + $0x168] sm:$0xff] %vm226_vm0, %v964_v2  ;;  %274 = vst.msk [vmem:[#allocation2 + $0x170] sm:$0xff] %vm226_vm0, %v964_v2 }
  0x1e   : > { %276 = vst.msk [vmem:[#allocation2 + $0x180] sm:$0xff] %vm226_vm0, %v964_v2  ;;  %277 = vst.msk [vmem:[#allocation2 + $0x188] sm:$0xff] %vm226_vm0, %v964_v2 }
  0x1f   : > { %278 = vst.msk [vmem:[#allocation2 + $0x190] sm:$0x3] %vm229_vm1, %v964_v2 }
  0x20   : > { %315 = vst.msk [vmem:[#allocation2 + $0x19] sm:$0xff] %vm226_vm0, %v282_v8  ;;  %316 = vst.msk [vmem:[#allocation2 + $0x21] sm:$0xff] %vm226_vm0, %v283_v9 }
  0x21   : > { %317 = vst.msk [vmem:[#allocation2 + $0x31] sm:$0xff] %vm226_vm0, %v284_v10  ;;  %318 = vst.msk [vmem:[#allocation2 + $0x39] sm:$0xff] %vm226_vm0, %v285_v15 }
  0x22   : > { %319 = vst.msk [vmem:[#allocation2 + $0x49] sm:$0xff] %vm226_vm0, %v286_v16  ;;  %320 = vst.msk [vmem:[#allocation2 + $0x51] sm:$0xff] %vm226_vm0, %v287_v17 }
  0x23   : > { %321 = vst.msk [vmem:[#allocation2 + $0x61] sm:$0xff] %vm226_vm0, %v288_v18  ;;  %322 = vst.msk [vmem:[#allocation2 + $0x69] sm:$0xff] %vm226_vm0, %v289_v19 }
  0x24   : > { %329 = vst.msk [vmem:[#allocation2 + $0xc1] sm:$0xff] %vm226_vm0, %v296_v20  ;;  %330 = vst.msk [vmem:[#allocation2 + $0xc9] sm:$0xff] %vm226_vm0, %v297_v28 }
  0x25   : > { %331 = vst.msk [vmem:[#allocation2 + $0xd9] sm:$0xff] %vm226_vm0, %v298_v29  ;;  %332 = vst.msk [vmem:[#allocation2 + $0xe1] sm:$0xff] %vm226_vm0, %v299_v30 }
  0x26   : > { %333 = vst.msk [vmem:[#allocation2 + $0xf1] sm:$0xff] %vm226_vm0, %v300_v33  ;;  %334 = vst.msk [vmem:[#allocation2 + $0xf9] sm:$0xff] %vm226_vm0, %v301_v34 }
  0x27   : > { %335 = vst.msk [vmem:[#allocation2 + $0x109] sm:$0xff] %vm226_vm0, %v302_v35  ;;  %336 = vst.msk [vmem:[#allocation2 + $0x111] sm:$0xff] %vm226_vm0, %v303_v37  ;;  %v457_v45 = vld [vmem:[#allocation2 + $0x18] ss:$2 sm:$0xff]  ;;  %v493_v46 = vld [vmem:[#allocation2 + $0x19] ss:$2 sm:$0xff] }
  0x28   : > { %337 = vst.msk [vmem:[#allocation2 + $0x121] sm:$0xff] %vm226_vm0, %v304_v38  ;;  %338 = vst.msk [vmem:[#allocation2 + $0x129] sm:$0xff] %vm226_vm0, %v305_v39  ;;  %v529_v47 = vld [vmem:[#allocation2 + $0x1a] ss:$2 sm:$0xff]  ;;  %v388_v50 = vld [vmem:[#allocation2 + $0x31] ss:$2 sm:$0xff]  ;;  %v476_v52 = vmul.f32 %v1110_v31, %v457_v45  ;;  %v512_v53 = vmul.f32 %v1113_v32, %v493_v46 }
  0x29   : > { %323 = vst.msk [vmem:[#allocation2 + $0x79] sm:$0xff] %vm226_vm0, %v290_v41  ;;  %324 = vst.msk [vmem:[#allocation2 + $0x81] sm:$0xff] %vm226_vm0, %v291_v42  ;;  %v352_v49 = vld [vmem:[#allocation2 + $0x30] ss:$2 sm:$0xff]  ;;  %v406_v56 = vmul.f32 %v1081_v13, %v388_v50  ;;  %v495_v59 = vld [vmem:[#allocation2 + $0x49] ss:$2 sm:$0xff]  ;;  %v548_v63 = vmul.f32 %v1128_v40, %v529_v47 }
  0x2a   : > { %325 = vst.msk [vmem:[#allocation2 + $0x91] sm:$0xff] %vm226_vm0, %v292_v43  ;;  %v424_v51 = vld [vmem:[#allocation2 + $0x32] ss:$2 sm:$0xff]  ;;  %v370_v55 = vmul.f32 %v1078_v12, %v352_v49  ;;  %v484_v62 = vadd.f32 %v476_v52, %v449_v44  ;;  %v601_v2 = vld [vmem:[#allocation2 + $0x31] ss:$2 sm:$0xff]  ;;  %v513_v5 = vmul.f32 %v1113_v32, %v495_v59 }
  0x2b   : > { %v442_v57 = vmul.f32 %v1084_v14, %v424_v51  ;;  %v459_v58 = vld [vmem:[#allocation2 + $0x48] ss:$2 sm:$0xff]  ;;  %v603_v9 = vld [vmem:[#allocation2 + $0x61] ss:$2 sm:$0xff]  ;;  %v620_v17 = vmul.f32 %v1144_v54, %v601_v2 }
  0x2c   : > { %v531_v60 = vld [vmem:[#allocation2 + $0x4a] ss:$2 sm:$0xff]  ;;  %v477_v61 = vmul.f32 %v1110_v31, %v459_v58  ;;  %v414_v4 = vadd.f32 %v406_v56, %v370_v55  ;;  %v520_v15 = vadd.f32 %v512_v53, %v484_v62  ;;  %v1162_v18 = vmul.f32 %v1144_v54, %v603_v9  ;;  %v394_v20 = vld [vmem:[#allocation2 + $0xc1] ss:$2 sm:$0xff]  ;;  %v537_v43 = vld [vmem:[#allocation2 + $0xda] ss:$2 sm:$0xff] }
  0x2d   : > { %v565_v0 = vld [vmem:[#allocation2 + $0x30] ss:$2 sm:$0xff]  ;;  %v567_v1 = vld [vmem:[#allocation2 + $0x60] ss:$2 sm:$0xff]  ;;  %v549_v6 = vmul.f32 %v1128_v40, %v531_v60  ;;  %v396_v24 = vld [vmem:[#allocation2 + $0xf1] ss:$2 sm:$0xff]  ;;  %v409_v25 = vmul.f32 %v1081_v13, %v394_v20 }
  0x2e   : > { %v584_v8 = vmul.f32 %v1136_v48, %v565_v0  ;;  %v637_v10 = vld [vmem:[#allocation2 + $0x32] ss:$2 sm:$0xff]  ;;  %v639_v11 = vld [vmem:[#allocation2 + $0x62] ss:$2 sm:$0xff]  ;;  %v1158_v16 = vmul.f32 %v1136_v48, %v567_v1  ;;  %v450_v21 = vadd.f32 %v442_v57, %v414_v4  ;;  %v556_v28 = vadd.f32 %v548_v63, %v520_v15  ;;  %v501_v36 = vld [vmem:[#allocation2 + $0xd9] ss:$2 sm:$0xff] }
  0x2f   : > { %v358_v7 = vld [vmem:[#allocation2 + $0xc0] ss:$2 sm:$0xff]  ;;  %v360_v19 = vld [vmem:[#allocation2 + $0xf0] ss:$2 sm:$0xff]  ;;  %v410_v29 = vmul.f32 %v1081_v13, %v396_v24  ;;  %v656_v38 = vmul.f32 %v1152_v3, %v637_v10  ;;  %v503_v42 = vld [vmem:[#allocation2 + $0x109] ss:$2 sm:$0xff]  ;;  %v1173_v46 = vmul.f32 %v1152_v3, %v639_v11  ;;  %v516_v56 = vmul.f32 %v1113_v32, %v501_v36 }
  0x30   : > { %v373_v22 = vmul.f32 %v1078_v12, %v358_v7  ;;  %v374_v23 = vmul.f32 %v1078_v12, %v360_v19  ;;  %v430_v26 = vld [vmem:[#allocation2 + $0xc2] ss:$2 sm:$0xff]  ;;  %v432_v27 = vld [vmem:[#allocation2 + $0xf2] ss:$2 sm:$0xff]  ;;  %v485_v37 = vadd.f32 %v477_v61, %v450_v21  ;;  %v592_v45 = vadd.f32 %v584_v8, %v556_v28  ;;  %v609_v58 = vld [vmem:[#allocation2 + $0xf1] ss:$2 sm:$0xff] }
  0x31   : > { %v445_v30 = vmul.f32 %v1084_v14, %v430_v26  ;;  %v446_v33 = vmul.f32 %v1084_v14, %v432_v27  ;;  %v465_v34 = vld [vmem:[#allocation2 + $0xd8] ss:$2 sm:$0xff]  ;;  %v467_v35 = vld [vmem:[#allocation2 + $0x108] ss:$2 sm:$0xff]  ;;  %v517_v57 = vmul.f32 %v1113_v32, %v503_v42  ;;  %v611_v59 = vld [vmem:[#allocation2 + $0x121] ss:$2 sm:$0xff]  ;;  %v552_v63 = vmul.f32 %v1128_v40, %v537_v43 }
  0x32   : > { %v417_v39 = vadd.f32 %v409_v25, %v373_v22  ;;  %v480_v41 = vmul.f32 %v1110_v31, %v465_v34  ;;  %v539_v44 = vld [vmem:[#allocation2 + $0x10a] ss:$2 sm:$0xff]  ;;  %v418_v47 = vadd.f32 %v410_v29, %v374_v23  ;;  %v481_v49 = vmul.f32 %v1110_v31, %v467_v35  ;;  %v1179_v53 = vld [vmem:[%s1290_s2] ss:$0 sm:$0xff]  ;;  %v390_v15 = vld [vmem:[#allocation2 + $0x61] ss:$2 sm:$0xff] }
  0x33   : > { %v573_v50 = vld [vmem:[#allocation2 + $0xf0] ss:$2 sm:$0xff]  ;;  %v575_v51 = vld [vmem:[#allocation2 + $0x120] ss:$2 sm:$0xff]  ;;  %v521_v52 = vadd.f32 %v513_v5, %v485_v37  ;;  %v628_v61 = vadd.f32 %v620_v17, %v592_v45  ;;  %v553_v0 = vmul.f32 %v1128_v40, %v539_v44  ;;  %v624_v20 = vmul.f32 %v1144_v54, %v609_v58  ;;  %v497_v27 = vld [vmem:[#allocation2 + $0x79] ss:$2 sm:$0xff] }
  0x34   : > { %v453_v55 = vadd.f32 %v445_v30, %v417_v39  ;;  %v645_v60 = vld [vmem:[#allocation2 + $0xf2] ss:$2 sm:$0xff]  ;;  %v454_v62 = vadd.f32 %v446_v33, %v418_v47  ;;  %v295_v4 = vld [vmem:[%s1070_s27 + $0x68] sm:$0xff]  ;;  %v588_v9 = vmul.f32 %v1136_v48, %v573_v50  ;;  %v589_v10 = vmul.f32 %v1136_v48, %v575_v51 }
  0x35   : > { %v293_v1 = vld [vmem:[%s1070_s27 + $0x58] sm:$0xff]  ;;  %v294_v2 = vld [vmem:[%s1070_s27 + $0x60] sm:$0xff]  ;;  %v557_v5 = vadd.f32 %v549_v6, %v521_v52  ;;  %328 = vst.msk [vmem:[#allocation2 + $0xb1] sm:$0xff] %vm226_vm0, %v295_v4  ;;  %v664_v7 = vadd.f32 %v656_v38, %v628_v61  ;;  %v625_v6 = vmul.f32 %v1144_v54, %v611_v59  ;;  %v407_v26 = vmul.f32 %v1081_v13, %v390_v15  ;;  %v307_v36 = vld [vmem:[%s1070_s27 + $0xc8] sm:$0xff] }
  0x36   : > { %v488_v8 = vadd.f32 %v480_v41, %v453_v55  ;;  %326 = vst.msk [vmem:[#allocation2 + $0x99] sm:$0xff] %vm226_vm0, %v293_v1  ;;  %327 = vst.msk [vmem:[#allocation2 + $0xa9] sm:$0xff] %vm226_vm0, %v294_v2  ;;  %v354_v11 = vld [vmem:[#allocation2 + $0x60] ss:$2 sm:$0xff]  ;;  %v489_v19 = vadd.f32 %v481_v49, %v454_v62  ;;  %v660_v34 = vmul.f32 %v1152_v3, %v645_v60  ;;  %v308_v37 = vld [vmem:[%s1070_s27 + $0xd0] sm:$0xff] }
  0x37   : > { %v426_v17 = vld [vmem:[#allocation2 + $0x62] ss:$2 sm:$0xff]  ;;  %v593_v23 = vadd.f32 %v1158_v16, %v557_v5  ;;  %v371_v25 = vmul.f32 %v1078_v12, %v354_v11  ;;  %v1199_v30 = vadd.f32 %v1179_v53, %v664_v7  ;;  %v309_v43 = vld [vmem:[%s1070_s27 + $0xd8] sm:$0xff]  ;;  %340 = vst.msk [vmem:[#allocation2 + $0x141] sm:$0xff] %vm226_vm0, %v307_v36  ;;  %341 = vst.msk [vmem:[#allocation2 + $0x151] sm:$0xff] %vm226_vm0, %v308_v37 }
  0x38   : > { %v647_v21 = vld [vmem:[#allocation2 + $0x122] ss:$2 sm:$0xff]  ;;  %v524_v24 = vadd.f32 %v516_v56, %v488_v8  ;;  %v525_v33 = vadd.f32 %v517_v57, %v489_v19  ;;  %v443_v35 = vmul.f32 %v1084_v14, %v426_v17  ;;  %v313_v52 = vld [vmem:[%s1070_s27 + $0xf8] sm:$0xff]  ;;  %342 = vst.msk [vmem:[#allocation2 + $0x159] sm:$0xff] %vm226_vm0, %v309_v43  ;;  %v398_v60 = vld [vmem:[#allocation2 + $0x121] ss:$2 sm:$0xff] }
  0x39   : > { %v461_v22 = vld [vmem:[#allocation2 + $0x78] ss:$2 sm:$0xff]  ;;  %v629_v38 = vadd.f32 %v1162_v18, %v593_v23  ;;  %v661_v41 = vmul.f32 %v1152_v3, %v647_v21  ;;  %v415_v42 = vadd.f32 %v407_v26, %v371_v25  ;;  %v311_v45 = vld [vmem:[%s1070_s27 + $0xe8] sm:$0xff]  ;;  %v687_v47 = vmax.f32 %v1199_v30, 0.0  ;;  %v312_v51 = vld [vmem:[%s1070_s27 + $0xf0] sm:$0xff]  ;;  %346 = vst.msk [vmem:[#allocation2 + $0x189] sm:$0xff] %vm226_vm0, %v313_v52 }
  0x3a   : > { %v533_v28 = vld [vmem:[#allocation2 + $0x7a] ss:$2 sm:$0xff]  ;;  %v560_v39 = vadd.f32 %v552_v63, %v524_v24  ;;  %v561_v49 = vadd.f32 %v553_v0, %v525_v33  ;;  %v478_v50 = vmul.f32 %v1110_v31, %v461_v22  ;;  %v514_v18 = vmul.f32 %v1113_v32, %v497_v27  ;;  %344 = vst.msk [vmem:[#allocation2 + $0x171] sm:$0xff] %vm226_vm0, %v311_v45 }
  0x3b   : > { %v571_v29 = vld [vmem:[#allocation2 + $0xc0] ss:$2 sm:$0xff]  ;;  %v665_v56 = vadd.f32 %v1173_v46, %v629_v38  ;;  %v451_v58 = vadd.f32 %v443_v35, %v415_v42  ;;  %v550_v59 = vmul.f32 %v1128_v40, %v533_v28  ;;  %345 = vst.msk [vmem:[#allocation2 + $0x181] sm:$0xff] %vm226_vm0, %v312_v51  ;;  %v411_v46 = vmul.f32 %v1081_v13, %v398_v60 }
  0x3c   : > { %v306_v16 = vld [vmem:[%s1070_s27 + $0xc0] sm:$0xff]  ;;  %v596_v57 = vadd.f32 %v588_v9, %v560_v39  ;;  %v597_v61 = vadd.f32 %v589_v10, %v561_v49  ;;  %v1227_v1 = vmul.f32 %v1136_v48, %v571_v29 }
  0x3d   : > { %v310_v44 = vld [vmem:[%s1070_s27 + $0xe0] sm:$0xff]  ;;  %339 = vst.msk [vmem:[#allocation2 + $0x139] sm:$0xff] %vm226_vm0, %v306_v16  ;;  %v356_v62 = vld [vmem:[#allocation2 + $0x90] ss:$2 sm:$0xff]  ;;  %v392_v63 = vld [vmem:[#allocation2 + $0x91] ss:$2 sm:$0xff]  ;;  %v680_v4 = vadd.f32 %v1179_v53, %v665_v56  ;;  %v486_v21 = vadd.f32 %v478_v50, %v451_v58 }
  0x3e   : > { %343 = vst.msk [vmem:[#allocation2 + $0x169] sm:$0xff] %vm226_vm0, %v310_v44  ;;  %v362_v55 = vld [vmem:[#allocation2 + $0x120] ss:$2 sm:$0xff]  ;;  %v632_v5 = vadd.f32 %v624_v20, %v596_v57  ;;  %v372_v8 = vmul.f32 %v1078_v12, %v356_v62  ;;  %v408_v9 = vmul.f32 %v1081_v13, %v392_v63  ;;  %v499_v15 = vld [vmem:[#allocation2 + $0xa9] ss:$2 sm:$0xff]  ;;  %v633_v17 = vadd.f32 %v625_v6, %v597_v61 }
  0x3f   : > { %v428_v0 = vld [vmem:[#allocation2 + $0x92] ss:$2 sm:$0xff]  ;;  %v375_v2 = vmul.f32 %v1078_v12, %v362_v55  ;;  %v605_v23 = vld [vmem:[#allocation2 + $0x91] ss:$2 sm:$0xff]  ;;  %v688_v24 = vmax.f32 %v680_v4, 0.0  ;;  %v515_v20 = vmul.f32 %v1113_v32, %v499_v15  ;;  %v522_v29 = vadd.f32 %v514_v18, %v486_v21 }
  0x40   : > { %v463_v11 = vld [vmem:[#allocation2 + $0xa8] ss:$2 sm:$0xff]  ;;  %v444_v7 = vmul.f32 %v1084_v14, %v428_v0  ;;  %v668_v25 = vadd.f32 %v660_v34, %v632_v5  ;;  %v416_v26 = vadd.f32 %v408_v9, %v372_v8  ;;  %v669_v28 = vadd.f32 %v661_v41, %v633_v17  ;;  %v400_v39 = vld [vmem:[#allocation2 + $0x151] ss:$2 sm:$0xff]  ;;  %v607_v57 = vld [vmem:[#allocation2 + $0xc1] ss:$2 sm:$0xff] }
  0x41   : > { %v535_v10 = vld [vmem:[#allocation2 + $0xaa] ss:$2 sm:$0xff]  ;;  %v479_v19 = vmul.f32 %v1110_v31, %v463_v11  ;;  %v695_v35 = vpack.c.bf16 %v688_v24, %v687_v47  ;;  %v622_v37 = vmul.f32 %v1144_v54, %v605_v23  ;;  %v558_v43 = vadd.f32 %v550_v59, %v522_v29 }
  0x42   : > { %v569_v22 = vld [vmem:[#allocation2 + $0x90] ss:$2 sm:$0xff]  ;;  %v551_v30 = vmul.f32 %v1128_v40, %v535_v10  ;;  %v683_v16 = vadd.f32 %v1179_v53, %v668_v25  ;;  %v452_v36 = vadd.f32 %v444_v7, %v416_v26  ;;  %v684_v42 = vadd.f32 %v1179_v53, %v669_v28  ;;  %v613_v25 = vld [vmem:[#allocation2 + $0x151] ss:$2 sm:$0xff] }
  0x43   : > { %v641_v27 = vld [vmem:[#allocation2 + $0x92] ss:$2 sm:$0xff]  ;;  %v586_v33 = vmul.f32 %v1136_v48, %v569_v22  ;;  %v434_v6 = vld [vmem:[#allocation2 + $0x122] ss:$2 sm:$0xff]  ;;  %936 = vmatprep.mubr.msk.bf16.mxu0 %vm226_vm0, %v695_v35  ;;  %v412_v18 = vmul.f32 %v1081_v13, %v400_v39  ;;  %v419_v51 = vadd.f32 %v411_v46, %v375_v2  ;;  %v623_v11 = vmul.f32 %v1144_v54, %v607_v57 }
  0x44   : > { %v364_v38 = vld [vmem:[#allocation2 + $0x150] ss:$2 sm:$0xff]  ;;  %v658_v41 = vmul.f32 %v1152_v3, %v641_v27  ;;  %v691_v47 = vmax.f32 %v683_v16, 0.0  ;;  %v487_v50 = vadd.f32 %v479_v19, %v452_v36  ;;  %v505_v52 = vld [vmem:[#allocation2 + $0x139] ss:$2 sm:$0xff]  ;;  %v692_v55 = vmax.f32 %v684_v42, 0.0 }
  0x45   : > { %v436_v34 = vld [vmem:[#allocation2 + $0x152] ss:$2 sm:$0xff]  ;;  %v376_v44 = vmul.f32 %v1078_v12, %v364_v38  ;;  %v594_v56 = vadd.f32 %v586_v33, %v558_v43  ;;  %v447_v58 = vmul.f32 %v1084_v14, %v434_v6  ;;  %v507_v60 = vld [vmem:[#allocation2 + $0x169] ss:$2 sm:$0xff]  ;;  %v643_v13 = vld [vmem:[#allocation2 + $0xc2] ss:$2 sm:$0xff]  ;;  %v518_v46 = vmul.f32 %v1113_v32, %v505_v52 }
  0x46   : > { %v469_v45 = vld [vmem:[#allocation2 + $0x138] ss:$2 sm:$0xff]  ;;  %v471_v49 = vld [vmem:[#allocation2 + $0x168] ss:$2 sm:$0xff]  ;;  %v448_v59 = vmul.f32 %v1084_v14, %v436_v34  ;;  %v523_v61 = vadd.f32 %v515_v20, %v487_v50  ;;  %v697_v4 = vpack.c.bf16 %v692_v55, %v691_v47  ;;  %v519_v14 = vmul.f32 %v1113_v32, %v507_v60  ;;  %v615_v32 = vld [vmem:[#allocation2 + $0x181] ss:$2 sm:$0xff] }
  0x47   : > { %v420_v12 = vadd.f32 %v412_v18, %v376_v44  ;;  %v482_v62 = vmul.f32 %v1110_v31, %v469_v45  ;;  %v483_v63 = vmul.f32 %v1110_v31, %v471_v49  ;;  %v541_v0 = vld [vmem:[#allocation2 + $0x13a] ss:$2 sm:$0xff]  ;;  %v630_v5 = vadd.f32 %v622_v37, %v594_v56  ;;  %v543_v8 = vld [vmem:[#allocation2 + $0x16a] ss:$2 sm:$0xff] }
  0x48   : > { %v455_v2 = vadd.f32 %v447_v58, %v419_v51  ;;  %v559_v9 = vadd.f32 %v551_v30, %v523_v61  ;;  %v577_v10 = vld [vmem:[#allocation2 + $0x150] ss:$2 sm:$0xff]  ;;  %940 = vmatprep.mubr.msk.bf16.mxu1 %vm226_vm0, %v697_v4  ;;  %v554_v31 = vmul.f32 %v1128_v40, %v541_v0  ;;  %v579_v19 = vld [vmem:[#allocation2 + $0x180] ss:$2 sm:$0xff]  ;;  %v659_v22 = vmul.f32 %v1152_v3, %v643_v13 }
  0x49   : > { %v456_v15 = vadd.f32 %v448_v59, %v420_v12  ;;  %v666_v17 = vadd.f32 %v658_v41, %v630_v5  ;;  %v555_v24 = vmul.f32 %v1128_v40, %v543_v8  ;;  %v590_v20 = vmul.f32 %v1136_v48, %v577_v10  ;;  %v649_v33 = vld [vmem:[#allocation2 + $0x152] ss:$2 sm:$0xff]  ;;  %v651_v35 = vld [vmem:[#allocation2 + $0x182] ss:$2 sm:$0xff] }
  0x4a   : > { %v490_v7 = vadd.f32 %v482_v62, %v455_v2  ;;  %v595_v21 = vadd.f32 %v1227_v1, %v559_v9  ;;  %v591_v30 = vmul.f32 %v1136_v48, %v579_v19  ;;  %v626_v1 = vmul.f32 %v1144_v54, %v613_v25 }
  0x4b   : > { %v491_v23 = vadd.f32 %v483_v63, %v456_v15  ;;  %v681_v28 = vadd.f32 %v1179_v53, %v666_v17  ;;  %v627_v40 = vmul.f32 %v1144_v54, %v615_v32  ;;  %v662_v38 = vmul.f32 %v1152_v3, %v649_v33 }
  0x4c   : > { %v526_v26 = vadd.f32 %v518_v46, %v490_v7  ;;  %v631_v27 = vadd.f32 %v623_v11, %v595_v21  ;;  %v663_v43 = vmul.f32 %v1152_v3, %v651_v35  ;;  %v919_v3 = vld [vmem:[%s1292_s4] ss:$0 sm:$0xff] }
  0x4d   : > { %v527_v29 = vadd.f32 %v519_v14, %v491_v23  ;;  %v689_v34 = vmax.f32 %v681_v28, 0.0 }
  0x4e   : > { %v562_v6 = vadd.f32 %v554_v31, %v526_v26  ;;  %v667_v16 = vadd.f32 %v659_v22, %v631_v27 }
  0x4f   : > { %v563_v36 = vadd.f32 %v555_v24, %v527_v29 }
  0x50   : > { %v598_v37 = vadd.f32 %v590_v20, %v562_v6  ;;  %v682_v39 = vadd.f32 %v1179_v53, %v667_v16 }
  0x51   : > { %v599_v42 = vadd.f32 %v591_v30, %v563_v36 }
  0x52   : > { %v634_v48 = vadd.f32 %v626_v1, %v598_v37  ;;  %v690_v41 = vmax.f32 %v682_v39, 0.0 }
  0x53   : > { %v635_v44 = vadd.f32 %v627_v40, %v599_v42 }
  0x54   : > { %v670_v45 = vadd.f32 %v662_v38, %v634_v48  ;;  %v696_v49 = vpack.c.bf16 %v690_v41, %v689_v34 }
  0x55   : > { %v671_v47 = vadd.f32 %v663_v43, %v635_v44 }
  0x56   : > { %v685_v50 = vadd.f32 %v1179_v53, %v670_v45  ;;  %937 = vmatmul.mubr.msk.bf16.vlgmr.msra.gmra.mrb[0].mxu0 %vm226_vm0, %v696_v49 }
  0x57   : > { %v686_v54 = vadd.f32 %v1179_v53, %v671_v47 }
  0x58   : > { %v693_v18 = vmax.f32 %v685_v50, 0.0 }
  0x59   : > { %v694_v51 = vmax.f32 %v686_v54, 0.0 }
  0x5b   : > { %v698_v52 = vpack.c.bf16 %v694_v51, %v693_v18 }
  0x5d   : > { %941 = vmatmul.mubr.msk.bf16.vlgmr.msra.gmra.mrb[0].mxu1 %vm226_vm0, %v698_v52 }
 0x129   : > { %v938_v55 = vpop.f32.mrb[0].mxu0 }
 0x12a   : > { %v769_v56 = vadd.f32 %v938_v55, %v919_v3  ;;  %v760_v57 = vpop.f32.mrb[1].mxu0 }
 0x12b   : > { %v761_v58 = vadd.f32 %v919_v3, %v760_v57  ;;  %v939_v53 = vpop.f32.mrb[2].mxu0 }
 0x12c   : > { %v793_v59 = vmax.f32 %v769_v56, 0.0  ;;  %v772_v60 = vadd.f32 %v939_v53, %v919_v3  ;;  %v763_v61 = vpop.f32.mrb[3].mxu0 }
 0x12d   : > { %v791_v12 = vmax.f32 %v761_v58, 0.0  ;;  %v764_v62 = vadd.f32 %v919_v3, %v763_v61 }
 0x12e   : > { %802 = vst.msk [vmem:[%s224_s14 + $0x10] sm:$0xff] %vm799_vm2, %v793_v59  ;;  %v794_v63 = vmax.f32 %v772_v60, 0.0 }
 0x12f   : > { %800 = vst.msk [vmem:[%s224_s14] sm:$0xff] %vm799_vm2, %v791_v12  ;;  %v792_v4 = vmax.f32 %v764_v62, 0.0 }
 0x130   : > { %v942_v0 = vpop.f32.mrb[0].mxu1  ;;  %803 = vst.msk [vmem:[%s224_s14 + $0x18] sm:$0xff] %vm799_vm2, %v794_v63 }
 0x131   : > { %v785_v5 = vadd.f32 %v942_v0, %v919_v3  ;;  %v776_v13 = vpop.f32.mrb[1].mxu1  ;;  %801 = vst.msk [vmem:[%s224_s14 + $0x8] sm:$0xff] %vm799_vm2, %v792_v4 }
 0x132   : > { %v777_v2 = vadd.f32 %v919_v3, %v776_v13  ;;  %v943_v46 = vpop.f32.mrb[2].mxu1 }
 0x133   : > { %v797_v8 = vmax.f32 %v785_v5, 0.0  ;;  %v788_v9 = vadd.f32 %v943_v46, %v919_v3  ;;  %v779_v11 = vpop.f32.mrb[3].mxu1 }
 0x134   : > { %v795_v15 = vmax.f32 %v777_v2, 0.0  ;;  %v780_v14 = vadd.f32 %v919_v3, %v779_v11 }
 0x135   : > { %806 = vst.msk [vmem:[%s224_s14 + $0x30] sm:$0xff] %vm799_vm2, %v797_v8  ;;  %v798_v10 = vmax.f32 %v788_v9, 0.0 }
 0x136   : > { %804 = vst.msk [vmem:[%s224_s14 + $0x20] sm:$0xff] %vm799_vm2, %v795_v15  ;;  %v796_v17 = vmax.f32 %v780_v14, 0.0 }
 0x137   : > { %807 = vst.msk [vmem:[%s224_s14 + $0x38] sm:$0xff] %vm799_vm2, %v798_v10 }
 0x138   : > { %805 = vst.msk [vmem:[%s224_s14 + $0x28] sm:$0xff] %vm799_vm2, %v796_v17 }
 0x139 PF: > { %s15_s18 = sadd.s32 1, %s962_s18  }
 0x13a   : > { %p12_p4 = scmp.ge.s32.totalorder %s15_s18, 4  }
 0x13c   :  { %14 = sbr.rel (!%p12_p4) target bundleno = 1 (0x1), region = 141 }

// kernel: mobilenet_v1_forward.14
= control target key start
LH: loop header
LB: loop body
LE: loop exit
PB: predicated region body
PF: predicated region fallthrough
CT: control target
= control target key end

     0   :  { %vm358_vm0 = vcmask 1044480   ;;  %vm359_vm1 = vcmask 1045504   ;;  %vm261_vm2 = vcmask 220160   ;;  %v995_v1 = vmov 65535   ;;  %s1475_s1 = inlined_call_operand.vmem [shape: bf16[27,8], index: 1, kind: input, shape index: {}]   ;;  %s1476_s0 = inlined_call_operand.vmem [shape: bf16[512,27], index: 0, kind: input, shape index: {}]   ;;  %s1477_s2 = inlined_call_operand.vmem [shape: f32[1,8], index: 2, kind: input, shape index: {}]   ;;  %s1478_s3 = inlined_call_operand.vmem [shape: f32[512,8], index: 3, kind: output, shape index: {}]  }
   0x1   :  { %v961_v0 = vld [vmem:[%s1475_s1] sm:$0xff]   ;;  %v360_v2 = vsel %vm358_vm0, 4294967295, %v995_v1  ;;  %v962_v3 = vld [vmem:[%s1475_s1 + $0x8] sm:$0x3f]   ;;  %v967_v10 = vld [vmem:[%s1476_s0 + $0x10] sm:$0xff]   ;;  %vm718_vm3 = vcmask 64512  }
   0x2   :  { %888 = vmatprep.subr.bf16.mxu0 %v961_v0  ;;  %956 = vmatprep.subr.bf16.mxu1 %v961_v0  ;;  %v361_v4 = vsel %vm359_vm1, %v360_v2, 0  ;;  %v963_v5 = vld [vmem:[%s1476_s0] sm:$0xff]   ;;  %v965_v8 = vld [vmem:[%s1476_s0 + $0x8] sm:$0xff]   ;;  %v968_v11 = vld [vmem:[%s1476_s0 + $0x90] sm:$0xff]  }
   0x3   :  { %889 = vmatpush3.bf16.msra.mxu0 %v961_v0  ;;  %958 = vmatpush3.bf16.msra.mxu1 %v961_v0  ;;  %v363_v6 = vand.u32 %v962_v3, %v361_v4  ;;  %v964_v7 = vld [vmem:[%s1476_s0 + $0x80] sm:$0xff]   ;;  %v966_v9 = vld [vmem:[%s1476_s0 + $0x88] sm:$0xff]   ;;  %v969_v12 = vld [vmem:[%s1476_s0 + $0x18] sm:$0xff]  }
   0x4   :  { %892 = vmatprep.mubr.msk.bf16.mxu0 %vm261_vm2, %v963_v5  ;;  %924 = vmatprep.mubr.msk.bf16.mxu1 %vm261_vm2, %v964_v7  ;;  %v970_v13 = vld [vmem:[%s1476_s0 + $0x98] sm:$0xff]   ;;  %v971_v14 = vld [vmem:[%s1476_s0 + $0x20] sm:$0xff]   ;;  %v973_v16 = vld [vmem:[%s1476_s0 + $0x28] sm:$0xff]  }
   0x5   :  { %890 = vmatprep.subr.bf16.mxu0 %v363_v6  ;;  %957 = vmatprep.subr.bf16.mxu1 %v363_v6  ;;  %v972_v15 = vld [vmem:[%s1476_s0 + $0xa0] sm:$0xff]   ;;  %v974_v17 = vld [vmem:[%s1476_s0 + $0xa8] sm:$0xff]   ;;  %v975_v18 = vld [vmem:[%s1476_s0 + $0x30] sm:$0xff]  }
   0x6   :  { %v976_v19 = vld [vmem:[%s1476_s0 + $0xb0] sm:$0xff]   ;;  %v977_v20 = vld [vmem:[%s1476_s0 + $0x38] sm:$0xff]   ;;  %v979_v22 = vld [vmem:[%s1476_s0 + $0x40] sm:$0xff]  }
   0x7   :  { %891 = vmatpush3.bf16.msra.mxu0 %v363_v6  ;;  %959 = vmatpush3.bf16.msra.mxu1 %v363_v6  ;;  %v978_v21 = vld [vmem:[%s1476_s0 + $0xb8] sm:$0xff]   ;;  %v980_v23 = vld [vmem:[%s1476_s0 + $0xc0] sm:$0xff]   ;;  %v981_v24 = vld [vmem:[%s1476_s0 + $0x48] sm:$0xff]  }
   0x8   :  { %v982_v25 = vld [vmem:[%s1476_s0 + $0xc8] sm:$0xff]   ;;  %v983_v26 = vld [vmem:[%s1476_s0 + $0x50] sm:$0xff]   ;;  %v985_v28 = vld [vmem:[%s1476_s0 + $0x58] sm:$0xff]  }
   0x9   :  { %v984_v27 = vld [vmem:[%s1476_s0 + $0xd0] sm:$0xff]   ;;  %v986_v29 = vld [vmem:[%s1476_s0 + $0xd8] sm:$0xff]   ;;  %v987_v30 = vld [vmem:[%s1476_s0 + $0x60] sm:$0xff]  }
   0xa   :  { %893 = vmatmul.mubr.msk.bf16.vlgmr.msra.gmra.mrb[0].mxu0 %vm261_vm2, %v965_v8  ;;  %925 = vmatmul.mubr.msk.bf16.vlgmr.msra.gmra.mrb[0].mxu1 %vm261_vm2, %v966_v9  ;;  %v988_v31 = vld [vmem:[%s1476_s0 + $0xe0] sm:$0xff]   ;;  %v989_v32 = vld [vmem:[%s1476_s0 + $0x68] sm:$0xff]   ;;  %v991_v34 = vld [vmem:[%s1476_s0 + $0x70] sm:$0xff]  }
   0xb   :  { %896 = vmatprep.mubr.msk.bf16.mxu0 %vm261_vm2, %v967_v10  ;;  %928 = vmatprep.mubr.msk.bf16.mxu1 %vm261_vm2, %v968_v11  ;;  %v990_v33 = vld [vmem:[%s1476_s0 + $0xe8] sm:$0xff]   ;;  %v992_v35 = vld [vmem:[%s1476_s0 + $0xf0] sm:$0xff]   ;;  %v993_v36 = vld [vmem:[%s1476_s0 + $0x78] sm:$0xff]  }
   0xc   :  { %v994_v37 = vld [vmem:[%s1476_s0 + $0xf8] sm:$0xff]   ;;  %v1153_v38 = vld [vmem:[%s1477_s2] ss:$0 sm:$0xff] }
  0x12   :  { %897 = vmatmul.mubr.msk.bf16.gmra.mrb[4].mxu0 %vm261_vm2, %v969_v12  ;;  %929 = vmatmul.mubr.msk.bf16.gmra.mrb[4].mxu1 %vm261_vm2, %v970_v13 }
  0x13   :  { %900 = vmatprep.mubr.msk.bf16.mxu0 %vm261_vm2, %v971_v14  ;;  %932 = vmatprep.mubr.msk.bf16.mxu1 %vm261_vm2, %v972_v15 }
  0x1a   :  { %901 = vmatmul.mubr.msk.bf16.gmra.mrb[8].mxu0 %vm261_vm2, %v973_v16  ;;  %933 = vmatmul.mubr.msk.bf16.gmra.mrb[8].mxu1 %vm261_vm2, %v974_v17 }
  0x1b   :  { %904 = vmatprep.mubr.msk.bf16.mxu0 %vm261_vm2, %v975_v18  ;;  %936 = vmatprep.mubr.msk.bf16.mxu1 %vm261_vm2, %v976_v19 }
  0x22   :  { %905 = vmatmul.mubr.msk.bf16.gmra.mrb[12].mxu0 %vm261_vm2, %v977_v20  ;;  %937 = vmatmul.mubr.msk.bf16.gmra.mrb[12].mxu1 %vm261_vm2, %v978_v21 }
  0x23   :  { %908 = vmatprep.mubr.msk.bf16.mxu0 %vm261_vm2, %v979_v22  ;;  %940 = vmatprep.mubr.msk.bf16.mxu1 %vm261_vm2, %v980_v23 }
  0x2a   :  { %909 = vmatmul.mubr.msk.bf16.gmra.mrb[16].mxu0 %vm261_vm2, %v981_v24  ;;  %941 = vmatmul.mubr.msk.bf16.gmra.mrb[16].mxu1 %vm261_vm2, %v982_v25 }
  0x2b   :  { %912 = vmatprep.mubr.msk.bf16.mxu0 %vm261_vm2, %v983_v26  ;;  %944 = vmatprep.mubr.msk.bf16.mxu1 %vm261_vm2, %v984_v27 }
  0x32   :  { %913 = vmatmul.mubr.msk.bf16.gmra.mrb[20].mxu0 %vm261_vm2, %v985_v28  ;;  %945 = vmatmul.mubr.msk.bf16.gmra.mrb[20].mxu1 %vm261_vm2, %v986_v29 }
  0x33   :  { %916 = vmatprep.mubr.msk.bf16.mxu0 %vm261_vm2, %v987_v30  ;;  %948 = vmatprep.mubr.msk.bf16.mxu1 %vm261_vm2, %v988_v31 }
  0x3a   :  { %917 = vmatmul.mubr.msk.bf16.gmra.mrb[24].mxu0 %vm261_vm2, %v989_v32  ;;  %949 = vmatmul.mubr.msk.bf16.gmra.mrb[24].mxu1 %vm261_vm2, %v990_v33 }
  0x3b   :  { %920 = vmatprep.mubr.msk.bf16.mxu0 %vm261_vm2, %v991_v34  ;;  %952 = vmatprep.mubr.msk.bf16.mxu1 %vm261_vm2, %v992_v35 }
  0x42   :  { %921 = vmatmul.mubr.msk.bf16.gmra.mrb[28].mxu0 %vm261_vm2, %v993_v36  ;;  %953 = vmatmul.mubr.msk.bf16.gmra.mrb[28].mxu1 %vm261_vm2, %v994_v37 }
  0xdd   :  { %v894_v39 = vpop.f32.mrb[0].mxu0  ;;  %v926_v40 = vpop.f32.mrb[0].mxu1 }
  0xde   :  { %v408_v41 = vadd.f32 %v894_v39, %v1153_v38  ;;  %v536_v42 = vadd.f32 %v926_v40, %v1153_v38  ;;  %v399_v43 = vpop.f32.mrb[1].mxu0  ;;  %v527_v44 = vpop.f32.mrb[1].mxu1 }
  0xdf   :  { %v400_v45 = vadd.f32 %v1153_v38, %v399_v43  ;;  %v528_v46 = vadd.f32 %v1153_v38, %v527_v44  ;;  %v895_v47 = vpop.f32.mrb[2].mxu0  ;;  %v927_v48 = vpop.f32.mrb[2].mxu1 }
  0xe0   :  { %v656_v49 = vmax.f32 %v408_v41, 0.0  ;;  %v688_v50 = vmax.f32 %v536_v42, 0.0  ;;  %v411_v51 = vadd.f32 %v895_v47, %v1153_v38  ;;  %v539_v52 = vadd.f32 %v927_v48, %v1153_v38  ;;  %v402_v53 = vpop.f32.mrb[3].mxu0  ;;  %v530_v54 = vpop.f32.mrb[3].mxu1 }
  0xe1   :  { %v654_v55 = vmax.f32 %v400_v45, 0.0  ;;  %v686_v56 = vmax.f32 %v528_v46, 0.0  ;;  %v403_v57 = vadd.f32 %v1153_v38, %v402_v53  ;;  %v531_v58 = vadd.f32 %v1153_v38, %v530_v54 }
  0xe2   :  { %721 = vst.msk [vmem:[%s1478_s3 + $0x10] sm:$0xff] %vm718_vm3, %v656_v49  ;;  %753 = vst.msk [vmem:[%s1478_s3 + $0x110] sm:$0xff] %vm718_vm3, %v688_v50  ;;  %v657_v59 = vmax.f32 %v411_v51, 0.0  ;;  %v689_v60 = vmax.f32 %v539_v52, 0.0 }
  0xe3   :  { %719 = vst.msk [vmem:[%s1478_s3] sm:$0xff] %vm718_vm3, %v654_v55  ;;  %751 = vst.msk [vmem:[%s1478_s3 + $0x100] sm:$0xff] %vm718_vm3, %v686_v56  ;;  %v655_v61 = vmax.f32 %v403_v57, 0.0  ;;  %v687_v62 = vmax.f32 %v531_v58, 0.0 }
  0xe4   :  { %722 = vst.msk [vmem:[%s1478_s3 + $0x18] sm:$0xff] %vm718_vm3, %v657_v59  ;;  %754 = vst.msk [vmem:[%s1478_s3 + $0x118] sm:$0xff] %vm718_vm3, %v689_v60 }
  0xe5   :  { %720 = vst.msk [vmem:[%s1478_s3 + $0x8] sm:$0xff] %vm718_vm3, %v655_v61  ;;  %752 = vst.msk [vmem:[%s1478_s3 + $0x108] sm:$0xff] %vm718_vm3, %v687_v62  ;;  %v898_v63 = vpop.f32.mrb[4].mxu0  ;;  %v930_v0 = vpop.f32.mrb[4].mxu1 }
  0xe6   :  { %v424_v1 = vadd.f32 %v898_v63, %v1153_v38  ;;  %v552_v2 = vadd.f32 %v930_v0, %v1153_v38  ;;  %v415_v3 = vpop.f32.mrb[5].mxu0  ;;  %v543_v4 = vpop.f32.mrb[5].mxu1 }
  0xe7   :  { %v416_v5 = vadd.f32 %v1153_v38, %v415_v3  ;;  %v544_v6 = vadd.f32 %v1153_v38, %v543_v4  ;;  %v899_v7 = vpop.f32.mrb[6].mxu0  ;;  %v931_v8 = vpop.f32.mrb[6].mxu1 }
  0xe8   :  { %v660_v9 = vmax.f32 %v424_v1, 0.0  ;;  %v692_v10 = vmax.f32 %v552_v2, 0.0  ;;  %v427_v11 = vadd.f32 %v899_v7, %v1153_v38  ;;  %v555_v12 = vadd.f32 %v931_v8, %v1153_v38  ;;  %v418_v13 = vpop.f32.mrb[7].mxu0  ;;  %v546_v14 = vpop.f32.mrb[7].mxu1 }
  0xe9   :  { %v658_v15 = vmax.f32 %v416_v5, 0.0  ;;  %v690_v16 = vmax.f32 %v544_v6, 0.0  ;;  %v419_v17 = vadd.f32 %v1153_v38, %v418_v13  ;;  %v547_v18 = vadd.f32 %v1153_v38, %v546_v14 }
  0xea   :  { %725 = vst.msk [vmem:[%s1478_s3 + $0x30] sm:$0xff] %vm718_vm3, %v660_v9  ;;  %757 = vst.msk [vmem:[%s1478_s3 + $0x130] sm:$0xff] %vm718_vm3, %v692_v10  ;;  %v661_v19 = vmax.f32 %v427_v11, 0.0  ;;  %v693_v20 = vmax.f32 %v555_v12, 0.0 }
  0xeb   :  { %723 = vst.msk [vmem:[%s1478_s3 + $0x20] sm:$0xff] %vm718_vm3, %v658_v15  ;;  %755 = vst.msk [vmem:[%s1478_s3 + $0x120] sm:$0xff] %vm718_vm3, %v690_v16  ;;  %v659_v21 = vmax.f32 %v419_v17, 0.0  ;;  %v691_v22 = vmax.f32 %v547_v18, 0.0 }
  0xec   :  { %726 = vst.msk [vmem:[%s1478_s3 + $0x38] sm:$0xff] %vm718_vm3, %v661_v19  ;;  %758 = vst.msk [vmem:[%s1478_s3 + $0x138] sm:$0xff] %vm718_vm3, %v693_v20 }
  0xed   :  { %724 = vst.msk [vmem:[%s1478_s3 + $0x28] sm:$0xff] %vm718_vm3, %v659_v21  ;;  %756 = vst.msk [vmem:[%s1478_s3 + $0x128] sm:$0xff] %vm718_vm3, %v691_v22  ;;  %v902_v23 = vpop.f32.mrb[8].mxu0  ;;  %v934_v24 = vpop.f32.mrb[8].mxu1 }
  0xee   :  { %v440_v25 = vadd.f32 %v902_v23, %v1153_v38  ;;  %v568_v26 = vadd.f32 %v934_v24, %v1153_v38  ;;  %v431_v27 = vpop.f32.mrb[9].mxu0  ;;  %v559_v28 = vpop.f32.mrb[9].mxu1 }
  0xef   :  { %v432_v29 = vadd.f32 %v1153_v38, %v431_v27  ;;  %v560_v30 = vadd.f32 %v1153_v38, %v559_v28  ;;  %v903_v31 = vpop.f32.mrb[10].mxu0  ;;  %v935_v32 = vpop.f32.mrb[10].mxu1 }
  0xf0   :  { %v664_v33 = vmax.f32 %v440_v25, 0.0  ;;  %v696_v34 = vmax.f32 %v568_v26, 0.0  ;;  %v443_v35 = vadd.f32 %v903_v31, %v1153_v38  ;;  %v571_v36 = vadd.f32 %v935_v32, %v1153_v38  ;;  %v434_v37 = vpop.f32.mrb[11].mxu0  ;;  %v562_v39 = vpop.f32.mrb[11].mxu1 }
  0xf1   :  { %v662_v40 = vmax.f32 %v432_v29, 0.0  ;;  %v694_v41 = vmax.f32 %v560_v30, 0.0  ;;  %v435_v42 = vadd.f32 %v1153_v38, %v434_v37  ;;  %v563_v43 = vadd.f32 %v1153_v38, %v562_v39 }
  0xf2   :  { %729 = vst.msk [vmem:[%s1478_s3 + $0x50] sm:$0xff] %vm718_vm3, %v664_v33  ;;  %761 = vst.msk [vmem:[%s1478_s3 + $0x150] sm:$0xff] %vm718_vm3, %v696_v34  ;;  %v665_v44 = vmax.f32 %v443_v35, 0.0  ;;  %v697_v45 = vmax.f32 %v571_v36, 0.0 }
  0xf3   :  { %727 = vst.msk [vmem:[%s1478_s3 + $0x40] sm:$0xff] %vm718_vm3, %v662_v40  ;;  %759 = vst.msk [vmem:[%s1478_s3 + $0x140] sm:$0xff] %vm718_vm3, %v694_v41  ;;  %v663_v46 = vmax.f32 %v435_v42, 0.0  ;;  %v695_v47 = vmax.f32 %v563_v43, 0.0 }
  0xf4   :  { %730 = vst.msk [vmem:[%s1478_s3 + $0x58] sm:$0xff] %vm718_vm3, %v665_v44  ;;  %762 = vst.msk [vmem:[%s1478_s3 + $0x158] sm:$0xff] %vm718_vm3, %v697_v45 }
  0xf5   :  { %728 = vst.msk [vmem:[%s1478_s3 + $0x48] sm:$0xff] %vm718_vm3, %v663_v46  ;;  %760 = vst.msk [vmem:[%s1478_s3 + $0x148] sm:$0xff] %vm718_vm3, %v695_v47  ;;  %v906_v48 = vpop.f32.mrb[12].mxu0  ;;  %v938_v49 = vpop.f32.mrb[12].mxu1 }
  0xf6   :  { %v456_v50 = vadd.f32 %v906_v48, %v1153_v38  ;;  %v584_v51 = vadd.f32 %v938_v49, %v1153_v38  ;;  %v447_v52 = vpop.f32.mrb[13].mxu0  ;;  %v575_v53 = vpop.f32.mrb[13].mxu1 }
  0xf7   :  { %v448_v54 = vadd.f32 %v1153_v38, %v447_v52  ;;  %v576_v55 = vadd.f32 %v1153_v38, %v575_v53  ;;  %v907_v56 = vpop.f32.mrb[14].mxu0  ;;  %v939_v57 = vpop.f32.mrb[14].mxu1 }
  0xf8   :  { %v668_v58 = vmax.f32 %v456_v50, 0.0  ;;  %v700_v59 = vmax.f32 %v584_v51, 0.0  ;;  %v459_v60 = vadd.f32 %v907_v56, %v1153_v38  ;;  %v587_v61 = vadd.f32 %v939_v57, %v1153_v38  ;;  %v450_v62 = vpop.f32.mrb[15].mxu0  ;;  %v578_v63 = vpop.f32.mrb[15].mxu1 }
  0xf9   :  { %v666_v0 = vmax.f32 %v448_v54, 0.0  ;;  %v698_v1 = vmax.f32 %v576_v55, 0.0  ;;  %v451_v2 = vadd.f32 %v1153_v38, %v450_v62  ;;  %v579_v3 = vadd.f32 %v1153_v38, %v578_v63 }
  0xfa   :  { %733 = vst.msk [vmem:[%s1478_s3 + $0x70] sm:$0xff] %vm718_vm3, %v668_v58  ;;  %765 = vst.msk [vmem:[%s1478_s3 + $0x170] sm:$0xff] %vm718_vm3, %v700_v59  ;;  %v669_v4 = vmax.f32 %v459_v60, 0.0  ;;  %v701_v5 = vmax.f32 %v587_v61, 0.0 }
  0xfb   :  { %731 = vst.msk [vmem:[%s1478_s3 + $0x60] sm:$0xff] %vm718_vm3, %v666_v0  ;;  %763 = vst.msk [vmem:[%s1478_s3 + $0x160] sm:$0xff] %vm718_vm3, %v698_v1  ;;  %v667_v6 = vmax.f32 %v451_v2, 0.0  ;;  %v699_v7 = vmax.f32 %v579_v3, 0.0 }
  0xfc   :  { %734 = vst.msk [vmem:[%s1478_s3 + $0x78] sm:$0xff] %vm718_vm3, %v669_v4  ;;  %766 = vst.msk [vmem:[%s1478_s3 + $0x178] sm:$0xff] %vm718_vm3, %v701_v5 }
  0xfd   :  { %732 = vst.msk [vmem:[%s1478_s3 + $0x68] sm:$0xff] %vm718_vm3, %v667_v6  ;;  %764 = vst.msk [vmem:[%s1478_s3 + $0x168] sm:$0xff] %vm718_vm3, %v699_v7  ;;  %v910_v8 = vpop.f32.mrb[16].mxu0  ;;  %v942_v9 = vpop.f32.mrb[16].mxu1 }
  0xfe   :  { %v472_v10 = vadd.f32 %v910_v8, %v1153_v38  ;;  %v600_v11 = vadd.f32 %v942_v9, %v1153_v38  ;;  %v463_v12 = vpop.f32.mrb[17].mxu0  ;;  %v591_v13 = vpop.f32.mrb[17].mxu1 }
  0xff   :  { %v464_v14 = vadd.f32 %v1153_v38, %v463_v12  ;;  %v592_v15 = vadd.f32 %v1153_v38, %v591_v13  ;;  %v911_v16 = vpop.f32.mrb[18].mxu0  ;;  %v943_v17 = vpop.f32.mrb[18].mxu1 }
 0x100   :  { %v672_v18 = vmax.f32 %v472_v10, 0.0  ;;  %v704_v19 = vmax.f32 %v600_v11, 0.0  ;;  %v475_v20 = vadd.f32 %v911_v16, %v1153_v38  ;;  %v603_v21 = vadd.f32 %v943_v17, %v1153_v38  ;;  %v466_v22 = vpop.f32.mrb[19].mxu0  ;;  %v594_v23 = vpop.f32.mrb[19].mxu1 }
 0x101   :  { %v670_v24 = vmax.f32 %v464_v14, 0.0  ;;  %v702_v25 = vmax.f32 %v592_v15, 0.0  ;;  %v467_v26 = vadd.f32 %v1153_v38, %v466_v22  ;;  %v595_v27 = vadd.f32 %v1153_v38, %v594_v23 }
 0x102   :  { %737 = vst.msk [vmem:[%s1478_s3 + $0x90] sm:$0xff] %vm718_vm3, %v672_v18  ;;  %769 = vst.msk [vmem:[%s1478_s3 + $0x190] sm:$0xff] %vm718_vm3, %v704_v19  ;;  %v673_v28 = vmax.f32 %v475_v20, 0.0  ;;  %v705_v29 = vmax.f32 %v603_v21, 0.0 }
 0x103   :  { %735 = vst.msk [vmem:[%s1478_s3 + $0x80] sm:$0xff] %vm718_vm3, %v670_v24  ;;  %767 = vst.msk [vmem:[%s1478_s3 + $0x180] sm:$0xff] %vm718_vm3, %v702_v25  ;;  %v671_v30 = vmax.f32 %v467_v26, 0.0  ;;  %v703_v31 = vmax.f32 %v595_v27, 0.0 }
 0x104   :  { %738 = vst.msk [vmem:[%s1478_s3 + $0x98] sm:$0xff] %vm718_vm3, %v673_v28  ;;  %770 = vst.msk [vmem:[%s1478_s3 + $0x198] sm:$0xff] %vm718_vm3, %v705_v29 }
 0x105   :  { %736 = vst.msk [vmem:[%s1478_s3 + $0x88] sm:$0xff] %vm718_vm3, %v671_v30  ;;  %768 = vst.msk [vmem:[%s1478_s3 + $0x188] sm:$0xff] %vm718_vm3, %v703_v31  ;;  %v914_v32 = vpop.f32.mrb[20].mxu0  ;;  %v946_v33 = vpop.f32.mrb[20].mxu1 }
 0x106   :  { %v488_v34 = vadd.f32 %v914_v32, %v1153_v38  ;;  %v616_v35 = vadd.f32 %v946_v33, %v1153_v38  ;;  %v479_v36 = vpop.f32.mrb[21].mxu0  ;;  %v607_v37 = vpop.f32.mrb[21].mxu1 }
 0x107   :  { %v480_v39 = vadd.f32 %v1153_v38, %v479_v36  ;;  %v608_v40 = vadd.f32 %v1153_v38, %v607_v37  ;;  %v915_v41 = vpop.f32.mrb[22].mxu0  ;;  %v947_v42 = vpop.f32.mrb[22].mxu1 }
 0x108   :  { %v676_v43 = vmax.f32 %v488_v34, 0.0  ;;  %v708_v44 = vmax.f32 %v616_v35, 0.0  ;;  %v491_v45 = vadd.f32 %v915_v41, %v1153_v38  ;;  %v619_v46 = vadd.f32 %v947_v42, %v1153_v38  ;;  %v482_v47 = vpop.f32.mrb[23].mxu0  ;;  %v610_v48 = vpop.f32.mrb[23].mxu1 }
 0x109   :  { %v674_v49 = vmax.f32 %v480_v39, 0.0  ;;  %v706_v50 = vmax.f32 %v608_v40, 0.0  ;;  %v483_v51 = vadd.f32 %v1153_v38, %v482_v47  ;;  %v611_v52 = vadd.f32 %v1153_v38, %v610_v48 }
 0x10a   :  { %741 = vst.msk [vmem:[%s1478_s3 + $0xb0] sm:$0xff] %vm718_vm3, %v676_v43  ;;  %773 = vst.msk [vmem:[%s1478_s3 + $0x1b0] sm:$0xff] %vm718_vm3, %v708_v44  ;;  %v677_v53 = vmax.f32 %v491_v45, 0.0  ;;  %v709_v54 = vmax.f32 %v619_v46, 0.0 }
 0x10b   :  { %739 = vst.msk [vmem:[%s1478_s3 + $0xa0] sm:$0xff] %vm718_vm3, %v674_v49  ;;  %771 = vst.msk [vmem:[%s1478_s3 + $0x1a0] sm:$0xff] %vm718_vm3, %v706_v50  ;;  %v675_v55 = vmax.f32 %v483_v51, 0.0  ;;  %v707_v56 = vmax.f32 %v611_v52, 0.0 }
 0x10c   :  { %742 = vst.msk [vmem:[%s1478_s3 + $0xb8] sm:$0xff] %vm718_vm3, %v677_v53  ;;  %774 = vst.msk [vmem:[%s1478_s3 + $0x1b8] sm:$0xff] %vm718_vm3, %v709_v54 }
 0x10d   :  { %740 = vst.msk [vmem:[%s1478_s3 + $0xa8] sm:$0xff] %vm718_vm3, %v675_v55  ;;  %772 = vst.msk [vmem:[%s1478_s3 + $0x1a8] sm:$0xff] %vm718_vm3, %v707_v56  ;;  %v918_v57 = vpop.f32.mrb[24].mxu0  ;;  %v950_v58 = vpop.f32.mrb[24].mxu1 }
 0x10e   :  { %v504_v59 = vadd.f32 %v918_v57, %v1153_v38  ;;  %v632_v60 = vadd.f32 %v950_v58, %v1153_v38  ;;  %v495_v61 = vpop.f32.mrb[25].mxu0  ;;  %v623_v62 = vpop.f32.mrb[25].mxu1 }
 0x10f   :  { %v496_v63 = vadd.f32 %v1153_v38, %v495_v61  ;;  %v624_v0 = vadd.f32 %v1153_v38, %v623_v62  ;;  %v919_v1 = vpop.f32.mrb[26].mxu0  ;;  %v951_v2 = vpop.f32.mrb[26].mxu1 }
 0x110   :  { %v680_v3 = vmax.f32 %v504_v59, 0.0  ;;  %v712_v4 = vmax.f32 %v632_v60, 0.0  ;;  %v507_v5 = vadd.f32 %v919_v1, %v1153_v38  ;;  %v635_v6 = vadd.f32 %v951_v2, %v1153_v38  ;;  %v498_v7 = vpop.f32.mrb[27].mxu0  ;;  %v626_v8 = vpop.f32.mrb[27].mxu1 }
 0x111   :  { %v678_v9 = vmax.f32 %v496_v63, 0.0  ;;  %v710_v10 = vmax.f32 %v624_v0, 0.0  ;;  %v499_v11 = vadd.f32 %v1153_v38, %v498_v7  ;;  %v627_v12 = vadd.f32 %v1153_v38, %v626_v8 }
 0x112   :  { %745 = vst.msk [vmem:[%s1478_s3 + $0xd0] sm:$0xff] %vm718_vm3, %v680_v3  ;;  %777 = vst.msk [vmem:[%s1478_s3 + $0x1d0] sm:$0xff] %vm718_vm3, %v712_v4  ;;  %v681_v13 = vmax.f32 %v507_v5, 0.0  ;;  %v713_v14 = vmax.f32 %v635_v6, 0.0 }
 0x113   :  { %743 = vst.msk [vmem:[%s1478_s3 + $0xc0] sm:$0xff] %vm718_vm3, %v678_v9  ;;  %775 = vst.msk [vmem:[%s1478_s3 + $0x1c0] sm:$0xff] %vm718_vm3, %v710_v10  ;;  %v679_v15 = vmax.f32 %v499_v11, 0.0  ;;  %v711_v16 = vmax.f32 %v627_v12, 0.0 }
 0x114   :  { %746 = vst.msk [vmem:[%s1478_s3 + $0xd8] sm:$0xff] %vm718_vm3, %v681_v13  ;;  %778 = vst.msk [vmem:[%s1478_s3 + $0x1d8] sm:$0xff] %vm718_vm3, %v713_v14 }
 0x115   :  { %744 = vst.msk [vmem:[%s1478_s3 + $0xc8] sm:$0xff] %vm718_vm3, %v679_v15  ;;  %776 = vst.msk [vmem:[%s1478_s3 + $0x1c8] sm:$0xff] %vm718_vm3, %v711_v16  ;;  %v922_v17 = vpop.f32.mrb[28].mxu0  ;;  %v954_v18 = vpop.f32.mrb[28].mxu1 }
 0x116   :  { %v520_v19 = vadd.f32 %v922_v17, %v1153_v38  ;;  %v648_v20 = vadd.f32 %v954_v18, %v1153_v38  ;;  %v511_v21 = vpop.f32.mrb[29].mxu0  ;;  %v639_v22 = vpop.f32.mrb[29].mxu1 }
 0x117   :  { %v512_v23 = vadd.f32 %v1153_v38, %v511_v21  ;;  %v640_v24 = vadd.f32 %v1153_v38, %v639_v22  ;;  %v923_v25 = vpop.f32.mrb[30].mxu0  ;;  %v955_v26 = vpop.f32.mrb[30].mxu1 }
 0x118   :  { %v684_v27 = vmax.f32 %v520_v19, 0.0  ;;  %v716_v28 = vmax.f32 %v648_v20, 0.0  ;;  %v523_v29 = vadd.f32 %v923_v25, %v1153_v38  ;;  %v651_v30 = vadd.f32 %v955_v26, %v1153_v38  ;;  %v514_v31 = vpop.f32.mrb[31].mxu0  ;;  %v642_v32 = vpop.f32.mrb[31].mxu1 }
 0x119   :  { %v682_v33 = vmax.f32 %v512_v23, 0.0  ;;  %v714_v34 = vmax.f32 %v640_v24, 0.0  ;;  %v515_v35 = vadd.f32 %v1153_v38, %v514_v31  ;;  %v643_v36 = vadd.f32 %v1153_v38, %v642_v32 }
 0x11a   :  { %749 = vst.msk [vmem:[%s1478_s3 + $0xf0] sm:$0xff] %vm718_vm3, %v684_v27  ;;  %781 = vst.msk [vmem:[%s1478_s3 + $0x1f0] sm:$0xff] %vm718_vm3, %v716_v28  ;;  %v685_v37 = vmax.f32 %v523_v29, 0.0  ;;  %v717_v39 = vmax.f32 %v651_v30, 0.0 }
 0x11b   :  { %747 = vst.msk [vmem:[%s1478_s3 + $0xe0] sm:$0xff] %vm718_vm3, %v682_v33  ;;  %779 = vst.msk [vmem:[%s1478_s3 + $0x1e0] sm:$0xff] %vm718_vm3, %v714_v34  ;;  %v683_v38 = vmax.f32 %v515_v35, 0.0  ;;  %v715_v40 = vmax.f32 %v643_v36, 0.0 }
 0x11c   :  { %750 = vst.msk [vmem:[%s1478_s3 + $0xf8] sm:$0xff] %vm718_vm3, %v685_v37  ;;  %782 = vst.msk [vmem:[%s1478_s3 + $0x1f8] sm:$0xff] %vm718_vm3, %v717_v39 }
 0x11d   :  { %748 = vst.msk [vmem:[%s1478_s3 + $0xe8] sm:$0xff] %vm718_vm3, %v683_v38  ;;  %780 = vst.msk [vmem:[%s1478_s3 + $0x1e8] sm:$0xff] %vm718_vm3, %v715_v40 }

// kernel: mobilenet_v1_forward.15
= control target key start
LH: loop header
LB: loop body
LE: loop exit
PB: predicated region body
PF: predicated region fallthrough
CT: control target
= control target key end

     0   :  { %s1814_s18 = smov 0   ;;  %s2847_s0 = inlined_call_operand.vmem [shape: f32[2,16,16,8], index: 0, kind: input, shape index: {}]   ;;  %s2848_s1 = inlined_call_operand.vmem [shape: f32[3,3,8], index: 1, kind: input, shape index: {}]   ;;  %s2849_s2 = inlined_call_operand.vmem [shape: f32[1,8], index: 2, kind: input, shape index: {}]   ;;  %s2850_s3 = inlined_call_operand.vmem [shape: bf16[8,16], index: 3, kind: input, shape index: {}]   ;;  %s2851_s4 = inlined_call_operand.vmem [shape: f32[1,16], index: 4, kind: input, shape index: {}]   ;;  %s2852_s5 = inlined_call_operand.vmem [shape: f32[2,256,16], index: 5, kind: output, shape index: {}]  }
   0x1 LB: > { %s1679_s19 = sadd.s32 4294967295, %s1781_s18   ;;  %p1683_p0 = scmp.ge.s32.totalorder %s1781_s18, 1  ;;  %s1781_s18 = sphi %s1814_s18, %s15_s18  }
   0x2   : > { %p187_p1 = scmp.lt.s32.totalorder %s1781_s18, 3 }
   0x4   : > { %p188_p2 = pnand %p1683_p0, %p187_p1 }
   0x5   : > { %v1338_v0 = vld [vmem:[%s2850_s3] sm:$0xf] (!%p188_p2)  ;;  %vm1394_vm0 = vcmask (!%p188_p2), 1043456   ;;  %p1827_p3 = scmp.lt.s32.totalorder (!%p188_p2), %s1679_s19, 1  ;;  %vm226_vm1 = vcmask (!%p188_p2), 64512   ;;  %v382_v1 = vlaneseq (!%p188_p2)  ;;  %v1783_v3 = vmov (!%p188_p2), 0.0  }
   0x6   : > { %191 = sbr.rel (%p188_p2) target bundleno = 426 (0x1aa), region = 40  ;;  %1763 = vmatprep.subr.msk.bf16.mxu0 (!%p188_p2), %vm1394_vm0, %v1338_v0  ;;  %1764 = vmatprep.subr.msk.bf16.mxu1 (!%p188_p2), %vm1394_vm0, %v1338_v0  ;;  %v1396_v2 = vsel (!%p188_p2), %vm1394_vm0, %v1338_v0, 0  ;;  %227 = vst.msk [vmem:[#allocation2] sm:$0xff] (!%p188_p2), %vm226_vm1, %v1783_v3  ;;  %228 = vst.msk [vmem:[#allocation2 + $0x8] sm:$0xff] (!%p188_p2), %vm226_vm1, %v1783_v3  ;;  %vm229_vm2 = vcmask (!%p188_p2), 58368   ;;  %vm1591_vm3 = vcmask (!%p188_p2), 130048  }
   0x7   : > { %231 = vst.msk [vmem:[#allocation2 + $0x18] sm:$0xff] (!%p188_p2), %vm226_vm1, %v1783_v3  ;;  %232 = vst.msk [vmem:[#allocation2 + $0x20] sm:$0xff] (!%p188_p2), %vm226_vm1, %v1783_v3  ;;  %1728 = vmatpush3.bf16.msra.mxu0 (!%p188_p2), %v1396_v2  ;;  %1762 = vmatpush3.bf16.msra.mxu1 (!%p188_p2), %v1396_v2  ;;  %v383_v4 = vshrl.u32 (!%p188_p2), %v382_v1, 7  ;;  %v347_v5 = vld [vmem:[%s2848_s1] sm:$0x7] (!%p188_p2) }
   0x8   : > { %234 = vst.msk [vmem:[#allocation2 + $0x30] sm:$0xff] (!%p188_p2), %vm226_vm1, %v1783_v3  ;;  %235 = vst.msk [vmem:[#allocation2 + $0x38] sm:$0xff] (!%p188_p2), %vm226_vm1, %v1783_v3  ;;  %v348_v12 = vld [vmem:[%s2848_s1 + $0x4] sm:$0x7] (!%p188_p2)  ;;  %v349_v19 = vld [vmem:[%s2848_s1 + $0x8] sm:$0x7] (!%p188_p2) }
   0x9   : > { %237 = vst.msk [vmem:[#allocation2 + $0x48] sm:$0xff] (!%p188_p2), %vm226_vm1, %v1783_v3  ;;  %238 = vst.msk [vmem:[#allocation2 + $0x50] sm:$0xff] (!%p188_p2), %vm226_vm1, %v1783_v3  ;;  %v384_v6 = vsub.s32 (!%p188_p2), 0, %v383_v4  ;;  %v1895_v7 = vsub.s32 (!%p188_p2), 1, %v383_v4  ;;  %v1897_v8 = vsub.s32 (!%p188_p2), 2, %v383_v4 }
   0xa   : > { %240 = vst.msk [vmem:[#allocation2 + $0x60] sm:$0xff] (!%p188_p2), %vm226_vm1, %v1783_v3  ;;  %241 = vst.msk [vmem:[#allocation2 + $0x68] sm:$0xff] (!%p188_p2), %vm226_vm1, %v1783_v3 }
   0xb   : > { %243 = vst.msk [vmem:[#allocation2 + $0x78] sm:$0xff] (!%p188_p2), %vm226_vm1, %v1783_v3  ;;  %244 = vst.msk [vmem:[#allocation2 + $0x80] sm:$0xff] (!%p188_p2), %vm226_vm1, %v1783_v3  ;;  %v1912_v13 = vrot.slane (!%p188_p2), %v347_v5, %v384_v6  ;;  %v1915_v14 = vrot.slane (!%p188_p2), %v347_v5, %v1895_v7  ;;  %v1918_v15 = vrot.slane (!%p188_p2), %v347_v5, %v1897_v8 }
   0xc   : > { %246 = vst.msk [vmem:[#allocation2 + $0x90] sm:$0xff] (!%p188_p2), %vm226_vm1, %v1783_v3  ;;  %247 = vst.msk [vmem:[#allocation2 + $0x98] sm:$0xff] (!%p188_p2), %vm226_vm1, %v1783_v3  ;;  %v1941_v36 = vrot.slane (!%p188_p2), %v348_v12, %v384_v6  ;;  %v1944_v37 = vrot.slane (!%p188_p2), %v348_v12, %v1895_v7  ;;  %v1953_v42 = vrot.slane (!%p188_p2), %v348_v12, %v1897_v8 }
   0xd   : > { %249 = vst.msk [vmem:[#allocation2 + $0xa8] sm:$0xff] %vm226_vm1, %v1783_v3  ;;  %250 = vst.msk [vmem:[#allocation2 + $0xb0] sm:$0xff] %vm226_vm1, %v1783_v3  ;;  %s2855_s19 = smov (!%p1827_p3, %s1679_s19), 1  ;;  %v350_v20 = vld [vmem:[#allocation2] sm:$0xff]  ;;  %v351_v21 = vld [vmem:[#allocation2 + $0x8] sm:$0xff]  ;;  %v1961_v47 = vrot.slane %v349_v19, %v384_v6  ;;  %v1970_v55 = vrot.slane %v349_v19, %v1895_v7  ;;  %v1973_v56 = vrot.slane %v349_v19, %v1897_v8 }
   0xe   : > { %252 = vst.msk [vmem:[#allocation2 + $0xc0] sm:$0xff] %vm226_vm1, %v1783_v3  ;;  %253 = vst.msk [vmem:[#allocation2 + $0xc8] sm:$0xff] %vm226_vm1, %v1783_v3  ;;  %s1708_s25 = sshll.u32 %s2855_s19, 8  ;;  %v450_v22 = vld [vmem:[#allocation2 + $0x1] sm:$0xff]  ;;  %v386_v23 = vmul.f32 %v1912_v13, %v350_v20  ;;  %v387_v24 = vmul.f32 %v1912_v13, %v351_v21 }
   0xf   : > { %255 = vst.msk [vmem:[#allocation2 + $0xd8] sm:$0xff] %vm226_vm1, %v1783_v3  ;;  %256 = vst.msk [vmem:[#allocation2 + $0xe0] sm:$0xff] %vm226_vm1, %v1783_v3  ;;  %s1904_s28 = scalar_lea.vmem %s2847_s0, %s1708_s25  ;;  %v486_v26 = vmul.f32 %v1915_v14, %v450_v22  ;;  %v550_v27 = vld [vmem:[#allocation2 + $0x2] sm:$0xff]  ;;  %s2747_s16 = scalar_lea.vmem %s2852_s5, %s1708_s25 }
  0x10   : > { %258 = vst.msk [vmem:[#allocation2 + $0xf0] sm:$0xff] %vm226_vm1, %v1783_v3  ;;  %259 = vst.msk [vmem:[#allocation2 + $0xf8] sm:$0xff] %vm226_vm1, %v1783_v3  ;;  %v282_v9 = vld [vmem:[%s1904_s28] sm:$0xff]  ;;  %v283_v10 = vld [vmem:[%s1904_s28 + $0x8] sm:$0xff]  ;;  %v586_v30 = vmul.f32 %v1918_v15, %v550_v27 }
  0x11   : > { %261 = vst.msk [vmem:[#allocation2 + $0x108] sm:$0xff] %vm226_vm1, %v1783_v3  ;;  %262 = vst.msk [vmem:[#allocation2 + $0x110] sm:$0xff] %vm226_vm1, %v1783_v3  ;;  %v284_v11 = vld [vmem:[%s1904_s28 + $0x10] sm:$0xff]  ;;  %v285_v16 = vld [vmem:[%s1904_s28 + $0x18] sm:$0xff]  ;;  %v518_v35 = vadd.f32 %v486_v26, %v386_v23 }
  0x12   : > { %264 = vst.msk [vmem:[#allocation2 + $0x120] sm:$0xff] %vm226_vm1, %v1783_v3  ;;  %265 = vst.msk [vmem:[#allocation2 + $0x128] sm:$0xff] %vm226_vm1, %v1783_v3  ;;  %v286_v17 = vld [vmem:[%s1904_s28 + $0x20] sm:$0xff]  ;;  %v287_v18 = vld [vmem:[%s1904_s28 + $0x28] sm:$0xff] }
  0x13   : > { %267 = vst.msk [vmem:[#allocation2 + $0x138] sm:$0xff] %vm226_vm1, %v1783_v3  ;;  %268 = vst.msk [vmem:[#allocation2 + $0x140] sm:$0xff] %vm226_vm1, %v1783_v3  ;;  %v296_v32 = vld [vmem:[%s1904_s28 + $0x70] sm:$0xff]  ;;  %v297_v33 = vld [vmem:[%s1904_s28 + $0x78] sm:$0xff]  ;;  %v618_v46 = vadd.f32 %v586_v30, %v518_v35 }
  0x14   : > { %270 = vst.msk [vmem:[#allocation2 + $0x150] sm:$0xff] %vm226_vm1, %v1783_v3  ;;  %271 = vst.msk [vmem:[#allocation2 + $0x158] sm:$0xff] %vm226_vm1, %v1783_v3  ;;  %v298_v34 = vld [vmem:[%s1904_s28 + $0x80] sm:$0xff]  ;;  %v299_v38 = vld [vmem:[%s1904_s28 + $0x88] sm:$0xff] }
  0x15   : > { %273 = vst.msk [vmem:[#allocation2 + $0x168] sm:$0xff] %vm226_vm1, %v1783_v3  ;;  %274 = vst.msk [vmem:[#allocation2 + $0x170] sm:$0xff] %vm226_vm1, %v1783_v3  ;;  %v300_v39 = vld [vmem:[%s1904_s28 + $0x90] sm:$0xff]  ;;  %v301_v40 = vld [vmem:[%s1904_s28 + $0x98] sm:$0xff] }
  0x16   : > { %276 = vst.msk [vmem:[#allocation2 + $0x180] sm:$0xff] %vm226_vm1, %v1783_v3  ;;  %277 = vst.msk [vmem:[#allocation2 + $0x188] sm:$0xff] %vm226_vm1, %v1783_v3  ;;  %v302_v43 = vld [vmem:[%s1904_s28 + $0xa0] sm:$0xff]  ;;  %v303_v44 = vld [vmem:[%s1904_s28 + $0xa8] sm:$0xff] }
  0x17   : > { %279 = vst.msk [vmem:[#allocation2 + $0x198] sm:$0xff] %vm226_vm1, %v1783_v3  ;;  %280 = vst.msk [vmem:[#allocation2 + $0x1a0] sm:$0xff] %vm226_vm1, %v1783_v3  ;;  %v288_v45 = vld [vmem:[%s1904_s28 + $0x30] sm:$0xff]  ;;  %v289_v48 = vld [vmem:[%s1904_s28 + $0x38] sm:$0xff] }
  0x18   : > { %230 = vst.msk [vmem:[#allocation2 + $0x10] sm:$0x3] %vm229_vm2, %v1783_v3  ;;  %233 = vst.msk [vmem:[#allocation2 + $0x28] sm:$0x3] %vm229_vm2, %v1783_v3  ;;  %v290_v49 = vld [vmem:[%s1904_s28 + $0x40] sm:$0xff]  ;;  %v291_v50 = vld [vmem:[%s1904_s28 + $0x48] sm:$0xff] }
  0x19   : > { %236 = vst.msk [vmem:[#allocation2 + $0x40] sm:$0x3] %vm229_vm2, %v1783_v3  ;;  %239 = vst.msk [vmem:[#allocation2 + $0x58] sm:$0x3] %vm229_vm2, %v1783_v3 }
  0x1a   : > { %242 = vst.msk [vmem:[#allocation2 + $0x70] sm:$0x3] %vm229_vm2, %v1783_v3  ;;  %245 = vst.msk [vmem:[#allocation2 + $0x88] sm:$0x3] %vm229_vm2, %v1783_v3 }
  0x1b   : > { %248 = vst.msk [vmem:[#allocation2 + $0xa0] sm:$0x3] %vm229_vm2, %v1783_v3  ;;  %251 = vst.msk [vmem:[#allocation2 + $0xb8] sm:$0x3] %vm229_vm2, %v1783_v3 }
  0x1c   : > { %254 = vst.msk [vmem:[#allocation2 + $0xd0] sm:$0x3] %vm229_vm2, %v1783_v3  ;;  %257 = vst.msk [vmem:[#allocation2 + $0xe8] sm:$0x3] %vm229_vm2, %v1783_v3 }
  0x1d   : > { %260 = vst.msk [vmem:[#allocation2 + $0x100] sm:$0x3] %vm229_vm2, %v1783_v3  ;;  %263 = vst.msk [vmem:[#allocation2 + $0x118] sm:$0x3] %vm229_vm2, %v1783_v3 }
  0x1e   : > { %266 = vst.msk [vmem:[#allocation2 + $0x130] sm:$0x3] %vm229_vm2, %v1783_v3  ;;  %269 = vst.msk [vmem:[#allocation2 + $0x148] sm:$0x3] %vm229_vm2, %v1783_v3 }
  0x1f   : > { %272 = vst.msk [vmem:[#allocation2 + $0x160] sm:$0x3] %vm229_vm2, %v1783_v3  ;;  %275 = vst.msk [vmem:[#allocation2 + $0x178] sm:$0x3] %vm229_vm2, %v1783_v3  ;;  %v451_v25 = vld [vmem:[#allocation2 + $0x9] sm:$0xff] }
  0x20   : > { %278 = vst.msk [vmem:[#allocation2 + $0x190] sm:$0x3] %vm229_vm2, %v1783_v3  ;;  %281 = vst.msk [vmem:[#allocation2 + $0x1a8] sm:$0x3] %vm229_vm2, %v1783_v3  ;;  %v551_v28 = vld [vmem:[#allocation2 + $0xa] sm:$0xff]  ;;  %v487_v29 = vmul.f32 %v1915_v14, %v451_v25 }
  0x21   : > { %315 = vst.msk [vmem:[#allocation2 + $0x19] sm:$0xff] %vm226_vm1, %v282_v9  ;;  %316 = vst.msk [vmem:[#allocation2 + $0x21] sm:$0xff] %vm226_vm1, %v283_v10  ;;  %v587_v31 = vmul.f32 %v1918_v15, %v551_v28 }
  0x22   : > { %317 = vst.msk [vmem:[#allocation2 + $0x31] sm:$0xff] %vm226_vm1, %v284_v11  ;;  %318 = vst.msk [vmem:[#allocation2 + $0x39] sm:$0xff] %vm226_vm1, %v285_v16  ;;  %v519_v41 = vadd.f32 %v487_v29, %v387_v24 }
  0x23   : > { %319 = vst.msk [vmem:[#allocation2 + $0x49] sm:$0xff] %vm226_vm1, %v286_v17  ;;  %320 = vst.msk [vmem:[#allocation2 + $0x51] sm:$0xff] %vm226_vm1, %v287_v18 }
  0x24   : > { %329 = vst.msk [vmem:[#allocation2 + $0xc1] sm:$0xff] %vm226_vm1, %v296_v32  ;;  %330 = vst.msk [vmem:[#allocation2 + $0xc9] sm:$0xff] %vm226_vm1, %v297_v33  ;;  %v619_v51 = vadd.f32 %v587_v31, %v519_v41 }
  0x25   : > { %331 = vst.msk [vmem:[#allocation2 + $0xd9] sm:$0xff] %vm226_vm1, %v298_v34  ;;  %332 = vst.msk [vmem:[#allocation2 + $0xe1] sm:$0xff] %vm226_vm1, %v299_v38 }
  0x26   : > { %333 = vst.msk [vmem:[#allocation2 + $0xf1] sm:$0xff] %vm226_vm1, %v300_v39  ;;  %334 = vst.msk [vmem:[#allocation2 + $0xf9] sm:$0xff] %vm226_vm1, %v301_v40 }
  0x27   : > { %335 = vst.msk [vmem:[#allocation2 + $0x109] sm:$0xff] %vm226_vm1, %v302_v43  ;;  %336 = vst.msk [vmem:[#allocation2 + $0x111] sm:$0xff] %vm226_vm1, %v303_v44 }
  0x28   : > { %321 = vst.msk [vmem:[#allocation2 + $0x61] sm:$0xff] %vm226_vm1, %v288_v45  ;;  %v650_v52 = vld [vmem:[#allocation2 + $0x18] sm:$0xff]  ;;  %v651_v53 = vld [vmem:[#allocation2 + $0x20] sm:$0xff]  ;;  %322 = vst.msk [vmem:[#allocation2 + $0x69] sm:$0xff] %vm226_vm1, %v289_v48 }
  0x29   : > { %v750_v54 = vld [vmem:[#allocation2 + $0x19] sm:$0xff]  ;;  %323 = vst.msk [vmem:[#allocation2 + $0x79] sm:$0xff] %vm226_vm1, %v290_v49  ;;  %324 = vst.msk [vmem:[#allocation2 + $0x81] sm:$0xff] %vm226_vm1, %v291_v50  ;;  %v686_v57 = vmul.f32 %v1941_v36, %v650_v52  ;;  %v687_v58 = vmul.f32 %v1941_v36, %v651_v53  ;;  %v751_v59 = vld [vmem:[#allocation2 + $0x21] sm:$0xff]  ;;  %v388_v63 = vmul.f32 %v650_v52, %v1912_v13 }
  0x2a   : > { %v786_v60 = vmul.f32 %v1944_v37, %v750_v54  ;;  %v850_v61 = vld [vmem:[#allocation2 + $0x1a] sm:$0xff]  ;;  %v851_v62 = vld [vmem:[#allocation2 + $0x22] sm:$0xff]  ;;  %v787_v0 = vmul.f32 %v1944_v37, %v751_v59  ;;  %v1985_v3 = vld [vmem:[#allocation2 + $0x30] sm:$0xff]  ;;  %v389_v6 = vmul.f32 %v651_v53, %v1912_v13  ;;  %v488_v23 = vmul.f32 %v750_v54, %v1915_v14 }
  0x2b   : > { %v886_v1 = vmul.f32 %v1953_v42, %v850_v61  ;;  %v887_v2 = vmul.f32 %v1953_v42, %v851_v62  ;;  %v1987_v4 = vld [vmem:[#allocation2 + $0x38] sm:$0xff]  ;;  %v718_v7 = vadd.f32 %v686_v57, %v618_v46  ;;  %v719_v8 = vadd.f32 %v687_v58, %v619_v51  ;;  %v2026_v39 = vld [vmem:[#allocation2 + $0x48] sm:$0xff]  ;;  %v2028_v40 = vld [vmem:[#allocation2 + $0x50] sm:$0xff] }
  0x2c   : > { %v1989_v5 = vld [vmem:[#allocation2 + $0x31] sm:$0xff]  ;;  %v987_v9 = vmul.f32 %v1961_v47, %v1985_v3  ;;  %v988_v10 = vmul.f32 %v1961_v47, %v1987_v4  ;;  %v1996_v11 = vld [vmem:[#allocation2 + $0x39] sm:$0xff]  ;;  %v489_v24 = vmul.f32 %v751_v59, %v1915_v14  ;;  %v588_v25 = vmul.f32 %v850_v61, %v1918_v15  ;;  %v2030_v41 = vld [vmem:[#allocation2 + $0x49] sm:$0xff] }
  0x2d   : > { %v1998_v12 = vld [vmem:[#allocation2 + $0x32] sm:$0xff]  ;;  %v2000_v16 = vld [vmem:[#allocation2 + $0x3a] sm:$0xff]  ;;  %v1087_v17 = vmul.f32 %v1970_v55, %v1989_v5  ;;  %v1088_v18 = vmul.f32 %v1970_v55, %v1996_v11  ;;  %v818_v21 = vadd.f32 %v786_v60, %v718_v7  ;;  %v819_v22 = vadd.f32 %v787_v0, %v719_v8  ;;  %v367_v50 = vld [vmem:[#allocation2 + $0xc8] sm:$0xff] }
  0x2e   : > { %v1187_v19 = vmul.f32 %v1973_v56, %v1998_v12  ;;  %v1188_v20 = vmul.f32 %v1973_v56, %v2000_v16  ;;  %v589_v26 = vmul.f32 %v851_v62, %v1918_v15  ;;  %v688_v27 = vmul.f32 %v1985_v3, %v1941_v36  ;;  %v2032_v48 = vld [vmem:[#allocation2 + $0x51] sm:$0xff]  ;;  %v366_v49 = vld [vmem:[#allocation2 + $0xc0] sm:$0xff]  ;;  %v467_v0 = vld [vmem:[#allocation2 + $0xc9] sm:$0xff] }
  0x2f   : > { %v689_v28 = vmul.f32 %v1987_v4, %v1941_v36  ;;  %v918_v29 = vadd.f32 %v886_v1, %v818_v21  ;;  %v919_v30 = vadd.f32 %v887_v2, %v819_v22  ;;  %v520_v31 = vadd.f32 %v488_v23, %v388_v63  ;;  %v2042_v57 = vld [vmem:[#allocation2 + $0x4a] sm:$0xff]  ;;  %v2044_v58 = vld [vmem:[#allocation2 + $0x52] sm:$0xff]  ;;  %v466_v59 = vld [vmem:[#allocation2 + $0xc1] sm:$0xff] }
  0x30   : > { %v521_v32 = vadd.f32 %v489_v24, %v389_v6  ;;  %v788_v33 = vmul.f32 %v1989_v5, %v1944_v37  ;;  %v789_v34 = vmul.f32 %v1996_v11, %v1944_v37  ;;  %v888_v35 = vmul.f32 %v1998_v12, %v1953_v42  ;;  %v566_v1 = vld [vmem:[#allocation2 + $0xc2] sm:$0xff]  ;;  %v567_v2 = vld [vmem:[#allocation2 + $0xca] sm:$0xff]  ;;  %v2049_v6 = vld [vmem:[%s2849_s2] ss:$0 sm:$0xff] }
  0x31   : > { %v889_v38 = vmul.f32 %v2000_v16, %v1953_v42  ;;  %v1019_v43 = vadd.f32 %v987_v9, %v918_v29  ;;  %v1020_v44 = vadd.f32 %v988_v10, %v919_v30  ;;  %v620_v45 = vadd.f32 %v588_v25, %v520_v31  ;;  %v2067_v31 = vld [vmem:[#allocation2 + $0xd8] sm:$0xff] }
  0x32   : > { %v621_v46 = vadd.f32 %v589_v26, %v521_v32  ;;  %v989_v51 = vmul.f32 %v1961_v47, %v2026_v39  ;;  %v990_v52 = vmul.f32 %v1961_v47, %v2028_v40  ;;  %v1089_v53 = vmul.f32 %v1970_v55, %v2030_v41 }
  0x33   : > { %v1090_v54 = vmul.f32 %v1970_v55, %v2032_v48  ;;  %v1119_v60 = vadd.f32 %v1087_v17, %v1019_v43  ;;  %v1120_v61 = vadd.f32 %v1088_v18, %v1020_v44  ;;  %v720_v62 = vadd.f32 %v688_v27, %v620_v45  ;;  %v2075_v43 = vld [vmem:[#allocation2 + $0xd9] sm:$0xff]  ;;  %v2077_v44 = vld [vmem:[#allocation2 + $0xe1] sm:$0xff] }
  0x34   : > { %v721_v63 = vadd.f32 %v689_v28, %v621_v46  ;;  %v2053_v7 = vmul.f32 %v1973_v56, %v2042_v57  ;;  %v2057_v8 = vmul.f32 %v1973_v56, %v2044_v58  ;;  %v402_v9 = vmul.f32 %v1912_v13, %v366_v49  ;;  %v2079_v49 = vld [vmem:[#allocation2 + $0xda] sm:$0xff] }
  0x35   : > { %v403_v10 = vmul.f32 %v1912_v13, %v367_v50  ;;  %v1219_v17 = vadd.f32 %v1187_v19, %v1119_v60  ;;  %v1220_v18 = vadd.f32 %v1188_v20, %v1120_v61  ;;  %v820_v21 = vadd.f32 %v788_v33, %v720_v62  ;;  %v2069_v19 = vld [vmem:[#allocation2 + $0xe0] sm:$0xff] }
  0x36   : > { %v821_v22 = vadd.f32 %v789_v34, %v721_v63  ;;  %v502_v23 = vmul.f32 %v1915_v14, %v466_v59  ;;  %v503_v24 = vmul.f32 %v1915_v14, %v467_v0  ;;  %v602_v25 = vmul.f32 %v1918_v15, %v566_v1  ;;  %v2081_v50 = vld [vmem:[#allocation2 + $0xe2] sm:$0xff]  ;;  %v2083_v59 = vld [vmem:[#allocation2 + $0xf0] sm:$0xff]  ;;  %v2089_v0 = vld [vmem:[#allocation2 + $0xf8] sm:$0xff] }
  0x37   : > { %v603_v26 = vmul.f32 %v1918_v15, %v567_v2  ;;  %v1258_v27 = vadd.f32 %v2049_v6, %v1219_v17  ;;  %v1259_v28 = vadd.f32 %v2049_v6, %v1220_v18  ;;  %v920_v29 = vadd.f32 %v888_v35, %v820_v21  ;;  %v305_v1 = vld [vmem:[%s1904_s28 + $0xb8] sm:$0xff]  ;;  %v306_v2 = vld [vmem:[%s1904_s28 + $0xc0] sm:$0xff] }
  0x38   : > { %v921_v30 = vadd.f32 %v889_v38, %v821_v22  ;;  %v534_v20 = vadd.f32 %v502_v23, %v402_v9  ;;  %v535_v32 = vadd.f32 %v503_v24, %v403_v10  ;;  %v702_v33 = vmul.f32 %v1941_v36, %v2067_v31  ;;  %v2098_v21 = vld [vmem:[#allocation2 + $0xf9] sm:$0xff]  ;;  %338 = vst.msk [vmem:[#allocation2 + $0x129] sm:$0xff] %vm226_vm1, %v305_v1  ;;  %v307_v23 = vld [vmem:[%s1904_s28 + $0xc8] sm:$0xff]  ;;  %v292_v24 = vld [vmem:[%s1904_s28 + $0x50] sm:$0xff] }
  0x39   : > { %v703_v34 = vmul.f32 %v1941_v36, %v2069_v19  ;;  %v1290_v35 = vmax.f32 %v1258_v27, 0.0  ;;  %v1291_v38 = vmax.f32 %v1259_v28, 0.0  ;;  %v1021_v45 = vadd.f32 %v989_v51, %v920_v29  ;;  %v2091_v51 = vld [vmem:[#allocation2 + $0xf1] sm:$0xff]  ;;  %339 = vst.msk [vmem:[#allocation2 + $0x139] sm:$0xff] %vm226_vm1, %v306_v2  ;;  %340 = vst.msk [vmem:[#allocation2 + $0x141] sm:$0xff] %vm226_vm1, %v307_v23  ;;  %v294_v28 = vld [vmem:[%s1904_s28 + $0x60] sm:$0xff] }
  0x3a   : > { %v1022_v46 = vadd.f32 %v990_v52, %v921_v30  ;;  %v634_v60 = vadd.f32 %v602_v25, %v534_v20  ;;  %v635_v61 = vadd.f32 %v603_v26, %v535_v32  ;;  %v802_v62 = vmul.f32 %v1944_v37, %v2075_v43  ;;  %v304_v52 = vld [vmem:[%s1904_s28 + $0xb0] sm:$0xff]  ;;  %325 = vst.msk [vmem:[#allocation2 + $0x91] sm:$0xff] %vm226_vm1, %v292_v24  ;;  %v295_v29 = vld [vmem:[%s1904_s28 + $0x68] sm:$0xff] }
  0x3b   : > { %v803_v63 = vmul.f32 %v1944_v37, %v2077_v44  ;;  %v1322_v9 = vpack.c.bf16 %v1291_v38, %v1290_v35  ;;  %v1121_v10 = vadd.f32 %v1089_v53, %v1021_v45  ;;  %v902_v18 = vmul.f32 %v1953_v42, %v2079_v49  ;;  %v2100_v22 = vld [vmem:[#allocation2 + $0xf2] sm:$0xff]  ;;  %337 = vst.msk [vmem:[#allocation2 + $0x121] sm:$0xff] %vm226_vm1, %v304_v52  ;;  %v310_v38 = vld [vmem:[%s1904_s28 + $0xe0] sm:$0xff]  ;;  %v311_v45 = vld [vmem:[%s1904_s28 + $0xe8] sm:$0xff] }
  0x3c   : > { %v1122_v17 = vadd.f32 %v1090_v54, %v1022_v46  ;;  %v293_v53 = vld [vmem:[%s1904_s28 + $0x58] sm:$0xff]  ;;  %v734_v54 = vadd.f32 %v702_v33, %v634_v60  ;;  %v735_v25 = vadd.f32 %v703_v34, %v635_v61  ;;  %v903_v26 = vmul.f32 %v1953_v42, %v2081_v50  ;;  %v308_v30 = vld [vmem:[%s1904_s28 + $0xd0] sm:$0xff]  ;;  %327 = vst.msk [vmem:[#allocation2 + $0xa9] sm:$0xff] %vm226_vm1, %v294_v28 }
  0x3d   : > { %v1003_v27 = vmul.f32 %v1961_v47, %v2083_v59  ;;  %326 = vst.msk [vmem:[#allocation2 + $0x99] sm:$0xff] %vm226_vm1, %v293_v53  ;;  %1729 = vmatprep.mubr.msk.bf16.mxu0 %vm226_vm1, %v1322_v9  ;;  %v1221_v20 = vadd.f32 %v2053_v7, %v1121_v10  ;;  %v1004_v33 = vmul.f32 %v1961_v47, %v2089_v0  ;;  %328 = vst.msk [vmem:[#allocation2 + $0xb1] sm:$0xff] %vm226_vm1, %v295_v29  ;;  %v309_v35 = vld [vmem:[%s1904_s28 + $0xd8] sm:$0xff] }
  0x3e   : > { %v1222_v32 = vadd.f32 %v2057_v8, %v1122_v17  ;;  %v1103_v34 = vmul.f32 %v1970_v55, %v2091_v51  ;;  %341 = vst.msk [vmem:[#allocation2 + $0x151] sm:$0xff] %vm226_vm1, %v308_v30  ;;  %v834_v46 = vadd.f32 %v802_v62, %v734_v54  ;;  %v835_v60 = vadd.f32 %v803_v63, %v735_v25  ;;  %v2133_v8 = vld [vmem:[#allocation2 + $0xfa] sm:$0xff] }
  0x3f   : > { %v1104_v7 = vmul.f32 %v1970_v55, %v2098_v21  ;;  %v1203_v61 = vmul.f32 %v1973_v56, %v2100_v22  ;;  %342 = vst.msk [vmem:[#allocation2 + $0x159] sm:$0xff] %vm226_vm1, %v309_v35  ;;  %343 = vst.msk [vmem:[#allocation2 + $0x169] sm:$0xff] %vm226_vm1, %v310_v38  ;;  %v1260_v52 = vadd.f32 %v2049_v6, %v1221_v20  ;;  %v2169_v35 = vld [vmem:[#allocation2 + $0x108] sm:$0xff] }
  0x40   : > { %344 = vst.msk [vmem:[#allocation2 + $0x171] sm:$0xff] %vm226_vm1, %v311_v45  ;;  %v1261_v1 = vadd.f32 %v2049_v6, %v1222_v32  ;;  %v1204_v62 = vmul.f32 %v1973_v56, %v2133_v8  ;;  %v404_v63 = vmul.f32 %v2067_v31, %v1912_v13  ;;  %v934_v2 = vadd.f32 %v902_v18, %v834_v46  ;;  %v2171_v46 = vld [vmem:[#allocation2 + $0x110] sm:$0xff] }
  0x41   : > { %v935_v9 = vadd.f32 %v903_v26, %v835_v60  ;;  %v405_v10 = vmul.f32 %v2069_v19, %v1912_v13  ;;  %v504_v17 = vmul.f32 %v2075_v43, %v1915_v14  ;;  %v1292_v23 = vmax.f32 %v1260_v52, 0.0  ;;  %v2177_v52 = vld [vmem:[#allocation2 + $0x111] sm:$0xff] }
  0x42   : > { %v1293_v24 = vmax.f32 %v1261_v1, 0.0  ;;  %v505_v53 = vmul.f32 %v2077_v44, %v1915_v14  ;;  %v604_v54 = vmul.f32 %v2079_v49, %v1918_v15  ;;  %v1035_v25 = vadd.f32 %v1003_v27, %v934_v2 }
  0x43   : > { %v1036_v28 = vadd.f32 %v1004_v33, %v935_v9  ;;  %v536_v29 = vadd.f32 %v504_v17, %v404_v63  ;;  %v605_v31 = vmul.f32 %v2081_v50, %v1918_v15  ;;  %v704_v19 = vmul.f32 %v2083_v59, %v1941_v36 }
  0x44   : > { %v1323_v18 = vpack.c.bf16 %v1293_v24, %v1292_v23  ;;  %v537_v26 = vadd.f32 %v505_v53, %v405_v10  ;;  %v705_v43 = vmul.f32 %v2089_v0, %v1941_v36  ;;  %v1135_v30 = vadd.f32 %v1103_v34, %v1035_v25  ;;  %v2189_v23 = vld [vmem:[#allocation2 + $0x112] sm:$0xff] }
  0x45   : > { %v1136_v20 = vadd.f32 %v1104_v7, %v1036_v28  ;;  %v636_v44 = vadd.f32 %v604_v54, %v536_v29  ;;  %v804_v49 = vmul.f32 %v2091_v51, %v1944_v37  ;;  %v805_v50 = vmul.f32 %v2098_v21, %v1944_v37  ;;  %v2175_v7 = vld [vmem:[#allocation2 + $0x109] sm:$0xff] }
  0x46   : > { %1730 = vmatmul.mubr.msk.bf16.vlgmr.msra.gmra.mrb[0].mxu0 %vm226_vm1, %v1323_v18  ;;  %v637_v27 = vadd.f32 %v605_v31, %v537_v26  ;;  %v904_v32 = vmul.f32 %v2100_v22, %v1953_v42  ;;  %v905_v33 = vmul.f32 %v2133_v8, %v1953_v42  ;;  %v1235_v34 = vadd.f32 %v1203_v61, %v1135_v30 }
  0x47   : > { %v1236_v38 = vadd.f32 %v1204_v62, %v1136_v20  ;;  %v736_v45 = vadd.f32 %v704_v19, %v636_v44  ;;  %v1005_v60 = vmul.f32 %v1961_v47, %v2169_v35  ;;  %v1006_v63 = vmul.f32 %v1961_v47, %v2171_v46  ;;  %v2185_v62 = vld [vmem:[#allocation2 + $0x10a] sm:$0xff] }
  0x48   : > { %v737_v1 = vadd.f32 %v705_v43, %v637_v27  ;;  %v1105_v2 = vmul.f32 %v1970_v55, %v2175_v7  ;;  %v1106_v61 = vmul.f32 %v1970_v55, %v2177_v52  ;;  %v1274_v9 = vadd.f32 %v2049_v6, %v1235_v34  ;;  %v2218_v34 = vld [vmem:[#allocation2 + $0x60] sm:$0xff] }
  0x49   : > { %v1275_v10 = vadd.f32 %v2049_v6, %v1236_v38  ;;  %v836_v17 = vadd.f32 %v804_v49, %v736_v45  ;;  %v1205_v24 = vmul.f32 %v1973_v56, %v2185_v62  ;;  %v1206_v54 = vmul.f32 %v1973_v56, %v2189_v23  ;;  %v312_v38 = vld [vmem:[%s1904_s28 + $0xf0] sm:$0xff]  ;;  %v313_v45 = vld [vmem:[%s1904_s28 + $0xf8] sm:$0xff] }
  0x4a   : > { %v837_v53 = vadd.f32 %v805_v50, %v737_v1  ;;  %v390_v25 = vmul.f32 %v1985_v3, %v1912_v13  ;;  %v391_v28 = vmul.f32 %v1987_v4, %v1912_v13  ;;  %v1306_v29 = vmax.f32 %v1274_v9, 0.0  ;;  %v2224_v9 = vld [vmem:[#allocation2 + $0x68] sm:$0xff]  ;;  %345 = vst.msk [vmem:[#allocation2 + $0x181] sm:$0xff] %vm226_vm1, %v312_v38  ;;  %346 = vst.msk [vmem:[#allocation2 + $0x189] sm:$0xff] %vm226_vm1, %v313_v45 }
  0x4b   : > { %v1307_v31 = vmax.f32 %v1275_v10, 0.0  ;;  %v936_v18 = vadd.f32 %v904_v32, %v836_v17  ;;  %v490_v26 = vmul.f32 %v1989_v5, %v1915_v14  ;;  %v491_v43 = vmul.f32 %v1996_v11, %v1915_v14  ;;  %v2228_v10 = vld [vmem:[#allocation2 + $0x61] sm:$0xff] }
  0x4c   : > { %v937_v19 = vadd.f32 %v905_v33, %v837_v53  ;;  %v590_v30 = vmul.f32 %v1998_v12, %v1918_v15  ;;  %v591_v3 = vmul.f32 %v2000_v16, %v1918_v15  ;;  %v690_v49 = vmul.f32 %v2026_v39, %v1941_v36 }
  0x4d   : > { %v1330_v20 = vpack.c.bf16 %v1307_v31, %v1306_v29  ;;  %v1037_v4 = vadd.f32 %v1005_v60, %v936_v18  ;;  %v522_v44 = vadd.f32 %v490_v26, %v390_v25  ;;  %v523_v5 = vadd.f32 %v491_v43, %v391_v28  ;;  %v2234_v25 = vld [vmem:[#allocation2 + $0x69] sm:$0xff] }
  0x4e   : > { %v1038_v27 = vadd.f32 %v1006_v63, %v937_v19  ;;  %v691_v50 = vmul.f32 %v2028_v40, %v1941_v36  ;;  %v790_v11 = vmul.f32 %v2030_v41, %v1944_v37  ;;  %v791_v16 = vmul.f32 %v2032_v48, %v1944_v37  ;;  %v2238_v29 = vld [vmem:[#allocation2 + $0x62] sm:$0xff]  ;;  %v2242_v19 = vld [vmem:[#allocation2 + $0x6a] sm:$0xff] }
  0x4f   : > { %1745 = vmatprep.mubr.msk.bf16.mxu1 %vm226_vm1, %v1330_v20  ;;  %v1137_v12 = vadd.f32 %v1105_v2, %v1037_v4  ;;  %v622_v32 = vadd.f32 %v590_v30, %v522_v44  ;;  %v890_v33 = vmul.f32 %v2042_v57, %v1953_v42  ;;  %v623_v1 = vadd.f32 %v591_v3, %v523_v5 }
  0x50   : > { %v1138_v60 = vadd.f32 %v1106_v61, %v1038_v27  ;;  %v891_v63 = vmul.f32 %v2044_v58, %v1953_v42  ;;  %v991_v2 = vmul.f32 %v1961_v47, %v2218_v34  ;;  %v992_v61 = vmul.f32 %v1961_v47, %v2224_v9 }
  0x51   : > { %v1237_v17 = vadd.f32 %v1205_v24, %v1137_v12  ;;  %v722_v53 = vadd.f32 %v690_v49, %v622_v32  ;;  %v1091_v28 = vmul.f32 %v1970_v55, %v2228_v10  ;;  %v723_v18 = vadd.f32 %v691_v50, %v623_v1 }
  0x52   : > { %v1238_v31 = vadd.f32 %v1206_v54, %v1138_v60  ;;  %v1092_v26 = vmul.f32 %v1970_v55, %v2234_v25  ;;  %v1191_v24 = vmul.f32 %v1973_v56, %v2238_v29  ;;  %v1192_v3 = vmul.f32 %v1973_v56, %v2242_v19 }
  0x53   : > { %v1276_v43 = vadd.f32 %v2049_v6, %v1237_v17  ;;  %v822_v30 = vadd.f32 %v790_v11, %v722_v53  ;;  %v392_v20 = vmul.f32 %v2026_v39, %v1912_v13  ;;  %v823_v4 = vadd.f32 %v791_v16, %v723_v18  ;;  %v2277_v18 = vld [vmem:[#allocation2 + $0x80] sm:$0xff] }
  0x54   : > { %v1277_v54 = vadd.f32 %v2049_v6, %v1238_v31  ;;  %v393_v44 = vmul.f32 %v2028_v40, %v1912_v13  ;;  %v492_v49 = vmul.f32 %v2030_v41, %v1915_v14  ;;  %v493_v50 = vmul.f32 %v2032_v48, %v1915_v14 }
  0x55   : > { %v1308_v27 = vmax.f32 %v1276_v43, 0.0  ;;  %v922_v5 = vadd.f32 %v890_v33, %v822_v30  ;;  %v592_v11 = vmul.f32 %v2042_v57, %v1918_v15  ;;  %v923_v32 = vadd.f32 %v891_v63, %v823_v4  ;;  %v2281_v43 = vld [vmem:[#allocation2 + $0x79] sm:$0xff]  ;;  %v2285_v4 = vld [vmem:[#allocation2 + $0x81] sm:$0xff] }
  0x56   : > { %v1309_v12 = vmax.f32 %v1277_v54, 0.0  ;;  %v524_v39 = vadd.f32 %v492_v49, %v392_v20  ;;  %v593_v16 = vmul.f32 %v2044_v58, %v1918_v15  ;;  %v525_v45 = vadd.f32 %v493_v50, %v393_v44  ;;  %v2289_v44 = vld [vmem:[#allocation2 + $0x7a] sm:$0xff]  ;;  %v2293_v50 = vld [vmem:[#allocation2 + $0x82] sm:$0xff] }
  0x57   : > { %v1023_v38 = vadd.f32 %v991_v2, %v922_v5  ;;  %v692_v40 = vmul.f32 %v2218_v34, %v1941_v36  ;;  %v693_v41 = vmul.f32 %v2224_v9, %v1941_v36  ;;  %v1024_v60 = vadd.f32 %v992_v61, %v923_v32  ;;  %v2272_v2 = vld [vmem:[#allocation2 + $0x78] sm:$0xff] }
  0x58   : > { %v1331_v33 = vpack.c.bf16 %v1309_v12, %v1308_v27  ;;  %v624_v48 = vadd.f32 %v592_v11, %v524_v39  ;;  %v792_v57 = vmul.f32 %v2228_v10, %v1944_v37  ;;  %v625_v63 = vadd.f32 %v593_v16, %v525_v45 }
  0x59   : > { %v1123_v1 = vadd.f32 %v1091_v28, %v1023_v38  ;;  %v793_v17 = vmul.f32 %v2234_v25, %v1944_v37  ;;  %v892_v58 = vmul.f32 %v2238_v29, %v1953_v42  ;;  %v1124_v53 = vadd.f32 %v1092_v26, %v1024_v60 }
  0x5a   : > { %1746 = vmatmul.mubr.msk.bf16.vlgmr.msra.gmra.mrb[0].mxu1 %vm226_vm1, %v1331_v33  ;;  %v724_v31 = vadd.f32 %v692_v40, %v624_v48  ;;  %v893_v61 = vmul.f32 %v2242_v19, %v1953_v42  ;;  %v993_v28 = vmul.f32 %v1961_v47, %v2272_v2  ;;  %v725_v20 = vadd.f32 %v693_v41, %v625_v63 }
  0x5b   : > { %v1223_v30 = vadd.f32 %v1191_v24, %v1123_v1  ;;  %v994_v54 = vmul.f32 %v1961_v47, %v2277_v18  ;;  %v1093_v26 = vmul.f32 %v1970_v55, %v2281_v43  ;;  %v1224_v49 = vadd.f32 %v1192_v3, %v1124_v53 }
  0x5c   : > { %v824_v27 = vadd.f32 %v792_v57, %v724_v31  ;;  %v1094_v5 = vmul.f32 %v1970_v55, %v2285_v4  ;;  %v1193_v24 = vmul.f32 %v1973_v56, %v2289_v44  ;;  %v825_v12 = vadd.f32 %v793_v17, %v725_v20 }
  0x5d   : > { %v1262_v11 = vadd.f32 %v2049_v6, %v1223_v30  ;;  %v1194_v32 = vmul.f32 %v1973_v56, %v2293_v50  ;;  %v406_v39 = vmul.f32 %v2083_v59, %v1912_v13  ;;  %v1263_v3 = vadd.f32 %v2049_v6, %v1224_v49  ;;  %v2323_v30 = vld [vmem:[#allocation2 + $0x120] sm:$0xff]  ;;  %v2328_v49 = vld [vmem:[#allocation2 + $0x128] sm:$0xff] }
  0x5e   : > { %v924_v16 = vadd.f32 %v892_v58, %v824_v27  ;;  %v407_v38 = vmul.f32 %v2089_v0, %v1912_v13  ;;  %v506_v45 = vmul.f32 %v2091_v51, %v1915_v14  ;;  %v925_v41 = vadd.f32 %v893_v61, %v825_v12 }
  0x5f   : > { %v1294_v40 = vmax.f32 %v1262_v11, 0.0  ;;  %v507_v33 = vmul.f32 %v2098_v21, %v1915_v14  ;;  %v606_v60 = vmul.f32 %v2100_v22, %v1918_v15  ;;  %v1295_v48 = vmax.f32 %v1263_v3, 0.0  ;;  %v2336_v3 = vld [vmem:[#allocation2 + $0x129] sm:$0xff] }
  0x60   : > { %v1025_v57 = vadd.f32 %v993_v28, %v924_v16  ;;  %v538_v59 = vadd.f32 %v506_v45, %v406_v39  ;;  %v607_v1 = vmul.f32 %v2133_v8, %v1918_v15  ;;  %v1026_v63 = vadd.f32 %v994_v54, %v925_v41  ;;  %v2340_v16 = vld [vmem:[#allocation2 + $0x122] sm:$0xff]  ;;  %v2345_v41 = vld [vmem:[#allocation2 + $0x12a] sm:$0xff] }
  0x61   : > { %v539_v17 = vadd.f32 %v507_v33, %v407_v38  ;;  %v706_v0 = vmul.f32 %v2169_v35, %v1941_v36  ;;  %v707_v51 = vmul.f32 %v2171_v46, %v1941_v36  ;;  %v1324_v58 = vpack.c.bf16 %v1295_v48, %v1294_v40 }
  0x62   : > { %v1125_v53 = vadd.f32 %v1093_v26, %v1025_v57  ;;  %v638_v21 = vadd.f32 %v606_v60, %v538_v59  ;;  %v806_v22 = vmul.f32 %v2175_v7, %v1944_v37  ;;  %v1126_v31 = vadd.f32 %v1094_v5, %v1026_v63  ;;  %v2332_v5 = vld [vmem:[#allocation2 + $0x121] sm:$0xff] }
  0x63   : > { %v639_v61 = vadd.f32 %v607_v1, %v539_v17  ;;  %v807_v28 = vmul.f32 %v2177_v52, %v1944_v37  ;;  %v906_v8 = vmul.f32 %v2185_v62, %v1953_v42  ;;  %1733 = vmatprep.mubr.msk.bf16.mxu0 %vm226_vm1, %v1324_v58  ;;  %v907_v26 = vmul.f32 %v2189_v23, %v1953_v42 }
  0x64   : > { %v1225_v20 = vadd.f32 %v1193_v24, %v1125_v53  ;;  %v738_v54 = vadd.f32 %v706_v0, %v638_v21  ;;  %v1007_v27 = vmul.f32 %v1961_v47, %v2323_v30  ;;  %v1226_v11 = vadd.f32 %v1194_v32, %v1126_v31 }
  0x65   : > { %v739_v12 = vadd.f32 %v707_v51, %v639_v61  ;;  %v1008_v39 = vmul.f32 %v1961_v47, %v2328_v49  ;;  %v1107_v24 = vmul.f32 %v1970_v55, %v2332_v5  ;;  %v1108_v40 = vmul.f32 %v1970_v55, %v2336_v3 }
  0x66   : > { %v1264_v38 = vadd.f32 %v2049_v6, %v1225_v20  ;;  %v838_v45 = vadd.f32 %v806_v22, %v738_v54  ;;  %v1207_v32 = vmul.f32 %v1973_v56, %v2340_v16  ;;  %v1265_v33 = vadd.f32 %v2049_v6, %v1226_v11  ;;  %v2377_v11 = vld [vmem:[#allocation2 + $0x138] sm:$0xff] }
  0x67   : > { %v839_v60 = vadd.f32 %v807_v28, %v739_v12  ;;  %v1208_v48 = vmul.f32 %v1973_v56, %v2345_v41  ;;  %v408_v57 = vmul.f32 %v2169_v35, %v1912_v13  ;;  %v409_v63 = vmul.f32 %v2171_v46, %v1912_v13  ;;  %v2379_v12 = vld [vmem:[#allocation2 + $0x140] sm:$0xff] }
  0x68   : > { %v1296_v59 = vmax.f32 %v1264_v38, 0.0  ;;  %v938_v1 = vadd.f32 %v906_v8, %v838_v45  ;;  %v508_v17 = vmul.f32 %v2175_v7, %v1915_v14  ;;  %v1297_v0 = vmax.f32 %v1265_v33, 0.0  ;;  %v2387_v33 = vld [vmem:[#allocation2 + $0x141] sm:$0xff] }
  0x69   : > { %v939_v51 = vadd.f32 %v907_v26, %v839_v60  ;;  %v509_v58 = vmul.f32 %v2177_v52, %v1915_v14  ;;  %v608_v53 = vmul.f32 %v2185_v62, %v1918_v15  ;;  %v609_v35 = vmul.f32 %v2189_v23, %v1918_v15 }
  0x6a   : > { %v1039_v21 = vadd.f32 %v1007_v27, %v938_v1  ;;  %v540_v22 = vadd.f32 %v508_v17, %v408_v57  ;;  %v708_v31 = vmul.f32 %v2323_v30, %v1941_v36  ;;  %v1325_v46 = vpack.c.bf16 %v1297_v0, %v1296_v59 }
  0x6b   : > { %v1040_v61 = vadd.f32 %v1008_v39, %v939_v51  ;;  %v541_v28 = vadd.f32 %v509_v58, %v409_v63  ;;  %v709_v7 = vmul.f32 %v2328_v49, %v1941_v36  ;;  %v808_v52 = vmul.f32 %v2332_v5, %v1944_v37  ;;  %v2395_v63 = vld [vmem:[#allocation2 + $0x142] sm:$0xff] }
  0x6c   : > { %v1139_v8 = vadd.f32 %v1107_v24, %v1039_v21  ;;  %v640_v20 = vadd.f32 %v608_v53, %v540_v22  ;;  %v809_v62 = vmul.f32 %v2336_v3, %v1944_v37  ;;  %1734 = vmatmul.mubr.msk.bf16.gmra.mrb[4].mxu0 %vm226_vm1, %v1325_v46  ;;  %v908_v26 = vmul.f32 %v2340_v16, %v1953_v42 }
  0x6d   : > { %v1140_v23 = vadd.f32 %v1108_v40, %v1040_v61  ;;  %v641_v54 = vadd.f32 %v609_v35, %v541_v28  ;;  %v909_v27 = vmul.f32 %v2345_v41, %v1953_v42  ;;  %v1009_v38 = vmul.f32 %v1961_v47, %v2377_v11  ;;  %v2385_v40 = vld [vmem:[#allocation2 + $0x139] sm:$0xff] }
  0x6e   : > { %v1239_v39 = vadd.f32 %v1207_v32, %v1139_v8  ;;  %v740_v24 = vadd.f32 %v708_v31, %v640_v20  ;;  %v1010_v45 = vmul.f32 %v1961_v47, %v2379_v12  ;;  %v1109_v59 = vmul.f32 %v1970_v55, %v2385_v40  ;;  %v2393_v32 = vld [vmem:[#allocation2 + $0x13a] sm:$0xff] }
  0x6f   : > { %v1240_v60 = vadd.f32 %v1208_v48, %v1140_v23  ;;  %v741_v57 = vadd.f32 %v709_v7, %v641_v54  ;;  %v1110_v1 = vmul.f32 %v1970_v55, %v2387_v33  ;;  %v1209_v51 = vmul.f32 %v1973_v56, %v2393_v32 }
  0x70   : > { %v1278_v17 = vadd.f32 %v2049_v6, %v1239_v39  ;;  %v840_v0 = vadd.f32 %v808_v52, %v740_v24  ;;  %v1210_v48 = vmul.f32 %v1973_v56, %v2395_v63  ;;  %v394_v21 = vmul.f32 %v2218_v34, %v1912_v13  ;;  %v2423_v39 = vld [vmem:[#allocation2 + $0x90] sm:$0xff] }
  0x71   : > { %v1279_v58 = vadd.f32 %v2049_v6, %v1240_v60  ;;  %v841_v53 = vadd.f32 %v809_v62, %v741_v57  ;;  %v395_v22 = vmul.f32 %v2224_v9, %v1912_v13  ;;  %v494_v46 = vmul.f32 %v2228_v10, %v1915_v14  ;;  %v2430_v60 = vld [vmem:[#allocation2 + $0x98] sm:$0xff] }
  0x72   : > { %v1310_v35 = vmax.f32 %v1278_v17, 0.0  ;;  %v940_v31 = vadd.f32 %v908_v26, %v840_v0  ;;  %v495_v61 = vmul.f32 %v2234_v25, %v1915_v14  ;;  %v594_v8 = vmul.f32 %v2238_v29, %v1918_v15 }
  0x73   : > { %v1311_v28 = vmax.f32 %v1279_v58, 0.0  ;;  %v941_v7 = vadd.f32 %v909_v27, %v841_v53  ;;  %v595_v20 = vmul.f32 %v2242_v19, %v1918_v15  ;;  %v526_v52 = vadd.f32 %v494_v46, %v394_v21  ;;  %v2436_v53 = vld [vmem:[#allocation2 + $0x91] sm:$0xff]  ;;  %v2446_v46 = vld [vmem:[#allocation2 + $0x9a] sm:$0xff] }
  0x74   : > { %v1041_v34 = vadd.f32 %v1009_v38, %v940_v31  ;;  %v527_v62 = vadd.f32 %v495_v61, %v395_v22  ;;  %v694_v9 = vmul.f32 %v2272_v2, %v1941_v36  ;;  %v695_v10 = vmul.f32 %v2277_v18, %v1941_v36  ;;  %v2440_v21 = vld [vmem:[#allocation2 + $0x92] sm:$0xff] }
  0x75   : > { %v1332_v23 = vpack.c.bf16 %v1311_v28, %v1310_v35  ;;  %v1042_v54 = vadd.f32 %v1010_v45, %v941_v7  ;;  %v794_v25 = vmul.f32 %v2281_v43, %v1944_v37  ;;  %v626_v27 = vadd.f32 %v594_v8, %v526_v52 }
  0x76   : > { %v1141_v26 = vadd.f32 %v1109_v59, %v1041_v34  ;;  %v627_v29 = vadd.f32 %v595_v20, %v527_v62  ;;  %v795_v19 = vmul.f32 %v2285_v4, %v1944_v37  ;;  %v894_v38 = vmul.f32 %v2289_v44, %v1953_v42 }
  0x77   : > { %1749 = vmatprep.mubr.msk.bf16.mxu1 %vm226_vm1, %v1332_v23  ;;  %v1142_v24 = vadd.f32 %v1110_v1, %v1042_v54  ;;  %v895_v45 = vmul.f32 %v2293_v50, %v1953_v42  ;;  %v995_v57 = vmul.f32 %v1961_v47, %v2423_v39  ;;  %v726_v17 = vadd.f32 %v694_v9, %v626_v27  ;;  %v2438_v1 = vld [vmem:[#allocation2 + $0x99] sm:$0xff] }
  0x78   : > { %v1241_v59 = vadd.f32 %v1209_v51, %v1141_v26  ;;  %v727_v0 = vadd.f32 %v695_v10, %v627_v29  ;;  %v996_v58 = vmul.f32 %v1961_v47, %v2430_v60  ;;  %v1095_v35 = vmul.f32 %v1970_v55, %v2436_v53 }
  0x79   : > { %v1242_v22 = vadd.f32 %v1210_v48, %v1142_v24  ;;  %v1096_v31 = vmul.f32 %v1970_v55, %v2438_v1  ;;  %v1195_v51 = vmul.f32 %v1973_v56, %v2440_v21  ;;  %v826_v28 = vadd.f32 %v794_v25, %v726_v17 }
  0x7a   : > { %v1280_v61 = vadd.f32 %v2049_v6, %v1241_v59  ;;  %v827_v7 = vadd.f32 %v795_v19, %v727_v0  ;;  %v1196_v8 = vmul.f32 %v1973_v56, %v2446_v46  ;;  %v396_v20 = vmul.f32 %v2272_v2, %v1912_v13 }
  0x7b   : > { %v1281_v48 = vadd.f32 %v2049_v6, %v1242_v22  ;;  %v397_v34 = vmul.f32 %v2277_v18, %v1912_v13  ;;  %v496_v52 = vmul.f32 %v2281_v43, %v1915_v14  ;;  %v926_v9 = vadd.f32 %v894_v38, %v826_v28  ;;  %v2481_v22 = vld [vmem:[#allocation2 + $0xb0] sm:$0xff] }
  0x7c   : > { %v1312_v62 = vmax.f32 %v1280_v61, 0.0  ;;  %v927_v23 = vadd.f32 %v895_v45, %v827_v7  ;;  %v497_v54 = vmul.f32 %v2285_v4, %v1915_v14  ;;  %v596_v26 = vmul.f32 %v2289_v44, %v1918_v15 }
  0x7d   : > { %v1313_v10 = vmax.f32 %v1281_v48, 0.0  ;;  %v528_v25 = vadd.f32 %v496_v52, %v396_v20  ;;  %v597_v2 = vmul.f32 %v2293_v50, %v1918_v15  ;;  %v1027_v27 = vadd.f32 %v995_v57, %v926_v9  ;;  %v2474_v57 = vld [vmem:[#allocation2 + $0xa8] sm:$0xff]  ;;  %v2489_v20 = vld [vmem:[#allocation2 + $0xb1] sm:$0xff] }
  0x7e   : > { %v1028_v29 = vadd.f32 %v996_v58, %v927_v23  ;;  %v529_v18 = vadd.f32 %v497_v54, %v397_v34  ;;  %v696_v43 = vmul.f32 %v2423_v39, %v1941_v36  ;;  %v697_v38 = vmul.f32 %v2430_v60, %v1941_v36  ;;  %v2487_v48 = vld [vmem:[#allocation2 + $0xa9] sm:$0xff]  ;;  %v2497_v23 = vld [vmem:[#allocation2 + $0xb2] sm:$0xff] }
  0x7f   : > { %v1333_v19 = vpack.c.bf16 %v1313_v10, %v1312_v62  ;;  %v628_v24 = vadd.f32 %v596_v26, %v528_v25  ;;  %v796_v4 = vmul.f32 %v2436_v53, %v1944_v37  ;;  %v1127_v45 = vadd.f32 %v1095_v35, %v1027_v27  ;;  %v2491_v34 = vld [vmem:[#allocation2 + $0xaa] sm:$0xff] }
  0x80   : > { %v1128_v59 = vadd.f32 %v1096_v31, %v1028_v29  ;;  %v629_v44 = vadd.f32 %v597_v2, %v529_v18  ;;  %v797_v50 = vmul.f32 %v2438_v1, %v1944_v37  ;;  %v896_v0 = vmul.f32 %v2440_v21, %v1953_v42 }
  0x81   : > { %1750 = vmatmul.mubr.msk.bf16.gmra.mrb[4].mxu1 %vm226_vm1, %v1333_v19  ;;  %v728_v17 = vadd.f32 %v696_v43, %v628_v24  ;;  %v897_v58 = vmul.f32 %v2446_v46, %v1953_v42  ;;  %v997_v35 = vmul.f32 %v1961_v47, %v2474_v57  ;;  %v1227_v31 = vadd.f32 %v1195_v51, %v1127_v45 }
  0x82   : > { %v1228_v61 = vadd.f32 %v1196_v8, %v1128_v59  ;;  %v729_v28 = vadd.f32 %v697_v38, %v629_v44  ;;  %v998_v7 = vmul.f32 %v1961_v47, %v2481_v22  ;;  %v1097_v62 = vmul.f32 %v1970_v55, %v2487_v48 }
  0x83   : > { %v828_v52 = vadd.f32 %v796_v4, %v728_v17  ;;  %v1098_v9 = vmul.f32 %v1970_v55, %v2489_v20  ;;  %v1197_v51 = vmul.f32 %v1973_v56, %v2491_v34  ;;  %v1266_v8 = vadd.f32 %v2049_v6, %v1227_v31  ;;  %v2528_v31 = vld [vmem:[#allocation2 + $0x150] sm:$0xff] }
  0x84   : > { %v1267_v54 = vadd.f32 %v2049_v6, %v1228_v61  ;;  %v829_v10 = vadd.f32 %v797_v50, %v729_v28  ;;  %v1198_v25 = vmul.f32 %v1973_v56, %v2497_v23  ;;  %v410_v2 = vmul.f32 %v2323_v30, %v1912_v13 }
  0x85   : > { %v928_v26 = vadd.f32 %v896_v0, %v828_v52  ;;  %v411_v27 = vmul.f32 %v2328_v49, %v1912_v13  ;;  %v510_v29 = vmul.f32 %v2332_v5, %v1915_v14  ;;  %v1298_v18 = vmax.f32 %v1266_v8, 0.0  ;;  %v2532_v52 = vld [vmem:[#allocation2 + $0x158] sm:$0xff] }
  0x86   : > { %v1299_v43 = vmax.f32 %v1267_v54, 0.0  ;;  %v929_v19 = vadd.f32 %v897_v58, %v829_v10  ;;  %v511_v24 = vmul.f32 %v2336_v3, %v1915_v14  ;;  %v610_v45 = vmul.f32 %v2340_v16, %v1918_v15 }
  0x87   : > { %v1029_v38 = vadd.f32 %v997_v35, %v928_v26  ;;  %v542_v4 = vadd.f32 %v510_v29, %v410_v2  ;;  %v611_v30 = vmul.f32 %v2345_v41, %v1918_v15  ;;  %v710_v5 = vmul.f32 %v2377_v11, %v1941_v36  ;;  %v2540_v26 = vld [vmem:[#allocation2 + $0x159] sm:$0xff] }
  0x88   : > { %v1326_v59 = vpack.c.bf16 %v1299_v43, %v1298_v18  ;;  %v1030_v44 = vadd.f32 %v998_v7, %v929_v19  ;;  %v543_v49 = vadd.f32 %v511_v24, %v411_v27  ;;  %v711_v0 = vmul.f32 %v2379_v12, %v1941_v36  ;;  %v2544_v2 = vld [vmem:[#allocation2 + $0x152] sm:$0xff]  ;;  %v2549_v43 = vld [vmem:[#allocation2 + $0x15a] sm:$0xff] }
  0x89   : > { %v1129_v50 = vadd.f32 %v1097_v62, %v1029_v38  ;;  %v642_v17 = vadd.f32 %v610_v45, %v542_v4  ;;  %v810_v3 = vmul.f32 %v2385_v40, %v1944_v37  ;;  %v811_v41 = vmul.f32 %v2387_v33, %v1944_v37 }
  0x8a   : > { %1737 = vmatprep.mubr.msk.bf16.mxu0 %vm226_vm1, %v1326_v59  ;;  %v1130_v16 = vadd.f32 %v1098_v9, %v1030_v44  ;;  %v643_v58 = vadd.f32 %v611_v30, %v543_v49  ;;  %v910_v35 = vmul.f32 %v2393_v32, %v1953_v42  ;;  %v911_v7 = vmul.f32 %v2395_v63, %v1953_v42  ;;  %v2536_v9 = vld [vmem:[#allocation2 + $0x151] sm:$0xff] }
  0x8b   : > { %v1229_v61 = vadd.f32 %v1197_v51, %v1129_v50  ;;  %v742_v28 = vadd.f32 %v710_v5, %v642_v17  ;;  %v1011_v62 = vmul.f32 %v1961_v47, %v2528_v31  ;;  %v1012_v10 = vmul.f32 %v1961_v47, %v2532_v52 }
  0x8c   : > { %v1230_v8 = vadd.f32 %v1198_v25, %v1130_v16  ;;  %v743_v54 = vadd.f32 %v711_v0, %v643_v58  ;;  %v1111_v51 = vmul.f32 %v1970_v55, %v2536_v9  ;;  %v1112_v18 = vmul.f32 %v1970_v55, %v2540_v26 }
  0x8d   : > { %v1268_v27 = vadd.f32 %v2049_v6, %v1229_v61  ;;  %v842_v29 = vadd.f32 %v810_v3, %v742_v28  ;;  %v1211_v25 = vmul.f32 %v1973_v56, %v2544_v2  ;;  %v1212_v38 = vmul.f32 %v1973_v56, %v2549_v43 }
  0x8e   : > { %v1269_v19 = vadd.f32 %v2049_v6, %v1230_v8  ;;  %v843_v24 = vadd.f32 %v811_v41, %v743_v54  ;;  %v412_v4 = vmul.f32 %v2377_v11, %v1912_v13  ;;  %v413_v59 = vmul.f32 %v2379_v12, %v1912_v13  ;;  %v2581_v8 = vld [vmem:[#allocation2 + $0x168] sm:$0xff]  ;;  %v2583_v54 = vld [vmem:[#allocation2 + $0x170] sm:$0xff] }
  0x8f   : > { %v1300_v45 = vmax.f32 %v1268_v27, 0.0  ;;  %v942_v30 = vadd.f32 %v910_v35, %v842_v29  ;;  %v512_v44 = vmul.f32 %v2385_v40, %v1915_v14  ;;  %v513_v50 = vmul.f32 %v2387_v33, %v1915_v14 }
  0x90   : > { %v1301_v49 = vmax.f32 %v1269_v19, 0.0  ;;  %v943_v5 = vadd.f32 %v911_v7, %v843_v24  ;;  %v612_v17 = vmul.f32 %v2393_v32, %v1918_v15  ;;  %v613_v11 = vmul.f32 %v2395_v63, %v1918_v15  ;;  %v2591_v19 = vld [vmem:[#allocation2 + $0x171] sm:$0xff] }
  0x91   : > { %v1043_v0 = vadd.f32 %v1011_v62, %v942_v30  ;;  %v544_v3 = vadd.f32 %v512_v44, %v412_v4  ;;  %v712_v16 = vmul.f32 %v2528_v31, %v1941_v36  ;;  %v545_v41 = vadd.f32 %v513_v50, %v413_v59  ;;  %v2599_v59 = vld [vmem:[#allocation2 + $0x172] sm:$0xff] }
  0x92   : > { %v1327_v12 = vpack.c.bf16 %v1301_v49, %v1300_v45  ;;  %v1044_v58 = vadd.f32 %v1012_v10, %v943_v5  ;;  %v713_v40 = vmul.f32 %v2532_v52, %v1941_v36  ;;  %v812_v33 = vmul.f32 %v2536_v9, %v1944_v37 }
  0x93   : > { %v1143_v35 = vadd.f32 %v1111_v51, %v1043_v0  ;;  %v644_v61 = vadd.f32 %v612_v17, %v544_v3  ;;  %v813_v32 = vmul.f32 %v2540_v26, %v1944_v37  ;;  %v645_v28 = vadd.f32 %v613_v11, %v545_v41 }
  0x94   : > { %1738 = vmatmul.mubr.msk.bf16.gmra.mrb[8].mxu0 %vm226_vm1, %v1327_v12  ;;  %v1144_v63 = vadd.f32 %v1112_v18, %v1044_v58  ;;  %v912_v7 = vmul.f32 %v2544_v2, %v1953_v42  ;;  %v913_v62 = vmul.f32 %v2549_v43, %v1953_v42  ;;  %v1013_v27 = vmul.f32 %v1961_v47, %v2581_v8  ;;  %v2589_v18 = vld [vmem:[#allocation2 + $0x169] sm:$0xff] }
  0x95   : > { %v1243_v10 = vadd.f32 %v1211_v25, %v1143_v35  ;;  %v744_v51 = vadd.f32 %v712_v16, %v644_v61  ;;  %v1014_v29 = vmul.f32 %v1961_v47, %v2583_v54  ;;  %v745_v4 = vadd.f32 %v713_v40, %v645_v28  ;;  %v2597_v25 = vld [vmem:[#allocation2 + $0x16a] sm:$0xff] }
  0x96   : > { %v1244_v24 = vadd.f32 %v1212_v38, %v1144_v63  ;;  %v1113_v45 = vmul.f32 %v1970_v55, %v2589_v18  ;;  %v1114_v30 = vmul.f32 %v1970_v55, %v2591_v19  ;;  %v1213_v5 = vmul.f32 %v1973_v56, %v2597_v25 }
  0x97   : > { %v1282_v44 = vadd.f32 %v2049_v6, %v1243_v10  ;;  %v844_v49 = vadd.f32 %v812_v33, %v744_v51  ;;  %v1214_v38 = vmul.f32 %v1973_v56, %v2599_v59  ;;  %v845_v17 = vadd.f32 %v813_v32, %v745_v4 }
  0x98   : > { %v1283_v50 = vadd.f32 %v2049_v6, %v1244_v24  ;;  %v398_v0 = vmul.f32 %v2423_v39, %v1912_v13  ;;  %v399_v3 = vmul.f32 %v2430_v60, %v1912_v13  ;;  %v498_v12 = vmul.f32 %v2436_v53, %v1915_v14 }
  0x99   : > { %v1314_v11 = vmax.f32 %v1282_v44, 0.0  ;;  %v944_v16 = vadd.f32 %v912_v7, %v844_v49  ;;  %v499_v58 = vmul.f32 %v2438_v1, %v1915_v14  ;;  %v945_v40 = vadd.f32 %v913_v62, %v845_v17  ;;  %v963_v62 = vld [vmem:[#allocation2 + $0xc0] sm:$0xff]  ;;  %v1064_v17 = vld [vmem:[#allocation2 + $0xc9] sm:$0xff] }
  0x9a   : > { %v1315_v41 = vmax.f32 %v1283_v50, 0.0  ;;  %v598_v6 = vmul.f32 %v2440_v21, %v1918_v15  ;;  %v599_v35 = vmul.f32 %v2446_v46, %v1918_v15  ;;  %v530_v61 = vadd.f32 %v498_v12, %v398_v0  ;;  %v1063_v50 = vld [vmem:[#allocation2 + $0xc1] sm:$0xff] }
  0x9b   : > { %v1045_v39 = vadd.f32 %v1013_v27, %v944_v16  ;;  %v531_v33 = vadd.f32 %v499_v58, %v399_v3  ;;  %v698_v60 = vmul.f32 %v2474_v57, %v1941_v36  ;;  %v1046_v63 = vadd.f32 %v1014_v29, %v945_v40  ;;  %v964_v29 = vld [vmem:[#allocation2 + $0xc8] sm:$0xff]  ;;  %v2640_v58 = vld [vmem:[%s2849_s2] ss:$0 sm:$0xff] }
  0x9c   : > { %v1334_v32 = vpack.c.bf16 %v1315_v41, %v1314_v11  ;;  %v699_v53 = vmul.f32 %v2481_v22, %v1941_v36  ;;  %v798_v1 = vmul.f32 %v2487_v48, %v1944_v37  ;;  %v630_v7 = vadd.f32 %v598_v6, %v530_v61  ;;  %v1163_v0 = vld [vmem:[#allocation2 + $0xc2] sm:$0xff]  ;;  %v1164_v16 = vld [vmem:[#allocation2 + $0xca] sm:$0xff] }
  0x9d   : > { %v1145_v28 = vadd.f32 %v1113_v45, %v1045_v39  ;;  %v631_v21 = vadd.f32 %v599_v35, %v531_v33  ;;  %v799_v46 = vmul.f32 %v2489_v20, %v1944_v37  ;;  %v1146_v10 = vadd.f32 %v1114_v30, %v1046_v63 }
  0x9e   : > { %1753 = vmatprep.mubr.msk.bf16.mxu1 %vm226_vm1, %v1334_v32  ;;  %v898_v51 = vmul.f32 %v2491_v34, %v1953_v42  ;;  %v899_v27 = vmul.f32 %v2497_v23, %v1953_v42  ;;  %v999_v24 = vmul.f32 %v1961_v47, %v963_v62  ;;  %v730_v45 = vadd.f32 %v698_v60, %v630_v7 }
  0x9f   : > { %v1245_v4 = vadd.f32 %v1213_v5, %v1145_v28  ;;  %v731_v44 = vadd.f32 %v699_v53, %v631_v21  ;;  %v1000_v49 = vmul.f32 %v1961_v47, %v964_v29  ;;  %v1246_v3 = vadd.f32 %v1214_v38, %v1146_v10 }
  0xa0   : > { %v1099_v30 = vmul.f32 %v1970_v55, %v1063_v50  ;;  %v1100_v11 = vmul.f32 %v1970_v55, %v1064_v17  ;;  %v1199_v12 = vmul.f32 %v1973_v56, %v1163_v0  ;;  %v830_v41 = vadd.f32 %v798_v1, %v730_v45 }
  0xa1   : > { %v1284_v5 = vadd.f32 %v2640_v58, %v1245_v4  ;;  %v831_v40 = vadd.f32 %v799_v46, %v731_v44  ;;  %v1200_v6 = vmul.f32 %v1973_v56, %v1164_v16  ;;  %v1285_v38 = vadd.f32 %v2640_v58, %v1246_v3  ;;  %v966_v4 = vld [vmem:[#allocation2 + $0xe0] sm:$0xff] }
  0xa2   : > { %v400_v35 = vmul.f32 %v2474_v57, %v1912_v13  ;;  %v401_v39 = vmul.f32 %v2481_v22, %v1912_v13  ;;  %v500_v61 = vmul.f32 %v2487_v48, %v1915_v14  ;;  %v930_v60 = vadd.f32 %v898_v51, %v830_v41  ;;  %v965_v48 = vld [vmem:[#allocation2 + $0xd8] sm:$0xff] }
  0xa3   : > { %v1316_v33 = vmax.f32 %v1284_v5, 0.0  ;;  %v931_v32 = vadd.f32 %v899_v27, %v831_v40  ;;  %v501_v63 = vmul.f32 %v2489_v20, %v1915_v14  ;;  %v1317_v53 = vmax.f32 %v1285_v38, 0.0  ;;  %v1065_v5 = vld [vmem:[#allocation2 + $0xd9] sm:$0xff]  ;;  %v1166_v40 = vld [vmem:[#allocation2 + $0xe2] sm:$0xff] }
  0xa4   : > { %v532_v1 = vadd.f32 %v500_v61, %v400_v35  ;;  %v600_v28 = vmul.f32 %v2491_v34, %v1918_v15  ;;  %v601_v57 = vmul.f32 %v2497_v23, %v1918_v15  ;;  %v1031_v7 = vadd.f32 %v999_v24, %v930_v60  ;;  %v1066_v23 = vld [vmem:[#allocation2 + $0xe1] sm:$0xff] }
  0xa5   : > { %v1032_v21 = vadd.f32 %v1000_v49, %v931_v32  ;;  %v533_v22 = vadd.f32 %v501_v63, %v401_v39  ;;  %v700_v46 = vmul.f32 %v963_v62, %v1941_v36  ;;  %v1335_v10 = vpack.c.bf16 %v1317_v53, %v1316_v33  ;;  %v1165_v24 = vld [vmem:[#allocation2 + $0xda] sm:$0xff] }
  0xa6   : > { %v632_v51 = vadd.f32 %v600_v28, %v532_v1  ;;  %v701_v27 = vmul.f32 %v964_v29, %v1941_v36  ;;  %v800_v20 = vmul.f32 %v1063_v50, %v1944_v37  ;;  %v1131_v45 = vadd.f32 %v1099_v30, %v1031_v7 }
  0xa7   : > { %v1132_v44 = vadd.f32 %v1100_v11, %v1032_v21  ;;  %v633_v3 = vadd.f32 %v601_v57, %v533_v22  ;;  %v801_v34 = vmul.f32 %v1064_v17, %v1944_v37  ;;  %1754 = vmatmul.mubr.msk.bf16.gmra.mrb[8].mxu1 %vm226_vm1, %v1335_v10  ;;  %v900_v62 = vmul.f32 %v1163_v0, %v1953_v42 }
  0xa8   : > { %v732_v49 = vadd.f32 %v700_v46, %v632_v51  ;;  %v901_v41 = vmul.f32 %v1164_v16, %v1953_v42  ;;  %v1001_v29 = vmul.f32 %v1961_v47, %v965_v48  ;;  %v1231_v50 = vadd.f32 %v1199_v12, %v1131_v45  ;;  %v979_v45 = vld [vmem:[#allocation2 + $0x180] sm:$0xff] }
  0xa9   : > { %v1232_v38 = vadd.f32 %v1200_v6, %v1132_v44  ;;  %v733_v30 = vadd.f32 %v701_v27, %v633_v3  ;;  %v1002_v11 = vmul.f32 %v1961_v47, %v966_v4  ;;  %v1101_v17 = vmul.f32 %v1970_v55, %v1065_v5  ;;  %v980_v5 = vld [vmem:[#allocation2 + $0x188] sm:$0xff] }
  0xaa   : > { %v832_v35 = vadd.f32 %v800_v20, %v732_v49  ;;  %v1102_v39 = vmul.f32 %v1970_v55, %v1066_v23  ;;  %v1201_v61 = vmul.f32 %v1973_v56, %v1165_v24  ;;  %v1270_v33 = vadd.f32 %v2640_v58, %v1231_v50  ;;  %v1079_v24 = vld [vmem:[#allocation2 + $0x181] sm:$0xff] }
  0xab   : > { %v1271_v0 = vadd.f32 %v2640_v58, %v1232_v38  ;;  %v833_v16 = vadd.f32 %v801_v34, %v733_v30  ;;  %v1202_v60 = vmul.f32 %v1973_v56, %v1166_v40  ;;  %v414_v12 = vmul.f32 %v2528_v31, %v1912_v13  ;;  %v1179_v50 = vld [vmem:[#allocation2 + $0x182] sm:$0xff] }
  0xac   : > { %v932_v32 = vadd.f32 %v900_v62, %v832_v35  ;;  %v415_v6 = vmul.f32 %v2532_v52, %v1912_v13  ;;  %v514_v63 = vmul.f32 %v2536_v9, %v1915_v14  ;;  %v1302_v53 = vmax.f32 %v1270_v33, 0.0  ;;  %v1180_v35 = vld [vmem:[#allocation2 + $0x18a] sm:$0xff] }
  0xad   : > { %v1303_v1 = vmax.f32 %v1271_v0, 0.0  ;;  %v933_v28 = vadd.f32 %v901_v41, %v833_v16  ;;  %v515_v57 = vmul.f32 %v2540_v26, %v1915_v14  ;;  %v614_v22 = vmul.f32 %v2544_v2, %v1918_v15 }
  0xae   : > { %v1033_v7 = vadd.f32 %v1001_v29, %v932_v32  ;;  %v546_v21 = vadd.f32 %v514_v63, %v414_v12  ;;  %v615_v31 = vmul.f32 %v2549_v43, %v1918_v15  ;;  %v714_v9 = vmul.f32 %v2581_v8, %v1941_v36  ;;  %v1080_v29 = vld [vmem:[#allocation2 + $0x189] sm:$0xff] }
  0xaf   : > { %v1328_v46 = vpack.c.bf16 %v1303_v1, %v1302_v53  ;;  %v1034_v48 = vadd.f32 %v1002_v11, %v933_v28  ;;  %v547_v52 = vadd.f32 %v515_v57, %v415_v6  ;;  %v715_v27 = vmul.f32 %v2583_v54, %v1941_v36 }
  0xb0   : > { %v1133_v10 = vadd.f32 %v1101_v17, %v1033_v7  ;;  %v646_v51 = vadd.f32 %v614_v22, %v546_v21  ;;  %v814_v26 = vmul.f32 %v2589_v18, %v1944_v37  ;;  %v815_v43 = vmul.f32 %v2591_v19, %v1944_v37 }
  0xb1   : > { %1741 = vmatprep.mubr.msk.bf16.mxu0 %vm226_vm1, %v1328_v46  ;;  %v1134_v2 = vadd.f32 %v1102_v39, %v1034_v48  ;;  %v647_v20 = vadd.f32 %v615_v31, %v547_v52  ;;  %v914_v4 = vmul.f32 %v2597_v25, %v1953_v42  ;;  %v915_v34 = vmul.f32 %v2599_v59, %v1953_v42  ;;  %v981_v48 = vld [vmem:[#allocation2 + $0x198] sm:$0xff] }
  0xb2   : > { %v1233_v44 = vadd.f32 %v1201_v61, %v1133_v10  ;;  %v746_v3 = vadd.f32 %v714_v9, %v646_v51  ;;  %v1015_v23 = vmul.f32 %v1961_v47, %v979_v45  ;;  %v1016_v41 = vmul.f32 %v1961_v47, %v980_v5  ;;  %v982_v9 = vld [vmem:[#allocation2 + $0x1a0] sm:$0xff] }
  0xb3   : > { %v1234_v49 = vadd.f32 %v1202_v60, %v1134_v2  ;;  %v747_v62 = vadd.f32 %v715_v27, %v647_v20  ;;  %v1115_v40 = vmul.f32 %v1970_v55, %v1079_v24  ;;  %v1116_v11 = vmul.f32 %v1970_v55, %v1080_v29  ;;  %v1081_v27 = vld [vmem:[#allocation2 + $0x199] sm:$0xff] }
  0xb4   : > { %v1272_v38 = vadd.f32 %v2640_v58, %v1233_v44  ;;  %v846_v30 = vadd.f32 %v814_v26, %v746_v3  ;;  %v1215_v17 = vmul.f32 %v1973_v56, %v1179_v50  ;;  %v1216_v33 = vmul.f32 %v1973_v56, %v1180_v35  ;;  %v1181_v44 = vld [vmem:[#allocation2 + $0x19a] sm:$0xff] }
  0xb5   : > { %v1273_v39 = vadd.f32 %v2640_v58, %v1234_v49  ;;  %v847_v61 = vadd.f32 %v815_v43, %v747_v62  ;;  %v416_v0 = vmul.f32 %v2581_v8, %v1912_v13  ;;  %v417_v32 = vmul.f32 %v2583_v54, %v1912_v13  ;;  %v1082_v43 = vld [vmem:[#allocation2 + $0x1a1] sm:$0xff] }
  0xb6   : > { %v1304_v16 = vmax.f32 %v1272_v38, 0.0  ;;  %v946_v60 = vadd.f32 %v914_v4, %v846_v30  ;;  %v516_v12 = vmul.f32 %v2589_v18, %v1915_v14  ;;  %v517_v53 = vmul.f32 %v2591_v19, %v1915_v14 }
  0xb7   : > { %v1305_v6 = vmax.f32 %v1273_v39, 0.0  ;;  %v947_v63 = vadd.f32 %v915_v34, %v847_v61  ;;  %v616_v1 = vmul.f32 %v2597_v25, %v1918_v15  ;;  %v617_v8 = vmul.f32 %v2599_v59, %v1918_v15 }
  0xb8   : > { %v1047_v28 = vadd.f32 %v1015_v23, %v946_v60  ;;  %v548_v57 = vadd.f32 %v516_v12, %v416_v0  ;;  %v716_v7 = vmul.f32 %v979_v45, %v1941_v36  ;;  %v549_v54 = vadd.f32 %v517_v53, %v417_v32  ;;  %v1182_v23 = vld [vmem:[#allocation2 + $0x1a2] sm:$0xff] }
  0xb9   : > { %v1329_v21 = vpack.c.bf16 %v1305_v6, %v1304_v16  ;;  %v1048_v13 = vadd.f32 %v1016_v41, %v947_v63  ;;  %v717_v18 = vmul.f32 %v980_v5, %v1941_v36  ;;  %v816_v46 = vmul.f32 %v1079_v24, %v1944_v37 }
  0xba   : > { %v1147_v22 = vadd.f32 %v1115_v40, %v1047_v28  ;;  %v648_v31 = vadd.f32 %v616_v1, %v548_v57  ;;  %v649_v19 = vadd.f32 %v617_v8, %v549_v54  ;;  %v817_v25 = vmul.f32 %v1080_v29, %v1944_v37 }
  0xbb   : > { %1742 = vmatmul.mubr.msk.bf16.gmra.mrb[12].mxu0 %vm226_vm1, %v1329_v21  ;;  %v1148_v14 = vadd.f32 %v1116_v11, %v1048_v13  ;;  %v916_v59 = vmul.f32 %v1179_v50, %v1953_v42  ;;  %v917_v36 = vmul.f32 %v1180_v35, %v1953_v42  ;;  %v1017_v20 = vmul.f32 %v1961_v47, %v981_v48 }
  0xbc   : > { %v1247_v52 = vadd.f32 %v1215_v17, %v1147_v22  ;;  %v748_v15 = vadd.f32 %v716_v7, %v648_v31  ;;  %v749_v51 = vadd.f32 %v717_v18, %v649_v19  ;;  %v1018_v45 = vmul.f32 %v1961_v47, %v982_v9 }
  0xbd   : > { %v1248_v10 = vadd.f32 %v1216_v33, %v1148_v14  ;;  %v1117_v5 = vmul.f32 %v1970_v55, %v1081_v27  ;;  %v1118_v49 = vmul.f32 %v1970_v55, %v1082_v43  ;;  %v1217_v41 = vmul.f32 %v1973_v56, %v1181_v44 }
  0xbe   : > { %v1286_v26 = vadd.f32 %v2640_v58, %v1247_v52  ;;  %v848_v2 = vadd.f32 %v816_v46, %v748_v15  ;;  %v849_v37 = vadd.f32 %v817_v25, %v749_v51  ;;  %v1218_v50 = vmul.f32 %v1973_v56, %v1182_v23  ;;  %v2739_v56 = vld [vmem:[%s2851_s4] ss:$0 sm:$0xff] }
  0xbf   : > { %v1287_v4 = vadd.f32 %v2640_v58, %v1248_v10 }
  0xc0   : > { %v1318_v3 = vmax.f32 %v1286_v26, 0.0  ;;  %v948_v34 = vadd.f32 %v916_v59, %v848_v2  ;;  %v949_v42 = vadd.f32 %v917_v36, %v849_v37 }
  0xc1   : > { %v1319_v24 = vmax.f32 %v1287_v4, 0.0 }
  0xc2   : > { %v1049_v62 = vadd.f32 %v1017_v20, %v948_v34  ;;  %v1050_v40 = vadd.f32 %v1018_v45, %v949_v42 }
  0xc3   : > { %v1336_v29 = vpack.c.bf16 %v1319_v24, %v1318_v3 }
  0xc4   : > { %v1149_v38 = vadd.f32 %v1117_v5, %v1049_v62  ;;  %v1150_v47 = vadd.f32 %v1118_v49, %v1050_v40 }
  0xc5   : > { %1757 = vmatprep.mubr.msk.bf16.mxu1 %vm226_vm1, %v1336_v29 }
  0xc6   : > { %v1249_v30 = vadd.f32 %v1217_v41, %v1149_v38  ;;  %v1250_v11 = vadd.f32 %v1218_v50, %v1150_v47 }
  0xc8   : > { %v1288_v35 = vadd.f32 %v2640_v58, %v1249_v30  ;;  %v1289_v17 = vadd.f32 %v2640_v58, %v1250_v11 }
  0xca   : > { %v1320_v39 = vmax.f32 %v1288_v35, 0.0  ;;  %v1321_v55 = vmax.f32 %v1289_v17, 0.0 }
  0xcc   : > { %v1337_v61 = vpack.c.bf16 %v1321_v55, %v1320_v39 }
  0xce   : > { %1758 = vmatmul.mubr.msk.bf16.gmra.mrb[12].mxu1 %vm226_vm1, %v1337_v61 }
 0x119   : > { %v1731_v33 = vpop.f32.mrb[0].mxu0 }
 0x11a   : > { %v1441_v0 = vadd.f32 %v1731_v33, %v2739_v56  ;;  %v1432_v16 = vpop.f32.mrb[1].mxu0 }
 0x11b   : > { %v1433_v58 = vadd.f32 %v2739_v56, %v1432_v16  ;;  %v1732_v60 = vpop.f32.mrb[2].mxu0 }
 0x11c   : > { %v1561_v32 = vmax.f32 %v1441_v0, 0.0  ;;  %v1444_v12 = vadd.f32 %v1732_v60, %v2739_v56  ;;  %v1435_v6 = vpop.f32.mrb[3].mxu0 }
 0x11d   : > { %v1559_v63 = vmax.f32 %v1433_v58, 0.0  ;;  %v1436_v53 = vadd.f32 %v2739_v56, %v1435_v6 }
 0x11e   : > { %1594 = vst.msk [vmem:[%s2747_s16 + $0x10] sm:$0xff] %vm1591_vm3, %v1561_v32  ;;  %v1562_v1 = vmax.f32 %v1444_v12, 0.0 }
 0x11f   : > { %1592 = vst.msk [vmem:[%s2747_s16] sm:$0xff] %vm1591_vm3, %v1559_v63  ;;  %v1560_v28 = vmax.f32 %v1436_v53, 0.0 }
 0x120   : > { %1595 = vst.msk [vmem:[%s2747_s16 + $0x18] sm:$0xff] %vm1591_vm3, %v1562_v1 }
 0x121   : > { %1593 = vst.msk [vmem:[%s2747_s16 + $0x8] sm:$0xff] %vm1591_vm3, %v1560_v28 }
 0x12d   : > { %v1747_v57 = vpop.f32.mrb[0].mxu1 }
 0x12e   : > { %v1505_v8 = vadd.f32 %v1747_v57, %v2739_v56  ;;  %v1496_v7 = vpop.f32.mrb[1].mxu1 }
 0x12f   : > { %v1497_v21 = vadd.f32 %v2739_v56, %v1496_v7  ;;  %v1748_v13 = vpop.f32.mrb[2].mxu1 }
 0x130   : > { %v1577_v54 = vmax.f32 %v1505_v8, 0.0  ;;  %v1508_v18 = vadd.f32 %v1748_v13, %v2739_v56  ;;  %v1499_v22 = vpop.f32.mrb[3].mxu1 }
 0x131   : > { %v1575_v31 = vmax.f32 %v1497_v21, 0.0  ;;  %v1500_v46 = vadd.f32 %v2739_v56, %v1499_v22 }
 0x132   : > { %1610 = vst.msk [vmem:[%s2747_s16 + $0x90] sm:$0xff] %vm1591_vm3, %v1577_v54  ;;  %v1578_v14 = vmax.f32 %v1508_v18, 0.0 }
 0x133   : > { %1608 = vst.msk [vmem:[%s2747_s16 + $0x80] sm:$0xff] %vm1591_vm3, %v1575_v31  ;;  %v1576_v19 = vmax.f32 %v1500_v46, 0.0 }
 0x134   : > { %1611 = vst.msk [vmem:[%s2747_s16 + $0x98] sm:$0xff] %vm1591_vm3, %v1578_v14 }
 0x135   : > { %1609 = vst.msk [vmem:[%s2747_s16 + $0x88] sm:$0xff] %vm1591_vm3, %v1576_v19 }
 0x13f   : > { %v1735_v25 = vpop.f32.mrb[4].mxu0 }
 0x140   : > { %v1457_v48 = vadd.f32 %v1735_v25, %v2739_v56  ;;  %v1448_v52 = vpop.f32.mrb[5].mxu0 }
 0x141   : > { %v1449_v15 = vadd.f32 %v2739_v56, %v1448_v52  ;;  %v1736_v59 = vpop.f32.mrb[6].mxu0 }
 0x142   : > { %v1565_v9 = vmax.f32 %v1457_v48, 0.0  ;;  %v1460_v10 = vadd.f32 %v1736_v59, %v2739_v56  ;;  %v1451_v51 = vpop.f32.mrb[7].mxu0 }
 0x143   : > { %v1563_v36 = vmax.f32 %v1449_v15, 0.0  ;;  %v1452_v27 = vadd.f32 %v2739_v56, %v1451_v51 }
 0x144   : > { %1598 = vst.msk [vmem:[%s2747_s16 + $0x30] sm:$0xff] %vm1591_vm3, %v1565_v9  ;;  %v1566_v26 = vmax.f32 %v1460_v10, 0.0 }
 0x145   : > { %1596 = vst.msk [vmem:[%s2747_s16 + $0x20] sm:$0xff] %vm1591_vm3, %v1563_v36  ;;  %v1564_v2 = vmax.f32 %v1452_v27, 0.0 }
 0x146   : > { %1599 = vst.msk [vmem:[%s2747_s16 + $0x38] sm:$0xff] %vm1591_vm3, %v1566_v26 }
 0x147   : > { %1597 = vst.msk [vmem:[%s2747_s16 + $0x28] sm:$0xff] %vm1591_vm3, %v1564_v2 }
 0x154   : > { %v1751_v20 = vpop.f32.mrb[4].mxu1 }
 0x155   : > { %v1521_v43 = vadd.f32 %v1751_v20, %v2739_v56  ;;  %v1512_v4 = vpop.f32.mrb[5].mxu1 }
 0x156   : > { %v1513_v37 = vadd.f32 %v2739_v56, %v1512_v4  ;;  %v1752_v45 = vpop.f32.mrb[6].mxu1 }
 0x157   : > { %v1581_v44 = vmax.f32 %v1521_v43, 0.0  ;;  %v1524_v3 = vadd.f32 %v1752_v45, %v2739_v56  ;;  %v1515_v34 = vpop.f32.mrb[7].mxu1 }
 0x158   : > { %v1579_v5 = vmax.f32 %v1513_v37, 0.0  ;;  %v1516_v23 = vadd.f32 %v2739_v56, %v1515_v34 }
 0x159   : > { %1614 = vst.msk [vmem:[%s2747_s16 + $0xb0] sm:$0xff] %vm1591_vm3, %v1581_v44  ;;  %v1582_v24 = vmax.f32 %v1524_v3, 0.0 }
 0x15a   : > { %1612 = vst.msk [vmem:[%s2747_s16 + $0xa0] sm:$0xff] %vm1591_vm3, %v1579_v5  ;;  %v1580_v42 = vmax.f32 %v1516_v23, 0.0 }
 0x15b   : > { %1615 = vst.msk [vmem:[%s2747_s16 + $0xb8] sm:$0xff] %vm1591_vm3, %v1582_v24 }
 0x15c   : > { %1613 = vst.msk [vmem:[%s2747_s16 + $0xa8] sm:$0xff] %vm1591_vm3, %v1580_v42 }
 0x167   : > { %v1739_v49 = vpop.f32.mrb[8].mxu0 }
 0x168   : > { %v1473_v62 = vadd.f32 %v1739_v49, %v2739_v56  ;;  %v1464_v41 = vpop.f32.mrb[9].mxu0 }
 0x169   : > { %v1465_v29 = vadd.f32 %v2739_v56, %v1464_v41  ;;  %v1740_v40 = vpop.f32.mrb[10].mxu0 }
 0x16a   : > { %v1569_v50 = vmax.f32 %v1473_v62, 0.0  ;;  %v1476_v38 = vadd.f32 %v1740_v40, %v2739_v56  ;;  %v1467_v47 = vpop.f32.mrb[11].mxu0 }
 0x16b   : > { %v1567_v30 = vmax.f32 %v1465_v29, 0.0  ;;  %v1468_v11 = vadd.f32 %v2739_v56, %v1467_v47 }
 0x16c   : > { %1602 = vst.msk [vmem:[%s2747_s16 + $0x50] sm:$0xff] %vm1591_vm3, %v1569_v50  ;;  %v1570_v35 = vmax.f32 %v1476_v38, 0.0 }
 0x16d   : > { %1600 = vst.msk [vmem:[%s2747_s16 + $0x40] sm:$0xff] %vm1591_vm3, %v1567_v30  ;;  %v1568_v17 = vmax.f32 %v1468_v11, 0.0 }
 0x16e   : > { %1603 = vst.msk [vmem:[%s2747_s16 + $0x58] sm:$0xff] %vm1591_vm3, %v1570_v35 }
 0x16f   : > { %1601 = vst.msk [vmem:[%s2747_s16 + $0x48] sm:$0xff] %vm1591_vm3, %v1568_v17 }
 0x17a   : > { %v1755_v39 = vpop.f32.mrb[8].mxu1 }
 0x17b   : > { %v1537_v55 = vadd.f32 %v1755_v39, %v2739_v56  ;;  %v1528_v61 = vpop.f32.mrb[9].mxu1 }
 0x17c   : > { %v1529_v33 = vadd.f32 %v2739_v56, %v1528_v61  ;;  %v1756_v0 = vpop.f32.mrb[10].mxu1 }
 0x17d   : > { %v1585_v16 = vmax.f32 %v1537_v55, 0.0  ;;  %v1540_v58 = vadd.f32 %v1756_v0, %v2739_v56  ;;  %v1531_v60 = vpop.f32.mrb[11].mxu1 }
 0x17e   : > { %v1583_v32 = vmax.f32 %v1529_v33, 0.0  ;;  %v1532_v12 = vadd.f32 %v2739_v56, %v1531_v60 }
 0x17f   : > { %1618 = vst.msk [vmem:[%s2747_s16 + $0xd0] sm:$0xff] %vm1591_vm3, %v1585_v16  ;;  %v1586_v6 = vmax.f32 %v1540_v58, 0.0 }
 0x180   : > { %1616 = vst.msk [vmem:[%s2747_s16 + $0xc0] sm:$0xff] %vm1591_vm3, %v1583_v32  ;;  %v1584_v63 = vmax.f32 %v1532_v12, 0.0 }
 0x181   : > { %1619 = vst.msk [vmem:[%s2747_s16 + $0xd8] sm:$0xff] %vm1591_vm3, %v1586_v6 }
 0x182   : > { %1617 = vst.msk [vmem:[%s2747_s16 + $0xc8] sm:$0xff] %vm1591_vm3, %v1584_v63 }
 0x18e   : > { %v1743_v53 = vpop.f32.mrb[12].mxu0 }
 0x18f   : > { %v1489_v1 = vadd.f32 %v1743_v53, %v2739_v56  ;;  %v1480_v28 = vpop.f32.mrb[13].mxu0 }
 0x190   : > { %v1481_v57 = vadd.f32 %v2739_v56, %v1480_v28  ;;  %v1744_v8 = vpop.f32.mrb[14].mxu0 }
 0x191   : > { %v1573_v7 = vmax.f32 %v1489_v1, 0.0  ;;  %v1492_v21 = vadd.f32 %v1744_v8, %v2739_v56  ;;  %v1483_v13 = vpop.f32.mrb[15].mxu0 }
 0x192   : > { %v1571_v54 = vmax.f32 %v1481_v57, 0.0  ;;  %v1484_v18 = vadd.f32 %v2739_v56, %v1483_v13 }
 0x193   : > { %1606 = vst.msk [vmem:[%s2747_s16 + $0x70] sm:$0xff] %vm1591_vm3, %v1573_v7  ;;  %v1574_v22 = vmax.f32 %v1492_v21, 0.0 }
 0x194   : > { %1604 = vst.msk [vmem:[%s2747_s16 + $0x60] sm:$0xff] %vm1591_vm3, %v1571_v54  ;;  %v1572_v31 = vmax.f32 %v1484_v18, 0.0 }
 0x195   : > { %1607 = vst.msk [vmem:[%s2747_s16 + $0x78] sm:$0xff] %vm1591_vm3, %v1574_v22 }
 0x196   : > { %1605 = vst.msk [vmem:[%s2747_s16 + $0x68] sm:$0xff] %vm1591_vm3, %v1572_v31 }
 0x1a1   : > { %v1759_v46 = vpop.f32.mrb[12].mxu1 }
 0x1a2   : > { %v1553_v14 = vadd.f32 %v1759_v46, %v2739_v56  ;;  %v1544_v19 = vpop.f32.mrb[13].mxu1 }
 0x1a3   : > { %v1545_v25 = vadd.f32 %v2739_v56, %v1544_v19  ;;  %v1760_v48 = vpop.f32.mrb[14].mxu1 }
 0x1a4   : > { %v1589_v52 = vmax.f32 %v1553_v14, 0.0  ;;  %v1556_v15 = vadd.f32 %v1760_v48, %v2739_v56  ;;  %v1547_v59 = vpop.f32.mrb[15].mxu1 }
 0x1a5   : > { %v1587_v9 = vmax.f32 %v1545_v25, 0.0  ;;  %v1548_v10 = vadd.f32 %v2739_v56, %v1547_v59 }
 0x1a6   : > { %1622 = vst.msk [vmem:[%s2747_s16 + $0xf0] sm:$0xff] %vm1591_vm3, %v1589_v52  ;;  %v1590_v51 = vmax.f32 %v1556_v15, 0.0 }
 0x1a7   : > { %1620 = vst.msk [vmem:[%s2747_s16 + $0xe0] sm:$0xff] %vm1591_vm3, %v1587_v9  ;;  %v1588_v36 = vmax.f32 %v1548_v10, 0.0 }
 0x1a8   : > { %1623 = vst.msk [vmem:[%s2747_s16 + $0xf8] sm:$0xff] %vm1591_vm3, %v1590_v51 }
 0x1a9   : > { %1621 = vst.msk [vmem:[%s2747_s16 + $0xe8] sm:$0xff] %vm1591_vm3, %v1588_v36 }
 0x1aa PF: > { %s15_s18 = sadd.s32 1, %s1781_s18  }
 0x1ab   : > { %p12_p4 = scmp.ge.s32.totalorder %s15_s18, 4  }
 0x1ad   :  { %14 = sbr.rel (!%p12_p4) target bundleno = 1 (0x1), region = 72 }

// kernel: mobilenet_v1_forward.17
= control target key start
LH: loop header
LB: loop body
LE: loop exit
PB: predicated region body
PF: predicated region fallthrough
CT: control target
= control target key end

     0   :  { %s812_s18 = smov 0   ;;  %s1087_s0 = inlined_call_operand.vmem [shape: f32[2,8,8,32], index: 0, kind: input, shape index: {}]   ;;  %s1088_s1 = inlined_call_operand.vmem [shape: f32[3,3,32], index: 1, kind: input, shape index: {}]   ;;  %s1089_s2 = inlined_call_operand.vmem [shape: f32[1,32], index: 2, kind: input, shape index: {}]   ;;  %s1090_s3 = inlined_call_operand.vmem [shape: bf16[32,32], index: 3, kind: input, shape index: {}]   ;;  %s1091_s4 = inlined_call_operand.vmem [shape: f32[1,32], index: 4, kind: input, shape index: {}]   ;;  %s1092_s5 = inlined_call_operand.vmem [shape: f32[2,64,32], index: 5, kind: output, shape index: {}]  }
   0x1 LB: > { %s719_s19 = sadd.s32 4294967295, %s779_s18   ;;  %p723_p0 = scmp.ge.s32.totalorder %s779_s18, 1  ;;  %s779_s18 = sphi %s812_s18, %s15_s18  }
   0x2   : > { %p187_p1 = scmp.lt.s32.totalorder %s779_s18, 3 }
   0x4   : > { %p188_p2 = pnand %p723_p0, %p187_p1 }
   0x5   : > { %v771_v0 = vld [vmem:[%s1090_s3] sm:$0xff] (!%p188_p2)   ;;  %p215_p3 = scmp.lt.s32.totalorder (!%p188_p2), %s719_s19, 1  ;;  %v276_v1 = vlaneseq (!%p188_p2)  ;;  %v772_v2 = vld [vmem:[%s1090_s3 + $0x8] sm:$0xff] (!%p188_p2)   ;;  %vm226_vm0 = vcmask (!%p188_p2), 261120   ;;  %vm228_vm1 = vcmask (!%p188_p2), 254976   ;;  %v781_v4 = vmov (!%p188_p2), 0.0  }
   0x6   : > { %191 = sbr.rel (%p188_p2) target bundleno = 295 (0x127), region = 40  ;;  %746 = vmatprep.subr.bf16.mxu0 (!%p188_p2), %v771_v0  ;;  %758 = vmatprep.subr.bf16.mxu1 (!%p188_p2), %v771_v0  ;;  %227 = vst.msk [vmem:[#allocation2] sm:$0xff] (!%p188_p2), %vm226_vm0, %v781_v4  ;;  %230 = vst.msk [vmem:[#allocation2 + $0x10] sm:$0xff] (!%p188_p2), %vm226_vm0, %v781_v4  ;;  %v265_v5 = vld [vmem:[%s1088_s1] sm:$0x7] (!%p188_p2) }
   0x7   : > { %v277_v3 = vshrl.u32 (!%p188_p2), %v276_v1, 7  ;;  %747 = vmatpush3.bf16.msra.mxu0 (!%p188_p2), %v771_v0  ;;  %760 = vmatpush3.bf16.msra.mxu1 (!%p188_p2), %v771_v0  ;;  %229 = vst.msk [vmem:[#allocation2 + $0x8] sm:$0x3] (!%p188_p2), %vm228_vm1, %v781_v4  ;;  %231 = vst.msk [vmem:[#allocation2 + $0x18] sm:$0x3] (!%p188_p2), %vm228_vm1, %v781_v4 }
   0x8   : > { %232 = vst.msk [vmem:[#allocation2 + $0x20] sm:$0xff] (!%p188_p2), %vm226_vm0, %v781_v4  ;;  %234 = vst.msk [vmem:[#allocation2 + $0x30] sm:$0xff] (!%p188_p2), %vm226_vm0, %v781_v4  ;;  %748 = vmatprep.subr.bf16.mxu0 (!%p188_p2), %v772_v2  ;;  %759 = vmatprep.subr.bf16.mxu1 (!%p188_p2), %v772_v2  ;;  %v266_v20 = vld [vmem:[%s1088_s1 + $0x4] sm:$0x7] (!%p188_p2)  ;;  %v267_v21 = vld [vmem:[%s1088_s1 + $0x8] sm:$0x7] (!%p188_p2) }
   0x9   : > { %233 = vst.msk [vmem:[#allocation2 + $0x28] sm:$0x3] (!%p188_p2), %vm228_vm1, %v781_v4  ;;  %235 = vst.msk [vmem:[#allocation2 + $0x38] sm:$0x3] (!%p188_p2), %vm228_vm1, %v781_v4  ;;  %v278_v6 = vsub.s32 (!%p188_p2), 0, %v277_v3  ;;  %v306_v7 = vsub.s32 (!%p188_p2), 1, %v277_v3 }
   0xa   : > { %236 = vst.msk [vmem:[#allocation2 + $0x40] sm:$0xff] (!%p188_p2), %vm226_vm0, %v781_v4  ;;  %238 = vst.msk [vmem:[#allocation2 + $0x50] sm:$0xff] (!%p188_p2), %vm226_vm0, %v781_v4  ;;  %v334_v8 = vsub.s32 (!%p188_p2), 2, %v277_v3 }
   0xb   : > { %237 = vst.msk [vmem:[#allocation2 + $0x48] sm:$0x3] (!%p188_p2), %vm228_vm1, %v781_v4  ;;  %239 = vst.msk [vmem:[#allocation2 + $0x58] sm:$0x3] (!%p188_p2), %vm228_vm1, %v781_v4  ;;  %749 = vmatpush3.bf16.msra.mxu0 (!%p188_p2), %v772_v2  ;;  %761 = vmatpush3.bf16.msra.mxu1 (!%p188_p2), %v772_v2  ;;  %v860_v12 = vrot.slane (!%p188_p2), %v265_v5, %v278_v6  ;;  %v862_v13 = vrot.slane (!%p188_p2), %v265_v5, %v306_v7 }
   0xc   : > { %240 = vst.msk [vmem:[#allocation2 + $0x60] sm:$0xff] (!%p188_p2), %vm226_vm0, %v781_v4  ;;  %242 = vst.msk [vmem:[#allocation2 + $0x70] sm:$0xff] (!%p188_p2), %vm226_vm0, %v781_v4  ;;  %v864_v14 = vrot.slane (!%p188_p2), %v265_v5, %v334_v8  ;;  %v880_v28 = vrot.slane (!%p188_p2), %v266_v20, %v278_v6  ;;  %v882_v29 = vrot.slane (!%p188_p2), %v266_v20, %v306_v7 }
   0xd   : > { %s1094_s19 = smov (!%p215_p3, %s719_s19), 1  ;;  %241 = vst.msk [vmem:[#allocation2 + $0x68] sm:$0x3] %vm228_vm1, %v781_v4  ;;  %243 = vst.msk [vmem:[#allocation2 + $0x78] sm:$0x3] %vm228_vm1, %v781_v4  ;;  %v268_v22 = vld [vmem:[#allocation2] sm:$0xff]  ;;  %v884_v31 = vrot.slane %v266_v20, %v334_v8  ;;  %v886_v32 = vrot.slane %v267_v21, %v278_v6  ;;  %v888_v36 = vrot.slane %v267_v21, %v306_v7 }
   0xe   : > { %244 = vst.msk [vmem:[#allocation2 + $0x80] sm:$0xff] %vm226_vm0, %v781_v4  ;;  %246 = vst.msk [vmem:[#allocation2 + $0x90] sm:$0xff] %vm226_vm0, %v781_v4  ;;  %s738_s24 = sshll.u32 %s1094_s19, 6  ;;  %v296_v23 = vld [vmem:[#allocation2 + $0x1] sm:$0xff]  ;;  %v280_v25 = vmul.f32 %v860_v12, %v268_v22  ;;  %v890_v37 = vrot.slane %v267_v21, %v334_v8 }
   0xf   : > { %245 = vst.msk [vmem:[#allocation2 + $0x88] sm:$0x3] %vm228_vm1, %v781_v4  ;;  %247 = vst.msk [vmem:[#allocation2 + $0x98] sm:$0x3] %vm228_vm1, %v781_v4  ;;  %s219_s29 = scalar_lea.vmem %s1087_s0, %s738_s24  ;;  %v324_v24 = vld [vmem:[#allocation2 + $0x2] sm:$0xff]  ;;  %v308_v26 = vmul.f32 %v862_v13, %v296_v23  ;;  %s224_s15 = scalar_lea.vmem %s1092_s5, %s738_s24 }
  0x10   : > { %v248_v9 = vld [vmem:[%s219_s29] sm:$0xff]  ;;  %v249_v10 = vld [vmem:[%s219_s29 + $0x8] sm:$0xff]  ;;  %v250_v11 = vld [vmem:[%s219_s29 + $0x10] sm:$0xff]  ;;  %v336_v27 = vmul.f32 %v864_v14, %v324_v24 }
  0x11   : > { %257 = vst.msk [vmem:[#allocation2 + $0x11] sm:$0xff] %vm226_vm0, %v248_v9  ;;  %258 = vst.msk [vmem:[#allocation2 + $0x21] sm:$0xff] %vm226_vm0, %v249_v10  ;;  %v251_v15 = vld [vmem:[%s219_s29 + $0x18] sm:$0xff]  ;;  %v252_v16 = vld [vmem:[%s219_s29 + $0x20] sm:$0xff]  ;;  %v316_v30 = vadd.f32 %v308_v26, %v280_v25 }
  0x12   : > { %259 = vst.msk [vmem:[#allocation2 + $0x31] sm:$0xff] %vm226_vm0, %v250_v11  ;;  %v253_v17 = vld [vmem:[%s219_s29 + $0x28] sm:$0xff]  ;;  %v254_v18 = vld [vmem:[%s219_s29 + $0x30] sm:$0xff]  ;;  %260 = vst.msk [vmem:[#allocation2 + $0x41] sm:$0xff] %vm226_vm0, %v251_v15 }
  0x13   : > { %261 = vst.msk [vmem:[#allocation2 + $0x51] sm:$0xff] %vm226_vm0, %v252_v16  ;;  %262 = vst.msk [vmem:[#allocation2 + $0x61] sm:$0xff] %vm226_vm0, %v253_v17  ;;  %v255_v19 = vld [vmem:[%s219_s29 + $0x38] sm:$0xff]  ;;  %v344_v41 = vadd.f32 %v336_v27, %v316_v30 }
  0x14   : > { %263 = vst.msk [vmem:[#allocation2 + $0x71] sm:$0xff] %vm226_vm0, %v254_v18  ;;  %264 = vst.msk [vmem:[#allocation2 + $0x81] sm:$0xff] %vm226_vm0, %v255_v19 }
  0x18   : > { %v269_v33 = vld [vmem:[#allocation2 + $0x10] sm:$0xff]  ;;  %v895_v42 = vld [vmem:[#allocation2 + $0x20] sm:$0xff] }
  0x19   : > { %v297_v34 = vld [vmem:[#allocation2 + $0x11] sm:$0xff]  ;;  %v281_v38 = vmul.f32 %v860_v12, %v269_v33  ;;  %v897_v43 = vld [vmem:[#allocation2 + $0x21] sm:$0xff]  ;;  %v364_v45 = vmul.f32 %v880_v28, %v269_v33  ;;  %v365_v46 = vmul.f32 %v880_v28, %v895_v42  ;;  %v449_v55 = vmul.f32 %v886_v32, %v895_v42 }
  0x1a   : > { %v325_v35 = vld [vmem:[#allocation2 + $0x12] sm:$0xff]  ;;  %v309_v39 = vmul.f32 %v862_v13, %v297_v34  ;;  %v899_v44 = vld [vmem:[#allocation2 + $0x22] sm:$0xff]  ;;  %v392_v47 = vmul.f32 %v882_v29, %v297_v34  ;;  %v393_v48 = vmul.f32 %v882_v29, %v897_v43  ;;  %v477_v61 = vmul.f32 %v888_v36, %v897_v43 }
  0x1b   : > { %v337_v40 = vmul.f32 %v864_v14, %v325_v35  ;;  %v907_v49 = vld [vmem:[#allocation2 + $0x30] sm:$0xff]  ;;  %v420_v53 = vmul.f32 %v884_v31, %v325_v35  ;;  %v421_v54 = vmul.f32 %v884_v31, %v899_v44  ;;  %v918_v56 = vld [vmem:[#allocation2 + $0x40] sm:$0xff]  ;;  %v372_v59 = vadd.f32 %v364_v45, %v344_v41 }
  0x1c   : > { %v909_v50 = vld [vmem:[#allocation2 + $0x31] sm:$0xff]  ;;  %v317_v52 = vadd.f32 %v309_v39, %v281_v38  ;;  %v922_v58 = vld [vmem:[#allocation2 + $0x41] sm:$0xff]  ;;  %v450_v60 = vmul.f32 %v886_v32, %v907_v49  ;;  %v505_v3 = vmul.f32 %v890_v37, %v899_v44  ;;  %v284_v5 = vmul.f32 %v860_v12, %v918_v56 }
  0x1d   : > { %v911_v51 = vld [vmem:[#allocation2 + $0x32] sm:$0xff]  ;;  %v478_v62 = vmul.f32 %v888_v36, %v909_v50  ;;  %v932_v0 = vld [vmem:[#allocation2 + $0x42] sm:$0xff]  ;;  %v400_v6 = vadd.f32 %v392_v47, %v372_v59  ;;  %v312_v8 = vmul.f32 %v862_v13, %v922_v58  ;;  %v987_v59 = vld [vmem:[%s1089_s2] ss:$0 sm:$0xff] }
  0x1e   : > { %v920_v57 = vld [vmem:[#allocation2 + $0x50] sm:$0xff]  ;;  %v345_v2 = vadd.f32 %v337_v40, %v317_v52  ;;  %v506_v4 = vmul.f32 %v890_v37, %v911_v51  ;;  %v340_v11 = vmul.f32 %v864_v14, %v932_v0  ;;  %v952_v16 = vld [vmem:[#allocation2 + $0x60] sm:$0xff] }
  0x1f   : > { %v930_v63 = vld [vmem:[#allocation2 + $0x51] sm:$0xff]  ;;  %v285_v7 = vmul.f32 %v860_v12, %v920_v57  ;;  %v368_v17 = vmul.f32 %v880_v28, %v920_v57  ;;  %v428_v18 = vadd.f32 %v420_v53, %v400_v6  ;;  %v320_v19 = vadd.f32 %v312_v8, %v284_v5  ;;  %v958_v22 = vld [vmem:[#allocation2 + $0x61] sm:$0xff] }
  0x20   : > { %v934_v1 = vld [vmem:[#allocation2 + $0x52] sm:$0xff]  ;;  %v313_v9 = vmul.f32 %v862_v13, %v930_v63  ;;  %v373_v10 = vadd.f32 %v365_v46, %v345_v2  ;;  %v369_v21 = vmul.f32 %v880_v28, %v952_v16  ;;  %v396_v24 = vmul.f32 %v882_v29, %v930_v63  ;;  %v964_v26 = vld [vmem:[#allocation2 + $0x62] sm:$0xff] }
  0x21   : > { %v341_v15 = vmul.f32 %v864_v14, %v934_v1  ;;  %v397_v25 = vmul.f32 %v882_v29, %v958_v22  ;;  %v424_v27 = vmul.f32 %v884_v31, %v934_v1  ;;  %v457_v30 = vadd.f32 %v449_v55, %v428_v18  ;;  %v970_v38 = vld [vmem:[#allocation2 + $0x70] sm:$0xff] }
  0x22   : > { %v321_v20 = vadd.f32 %v313_v9, %v285_v7  ;;  %v401_v23 = vadd.f32 %v393_v48, %v373_v10  ;;  %v348_v33 = vadd.f32 %v340_v11, %v320_v19  ;;  %v425_v35 = vmul.f32 %v884_v31, %v964_v26  ;;  %v976_v45 = vld [vmem:[#allocation2 + $0x71] sm:$0xff] }
  0x23   : > { %v453_v40 = vmul.f32 %v886_v32, %v952_v16  ;;  %v454_v41 = vmul.f32 %v886_v32, %v970_v38  ;;  %v481_v46 = vmul.f32 %v888_v36, %v958_v22  ;;  %v485_v47 = vadd.f32 %v477_v61, %v457_v30  ;;  %v982_v55 = vld [vmem:[#allocation2 + $0x72] sm:$0xff] }
  0x24   : > { %v349_v34 = vadd.f32 %v341_v15, %v321_v20  ;;  %v429_v39 = vadd.f32 %v421_v54, %v401_v23  ;;  %v376_v48 = vadd.f32 %v368_v17, %v348_v33  ;;  %v482_v53 = vmul.f32 %v888_v36, %v976_v45 }
  0x25   : > { %v509_v2 = vmul.f32 %v890_v37, %v964_v26  ;;  %v510_v5 = vmul.f32 %v890_v37, %v982_v55  ;;  %v282_v61 = vmul.f32 %v895_v42, %v860_v12  ;;  %v513_v6 = vadd.f32 %v505_v3, %v485_v47 }
  0x26   : > { %v377_v52 = vadd.f32 %v369_v21, %v349_v34  ;;  %v458_v54 = vadd.f32 %v450_v60, %v429_v39  ;;  %v404_v7 = vadd.f32 %v396_v24, %v376_v48  ;;  %v283_v60 = vmul.f32 %v907_v49, %v860_v12 }
  0x27   : > { %v310_v10 = vmul.f32 %v897_v43, %v862_v13  ;;  %v311_v11 = vmul.f32 %v909_v50, %v862_v13  ;;  %v338_v15 = vmul.f32 %v899_v44, %v864_v14  ;;  %v528_v17 = vadd.f32 %v987_v59, %v513_v6 }
  0x28   : > { %v405_v8 = vadd.f32 %v397_v25, %v377_v52  ;;  %v486_v9 = vadd.f32 %v478_v62, %v458_v54  ;;  %v432_v18 = vadd.f32 %v424_v27, %v404_v7  ;;  %v339_v3 = vmul.f32 %v911_v51, %v864_v14 }
  0x29   : > { %v318_v20 = vadd.f32 %v310_v10, %v282_v61  ;;  %v319_v21 = vadd.f32 %v311_v11, %v283_v60  ;;  %v366_v62 = vmul.f32 %v907_v49, %v880_v28  ;;  %v536_v43 = vmax.f32 %v528_v17, 0.0  ;;  %v359_v11 = vld [vmem:[#allocation2 + $0x80] sm:$0xff] }
  0x2a   : > { %v433_v42 = vadd.f32 %v425_v35, %v405_v8  ;;  %v514_v19 = vadd.f32 %v506_v4, %v486_v9  ;;  %v461_v23 = vadd.f32 %v453_v40, %v432_v18  ;;  %v367_v25 = vmul.f32 %v880_v28, %v918_v56 }
  0x2b   : > { %v346_v30 = vadd.f32 %v338_v15, %v318_v20  ;;  %v347_v27 = vadd.f32 %v339_v3, %v319_v21  ;;  %v394_v33 = vmul.f32 %v909_v50, %v882_v29  ;;  %v395_v35 = vmul.f32 %v882_v29, %v922_v58  ;;  %v387_v3 = vld [vmem:[#allocation2 + $0x81] sm:$0xff] }
  0x2c   : > { %v462_v24 = vadd.f32 %v454_v41, %v433_v42  ;;  %v529_v44 = vadd.f32 %v987_v59, %v514_v19  ;;  %v489_v34 = vadd.f32 %v481_v46, %v461_v23  ;;  %v422_v49 = vmul.f32 %v911_v51, %v884_v31 }
  0x2d   : > { %v374_v40 = vadd.f32 %v366_v62, %v346_v30  ;;  %v375_v41 = vadd.f32 %v367_v25, %v347_v27  ;;  %v423_v47 = vmul.f32 %v884_v31, %v932_v0  ;;  %v451_v54 = vmul.f32 %v886_v32, %v918_v56  ;;  %v415_v62 = vld [vmem:[#allocation2 + $0x82] sm:$0xff] }
  0x2e   : > { %v490_v4 = vadd.f32 %v482_v53, %v462_v24  ;;  %v537_v39 = vmax.f32 %v529_v44, 0.0  ;;  %v517_v48 = vadd.f32 %v509_v2, %v489_v34  ;;  %v452_v50 = vmul.f32 %v886_v32, %v920_v57  ;;  %v444_v44 = vld [vmem:[#allocation2 + $0x90] sm:$0xff] }
  0x2f   : > { %v402_v53 = vadd.f32 %v394_v33, %v374_v40  ;;  %v403_v61 = vadd.f32 %v395_v35, %v375_v41  ;;  %v479_v51 = vmul.f32 %v888_v36, %v922_v58  ;;  %v480_v2 = vmul.f32 %v888_v36, %v930_v63  ;;  %v500_v41 = vld [vmem:[#allocation2 + $0x92] sm:$0xff] }
  0x30   : > { %v518_v52 = vadd.f32 %v510_v5, %v490_v4  ;;  %v544_v46 = vpack.c.bf16 %v537_v39, %v536_v43  ;;  %v532_v6 = vadd.f32 %v987_v59, %v517_v48  ;;  %v507_v5 = vmul.f32 %v890_v37, %v932_v0  ;;  %v472_v4 = vld [vmem:[#allocation2 + $0x91] sm:$0xff] }
  0x31   : > { %v430_v56 = vadd.f32 %v422_v49, %v402_v53  ;;  %v431_v57 = vadd.f32 %v423_v47, %v403_v61  ;;  %v508_v8 = vmul.f32 %v890_v37, %v934_v1  ;;  %v286_v58 = vmul.f32 %v952_v16, %v860_v12 }
  0x32   : > { %v533_v7 = vadd.f32 %v987_v59, %v518_v52  ;;  %750 = vmatprep.mubr.msk.bf16.mxu0 %vm226_vm0, %v544_v46  ;;  %v540_v60 = vmax.f32 %v532_v6, 0.0  ;;  %v287_v10 = vmul.f32 %v970_v38, %v860_v12  ;;  %v314_v63 = vmul.f32 %v958_v22, %v862_v13 }
  0x33   : > { %v459_v0 = vadd.f32 %v451_v54, %v430_v56  ;;  %v460_v15 = vadd.f32 %v452_v50, %v431_v57  ;;  %v315_v17 = vmul.f32 %v976_v45, %v862_v13  ;;  %v342_v1 = vmul.f32 %v964_v26, %v864_v14  ;;  %v729_v56 = vld [vmem:[%s1091_s4] ss:$0 sm:$0xff] }
  0x34   : > { %v541_v9 = vmax.f32 %v533_v7, 0.0  ;;  %v322_v42 = vadd.f32 %v314_v63, %v286_v58  ;;  %v343_v16 = vmul.f32 %v982_v55, %v864_v14  ;;  %v370_v12 = vmul.f32 %v970_v38, %v880_v28 }
  0x35   : > { %v487_v19 = vadd.f32 %v479_v51, %v459_v0  ;;  %v488_v22 = vadd.f32 %v480_v2, %v460_v15  ;;  %v323_v20 = vadd.f32 %v315_v17, %v287_v10  ;;  %v371_v21 = vmul.f32 %v880_v28, %v359_v11 }
  0x36   : > { %v546_v18 = vpack.c.bf16 %v541_v9, %v540_v60  ;;  %v350_v13 = vadd.f32 %v342_v1, %v322_v42  ;;  %v398_v26 = vmul.f32 %v976_v45, %v882_v29  ;;  %v399_v14 = vmul.f32 %v882_v29, %v387_v3 }
  0x37   : > { %v515_v43 = vadd.f32 %v507_v5, %v487_v19  ;;  %v516_v23 = vadd.f32 %v508_v8, %v488_v22  ;;  %v351_v24 = vadd.f32 %v343_v16, %v323_v20  ;;  %v426_v38 = vmul.f32 %v982_v55, %v884_v31 }
  0x38   : > { %754 = vmatprep.mubr.msk.bf16.mxu1 %vm226_vm0, %v546_v18  ;;  %v378_v25 = vadd.f32 %v370_v12, %v350_v13  ;;  %v427_v33 = vmul.f32 %v884_v31, %v415_v62  ;;  %v455_v45 = vmul.f32 %v886_v32, %v359_v11  ;;  %v456_v29 = vmul.f32 %v886_v32, %v444_v44 }
  0x39   : > { %v530_v30 = vadd.f32 %v987_v59, %v515_v43  ;;  %v531_v28 = vadd.f32 %v987_v59, %v516_v23  ;;  %v379_v27 = vadd.f32 %v371_v21, %v351_v24  ;;  %v483_v55 = vmul.f32 %v888_v36, %v387_v3 }
  0x3a   : > { %v406_v34 = vadd.f32 %v398_v26, %v378_v25  ;;  %v484_v52 = vmul.f32 %v888_v36, %v472_v4  ;;  %v511_v31 = vmul.f32 %v890_v37, %v415_v62  ;;  %v512_v46 = vmul.f32 %v890_v37, %v500_v41 }
  0x3b   : > { %v538_v35 = vmax.f32 %v530_v30, 0.0  ;;  %v539_v49 = vmax.f32 %v531_v28, 0.0  ;;  %v407_v39 = vadd.f32 %v399_v14, %v379_v27 }
  0x3c   : > { %v434_v40 = vadd.f32 %v426_v38, %v406_v34 }
  0x3d   : > { %v545_v47 = vpack.c.bf16 %v539_v49, %v538_v35  ;;  %v435_v48 = vadd.f32 %v427_v33, %v407_v39 }
  0x3e   : > { %v463_v54 = vadd.f32 %v455_v45, %v434_v40 }
  0x3f   : > { %751 = vmatmul.mubr.msk.bf16.vlgmr.msra.gmra.mrb[0].mxu0 %vm226_vm0, %v545_v47  ;;  %v464_v50 = vadd.f32 %v456_v29, %v435_v48 }
  0x40   : > { %v491_v53 = vadd.f32 %v483_v55, %v463_v54 }
  0x41   : > { %v492_v61 = vadd.f32 %v484_v52, %v464_v50 }
  0x42   : > { %v519_v32 = vadd.f32 %v511_v31, %v491_v53 }
  0x43   : > { %v520_v51 = vadd.f32 %v512_v46, %v492_v61 }
  0x44   : > { %v534_v6 = vadd.f32 %v987_v59, %v519_v32 }
  0x45   : > { %v535_v7 = vadd.f32 %v987_v59, %v520_v51 }
  0x46   : > { %v542_v2 = vmax.f32 %v534_v6, 0.0 }
  0x47   : > { %v543_v5 = vmax.f32 %v535_v7, 0.0 }
  0x49   : > { %v547_v36 = vpack.c.bf16 %v543_v5, %v542_v2 }
  0x4b   : > { %755 = vmatmul.mubr.msk.bf16.vlgmr.msra.gmra.mrb[0].mxu1 %vm226_vm0, %v547_v36 }
 0x112   : > { %v752_v57 = vpop.f32.mrb[0].mxu0 }
 0x113   : > { %v626_v8 = vadd.f32 %v752_v57, %v729_v56  ;;  %v617_v37 = vpop.f32.mrb[1].mxu0 }
 0x114   : > { %v618_v58 = vadd.f32 %v729_v56, %v617_v37  ;;  %v753_v60 = vpop.f32.mrb[2].mxu0 }
 0x115   : > { %v650_v59 = vmax.f32 %v626_v8, 0.0  ;;  %v629_v9 = vadd.f32 %v753_v60, %v729_v56  ;;  %v620_v10 = vpop.f32.mrb[3].mxu0 }
 0x116   : > { %v648_v63 = vmax.f32 %v618_v58, 0.0  ;;  %v621_v11 = vadd.f32 %v729_v56, %v620_v10 }
 0x117   : > { %658 = vst.msk [vmem:[%s224_s15 + $0x10] sm:$0xff] %vm226_vm0, %v650_v59  ;;  %v651_v0 = vmax.f32 %v629_v9, 0.0 }
 0x118   : > { %656 = vst.msk [vmem:[%s224_s15] sm:$0xff] %vm226_vm0, %v648_v63  ;;  %v649_v15 = vmax.f32 %v621_v11, 0.0 }
 0x119   : > { %659 = vst.msk [vmem:[%s224_s15 + $0x18] sm:$0xff] %vm226_vm0, %v651_v0 }
 0x11a   : > { %657 = vst.msk [vmem:[%s224_s15 + $0x8] sm:$0xff] %vm226_vm0, %v649_v15 }
 0x11e   : > { %v756_v17 = vpop.f32.mrb[0].mxu1 }
 0x11f   : > { %v642_v1 = vadd.f32 %v756_v17, %v729_v56  ;;  %v633_v18 = vpop.f32.mrb[1].mxu1 }
 0x120   : > { %v634_v42 = vadd.f32 %v729_v56, %v633_v18  ;;  %v757_v16 = vpop.f32.mrb[2].mxu1 }
 0x121   : > { %v654_v12 = vmax.f32 %v642_v1, 0.0  ;;  %v645_v3 = vadd.f32 %v757_v16, %v729_v56  ;;  %v636_v19 = vpop.f32.mrb[3].mxu1 }
 0x122   : > { %v652_v22 = vmax.f32 %v634_v42, 0.0  ;;  %v637_v20 = vadd.f32 %v729_v56, %v636_v19 }
 0x123   : > { %662 = vst.msk [vmem:[%s224_s15 + $0x30] sm:$0xff] %vm226_vm0, %v654_v12  ;;  %v655_v21 = vmax.f32 %v645_v3, 0.0 }
 0x124   : > { %660 = vst.msk [vmem:[%s224_s15 + $0x20] sm:$0xff] %vm226_vm0, %v652_v22  ;;  %v653_v13 = vmax.f32 %v637_v20, 0.0 }
 0x125   : > { %663 = vst.msk [vmem:[%s224_s15 + $0x38] sm:$0xff] %vm226_vm0, %v655_v21 }
 0x126   : > { %661 = vst.msk [vmem:[%s224_s15 + $0x28] sm:$0xff] %vm226_vm0, %v653_v13 }
 0x127 PF: > { %s15_s18 = sadd.s32 1, %s779_s18  }
 0x128   : > { %p12_p4 = scmp.ge.s32.totalorder %s15_s18, 4  }
 0x12a   :  { %14 = sbr.rel (!%p12_p4) target bundleno = 1 (0x1), region = 72 }

// kernel: mobilenet_v1_forward.18
= control target key start
LH: loop header
LB: loop body
LE: loop exit
PB: predicated region body
PF: predicated region fallthrough
CT: control target
= control target key end

     0   :  { %s700_s18 = smov 0   ;;  %s790_s0 = inlined_call_operand.vmem [shape: f32[2,8,8,32], index: 0, kind: input, shape index: {}]   ;;  %s791_s1 = inlined_call_operand.vmem [shape: f32[3,3,32], index: 1, kind: input, shape index: {}]   ;;  %s792_s2 = inlined_call_operand.vmem [shape: f32[1,32], index: 2, kind: input, shape index: {}]   ;;  %s793_s3 = inlined_call_operand.vmem [shape: bf16[32,64], index: 3, kind: input, shape index: {}]   ;;  %s794_s4 = inlined_call_operand.vmem [shape: f32[1,64], index: 4, kind: input, shape index: {}]   ;;  %s795_s5 = inlined_call_operand.vmem [shape: f32[2,16,64], index: 5, kind: output, shape index: {}]  }
   0x1 LB: > { %s619_s19 = sadd.s32 4294967295, %s666_s18   ;;  %p623_p0 = scmp.ge.s32.totalorder %s666_s18, 1  ;;  %s666_s18 = sphi %s700_s18, %s15_s18  }
   0x2   : > { %p187_p1 = scmp.lt.s32.totalorder %s666_s18, 3 }
   0x4   : > { %p188_p2 = pnand %p623_p0, %p187_p1 }
   0x5   : > { %v658_v0 = vld [vmem:[%s793_s3] sm:$0xff] (!%p188_p2)   ;;  %v275_v1 = vlaneseq (!%p188_p2)  ;;  %v668_v2 = vmov (!%p188_p2), 0.0   ;;  %v659_v3 = vld [vmem:[%s793_s3 + $0x8] sm:$0xff] (!%p188_p2)   ;;  %vm669_vm0 = vmmov (!%p188_p2), 0   ;;  %p716_p3 = scmp.lt.s32.totalorder (!%p188_p2), %s619_s19, 1  ;;  %vm226_vm1 = vcmask (!%p188_p2), 261120  }
   0x6   : > { %191 = sbr.rel (%p188_p2) target bundleno = 274 (0x112), region = 40  ;;  %640 = vmatprep.subr.bf16.mxu0 (!%p188_p2), %v668_v2  ;;  %644 = vmatprep.mubr.msk.bf16.mxu0 (!%p188_p2), %vm669_vm0, %v668_v2  ;;  %vm228_vm2 = vcmask (!%p188_p2), 254976   ;;  %227 = vst.msk [vmem:[#allocation2] sm:$0xff] (!%p188_p2), %vm226_vm1, %v668_v2  ;;  %230 = vst.msk [vmem:[#allocation2 + $0x10] sm:$0xff] (!%p188_p2), %vm226_vm1, %v668_v2  ;;  %v265_v5 = vld [vmem:[%s791_s1] sm:$0x7] (!%p188_p2) }
   0x7   : > { %641 = vmatpush3.bf16.msra.mxu0 (!%p188_p2), %v658_v0  ;;  %v276_v4 = vshrl.u32 (!%p188_p2), %v275_v1, 7  ;;  %229 = vst.msk [vmem:[#allocation2 + $0x8] sm:$0x3] (!%p188_p2), %vm228_vm2, %v668_v2  ;;  %231 = vst.msk [vmem:[#allocation2 + $0x18] sm:$0x3] (!%p188_p2), %vm228_vm2, %v668_v2  ;;  %vm539_vm3 = vcmask (!%p188_p2), 523264  }
   0x8   : > { %642 = vmatprep.subr.bf16.mxu0 (!%p188_p2), %v668_v2  ;;  %232 = vst.msk [vmem:[#allocation2 + $0x20] sm:$0xff] (!%p188_p2), %vm226_vm1, %v668_v2  ;;  %234 = vst.msk [vmem:[#allocation2 + $0x30] sm:$0xff] (!%p188_p2), %vm226_vm1, %v668_v2  ;;  %v266_v25 = vld [vmem:[%s791_s1 + $0x4] sm:$0x7] (!%p188_p2)  ;;  %v267_v26 = vld [vmem:[%s791_s1 + $0x8] sm:$0x7] (!%p188_p2) }
   0x9   : > { %233 = vst.msk [vmem:[#allocation2 + $0x28] sm:$0x3] (!%p188_p2), %vm228_vm2, %v668_v2  ;;  %235 = vst.msk [vmem:[#allocation2 + $0x38] sm:$0x3] (!%p188_p2), %vm228_vm2, %v668_v2  ;;  %v277_v6 = vsub.s32 (!%p188_p2), 0, %v276_v4  ;;  %v297_v7 = vsub.s32 (!%p188_p2), 1, %v276_v4 }
   0xa   : > { %236 = vst.msk [vmem:[#allocation2 + $0x40] sm:$0xff] (!%p188_p2), %vm226_vm1, %v668_v2  ;;  %238 = vst.msk [vmem:[#allocation2 + $0x50] sm:$0xff] (!%p188_p2), %vm226_vm1, %v668_v2  ;;  %v751_v9 = vsub.s32 (!%p188_p2), 2, %v276_v4 }
   0xb   : > { %237 = vst.msk [vmem:[#allocation2 + $0x48] sm:$0x3] (!%p188_p2), %vm228_vm2, %v668_v2  ;;  %239 = vst.msk [vmem:[#allocation2 + $0x58] sm:$0x3] (!%p188_p2), %vm228_vm2, %v668_v2  ;;  %643 = vmatpush3.bf16.msra.mxu0 (!%p188_p2), %v659_v3  ;;  %v278_v8 = vrot.slane (!%p188_p2), %v265_v5, %v277_v6  ;;  %v298_v13 = vrot.slane (!%p188_p2), %v265_v5, %v297_v7  ;;  %v337_v35 = vrot.slane (!%p188_p2), %v266_v25, %v277_v6 }
   0xc   : > { %240 = vst.msk [vmem:[#allocation2 + $0x60] sm:$0xff] (!%p188_p2), %vm226_vm1, %v668_v2  ;;  %242 = vst.msk [vmem:[#allocation2 + $0x70] sm:$0xff] (!%p188_p2), %vm226_vm1, %v668_v2  ;;  %v318_v22 = vrot.slane (!%p188_p2), %v265_v5, %v751_v9  ;;  %v357_v40 = vrot.slane (!%p188_p2), %v266_v25, %v297_v7  ;;  %v377_v41 = vrot.slane (!%p188_p2), %v266_v25, %v751_v9 }
   0xd   : > { %241 = vst.msk [vmem:[#allocation2 + $0x68] sm:$0x3] %vm228_vm2, %v668_v2  ;;  %243 = vst.msk [vmem:[#allocation2 + $0x78] sm:$0x3] %vm228_vm2, %v668_v2  ;;  %s798_s19 = smov (!%p716_p3, %s619_s19), 1  ;;  %v397_v52 = vrot.slane %v267_v26, %v277_v6  ;;  %v769_v53 = vrot.slane %v267_v26, %v297_v7  ;;  %v437_v1 = vrot.slane %v267_v26, %v751_v9 }
   0xe   : > { %244 = vst.msk [vmem:[#allocation2 + $0x80] sm:$0xff] %vm226_vm1, %v668_v2  ;;  %s635_s27 = sshll.u32 %s798_s19, 6  ;;  %v268_v19 = vld [vmem:[#allocation2] ss:$2 sm:$0xf]  ;;  %s636_s14 = sshll.u32 %s798_s19, 4 }
   0xf   : > { %245 = vst.msk [vmem:[#allocation2 + $0x88] sm:$0x3] %vm228_vm2, %v668_v2  ;;  %s219_s30 = scalar_lea.vmem %s790_s0, %s635_s27  ;;  %v279_v20 = vmul.f32 %v278_v8, %v268_v19  ;;  %v288_v21 = vld [vmem:[#allocation2 + $0x1] ss:$2 sm:$0xf]  ;;  %s224_s17 = scalar_lea.vmem %s795_s5, %s636_s14 }
  0x10   : > { %v248_v10 = vld [vmem:[%s219_s30] sm:$0xff]  ;;  %v249_v11 = vld [vmem:[%s219_s30 + $0x8] sm:$0xff]  ;;  %v250_v12 = vld [vmem:[%s219_s30 + $0x10] sm:$0xff]  ;;  %v299_v23 = vmul.f32 %v298_v13, %v288_v21 }
  0x11   : > { %v251_v14 = vld [vmem:[%s219_s30 + $0x18] sm:$0xff]  ;;  %v252_v15 = vld [vmem:[%s219_s30 + $0x20] sm:$0xff]  ;;  %v253_v16 = vld [vmem:[%s219_s30 + $0x28] sm:$0xff]  ;;  %257 = vst.msk [vmem:[#allocation2 + $0x11] sm:$0xff] %vm226_vm1, %v248_v10 }
  0x12   : > { %258 = vst.msk [vmem:[#allocation2 + $0x21] sm:$0xff] %vm226_vm1, %v249_v11  ;;  %259 = vst.msk [vmem:[#allocation2 + $0x31] sm:$0xff] %vm226_vm1, %v250_v12  ;;  %v254_v17 = vld [vmem:[%s219_s30 + $0x30] sm:$0xff]  ;;  %v255_v18 = vld [vmem:[%s219_s30 + $0x38] sm:$0xff]  ;;  %v303_v27 = vadd.f32 %v299_v23, %v279_v20 }
  0x13   : > { %260 = vst.msk [vmem:[#allocation2 + $0x41] sm:$0xff] %vm226_vm1, %v251_v14  ;;  %261 = vst.msk [vmem:[#allocation2 + $0x51] sm:$0xff] %vm226_vm1, %v252_v15  ;;  %v308_v24 = vld [vmem:[#allocation2 + $0x2] ss:$2 sm:$0xf] }
  0x14   : > { %262 = vst.msk [vmem:[#allocation2 + $0x61] sm:$0xff] %vm226_vm1, %v253_v16  ;;  %263 = vst.msk [vmem:[#allocation2 + $0x71] sm:$0xff] %vm226_vm1, %v254_v17  ;;  %v319_v28 = vmul.f32 %v318_v22, %v308_v24 }
  0x15   : > { %264 = vst.msk [vmem:[#allocation2 + $0x81] sm:$0xff] %vm226_vm1, %v255_v18 }
  0x16   : > { %v323_v47 = vadd.f32 %v319_v28, %v303_v27 }
  0x18   : > { %v327_v51 = vld [vmem:[#allocation2 + $0x10] ss:$2 sm:$0xf]  ;;  %v347_v0 = vld [vmem:[#allocation2 + $0x11] ss:$2 sm:$0xf] }
  0x19   : > { %v270_v29 = vld [vmem:[#allocation2 + $0x20] ss:$2 sm:$0xf]  ;;  %v290_v30 = vld [vmem:[#allocation2 + $0x21] ss:$2 sm:$0xf]  ;;  %v338_v59 = vmul.f32 %v337_v35, %v327_v51  ;;  %v358_v11 = vmul.f32 %v357_v40, %v347_v0 }
  0x1a   : > { %v272_v31 = vld [vmem:[#allocation2 + $0x40] ss:$2 sm:$0xf]  ;;  %v280_v33 = vmul.f32 %v278_v8, %v270_v29  ;;  %v300_v34 = vmul.f32 %v298_v13, %v290_v30  ;;  %v292_v38 = vld [vmem:[#allocation2 + $0x41] ss:$2 sm:$0xf] }
  0x1b   : > { %v274_v32 = vld [vmem:[#allocation2 + $0x60] ss:$2 sm:$0xf]  ;;  %v281_v36 = vmul.f32 %v278_v8, %v272_v31  ;;  %v294_v39 = vld [vmem:[#allocation2 + $0x61] ss:$2 sm:$0xf]  ;;  %v301_v42 = vmul.f32 %v298_v13, %v292_v38  ;;  %v342_v5 = vadd.f32 %v338_v59, %v323_v47 }
  0x1c   : > { %v282_v37 = vmul.f32 %v278_v8, %v274_v32  ;;  %v302_v43 = vmul.f32 %v298_v13, %v294_v39  ;;  %v304_v44 = vadd.f32 %v300_v34, %v280_v33  ;;  %v310_v45 = vld [vmem:[#allocation2 + $0x22] ss:$2 sm:$0xf]  ;;  %v329_v57 = vld [vmem:[#allocation2 + $0x30] ss:$2 sm:$0xf] }
  0x1d   : > { %v312_v46 = vld [vmem:[#allocation2 + $0x42] ss:$2 sm:$0xf]  ;;  %v320_v49 = vmul.f32 %v318_v22, %v310_v45  ;;  %v305_v54 = vadd.f32 %v301_v42, %v281_v36  ;;  %v331_v58 = vld [vmem:[#allocation2 + $0x50] ss:$2 sm:$0xf]  ;;  %v339_v62 = vmul.f32 %v337_v35, %v329_v57  ;;  %v362_v21 = vadd.f32 %v358_v11, %v342_v5 }
  0x1e   : > { %v314_v48 = vld [vmem:[#allocation2 + $0x62] ss:$2 sm:$0xf]  ;;  %v321_v50 = vmul.f32 %v318_v22, %v312_v46  ;;  %v306_v55 = vadd.f32 %v302_v43, %v282_v37  ;;  %v333_v61 = vld [vmem:[#allocation2 + $0x70] ss:$2 sm:$0xf]  ;;  %v340_v63 = vmul.f32 %v337_v35, %v331_v58 }
  0x1f   : > { %v322_v56 = vmul.f32 %v318_v22, %v314_v48  ;;  %v324_v60 = vadd.f32 %v320_v49, %v304_v44  ;;  %v341_v4 = vmul.f32 %v337_v35, %v333_v61  ;;  %v349_v6 = vld [vmem:[#allocation2 + $0x31] ss:$2 sm:$0xf]  ;;  %v367_v14 = vld [vmem:[#allocation2 + $0x12] ss:$2 sm:$0xf] }
  0x20   : > { %v325_v2 = vadd.f32 %v321_v50, %v305_v54  ;;  %v351_v7 = vld [vmem:[#allocation2 + $0x51] ss:$2 sm:$0xf]  ;;  %v359_v12 = vmul.f32 %v357_v40, %v349_v6  ;;  %v369_v18 = vld [vmem:[#allocation2 + $0x32] ss:$2 sm:$0xf]  ;;  %v378_v20 = vmul.f32 %v377_v41, %v367_v14 }
  0x21   : > { %v326_v3 = vadd.f32 %v322_v56, %v306_v55  ;;  %v343_v8 = vadd.f32 %v339_v62, %v324_v60  ;;  %v353_v10 = vld [vmem:[#allocation2 + $0x71] ss:$2 sm:$0xf]  ;;  %v360_v13 = vmul.f32 %v357_v40, %v351_v7  ;;  %v371_v19 = vld [vmem:[#allocation2 + $0x52] ss:$2 sm:$0xf]  ;;  %v379_v23 = vmul.f32 %v377_v41, %v369_v18 }
  0x22   : > { %v344_v15 = vadd.f32 %v340_v63, %v325_v2  ;;  %v361_v17 = vmul.f32 %v357_v40, %v353_v10  ;;  %v373_v22 = vld [vmem:[#allocation2 + $0x72] ss:$2 sm:$0xf]  ;;  %v380_v24 = vmul.f32 %v377_v41, %v371_v19  ;;  %v387_v25 = vld [vmem:[#allocation2 + $0x20] ss:$2 sm:$0xf]  ;;  %v382_v32 = vadd.f32 %v378_v20, %v362_v21 }
  0x23   : > { %v345_v16 = vadd.f32 %v341_v4, %v326_v3  ;;  %v363_v9 = vadd.f32 %v359_v12, %v343_v8  ;;  %v381_v28 = vmul.f32 %v377_v41, %v373_v22  ;;  %v389_v29 = vld [vmem:[#allocation2 + $0x40] ss:$2 sm:$0xf]  ;;  %v398_v31 = vmul.f32 %v397_v52, %v387_v25  ;;  %v407_v37 = vld [vmem:[#allocation2 + $0x21] ss:$2 sm:$0xf] }
  0x24   : > { %v364_v26 = vadd.f32 %v360_v13, %v344_v15  ;;  %v391_v30 = vld [vmem:[#allocation2 + $0x60] ss:$2 sm:$0xf]  ;;  %v399_v35 = vmul.f32 %v397_v52, %v389_v29  ;;  %v409_v42 = vld [vmem:[#allocation2 + $0x41] ss:$2 sm:$0xf]  ;;  %v418_v44 = vmul.f32 %v769_v53, %v407_v37 }
  0x25   : > { %v365_v27 = vadd.f32 %v361_v17, %v345_v16  ;;  %v383_v33 = vadd.f32 %v379_v23, %v363_v9  ;;  %v393_v34 = vld [vmem:[#allocation2 + $0x80] ss:$2 sm:$0xf]  ;;  %v400_v36 = vmul.f32 %v397_v52, %v391_v30  ;;  %v411_v43 = vld [vmem:[#allocation2 + $0x61] ss:$2 sm:$0xf]  ;;  %v402_v45 = vadd.f32 %v398_v31, %v382_v32 }
  0x26   : > { %v384_v38 = vadd.f32 %v380_v24, %v364_v26  ;;  %v401_v40 = vmul.f32 %v397_v52, %v393_v34  ;;  %v413_v47 = vld [vmem:[#allocation2 + $0x81] ss:$2 sm:$0xf]  ;;  %v419_v41 = vmul.f32 %v769_v53, %v409_v42  ;;  %v420_v48 = vmul.f32 %v769_v53, %v411_v43  ;;  %v427_v49 = vld [vmem:[#allocation2 + $0x22] ss:$2 sm:$0xf] }
  0x27   : > { %v385_v39 = vadd.f32 %v381_v28, %v365_v27  ;;  %v403_v46 = vadd.f32 %v399_v35, %v383_v33  ;;  %v421_v54 = vmul.f32 %v769_v53, %v413_v47  ;;  %v429_v55 = vld [vmem:[#allocation2 + $0x42] ss:$2 sm:$0xf]  ;;  %v438_v57 = vmul.f32 %v437_v1, %v427_v49  ;;  %v628_v2 = vld [vmem:[%s792_s2] ss:$0 sm:$0xff] }
  0x28   : > { %v404_v50 = vadd.f32 %v400_v36, %v384_v38  ;;  %v431_v56 = vld [vmem:[#allocation2 + $0x62] ss:$2 sm:$0xf]  ;;  %v422_v52 = vadd.f32 %v418_v44, %v402_v45  ;;  %v439_v60 = vmul.f32 %v437_v1, %v429_v55  ;;  %v629_v17 = vld [vmem:[%s794_s4] ss:$0 sm:$0xff] }
  0x29   : > { %v405_v51 = vadd.f32 %v401_v40, %v385_v39  ;;  %v423_v58 = vadd.f32 %v419_v41, %v403_v46  ;;  %v433_v59 = vld [vmem:[#allocation2 + $0x82] ss:$2 sm:$0xf]  ;;  %v440_v61 = vmul.f32 %v437_v1, %v431_v56 }
  0x2a   : > { %v424_v62 = vadd.f32 %v420_v48, %v404_v50  ;;  %v441_v0 = vmul.f32 %v437_v1, %v433_v59  ;;  %v442_v3 = vadd.f32 %v438_v57, %v422_v52 }
  0x2b   : > { %v425_v63 = vadd.f32 %v421_v54, %v405_v51  ;;  %v443_v4 = vadd.f32 %v439_v60, %v423_v58 }
  0x2c   : > { %v444_v5 = vadd.f32 %v440_v61, %v424_v62  ;;  %v453_v6 = vadd.f32 %v628_v2, %v442_v3 }
  0x2d   : > { %v445_v53 = vadd.f32 %v441_v0, %v425_v63  ;;  %v454_v7 = vadd.f32 %v628_v2, %v443_v4 }
  0x2e   : > { %v455_v8 = vadd.f32 %v628_v2, %v444_v5  ;;  %v457_v11 = vmax.f32 %v453_v6, 0.0 }
  0x2f   : > { %v456_v10 = vadd.f32 %v628_v2, %v445_v53  ;;  %v458_v12 = vmax.f32 %v454_v7, 0.0 }
  0x30   : > { %v459_v13 = vmax.f32 %v455_v8, 0.0 }
  0x31   : > { %v460_v14 = vmax.f32 %v456_v10, 0.0  ;;  %v465_v15 = vcombine.low %v457_v11, %v458_v12 }
  0x33   : > { %v466_v16 = vcombine.low %v459_v13, %v460_v14 }
  0x35   : > { %v469_v1 = vpack.c.bf16 %v466_v16, %v465_v15 }
  0x37   : > { %645 = vmatmul.mubr.msk.bf16.vlgmr.msra.gmra.mrb[0].mxu0 %vm226_vm1, %v469_v1 }
 0x10a   : > { %v530_v18 = vpop.f32.mrb[0].mxu0 }
 0x10b   : > { %v531_v19 = vadd.f32 %v629_v17, %v530_v18  ;;  %v646_v20 = vpop.f32.mrb[1].mxu0 }
 0x10c   : > { %v533_v21 = vpop.f32.mrb[2].mxu0 }
 0x10d   : > { %v537_v9 = vmax.f32 %v531_v19, 0.0  ;;  %v534_v22 = vadd.f32 %v629_v17, %v533_v21  ;;  %v647_v23 = vpop.f32.mrb[3].mxu0 }
 0x10f   : > { %540 = vst.msk [vmem:[%s224_s17] sm:$0xff] %vm539_vm3, %v537_v9  ;;  %v538_v24 = vmax.f32 %v534_v22, 0.0 }
 0x111   : > { %541 = vst.msk [vmem:[%s224_s17 + $0x8] sm:$0xff] %vm539_vm3, %v538_v24 }
 0x112 PF: > { %s15_s18 = sadd.s32 1, %s666_s18  }
 0x113   : > { %p12_p4 = scmp.ge.s32.totalorder %s15_s18, 4  }
 0x115   :  { %14 = sbr.rel (!%p12_p4) target bundleno = 1 (0x1), region = 105 }

// kernel: mobilenet_v1_forward.19
= control target key start
LH: loop header
LB: loop body
LE: loop exit
PB: predicated region body
PF: predicated region fallthrough
CT: control target
= control target key end

     0   :  { %s649_s18 = smov 0   ;;  %s731_s0 = inlined_call_operand.vmem [shape: f32[2,4,4,64], index: 0, kind: input, shape index: {}]   ;;  %s732_s1 = inlined_call_operand.vmem [shape: f32[3,3,64], index: 1, kind: input, shape index: {}]   ;;  %s733_s2 = inlined_call_operand.vmem [shape: f32[1,64], index: 2, kind: input, shape index: {}]   ;;  %s734_s3 = inlined_call_operand.vmem [shape: bf16[64,64], index: 3, kind: input, shape index: {}]   ;;  %s735_s4 = inlined_call_operand.vmem [shape: f32[1,64], index: 4, kind: input, shape index: {}]   ;;  %s736_s5 = inlined_call_operand.vmem [shape: f32[2,16,64], index: 5, kind: output, shape index: {}]  }
   0x1 LB: > { %s558_s19 = sadd.s32 4294967295, %s615_s18   ;;  %p562_p0 = scmp.ge.s32.totalorder %s615_s18, 1  ;;  %s615_s18 = sphi %s649_s18, %s15_s18  }
   0x2   : > { %p187_p1 = scmp.lt.s32.totalorder %s615_s18, 3 }
   0x4   : > { %p188_p2 = pnand %p562_p0, %p187_p1 }
   0x5   : > { %v605_v0 = vld [vmem:[%s734_s3] sm:$0xff] (!%p188_p2)   ;;  %v617_v1 = vmov (!%p188_p2), 0.0   ;;  %v250_v2 = vlaneseq (!%p188_p2)  ;;  %v606_v3 = vld [vmem:[%s734_s3 + $0x8] sm:$0xff] (!%p188_p2)   ;;  %vm618_vm0 = vmmov (!%p188_p2), 0   ;;  %p215_p3 = scmp.lt.s32.totalorder (!%p188_p2), %s558_s19, 1  ;;  %vm226_vm1 = vcmask (!%p188_p2), 521216  }
   0x6   : > { %191 = sbr.rel (%p188_p2) target bundleno = 272 (0x110), region = 40  ;;  %583 = vmatprep.subr.bf16.mxu0 (!%p188_p2), %v617_v1  ;;  %591 = vmatprep.mubr.msk.bf16.mxu0 (!%p188_p2), %vm618_vm0, %v617_v1  ;;  %227 = vst.msk [vmem:[#allocation2] sm:$0x3f] (!%p188_p2), %vm226_vm1, %v617_v1  ;;  %228 = vst.msk [vmem:[#allocation2 + $0x8] sm:$0x3f] (!%p188_p2), %vm226_vm1, %v617_v1  ;;  %v607_v5 = vld [vmem:[%s734_s3 + $0x10] sm:$0xff] (!%p188_p2)  }
   0x7   : > { %584 = vmatpush3.bf16.msra.mxu0 (!%p188_p2), %v605_v0  ;;  %229 = vst.msk [vmem:[#allocation2 + $0x10] sm:$0x3f] (!%p188_p2), %vm226_vm1, %v617_v1  ;;  %230 = vst.msk [vmem:[#allocation2 + $0x18] sm:$0x3f] (!%p188_p2), %vm226_vm1, %v617_v1  ;;  %v251_v4 = vshrl.u32 (!%p188_p2), %v250_v2, 7  ;;  %vm238_vm2 = vcmask (!%p188_p2), 519168  }
   0x8   : > { %585 = vmatprep.subr.bf16.mxu0 (!%p188_p2), %v617_v1  ;;  %231 = vst.msk [vmem:[#allocation2 + $0x20] sm:$0x3f] (!%p188_p2), %vm226_vm1, %v617_v1  ;;  %232 = vst.msk [vmem:[#allocation2 + $0x28] sm:$0x3f] (!%p188_p2), %vm226_vm1, %v617_v1  ;;  %v243_v6 = vld [vmem:[%s732_s1] sm:$0x7] (!%p188_p2) }
   0x9   : > { %v252_v7 = vsub.s32 (!%p188_p2), 0, %v251_v4  ;;  %v268_v8 = vsub.s32 (!%p188_p2), 1, %v251_v4  ;;  %v284_v9 = vsub.s32 (!%p188_p2), 2, %v251_v4  ;;  %v245_v14 = vld [vmem:[%s732_s1 + $0x8] sm:$0x7] (!%p188_p2)  ;;  %v608_v17 = vld [vmem:[%s734_s3 + $0x18] sm:$0xff] (!%p188_p2)  }
   0xa   : > { %v244_v25 = vld [vmem:[%s732_s1 + $0x4] sm:$0x7] (!%p188_p2)  ;;  %vm454_vm3 = vcmask (!%p188_p2), 523264  }
   0xb   : > { %586 = vmatpush3.bf16.msra.mxu0 (!%p188_p2), %v606_v3  ;;  %v253_v15 = vrot.slane (!%p188_p2), %v243_v6, %v252_v7  ;;  %v269_v16 = vrot.slane (!%p188_p2), %v243_v6, %v268_v8  ;;  %v285_v18 = vrot.slane (!%p188_p2), %v243_v6, %v284_v9  ;;  %v687_v24 = vrot.slane (!%p188_p2), %v245_v14, %v252_v7 }
   0xc   : > { %587 = vmatprep.subr.bf16.mxu0 (!%p188_p2), %v617_v1  ;;  %v692_v27 = vrot.slane (!%p188_p2), %v245_v14, %v268_v8  ;;  %v694_v32 = vrot.slane (!%p188_p2), %v245_v14, %v284_v9  ;;  %v301_v36 = vrot.slane (!%p188_p2), %v244_v25, %v252_v7  ;;  %v317_v37 = vrot.slane (!%p188_p2), %v244_v25, %v268_v8 }
   0xd   : > { %s738_s19 = smov (!%p215_p3, %s558_s19), 1  ;;  %v246_v19 = vld [vmem:[#allocation2] sm:$0xf]  ;;  %v333_v38 = vrot.slane %v244_v25, %v284_v9 }
   0xe   : > { %s576_s26 = sshll.u32 %s738_s19, 4  ;;  %v262_v20 = vld [vmem:[#allocation2 + $0x1] sm:$0xf]  ;;  %v254_v22 = vmul.f32 %v253_v15, %v246_v19 }
   0xf   : > { %s219_s6 = scalar_lea.vmem %s731_s0, %s576_s26  ;;  %588 = vmatpush3.bf16.msra.mxu0 %v607_v5  ;;  %v278_v21 = vld [vmem:[#allocation2 + $0x2] sm:$0xf]  ;;  %v270_v23 = vmul.f32 %v269_v16, %v262_v20  ;;  %v346_v26 = vld [vmem:[#allocation2 + $0x28] sm:$0xf]  ;;  %s224_s21 = scalar_lea.vmem %s736_s5, %s576_s26 }
  0x10   : > { %v233_v10 = vld [vmem:[%s219_s6] sm:$0xf]  ;;  %v234_v11 = vld [vmem:[%s219_s6 + $0x4] sm:$0xf]  ;;  %v235_v12 = vld [vmem:[%s219_s6 + $0x8] sm:$0xf]  ;;  %589 = vmatprep.subr.bf16.mxu0 %v617_v1  ;;  %v286_v29 = vmul.f32 %v285_v18, %v278_v21  ;;  %v697_v39 = vmul.f32 %v687_v24, %v346_v26 }
  0x11   : > { %v236_v13 = vld [vmem:[%s219_s6 + $0xc] sm:$0xf]  ;;  %239 = vst.msk [vmem:[#allocation2 + $0x9] sm:$0xf] %vm238_vm2, %v233_v10  ;;  %240 = vst.msk [vmem:[#allocation2 + $0x11] sm:$0xf] %vm238_vm2, %v234_v11  ;;  %v274_v28 = vadd.f32 %v270_v23, %v254_v22 }
  0x12   : > { %241 = vst.msk [vmem:[#allocation2 + $0x19] sm:$0xf] %vm238_vm2, %v235_v12  ;;  %242 = vst.msk [vmem:[#allocation2 + $0x21] sm:$0xf] %vm238_vm2, %v236_v13  ;;  %v362_v30 = vld [vmem:[#allocation2 + $0x29] sm:$0xf] }
  0x13   : > { %590 = vmatpush3.bf16.msra.mxu0 %v608_v17  ;;  %v378_v31 = vld [vmem:[#allocation2 + $0x2a] sm:$0xf]  ;;  %v700_v46 = vmul.f32 %v692_v27, %v362_v30  ;;  %v290_v53 = vadd.f32 %v286_v29, %v274_v28 }
  0x14   : > { %v703_v60 = vmul.f32 %v694_v32, %v378_v31 }
  0x18   : > { %v247_v33 = vld [vmem:[#allocation2 + $0x8] sm:$0xf]  ;;  %v248_v34 = vld [vmem:[#allocation2 + $0x10] sm:$0xf] }
  0x19   : > { %v249_v35 = vld [vmem:[#allocation2 + $0x18] sm:$0xf]  ;;  %v255_v40 = vmul.f32 %v253_v15, %v247_v33  ;;  %v256_v41 = vmul.f32 %v253_v15, %v248_v34  ;;  %v263_v43 = vld [vmem:[#allocation2 + $0x9] sm:$0xf]  ;;  %v264_v44 = vld [vmem:[#allocation2 + $0x11] sm:$0xf] }
  0x1a   : > { %v257_v42 = vmul.f32 %v253_v15, %v249_v35  ;;  %v265_v45 = vld [vmem:[#allocation2 + $0x19] sm:$0xf]  ;;  %v271_v47 = vmul.f32 %v269_v16, %v263_v43  ;;  %v272_v48 = vmul.f32 %v269_v16, %v264_v44  ;;  %v279_v50 = vld [vmem:[#allocation2 + $0xa] sm:$0xf]  ;;  %v280_v51 = vld [vmem:[#allocation2 + $0x12] sm:$0xf] }
  0x1b   : > { %v273_v49 = vmul.f32 %v269_v16, %v265_v45  ;;  %v281_v52 = vld [vmem:[#allocation2 + $0x1a] sm:$0xf]  ;;  %v287_v54 = vmul.f32 %v285_v18, %v279_v50  ;;  %v288_v55 = vmul.f32 %v285_v18, %v280_v51  ;;  %v294_v57 = vld [vmem:[#allocation2 + $0x8] sm:$0xf]  ;;  %v295_v58 = vld [vmem:[#allocation2 + $0x10] sm:$0xf] }
  0x1c   : > { %v289_v56 = vmul.f32 %v285_v18, %v281_v52  ;;  %v296_v59 = vld [vmem:[#allocation2 + $0x18] sm:$0xf]  ;;  %v275_v61 = vadd.f32 %v271_v47, %v255_v40  ;;  %v276_v62 = vadd.f32 %v272_v48, %v256_v41  ;;  %v297_v0 = vld [vmem:[#allocation2 + $0x20] sm:$0xf]  ;;  %v302_v1 = vmul.f32 %v301_v36, %v294_v57  ;;  %v310_v2 = vld [vmem:[#allocation2 + $0x9] sm:$0xf] }
  0x1d   : > { %v277_v63 = vadd.f32 %v273_v49, %v257_v42  ;;  %v311_v3 = vld [vmem:[#allocation2 + $0x11] sm:$0xf]  ;;  %v303_v4 = vmul.f32 %v301_v36, %v295_v58  ;;  %v304_v5 = vmul.f32 %v301_v36, %v296_v59  ;;  %v305_v6 = vmul.f32 %v301_v36, %v297_v0  ;;  %v312_v7 = vld [vmem:[#allocation2 + $0x19] sm:$0xf]  ;;  %v313_v8 = vld [vmem:[#allocation2 + $0x21] sm:$0xf] }
  0x1e   : > { %v318_v9 = vmul.f32 %v317_v37, %v310_v2  ;;  %v326_v10 = vld [vmem:[#allocation2 + $0xa] sm:$0xf]  ;;  %v291_v11 = vadd.f32 %v287_v54, %v275_v61  ;;  %v292_v12 = vadd.f32 %v288_v55, %v276_v62  ;;  %v306_v14 = vadd.f32 %v302_v1, %v290_v53  ;;  %v327_v15 = vld [vmem:[#allocation2 + $0x12] sm:$0xf]  ;;  %v328_v16 = vld [vmem:[#allocation2 + $0x1a] sm:$0xf] }
  0x1f   : > { %v293_v13 = vadd.f32 %v289_v56, %v277_v63  ;;  %v329_v17 = vld [vmem:[#allocation2 + $0x22] sm:$0xf]  ;;  %v319_v18 = vmul.f32 %v317_v37, %v311_v3  ;;  %v320_v19 = vmul.f32 %v317_v37, %v312_v7  ;;  %v321_v20 = vmul.f32 %v317_v37, %v313_v8  ;;  %v343_v22 = vld [vmem:[#allocation2 + $0x10] sm:$0xf]  ;;  %v344_v23 = vld [vmem:[#allocation2 + $0x18] sm:$0xf] }
  0x20   : > { %v334_v21 = vmul.f32 %v333_v38, %v326_v10  ;;  %v307_v25 = vadd.f32 %v303_v4, %v291_v11  ;;  %v308_v26 = vadd.f32 %v304_v5, %v292_v12  ;;  %v322_v29 = vadd.f32 %v318_v9, %v306_v14  ;;  %v345_v30 = vld [vmem:[#allocation2 + $0x20] sm:$0xf]  ;;  %v359_v31 = vld [vmem:[#allocation2 + $0x11] sm:$0xf]  ;;  %v360_v33 = vld [vmem:[#allocation2 + $0x19] sm:$0xf] }
  0x21   : > { %v309_v28 = vadd.f32 %v305_v6, %v293_v13  ;;  %v335_v34 = vmul.f32 %v333_v38, %v327_v15  ;;  %v336_v35 = vmul.f32 %v333_v38, %v328_v16  ;;  %v337_v36 = vmul.f32 %v333_v38, %v329_v17  ;;  %v361_v41 = vld [vmem:[#allocation2 + $0x21] sm:$0xf]  ;;  %v375_v45 = vld [vmem:[#allocation2 + $0x12] sm:$0xf]  ;;  %v376_v47 = vld [vmem:[#allocation2 + $0x1a] sm:$0xf] }
  0x22   : > { %v351_v40 = vmul.f32 %v687_v24, %v343_v22  ;;  %v323_v42 = vadd.f32 %v319_v18, %v307_v25  ;;  %v324_v43 = vadd.f32 %v320_v19, %v308_v26  ;;  %v338_v37 = vadd.f32 %v334_v21, %v322_v29  ;;  %v377_v48 = vld [vmem:[#allocation2 + $0x22] sm:$0xf]  ;;  %v567_v0 = vld [vmem:[%s733_s2] ss:$0 sm:$0xff] }
  0x23   : > { %v325_v44 = vadd.f32 %v321_v20, %v309_v28  ;;  %v352_v49 = vmul.f32 %v687_v24, %v344_v23  ;;  %v353_v50 = vmul.f32 %v687_v24, %v345_v30  ;;  %v367_v51 = vmul.f32 %v692_v27, %v359_v31 }
  0x24   : > { %v368_v52 = vmul.f32 %v692_v27, %v360_v33  ;;  %v339_v53 = vadd.f32 %v335_v34, %v323_v42  ;;  %v340_v38 = vadd.f32 %v336_v35, %v324_v43  ;;  %v355_v55 = vadd.f32 %v351_v40, %v338_v37 }
  0x25   : > { %v341_v54 = vadd.f32 %v337_v36, %v325_v44  ;;  %v369_v56 = vmul.f32 %v692_v27, %v361_v41  ;;  %v383_v57 = vmul.f32 %v694_v32, %v375_v45  ;;  %v384_v58 = vmul.f32 %v694_v32, %v376_v47 }
  0x26   : > { %v385_v59 = vmul.f32 %v694_v32, %v377_v48  ;;  %v356_v61 = vadd.f32 %v352_v49, %v339_v53  ;;  %v357_v62 = vadd.f32 %v353_v50, %v340_v38  ;;  %v371_v63 = vadd.f32 %v367_v51, %v355_v55 }
  0x27   : > { %v358_v24 = vadd.f32 %v697_v39, %v341_v54 }
  0x28   : > { %v372_v1 = vadd.f32 %v368_v52, %v356_v61  ;;  %v373_v2 = vadd.f32 %v369_v56, %v357_v62  ;;  %v387_v27 = vadd.f32 %v383_v57, %v371_v63 }
  0x29   : > { %v374_v3 = vadd.f32 %v700_v46, %v358_v24  ;;  %v568_v46 = vld [vmem:[%s735_s4] ss:$0 sm:$0xff] }
  0x2a   : > { %v388_v4 = vadd.f32 %v384_v58, %v372_v1  ;;  %v389_v5 = vadd.f32 %v385_v59, %v373_v2  ;;  %v398_v7 = vadd.f32 %v567_v0, %v387_v27 }
  0x2b   : > { %v390_v6 = vadd.f32 %v703_v60, %v374_v3 }
  0x2c   : > { %v399_v32 = vadd.f32 %v567_v0, %v388_v4  ;;  %v400_v8 = vadd.f32 %v567_v0, %v389_v5  ;;  %v402_v39 = vmax.f32 %v398_v7, 0.0 }
  0x2d   : > { %v401_v9 = vadd.f32 %v567_v0, %v390_v6 }
  0x2e   : > { %v403_v10 = vmax.f32 %v399_v32, 0.0  ;;  %v404_v11 = vmax.f32 %v400_v8, 0.0 }
  0x2f   : > { %v405_v12 = vmax.f32 %v401_v9, 0.0 }
  0x30   : > { %v410_v13 = vcombine.low %v402_v39, %v403_v10 }
  0x31   : > { %v411_v14 = vcombine.low %v404_v11, %v405_v12 }
  0x33   : > { %v414_v15 = vpack.c.bf16 %v411_v14, %v410_v13 }
  0x35   : > { %592 = vmatmul.mubr.msk.bf16.vlgmr.msra.gmra.mrb[0].mxu0 %vm454_vm3, %v414_v15 }
 0x108   : > { %v492_v16 = vpop.f32.mrb[0].mxu0 }
 0x109   : > { %v493_v60 = vadd.f32 %v568_v46, %v492_v16  ;;  %v593_v17 = vpop.f32.mrb[1].mxu0 }
 0x10a   : > { %v495_v18 = vpop.f32.mrb[2].mxu0 }
 0x10b   : > { %v499_v19 = vmax.f32 %v493_v60, 0.0  ;;  %v496_v20 = vadd.f32 %v568_v46, %v495_v18  ;;  %v594_v21 = vpop.f32.mrb[3].mxu0 }
 0x10d   : > { %501 = vst.msk [vmem:[%s224_s21] sm:$0xff] %vm454_vm3, %v499_v19  ;;  %v500_v22 = vmax.f32 %v496_v20, 0.0 }
 0x10f   : > { %502 = vst.msk [vmem:[%s224_s21 + $0x8] sm:$0xff] %vm454_vm3, %v500_v22 }
 0x110 PF: > { %s15_s18 = sadd.s32 1, %s615_s18  }
 0x111   : > { %p12_p4 = scmp.ge.s32.totalorder %s15_s18, 4  }
 0x113   :  { %14 = sbr.rel (!%p12_p4) target bundleno = 1 (0x1), region = 72 }

// kernel: mobilenet_v1_forward.20
= control target key start
LH: loop header
LB: loop body
LE: loop exit
PB: predicated region body
PF: predicated region fallthrough
CT: control target
= control target key end

     0   :  { %s612_s18 = smov 0   ;;  %s670_s0 = inlined_call_operand.vmem [shape: f32[2,4,4,64], index: 0, kind: input, shape index: {}]   ;;  %s671_s1 = inlined_call_operand.vmem [shape: f32[3,3,64], index: 1, kind: input, shape index: {}]   ;;  %s672_s2 = inlined_call_operand.vmem [shape: f32[1,64], index: 2, kind: input, shape index: {}]   ;;  %s673_s3 = inlined_call_operand.vmem [shape: bf16[64,128], index: 3, kind: input, shape index: {}]   ;;  %s674_s4 = inlined_call_operand.vmem [shape: f32[1,128], index: 4, kind: input, shape index: {}]   ;;  %s675_s5 = inlined_call_operand.vmem [shape: f32[2,4,128], index: 5, kind: output, shape index: {}]  }
   0x1 LB: > { %s521_s19 = sadd.s32 4294967295, %s577_s18   ;;  %p525_p0 = scmp.ge.s32.totalorder %s577_s18, 1  ;;  %s577_s18 = sphi %s612_s18, %s15_s18  }
   0x2   : > { %p187_p1 = scmp.lt.s32.totalorder %s577_s18, 3 }
   0x4   : > { %p188_p2 = pnand %p525_p0, %p187_p1 }
   0x5   : > { %vm224_vm0 = vcmask (!%p188_p2), 521216   ;;  %v579_v0 = vmov (!%p188_p2), 0.0   ;;  %v567_v1 = vld [vmem:[%s673_s3] sm:$0xff] (!%p188_p2)   ;;  %v247_v2 = vlaneseq (!%p188_p2)  ;;  %vm580_vm1 = vmmov (!%p188_p2), 0   ;;  %p214_p3 = scmp.lt.s32.totalorder (!%p188_p2), %s521_s19, 1  ;;  %v568_v3 = vld [vmem:[%s673_s3 + $0x8] sm:$0xff] (!%p188_p2)  }
   0x6   : > { %191 = sbr.rel (%p188_p2) target bundleno = 270 (0x10e), region = 40  ;;  %225 = vst.msk [vmem:[#allocation2] sm:$0x3f] (!%p188_p2), %vm224_vm0, %v579_v0  ;;  %544 = vmatprep.subr.bf16.mxu0 (!%p188_p2), %v579_v0  ;;  %226 = vst.msk [vmem:[#allocation2 + $0x8] sm:$0x3f] (!%p188_p2), %vm224_vm0, %v579_v0  ;;  %552 = vmatprep.mubr.msk.bf16.mxu0 (!%p188_p2), %vm580_vm1, %v579_v0  ;;  %vm236_vm2 = vcmask (!%p188_p2), 519168  }
   0x7   : > { %227 = vst.msk [vmem:[#allocation2 + $0x10] sm:$0x3f] (!%p188_p2), %vm224_vm0, %v579_v0  ;;  %228 = vst.msk [vmem:[#allocation2 + $0x18] sm:$0x3f] (!%p188_p2), %vm224_vm0, %v579_v0  ;;  %545 = vmatpush3.bf16.msra.mxu0 (!%p188_p2), %v567_v1  ;;  %v628_v4 = vshrl.u32 (!%p188_p2), %v247_v2, 7  ;;  %v569_v6 = vld [vmem:[%s673_s3 + $0x10] sm:$0xff] (!%p188_p2)  }
   0x8   : > { %229 = vst.msk [vmem:[#allocation2 + $0x20] sm:$0x3f] (!%p188_p2), %vm224_vm0, %v579_v0  ;;  %546 = vmatprep.subr.bf16.mxu0 (!%p188_p2), %v579_v0  ;;  %v241_v5 = vld [vmem:[%s671_s1] sm:$0x7] (!%p188_p2)  ;;  %v570_v20 = vld [vmem:[%s673_s3 + $0x18] sm:$0xff] (!%p188_p2)   ;;  %vm412_vm3 = vcmask (!%p188_p2), 523264  }
   0x9   : > { %v249_v7 = vsub.s32 (!%p188_p2), 0, %v628_v4  ;;  %v261_v8 = vsub.s32 (!%p188_p2), 1, %v628_v4  ;;  %v273_v9 = vsub.s32 (!%p188_p2), 2, %v628_v4  ;;  %v242_v21 = vld [vmem:[%s671_s1 + $0x4] sm:$0x7] (!%p188_p2) }
   0xa   : > { %v243_v27 = vld [vmem:[%s671_s1 + $0x8] sm:$0x7] (!%p188_p2) }
   0xb   : > { %547 = vmatpush3.bf16.msra.mxu0 (!%p188_p2), %v568_v3  ;;  %v250_v15 = vrot.slane (!%p188_p2), %v241_v5, %v249_v7  ;;  %v262_v16 = vrot.slane (!%p188_p2), %v241_v5, %v261_v8  ;;  %v274_v17 = vrot.slane (!%p188_p2), %v241_v5, %v273_v9  ;;  %v285_v26 = vrot.slane (!%p188_p2), %v242_v21, %v249_v7 }
   0xc   : > { %548 = vmatprep.subr.bf16.mxu0 (!%p188_p2), %v579_v0  ;;  %v297_v28 = vrot.slane (!%p188_p2), %v242_v21, %v261_v8  ;;  %v309_v32 = vrot.slane (!%p188_p2), %v242_v21, %v273_v9  ;;  %v321_v41 = vrot.slane (!%p188_p2), %v243_v27, %v249_v7  ;;  %v333_v51 = vrot.slane (!%p188_p2), %v243_v27, %v261_v8 }
   0xd   : > { %s677_s19 = smov (!%p214_p3, %s521_s19), 1  ;;  %v244_v14 = vld [vmem:[#allocation2] ss:$2 sm:$0x3]  ;;  %v345_v58 = vrot.slane %v243_v27, %v273_v9 }
   0xe   : > { %s538_s24 = sshll.u32 %s677_s19, 4  ;;  %v256_v18 = vld [vmem:[#allocation2 + $0x1] ss:$2 sm:$0x3]  ;;  %v251_v22 = vmul.f32 %v250_v15, %v244_v14  ;;  %v529_v9 = vld [vmem:[%s672_s2] ss:$0 sm:$0xff] }
   0xf   : > { %s218_s6 = scalar_lea.vmem %s670_s0, %s538_s24  ;;  %v268_v19 = vld [vmem:[#allocation2 + $0x2] ss:$2 sm:$0x3]  ;;  %549 = vmatpush3.bf16.msra.mxu0 %v569_v6  ;;  %v263_v23 = vmul.f32 %v262_v16, %v256_v18  ;;  %v530_v27 = vld [vmem:[%s674_s4] ss:$0 sm:$0xff]  ;;  %s528_s17 = sshll.u32 %s677_s19, 2 }
  0x10   : > { %v231_v10 = vld [vmem:[%s218_s6] sm:$0xf]  ;;  %v232_v11 = vld [vmem:[%s218_s6 + $0x4] sm:$0xf]  ;;  %v233_v12 = vld [vmem:[%s218_s6 + $0x8] sm:$0xf]  ;;  %550 = vmatprep.subr.bf16.mxu0 %v579_v0  ;;  %v275_v24 = vmul.f32 %v274_v17, %v268_v19  ;;  %s222_s22 = scalar_lea.vmem %s675_s5, %s528_s17 }
  0x11   : > { %v234_v13 = vld [vmem:[%s218_s6 + $0xc] sm:$0xf]  ;;  %237 = vst.msk [vmem:[#allocation2 + $0x9] sm:$0xf] %vm236_vm2, %v231_v10  ;;  %238 = vst.msk [vmem:[#allocation2 + $0x11] sm:$0xf] %vm236_vm2, %v232_v11  ;;  %v265_v25 = vadd.f32 %v263_v23, %v251_v22 }
  0x12   : > { %239 = vst.msk [vmem:[#allocation2 + $0x19] sm:$0xf] %vm236_vm2, %v233_v12  ;;  %240 = vst.msk [vmem:[#allocation2 + $0x21] sm:$0xf] %vm236_vm2, %v234_v13  ;;  %v581_v13 = vmov 1983009808  }
  0x13   : > { %551 = vmatpush3.bf16.msra.mxu0 %v570_v20  ;;  %v277_v31 = vadd.f32 %v275_v24, %v265_v25  ;;  %v365_v14 = vunpack.c.l.s4 %v581_v13 }
  0x15   : > { %v366_v19 = vunpack.c.0.s8 %v365_v14 }
  0x17   : > { %v369_v23 = vsub.s32 %v366_v19, %v628_v4 }
  0x18   : > { %v246_v29 = vld [vmem:[#allocation2 + $0x10] ss:$2 sm:$0x3]  ;;  %v258_v30 = vld [vmem:[#allocation2 + $0x11] ss:$2 sm:$0x3] }
  0x19   : > { %v252_v33 = vmul.f32 %v250_v15, %v246_v29  ;;  %v264_v34 = vmul.f32 %v262_v16, %v258_v30  ;;  %v270_v35 = vld [vmem:[#allocation2 + $0x12] ss:$2 sm:$0x3]  ;;  %v279_v36 = vld [vmem:[#allocation2 + $0x8] ss:$2 sm:$0x3] }
  0x1a   : > { %v276_v37 = vmul.f32 %v274_v17, %v270_v35  ;;  %v281_v38 = vld [vmem:[#allocation2 + $0x18] ss:$2 sm:$0x3]  ;;  %v286_v39 = vmul.f32 %v285_v26, %v279_v36  ;;  %v291_v40 = vld [vmem:[#allocation2 + $0x9] ss:$2 sm:$0x3] }
  0x1b   : > { %v266_v42 = vadd.f32 %v264_v34, %v252_v33  ;;  %v287_v43 = vmul.f32 %v285_v26, %v281_v38  ;;  %v293_v44 = vld [vmem:[#allocation2 + $0x19] ss:$2 sm:$0x3]  ;;  %v298_v45 = vmul.f32 %v297_v28, %v291_v40  ;;  %v303_v46 = vld [vmem:[#allocation2 + $0xa] ss:$2 sm:$0x3] }
  0x1c   : > { %v288_v47 = vadd.f32 %v286_v39, %v277_v31  ;;  %v305_v48 = vld [vmem:[#allocation2 + $0x1a] ss:$2 sm:$0x3]  ;;  %v310_v49 = vmul.f32 %v309_v32, %v303_v46  ;;  %v315_v50 = vld [vmem:[#allocation2 + $0x10] ss:$2 sm:$0x3]  ;;  %v299_v53 = vmul.f32 %v297_v28, %v293_v44 }
  0x1d   : > { %v278_v52 = vadd.f32 %v276_v37, %v266_v42  ;;  %v327_v54 = vld [vmem:[#allocation2 + $0x11] ss:$2 sm:$0x3]  ;;  %v317_v56 = vld [vmem:[#allocation2 + $0x20] ss:$2 sm:$0x3]  ;;  %v322_v57 = vmul.f32 %v321_v41, %v315_v50  ;;  %v311_v60 = vmul.f32 %v309_v32, %v305_v48 }
  0x1e   : > { %v300_v55 = vadd.f32 %v298_v45, %v288_v47  ;;  %v339_v61 = vld [vmem:[#allocation2 + $0x12] ss:$2 sm:$0x3]  ;;  %v329_v63 = vld [vmem:[#allocation2 + $0x21] ss:$2 sm:$0x3]  ;;  %v334_v0 = vmul.f32 %v333_v51, %v327_v54  ;;  %v323_v2 = vmul.f32 %v321_v41, %v317_v56 }
  0x1f   : > { %v289_v59 = vadd.f32 %v287_v43, %v278_v52  ;;  %v341_v5 = vld [vmem:[#allocation2 + $0x22] ss:$2 sm:$0x3]  ;;  %v346_v6 = vmul.f32 %v345_v58, %v339_v61  ;;  %v335_v8 = vmul.f32 %v333_v51, %v329_v63 }
  0x20   : > { %v312_v62 = vadd.f32 %v310_v49, %v300_v55  ;;  %v347_v12 = vmul.f32 %v345_v58, %v341_v5 }
  0x21   : > { %v301_v1 = vadd.f32 %v299_v53, %v289_v59 }
  0x22   : > { %v324_v3 = vadd.f32 %v322_v57, %v312_v62 }
  0x23   : > { %v313_v7 = vadd.f32 %v311_v60, %v301_v1 }
  0x24   : > { %v336_v10 = vadd.f32 %v334_v0, %v324_v3 }
  0x25   : > { %v325_v11 = vadd.f32 %v323_v2, %v313_v7 }
  0x26   : > { %v348_v15 = vadd.f32 %v346_v6, %v336_v10 }
  0x27   : > { %v337_v16 = vadd.f32 %v335_v8, %v325_v11 }
  0x28   : > { %v357_v17 = vadd.f32 %v529_v9, %v348_v15 }
  0x29   : > { %v349_v18 = vadd.f32 %v347_v12, %v337_v16 }
  0x2a   : > { %v359_v21 = vmax.f32 %v357_v17, 0.0 }
  0x2b   : > { %v358_v20 = vadd.f32 %v529_v9, %v349_v18 }
  0x2d   : > { %v360_v22 = vmax.f32 %v358_v20, 0.0 }
  0x2f   : > { %v363_v24 = vcombine.low %v359_v21, %v360_v22 }
  0x31   : > { %v370_v25 = vrot.slane %v363_v24, %v369_v23 }
  0x33   : > { %v372_v26 = vpack.c.bf16 %v370_v25, %v370_v25 }
  0x35   : > { %553 = vmatmul.mubr.msk.bf16.vlgmr.msra.gmra.mrb[0].mxu0 %vm412_vm3, %v372_v26 }
 0x108   : > { %v450_v28 = vpop.f32.mrb[0].mxu0 }
 0x109   : > { %v451_v29 = vadd.f32 %v530_v27, %v450_v28  ;;  %v554_v30 = vpop.f32.mrb[1].mxu0 }
 0x10a   : > { %v453_v31 = vpop.f32.mrb[2].mxu0 }
 0x10b   : > { %v456_v32 = vmax.f32 %v451_v29, 0.0  ;;  %v555_v4 = vpop.f32.mrb[3].mxu0 }
 0x10d   : > { %457 = vst [vmem:[%s222_s22] sm:$0xf] %v456_v32 }
 0x10e PF: > { %s15_s18 = sadd.s32 1, %s577_s18  }
 0x10f   : > { %p12_p4 = scmp.ge.s32.totalorder %s15_s18, 4  }
 0x111   :  { %14 = sbr.rel (!%p12_p4) target bundleno = 1 (0x1), region = 87 }

// kernel: mobilenet_v1_forward.21
= control target key start
LH: loop header
LB: loop body
LE: loop exit
PB: predicated region body
PF: predicated region fallthrough
CT: control target
= control target key end

     0   :  { %s626_s18 = smov 0   ;;  %s708_s0 = inlined_call_operand.vmem [shape: f32[2,2,2,128], index: 0, kind: input, shape index: {}]   ;;  %s709_s1 = inlined_call_operand.vmem [shape: f32[3,3,128], index: 1, kind: input, shape index: {}]   ;;  %s710_s2 = inlined_call_operand.vmem [shape: f32[1,128], index: 2, kind: input, shape index: {}]   ;;  %s711_s3 = inlined_call_operand.vmem [shape: bf16[128,128], index: 3, kind: input, shape index: {}]   ;;  %s712_s4 = inlined_call_operand.vmem [shape: f32[1,128], index: 4, kind: input, shape index: {}]   ;;  %s713_s5 = inlined_call_operand.vmem [shape: f32[2,4,128], index: 5, kind: output, shape index: {}]  }
   0x1 LB: > { %s516_s19 = sadd.s32 4294967295, %s591_s18   ;;  %p520_p0 = scmp.ge.s32.totalorder %s591_s18, 1  ;;  %s591_s18 = sphi %s626_s18, %s15_s18  }
   0x2   : > { %p187_p1 = scmp.lt.s32.totalorder %s591_s18, 3 }
   0x4   : > { %p188_p2 = pnand %p520_p0, %p187_p1 }
   0x5   : > { %v577_v0 = vld [vmem:[%s711_s3] sm:$0xff] (!%p188_p2)   ;;  %v238_v1 = vlaneseq (!%p188_p2)  ;;  %v593_v2 = vmov (!%p188_p2), 0.0   ;;  %v578_v3 = vld [vmem:[%s711_s3 + $0x8] sm:$0xff] (!%p188_p2)   ;;  %vm594_vm0 = vmmov (!%p188_p2), 0   ;;  %p214_p3 = scmp.lt.s32.totalorder (!%p188_p2), %s516_s19, 1  ;;  %v579_v6 = vld [vmem:[%s711_s3 + $0x10] sm:$0xff] (!%p188_p2)  }
   0x6   : > { %191 = sbr.rel (%p188_p2) target bundleno = 271 (0x10f), region = 40  ;;  %546 = vmatprep.subr.bf16.mxu0 (!%p188_p2), %v593_v2  ;;  %224 = vst [vmem:[#allocation2] sm:$0xf] (!%p188_p2), %v593_v2  ;;  %225 = vst [vmem:[#allocation2 + $0x4] sm:$0xf] (!%p188_p2), %v593_v2  ;;  %562 = vmatprep.mubr.msk.bf16.mxu0 (!%p188_p2), %vm594_vm0, %v593_v2  ;;  %v580_v14 = vld [vmem:[%s711_s3 + $0x18] sm:$0xff] (!%p188_p2)  }
   0x7   : > { %226 = vst [vmem:[#allocation2 + $0x8] sm:$0xf] (!%p188_p2), %v593_v2  ;;  %227 = vst [vmem:[#allocation2 + $0xc] sm:$0xf] (!%p188_p2), %v593_v2  ;;  %547 = vmatpush3.bf16.msra.mxu0 (!%p188_p2), %v577_v0  ;;  %v647_v4 = vshrl.u32 (!%p188_p2), %v238_v1, 7  ;;  %v581_v23 = vld [vmem:[%s711_s3 + $0x20] sm:$0xff] (!%p188_p2)  }
   0x8   : > { %548 = vmatprep.subr.bf16.mxu0 (!%p188_p2), %v593_v2  ;;  %v233_v10 = vld [vmem:[%s709_s1] sm:$0x7] (!%p188_p2)  ;;  %v234_v17 = vld [vmem:[%s709_s1 + $0x4] sm:$0x7] (!%p188_p2)  ;;  %v235_v27 = vld [vmem:[%s709_s1 + $0x8] sm:$0x7] (!%p188_p2) }
   0x9   : > { %v240_v5 = vsub.s32 (!%p188_p2), 0, %v647_v4  ;;  %v250_v7 = vsub.s32 (!%p188_p2), 1, %v647_v4  ;;  %v260_v16 = vsub.s32 (!%p188_p2), 2, %v647_v4  ;;  %v582_v39 = vld [vmem:[%s711_s3 + $0x28] sm:$0xff] (!%p188_p2)   ;;  %v583_v55 = vld [vmem:[%s711_s3 + $0x30] sm:$0xff] (!%p188_p2)  }
   0xb   : > { %549 = vmatpush3.bf16.msra.mxu0 (!%p188_p2), %v578_v3  ;;  %v241_v12 = vrot.slane (!%p188_p2), %v233_v10, %v240_v5  ;;  %v251_v13 = vrot.slane (!%p188_p2), %v233_v10, %v250_v7  ;;  %v261_v21 = vrot.slane (!%p188_p2), %v233_v10, %v260_v16  ;;  %v271_v25 = vrot.slane (!%p188_p2), %v234_v17, %v240_v5 }
   0xc   : > { %550 = vmatprep.subr.bf16.mxu0 (!%p188_p2), %v593_v2  ;;  %v281_v26 = vrot.slane (!%p188_p2), %v234_v17, %v250_v7  ;;  %v291_v32 = vrot.slane (!%p188_p2), %v234_v17, %v260_v16  ;;  %v302_v44 = vrot.slane (!%p188_p2), %v235_v27, %v240_v5  ;;  %v312_v51 = vrot.slane (!%p188_p2), %v235_v27, %v250_v7 }
   0xd   : > { %s715_s19 = smov (!%p214_p3, %s516_s19), 1  ;;  %v236_v11 = vld [vmem:[#allocation2] sm:$0x3]  ;;  %v256_v20 = vld [vmem:[#allocation2 + $0x2] sm:$0x3]  ;;  %v322_v59 = vrot.slane %v235_v27, %v260_v16 }
   0xe   : > { %s536_s26 = sshll.u32 %s715_s19, 2  ;;  %v246_v15 = vld [vmem:[#allocation2 + $0x1] sm:$0x3]  ;;  %v242_v18 = vmul.f32 %v241_v12, %v236_v11  ;;  %v262_v24 = vmul.f32 %v261_v21, %v256_v20  ;;  %v298_v57 = vld [vmem:[#allocation2 + $0xc] sm:$0x3] }
   0xf   : > { %s218_s29 = scalar_lea.vmem %s708_s0, %s536_s26  ;;  %551 = vmatpush3.bf16.msra.mxu0 %v579_v6  ;;  %v252_v19 = vmul.f32 %v251_v13, %v246_v15  ;;  %v308_v0 = vld [vmem:[#allocation2 + $0xd] sm:$0x3]  ;;  %v304_v5 = vmul.f32 %v302_v44, %v298_v57  ;;  %v584_v6 = vld [vmem:[%s711_s3 + $0x38] sm:$0xff]   ;;  %v524_v15 = vld [vmem:[%s710_s2] ss:$0 sm:$0xff]  ;;  %s222_s30 = scalar_lea.vmem %s713_s5, %s536_s26 }
  0x10   : > { %v228_v8 = vld [vmem:[%s218_s29] sm:$0x3]  ;;  %v229_v9 = vld [vmem:[%s218_s29 + $0x2] sm:$0x3]  ;;  %552 = vmatprep.subr.bf16.mxu0 %v593_v2  ;;  %v314_v11 = vmul.f32 %v312_v51, %v308_v0  ;;  %v595_v16 = vmov 1983009808  }
  0x11   : > { %231 = vst [vmem:[#allocation2 + $0x5] sm:$0x3] %v228_v8  ;;  %232 = vst [vmem:[#allocation2 + $0x9] sm:$0x3] %v229_v9  ;;  %v254_v22 = vadd.f32 %v252_v19, %v242_v18  ;;  %v318_v8 = vld [vmem:[#allocation2 + $0xe] sm:$0x3]  ;;  %v342_v17 = vunpack.c.l.s4 %v595_v16 }
  0x13   : > { %553 = vmatpush3.bf16.msra.mxu0 %v580_v14  ;;  %v264_v31 = vadd.f32 %v262_v24, %v254_v22  ;;  %v324_v14 = vmul.f32 %v322_v59, %v318_v8  ;;  %v343_v22 = vunpack.c.0.s8 %v342_v17 }
  0x14   : > { %554 = vmatprep.subr.bf16.mxu0 %v593_v2 }
  0x17   : > { %555 = vmatpush3.bf16.msra.mxu0 %v581_v23 }
  0x18   : > { %v237_v28 = vld [vmem:[#allocation2 + $0x4] sm:$0x3]  ;;  %v257_v30 = vld [vmem:[#allocation2 + $0x6] sm:$0x3]  ;;  %v267_v37 = vld [vmem:[#allocation2 + $0x8] sm:$0x3]  ;;  %556 = vmatprep.subr.bf16.mxu0 %v593_v2 }
  0x19   : > { %v247_v29 = vld [vmem:[#allocation2 + $0x5] sm:$0x3]  ;;  %v243_v33 = vmul.f32 %v241_v12, %v237_v28  ;;  %v263_v35 = vmul.f32 %v261_v21, %v257_v30  ;;  %v277_v41 = vld [vmem:[#allocation2 + $0x9] sm:$0x3]  ;;  %v273_v46 = vmul.f32 %v271_v25, %v267_v37 }
  0x1a   : > { %v253_v34 = vmul.f32 %v251_v13, %v247_v29  ;;  %v266_v36 = vld [vmem:[#allocation2 + $0x4] sm:$0x3]  ;;  %v286_v43 = vld [vmem:[#allocation2 + $0x6] sm:$0x3]  ;;  %v297_v47 = vld [vmem:[#allocation2 + $0x8] sm:$0x3]  ;;  %v283_v53 = vmul.f32 %v281_v26, %v277_v41 }
  0x1b   : > { %v276_v38 = vld [vmem:[#allocation2 + $0x5] sm:$0x3]  ;;  %v272_v40 = vmul.f32 %v271_v25, %v266_v36  ;;  %v287_v49 = vld [vmem:[#allocation2 + $0xa] sm:$0x3]  ;;  %v292_v50 = vmul.f32 %v291_v32, %v286_v43  ;;  %557 = vmatpush3.bf16.msra.mxu0 %v582_v39  ;;  %v303_v58 = vmul.f32 %v302_v44, %v297_v47  ;;  %v346_v25 = vsub.s32 %v343_v22, %v647_v4  ;;  %v525_v29 = vld [vmem:[%s712_s4] ss:$0 sm:$0xff] }
  0x1c   : > { %v282_v42 = vmul.f32 %v281_v26, %v276_v38  ;;  %v255_v45 = vadd.f32 %v253_v34, %v243_v33  ;;  %v307_v54 = vld [vmem:[#allocation2 + $0x9] sm:$0x3]  ;;  %558 = vmatprep.subr.bf16.mxu0 %v593_v2  ;;  %v293_v61 = vmul.f32 %v291_v32, %v287_v49 }
  0x1d   : > { %v274_v48 = vadd.f32 %v272_v40, %v264_v31  ;;  %v317_v62 = vld [vmem:[#allocation2 + $0xa] sm:$0x3]  ;;  %v313_v1 = vmul.f32 %v312_v51, %v307_v54 }
  0x1e   : > { %v265_v52 = vadd.f32 %v263_v35, %v255_v45  ;;  %v323_v9 = vmul.f32 %v322_v59, %v317_v62 }
  0x1f   : > { %v284_v56 = vadd.f32 %v282_v42, %v274_v48  ;;  %559 = vmatpush3.bf16.msra.mxu0 %v583_v55 }
  0x20   : > { %v275_v60 = vadd.f32 %v273_v46, %v265_v52  ;;  %560 = vmatprep.subr.bf16.mxu0 %v593_v2 }
  0x21   : > { %v294_v63 = vadd.f32 %v292_v50, %v284_v56 }
  0x22   : > { %v285_v3 = vadd.f32 %v283_v53, %v275_v60 }
  0x23   : > { %v305_v7 = vadd.f32 %v303_v58, %v294_v63  ;;  %561 = vmatpush3.bf16.msra.mxu0 %v584_v6 }
  0x24   : > { %v295_v10 = vadd.f32 %v293_v61, %v285_v3 }
  0x25   : > { %v315_v12 = vadd.f32 %v313_v1, %v305_v7 }
  0x26   : > { %v306_v13 = vadd.f32 %v304_v5, %v295_v10 }
  0x27   : > { %v325_v18 = vadd.f32 %v323_v9, %v315_v12 }
  0x28   : > { %v316_v19 = vadd.f32 %v314_v11, %v306_v13 }
  0x29   : > { %v334_v20 = vadd.f32 %v524_v15, %v325_v18 }
  0x2a   : > { %v326_v21 = vadd.f32 %v324_v14, %v316_v19 }
  0x2b   : > { %v336_v2 = vmax.f32 %v334_v20, 0.0 }
  0x2c   : > { %v335_v23 = vadd.f32 %v524_v15, %v326_v21 }
  0x2e   : > { %v337_v24 = vmax.f32 %v335_v23, 0.0 }
  0x30   : > { %v340_v26 = vcombine.low %v336_v2, %v337_v24 }
  0x32   : > { %v347_v27 = vrot.slane %v340_v26, %v346_v25 }
  0x34   : > { %v349_v28 = vpack.c.bf16 %v347_v27, %v347_v27 }
  0x36   : > { %563 = vmatmul.mubr.bf16.vlgmr.msra.gmra.mrb[0].mxu0 %v349_v28 }
 0x109   : > { %v455_v30 = vpop.f32.mrb[0].mxu0 }
 0x10a   : > { %v456_v31 = vadd.f32 %v525_v29, %v455_v30  ;;  %v564_v32 = vpop.f32.mrb[1].mxu0 }
 0x10b   : > { %v458_v33 = vpop.f32.mrb[2].mxu0 }
 0x10c   : > { %v461_v34 = vmax.f32 %v456_v31, 0.0  ;;  %v565_v35 = vpop.f32.mrb[3].mxu0 }
 0x10e   : > { %462 = vst [vmem:[%s222_s30] sm:$0xf] %v461_v34 }
 0x10f PF: > { %s15_s18 = sadd.s32 1, %s591_s18  }
 0x110   : > { %p12_p4 = scmp.ge.s32.totalorder %s15_s18, 4  }
 0x112   :  { %14 = sbr.rel (!%p12_p4) target bundleno = 1 (0x1), region = 72 }

// kernel: mobilenet_v1_forward.26
= control target key start
LH: loop header
LB: loop body
LE: loop exit
PB: predicated region body
PF: predicated region fallthrough
CT: control target
= control target key end

     0   :  { %s623_s18 = smov 0   ;;  %s707_s0 = inlined_call_operand.vmem [shape: f32[2,2,2,128], index: 0, kind: input, shape index: {}]   ;;  %s708_s1 = inlined_call_operand.vmem [shape: f32[3,3,128], index: 1, kind: input, shape index: {}]   ;;  %s709_s2 = inlined_call_operand.vmem [shape: f32[1,128], index: 2, kind: input, shape index: {}]   ;;  %s710_s3 = inlined_call_operand.vmem [shape: bf16[128,256], index: 3, kind: input, shape index: {}]   ;;  %s711_s4 = inlined_call_operand.vmem [shape: f32[1,256], index: 4, kind: input, shape index: {}]   ;;  %s712_s5 = inlined_call_operand.vmem [shape: f32[2,1,256], index: 5, kind: output, shape index: {}]  }
   0x1 LB: > { %s520_s19 = sadd.s32 4294967295, %s588_s18   ;;  %p524_p0 = scmp.ge.s32.totalorder %s588_s18, 1  ;;  %s588_s18 = sphi %s623_s18, %s15_s18  }
   0x2   : > { %p187_p1 = scmp.lt.s32.totalorder %s588_s18, 3 }
   0x4   : > { %p188_p2 = pnand %p524_p0, %p187_p1 }
   0x5   : > { %v558_v0 = vld [vmem:[%s710_s3 + $0x4] ss:$8 sps:$4 sm:$0xff] (!%p188_p2)   ;;  %p214_p3 = scmp.lt.s32.totalorder (!%p188_p2), %s520_s19, 1  ;;  %v560_v1 = vld [vmem:[%s710_s3] ss:$8 sps:$4 sm:$0xff] (!%p188_p2)   ;;  %v590_v2 = vmov (!%p188_p2), 0   ;;  %v387_v59 = vlaneseq (!%p188_p2) }
   0x6   : > { %191 = sbr.rel (%p188_p2) target bundleno = 267 (0x10b), region = 40  ;;  %429 = vmatprep.mubr.bf16.mxu0 (!%p188_p2), %v590_v2  ;;  %397 = vmatprep.subr.bf16.mxu0 (!%p188_p2), %v558_v0  ;;  %v561_v3 = vld [vmem:[%s710_s3 + $0x14] ss:$8 sps:$4 sm:$0xff] (!%p188_p2)   ;;  %v591_v4 = vmov (!%p188_p2), 0.0   ;;  %v563_v5 = vld [vmem:[%s710_s3 + $0x10] ss:$8 sps:$4 sm:$0xff] (!%p188_p2)  }
   0x7   : > { %224 = vst [vmem:[#allocation2] sm:$0xf] (!%p188_p2), %v591_v4  ;;  %225 = vst [vmem:[#allocation2 + $0x4] sm:$0xf] (!%p188_p2), %v591_v4  ;;  %398 = vmatpush1.bf16.msra.mxu0 (!%p188_p2), %v560_v1  ;;  %v564_v6 = vld [vmem:[%s710_s3 + $0x24] ss:$8 sps:$4 sm:$0xff] (!%p188_p2)  }
   0x8   : > { %226 = vst [vmem:[#allocation2 + $0x8] sm:$0xf] (!%p188_p2), %v591_v4  ;;  %399 = vmatprep.subr.bf16.mxu0 (!%p188_p2), %v561_v3  ;;  %v566_v7 = vld [vmem:[%s710_s3 + $0x20] ss:$8 sps:$4 sm:$0xff] (!%p188_p2)   ;;  %v567_v8 = vld [vmem:[%s710_s3 + $0x34] ss:$8 sps:$4 sm:$0xff] (!%p188_p2)  }
   0x9   : > { %v569_v9 = vld [vmem:[%s710_s3 + $0x30] ss:$8 sps:$4 sm:$0xff] (!%p188_p2)   ;;  %v570_v11 = vld [vmem:[%s710_s3 + $0x44] ss:$8 sps:$4 sm:$0xff] (!%p188_p2)   ;;  %v233_v13 = vld [vmem:[%s708_s1] sm:$0x7] (!%p188_p2) }
   0xa   : > { %v234_v14 = vld [vmem:[%s708_s1 + $0x4] sm:$0x7] (!%p188_p2)  ;;  %v242_v16 = vrot.slane (!%p188_p2), %v233_v13, 1  ;;  %v248_v21 = vrot.slane (!%p188_p2), %v233_v13, 2  ;;  %v572_v23 = vld [vmem:[%s710_s3 + $0x40] ss:$8 sps:$4 sm:$0xff] (!%p188_p2)  }
   0xb   : > { %400 = vmatpush1.bf16.msra.mxu0 (!%p188_p2), %v563_v5  ;;  %v258_v24 = vrot.slane (!%p188_p2), %v234_v14, 1  ;;  %v573_v25 = vld [vmem:[%s710_s3 + $0x54] ss:$8 sps:$4 sm:$0xff] (!%p188_p2)   ;;  %v264_v29 = vrot.slane (!%p188_p2), %v234_v14, 2  ;;  %v235_v30 = vld [vmem:[%s708_s1 + $0x8] sm:$0x7] (!%p188_p2) }
   0xc   : > { %401 = vmatprep.subr.bf16.mxu0 (!%p188_p2), %v564_v6  ;;  %v575_v34 = vld [vmem:[%s710_s3 + $0x50] ss:$8 sps:$4 sm:$0xff] (!%p188_p2)   ;;  %v576_v37 = vld [vmem:[%s710_s3 + $0x64] ss:$8 sps:$4 sm:$0xff] (!%p188_p2)   ;;  %v275_v40 = vrot.slane (!%p188_p2), %v235_v30, 1  ;;  %v281_v44 = vrot.slane (!%p188_p2), %v235_v30, 2 }
   0xd   : > { %s714_s19 = smov (!%p214_p3, %s520_s19), 1  ;;  %v578_v45 = vld [vmem:[%s710_s3 + $0x60] ss:$8 sps:$4 sm:$0xff]   ;;  %v579_v47 = vld [vmem:[%s710_s3 + $0x74] ss:$8 sps:$4 sm:$0xff]   ;;  %v388_v60 = vshrl.u32 %v387_v59, 7 }
   0xe   : > { %s546_s30 = sshll.u32 %s714_s19, 2  ;;  %v236_v15 = vld [vmem:[#allocation2] ss:$2 sm:$0x1]  ;;  %v581_v52 = vld [vmem:[%s710_s3 + $0x70] ss:$8 sps:$4 sm:$0xff]  }
   0xf   : > { %s218_s10 = scalar_lea.vmem %s707_s0, %s546_s30  ;;  %402 = vmatpush1.bf16.msra.mxu0 %v566_v7  ;;  %v237_v17 = vmul.f32 %v236_v15, %v233_v13  ;;  %v240_v18 = vld [vmem:[#allocation2 + $0x1] ss:$2 sm:$0x1]  ;;  %v247_v19 = vld [vmem:[#allocation2 + $0x2] ss:$2 sm:$0x1] }
  0x10   : > { %v228_v10 = vld [vmem:[%s218_s10] sm:$0x3]  ;;  %v229_v12 = vld [vmem:[%s218_s10 + $0x2] sm:$0x3]  ;;  %403 = vmatprep.subr.bf16.mxu0 %v567_v8  ;;  %v244_v20 = vmul.f32 %v242_v16, %v240_v18  ;;  %v250_v27 = vmul.f32 %v248_v21, %v247_v19  ;;  %v389_v61 = vsub.s32 0, %v388_v60  ;;  %v393_v63 = vsub.s32 1, %v388_v60 }
  0x11   : > { %231 = vst [vmem:[#allocation2 + $0x5] sm:$0x3] %v228_v10  ;;  %232 = vst [vmem:[#allocation2 + $0x9] sm:$0x3] %v229_v12  ;;  %v285_v54 = vld [vmem:[%s709_s2] sm:$0x1] }
  0x12   : > { %v252_v22 = vld [vmem:[#allocation2 + $0x4] ss:$2 sm:$0x1]  ;;  %v245_v26 = vadd.f32 %v244_v20, %v237_v17  ;;  %v269_v36 = vld [vmem:[#allocation2 + $0x8] ss:$2 sm:$0x1] }
  0x13   : > { %404 = vmatpush1.bf16.msra.mxu0 %v569_v9  ;;  %v253_v28 = vmul.f32 %v252_v22, %v234_v14  ;;  %v270_v43 = vmul.f32 %v269_v36, %v235_v30  ;;  %v305_v62 = vld [vmem:[%s711_s4] sm:$0x3]  ;;  %v592_v0 = vmov 1966171168   ;;  %s527_s20 = sshll.u32 %s714_s19, 1  ;;  %vm460_vm0 = vcmp.lt.s32.totalorder %v387_v59, 256 }
  0x14   : > { %405 = vmatprep.subr.bf16.mxu0 %v570_v11  ;;  %v251_v31 = vadd.f32 %v250_v27, %v245_v26  ;;  %v444_v1 = vunpack.c.l.s4 %v592_v0  ;;  %v390_v2 = vrot.slane %v305_v62, %v389_v61  ;;  %v394_v3 = vrot.slane %v305_v62, %v393_v63  ;;  %s222_s23 = scalar_lea.vmem %s712_s5, %s527_s20 }
  0x16   : > { %v254_v38 = vadd.f32 %v253_v28, %v251_v31  ;;  %v445_v5 = vunpack.c.0.s8 %v444_v1 }
  0x17   : > { %406 = vmatpush1.bf16.msra.mxu0 %v572_v23 }
  0x18   : > { %v256_v32 = vld [vmem:[#allocation2 + $0x5] ss:$2 sm:$0x1]  ;;  %v263_v33 = vld [vmem:[#allocation2 + $0x6] ss:$2 sm:$0x1]  ;;  %407 = vmatprep.subr.bf16.mxu0 %v573_v25  ;;  %v448_v13 = vsub.s32 %v445_v5, %v388_v60 }
  0x19   : > { %v260_v35 = vmul.f32 %v258_v24, %v256_v32  ;;  %v266_v39 = vmul.f32 %v264_v29, %v263_v33  ;;  %v273_v41 = vld [vmem:[#allocation2 + $0x9] ss:$2 sm:$0x1]  ;;  %v280_v46 = vld [vmem:[#allocation2 + $0xa] ss:$2 sm:$0x1] }
  0x1a   : > { %v277_v49 = vmul.f32 %v275_v40, %v273_v41  ;;  %v283_v51 = vmul.f32 %v281_v44, %v280_v46 }
  0x1b   : > { %v261_v42 = vadd.f32 %v260_v35, %v254_v38  ;;  %408 = vmatpush1.bf16.msra.mxu0 %v575_v34 }
  0x1c   : > { %409 = vmatprep.subr.bf16.mxu0 %v576_v37 }
  0x1d   : > { %v267_v48 = vadd.f32 %v266_v39, %v261_v42 }
  0x1f   : > { %v271_v50 = vadd.f32 %v270_v43, %v267_v48  ;;  %410 = vmatpush1.bf16.msra.mxu0 %v578_v45 }
  0x20   : > { %411 = vmatprep.subr.bf16.mxu0 %v579_v47 }
  0x21   : > { %v278_v53 = vadd.f32 %v277_v49, %v271_v50 }
  0x23   : > { %v284_v55 = vadd.f32 %v283_v51, %v278_v53  ;;  %412 = vmatpush1.bf16.msra.mxu0 %v581_v52 }
  0x25   : > { %v286_v56 = vadd.f32 %v285_v54, %v284_v55 }
  0x27   : > { %v287_v57 = vmax.f32 %v286_v56, 0.0 }
  0x29   : > { %v288_v58 = vpack.c.bf16 %v287_v57, %v287_v57 }
  0x2b   : > { %430 = vmatmul.mubr.bf16.vlgmr.msra.gmra.mrb[0].mxu0 %v288_v58 }
  0xfe   : > { %v431_v4 = vpop.f32.mrb[0].mxu0 }
  0xff   : > { %v432_v6 = vadd.f32 %v431_v4, %v390_v2  ;;  %v433_v7 = vpop.f32.mrb[1].mxu0 }
 0x100   : > { %v434_v8 = vadd.f32 %v433_v7, %v394_v3  ;;  %v435_v9 = vpop.f32.mrb[2].mxu0 }
 0x101   : > { %v438_v10 = vmax.f32 %v432_v6, 0.0  ;;  %v436_v11 = vpop.f32.mrb[3].mxu0 }
 0x102   : > { %v439_v12 = vmax.f32 %v434_v8, 0.0 }
 0x104   : > { %v442_v14 = vcombine.low %v438_v10, %v439_v12 }
 0x106   : > { %v449_v15 = vrot.slane %v442_v14, %v448_v13 }
 0x108   : > { %v456_v16 = vrot.slane %v449_v15, %v448_v13 }
 0x10a   : > { %462 = vst.msk [vmem:[%s222_s23] sm:$0x3] %vm460_vm0, %v456_v16 }
 0x10b PF: > { %s15_s18 = sadd.s32 1, %s588_s18  }
 0x10c   : > { %p12_p4 = scmp.ge.s32.totalorder %s15_s18, 4  }
 0x10e   :  { %14 = sbr.rel (!%p12_p4) target bundleno = 1 (0x1), region = 78 }

// kernel: mobilenet_v1_forward.27
= control target key start
LH: loop header
LB: loop body
LE: loop exit
PB: predicated region body
PF: predicated region fallthrough
CT: control target
= control target key end

     0   :  { %12 = vsyncpa [#allocation4], 0  ;;  %s1472_s0 = inlined_call_operand.vmem [shape: f32[2,1,1,256], index: 0, kind: input, shape index: {}]   ;;  %s1473_s1 = inlined_call_operand.vmem [shape: f32[3,3,256], index: 1, kind: input, shape index: {}]   ;;  %s1474_s2 = inlined_call_operand.vmem [shape: f32[1,256], index: 2, kind: input, shape index: {}]   ;;  %s1475_s3 = inlined_call_operand.vmem [shape: bf16[256,256], index: 3, kind: input, shape index: {}]   ;;  %s1476_s4 = inlined_call_operand.vmem [shape: f32[1,256], index: 4, kind: input, shape index: {}]   ;;  %s1477_s5 = inlined_call_operand.vmem [shape: bf16[256,10], index: 5, kind: input, shape index: {}]   ;;  %s1478_s6 = inlined_call_operand.vmem [shape: f32[1,10], index: 6, kind: input, shape index: {}]   ;;  %s1479_s7 = inlined_call_operand.hbm [shape: f32[2,1,10], index: 7, kind: output, shape index: {}]  }
   0x1   :  { %14 = vsyncpa [#allocation4 + $0x1], 0  ;;  %s1205_s24 = smov 0   ;;  %s1207_s25 = smov 0  }
   0x2   :  { %s1209_s26 = smov 0   ;;  %s1211_s27 = smov 0  }
   0x3 LB: > { %s1226_s28 = sadd.s32 4294967295, %s1160_s27   ;;  %s912_s29 = sadd.s32 4294967294, %s1160_s27   ;;  %s1160_s27 = sphi %s1211_s27, %s1485_s27   ;;  %s1156_s26 = sphi %s1209_s26, %s1484_s26   ;;  %s1152_s25 = sphi %s1207_s25, %s1483_s25   ;;  %s1148_s24 = sphi %s1205_s24, %s1482_s24  }
   0x4   : > { %s1230_s30 = sadd.s32 1, %s1160_s27   ;;  %s179_s8 = sadd.s32 1, %s1156_s26 }
   0x5   : > { %s176_s9 = ssub.s32 %s1160_s27, %s1230_s30  ;;  %p189_p0 = scmp.ne.s32.totalorder %s1156_s26, %s1152_s25 }
   0x6   : > { %p177_p1 = scmp.eq.s32.totalorder %s176_s9, 0  ;;  %p190_p2 = scmp.eq.s32.totalorder %s1226_s28, 1 }
   0x7   : > { %p195_p3 = scmp.ne.s32.totalorder %s1152_s25, %s1148_s24  ;;  %p196_p4 = scmp.eq.s32.totalorder %s912_s29, 1 }
   0x8   : > { %s1241_s10 = scalar_select %p177_p1, %s1156_s26, %s179_s8  }
   0x9   : > { %p1243_p5 = por %p190_p2, %p189_p0  ;;  %p1247_p6 = por %p196_p4, %p195_p3 }
   0xa   : > { %p915_p7 = scmp.ge.s32.totalorder %s1160_s27, 1  ;;  %p239_p8 = scmp.lt.s32.totalorder %s1160_s27, 3 }
   0xc   : > { %p240_p9 = pnand %p915_p7, %p239_p8 }
   0xd   : > { %v1034_v0 = vld [vmem:[%s1475_s3 + $0x4] ss:$8 sps:$4 sm:$0xff] (!%p240_p9)   ;;  %v1036_v1 = vld [vmem:[%s1475_s3] ss:$8 sps:$4 sm:$0xff] (!%p240_p9)   ;;  %v1162_v2 = vmov (!%p240_p9), 0.0   ;;  %p269_p10 = scmp.lt.s32.totalorder (!%p240_p9), %s1226_s28, 1  ;;  %v279_v9 = vlaneseq (!%p240_p9) }
   0xe   : > { %243 = sbr.rel (%p240_p9) target bundleno = 529 (0x211), region = 48  ;;  %274 = vst [vmem:[#allocation2] sm:$0x77] (!%p240_p9), %v1162_v2  ;;  %275 = vst [vmem:[#allocation2 + $0x8] sm:$0x77] (!%p240_p9), %v1162_v2  ;;  %622 = vmatprep.subr.bf16.mxu0 (!%p240_p9), %v1034_v0  ;;  %v1082_v29 = vld [vmem:[%s1477_s5 + $0x40] sm:$0xff] (!%p240_p9)  }
   0xf   : > { %276 = vst [vmem:[#allocation2 + $0x10] sm:$0x77] (!%p240_p9), %v1162_v2  ;;  %v1037_v3 = vld [vmem:[%s1475_s3 + $0x14] ss:$8 sps:$4 sm:$0xff] (!%p240_p9)   ;;  %623 = vmatpush1.bf16.msra.mxu0 (!%p240_p9), %v1036_v1  ;;  %v1039_v4 = vld [vmem:[%s1475_s3 + $0x10] ss:$8 sps:$4 sm:$0xff] (!%p240_p9)   ;;  %971 = vmatprep.subr.bf16.mxu1 (!%p240_p9), %v1082_v29 }
  0x10   : > { %624 = vmatprep.subr.bf16.mxu0 (!%p240_p9), %v1037_v3  ;;  %v1040_v5 = vld [vmem:[%s1475_s3 + $0x24] ss:$8 sps:$4 sm:$0xff] (!%p240_p9)   ;;  %v1042_v6 = vld [vmem:[%s1475_s3 + $0x20] ss:$8 sps:$4 sm:$0xff] (!%p240_p9)   ;;  %v1043_v7 = vld [vmem:[%s1475_s3 + $0x34] ss:$8 sps:$4 sm:$0xff] (!%p240_p9)  }
  0x11   : > { %v1045_v8 = vld [vmem:[%s1475_s3 + $0x30] ss:$8 sps:$4 sm:$0xff] (!%p240_p9)   ;;  %v1163_v10 = vmov (!%p240_p9), 1966171168   ;;  %v1046_v12 = vld [vmem:[%s1475_s3 + $0x44] ss:$8 sps:$4 sm:$0xff] (!%p240_p9)  }
  0x12   : > { %v298_v11 = vunpack.c.l.s4 (!%p240_p9), %v1163_v10  ;;  %v1048_v13 = vld [vmem:[%s1475_s3 + $0x40] ss:$8 sps:$4 sm:$0xff] (!%p240_p9)   ;;  %v1285_v15 = vshrl.u32 (!%p240_p9), %v279_v9, 7  ;;  %v1049_v16 = vld [vmem:[%s1475_s3 + $0x54] ss:$8 sps:$4 sm:$0xff] (!%p240_p9)   ;;  %vm281_vm0 = vcmp.lt.s32.totalorder (!%p240_p9), %v279_v9, 256 }
  0x13   : > { %625 = vmatpush1.bf16.msra.mxu0 (!%p240_p9), %v1039_v4  ;;  %v1051_v17 = vld [vmem:[%s1475_s3 + $0x50] ss:$8 sps:$4 sm:$0xff] (!%p240_p9)   ;;  %v1052_v19 = vld [vmem:[%s1475_s3 + $0x64] ss:$8 sps:$4 sm:$0xff] (!%p240_p9)   ;;  %v1054_v20 = vld [vmem:[%s1475_s3 + $0x60] ss:$8 sps:$4 sm:$0xff] (!%p240_p9)  }
  0x14   : > { %626 = vmatprep.subr.bf16.mxu0 (!%p240_p9), %v1040_v5  ;;  %v299_v14 = vunpack.c.0.s8 (!%p240_p9), %v298_v11  ;;  %v1055_v22 = vld [vmem:[%s1475_s3 + $0x74] ss:$8 sps:$4 sm:$0xff] (!%p240_p9)   ;;  %v917_v23 = vld.sshfl [vmem:[%s1473_s1] sm:$0x5f pattern:$0x75316420] (!%p240_p9) }
  0x15   : > { %s270_s15 = scalar_select %p269_p10, %s1226_s28, 1  ;;  %v918_v24 = vld.sshfl [vmem:[%s1473_s1 + $0x8] sm:$0x5f pattern:$0x75316420]  ;;  %v309_v26 = vcombine.high %v917_v23, %v917_v23  ;;  %v1083_v30 = vld [vmem:[%s1477_s5] sm:$0xff]  }
  0x16   : > { %v302_v18 = vsub.s32 %v299_v14, %v1285_v15  ;;  %v919_v27 = vld.sshfl [vmem:[%s1473_s1 + $0x10] sm:$0x5f pattern:$0x75316420]  ;;  %v346_v28 = vcombine.high %v918_v24, %v918_v24  ;;  %v1058_v43 = vld [vmem:[%s1475_s3 + $0x84] ss:$8 sps:$4 sm:$0xff]   ;;  %972 = vmatpush3.bf16.msra.mxu1 %v1083_v30 }
  0x17   : > { %627 = vmatpush1.bf16.msra.mxu0 %v1042_v6  ;;  %s916_s20 = sshll.u32 %s270_s15, 1  ;;  %v288_v31 = vld [vmem:[#allocation2] ss:$4 sm:$0x3]  ;;  %v1057_v39 = vld [vmem:[%s1475_s3 + $0x70] ss:$8 sps:$4 sm:$0xff]   ;;  %v385_v50 = vcombine.high %v919_v27, %v919_v27 }
  0x18   : > { %628 = vmatprep.subr.bf16.mxu0 %v1043_v7  ;;  %s272_s8 = scalar_lea.vmem %s1472_s0, %s916_s20  ;;  %v303_v25 = vrot.slane %v917_v23, %v302_v18  ;;  %v308_v32 = vld [vmem:[#allocation2 + $0x1] ss:$4 sm:$0x3]  ;;  %v316_v33 = vrot.slane %v309_v26, %v302_v18  ;;  %v341_v35 = vrot.slane %v918_v24, %v302_v18  ;;  %v321_v37 = vld [vmem:[#allocation2 + $0x2] ss:$4 sm:$0x3]  ;;  %v353_v42 = vrot.slane %v346_v28, %v302_v18 }
  0x19   : > { %v277_v21 = vld [vmem:[%s272_s8] sm:$0x3]  ;;  %v326_v38 = vld [vmem:[#allocation2 + $0x8] ss:$4 sm:$0x3]  ;;  %v379_v56 = vrot.slane %v919_v27, %v302_v18  ;;  %v1086_v59 = vld [vmem:[%s1477_s5 + $0x50] sm:$0xff]   ;;  %v392_v62 = vrot.slane %v385_v50, %v302_v18 }
  0x1a   : > { %284 = vst.msk [vmem:[#allocation2 + $0x9] ss:$4 sm:$0x3] %vm281_vm0, %v277_v21  ;;  %v322_v34 = vcombine.high %v303_v25, %v303_v25  ;;  %v305_v36 = vmul.f32 %v303_v25, %v288_v31  ;;  %v318_v40 = vmul.f32 %v316_v33, %v308_v32  ;;  %v358_v44 = vld [vmem:[#allocation2 + $0xa] ss:$4 sm:$0x3]  ;;  %v343_v47 = vmul.f32 %v341_v35, %v326_v38 }
  0x1b   : > { %629 = vmatpush1.bf16.msra.mxu0 %v1045_v8  ;;  %v1060_v45 = vld [vmem:[%s1475_s3 + $0x80] ss:$8 sps:$4 sm:$0xff]   ;;  %v359_v49 = vcombine.high %v341_v35, %v341_v35  ;;  %v1061_v52 = vld [vmem:[%s1475_s3 + $0x94] ss:$8 sps:$4 sm:$0xff]   ;;  %v1063_v2 = vld [vmem:[%s1475_s3 + $0x90] ss:$8 sps:$4 sm:$0xff]   ;;  %v398_v5 = vcombine.high %v379_v56, %v379_v56 }
  0x1c   : > { %630 = vmatprep.subr.bf16.mxu0 %v1046_v12  ;;  %v324_v41 = vmul.f32 %v322_v34, %v321_v37  ;;  %v319_v46 = vadd.f32 %v318_v40, %v305_v36  ;;  %v1084_v51 = vld [vmem:[%s1477_s5 + $0x48] sm:$0xff]   ;;  %v364_v53 = vld [vmem:[#allocation2 + $0x10] ss:$4 sm:$0x3]  ;;  %v1088_v1 = vld [vmem:[%s1477_s5 + $0x58] sm:$0xff]   ;;  %v412_v24 = vsub.s32 1, %v1285_v15 }
  0x1d   : > { %973 = vmatprep.subr.bf16.mxu1 %v1084_v51  ;;  %v1085_v57 = vld [vmem:[%s1477_s5 + $0x8] sm:$0xff]   ;;  %v384_v58 = vld [vmem:[#allocation2 + $0x11] ss:$4 sm:$0x3]  ;;  %v361_v61 = vmul.f32 %v359_v49, %v358_v44  ;;  %v381_v4 = vmul.f32 %v379_v56, %v364_v53  ;;  %v1089_v10 = vld [vmem:[%s1477_s5 + $0x18] sm:$0xff]   ;;  %v408_v33 = vsub.s32 0, %v1285_v15 }
  0x1e   : > { %v325_v54 = vadd.f32 %v324_v41, %v319_v46  ;;  %974 = vmatpush3.bf16.msra.mxu1 %v1085_v57  ;;  %v1087_v63 = vld [vmem:[%s1477_s5 + $0x10] sm:$0xff]   ;;  %v1064_v6 = vld [vmem:[%s1475_s3 + $0xa4] ss:$8 sps:$4 sm:$0xff]   ;;  %v1066_v7 = vld [vmem:[%s1475_s3 + $0xa0] ss:$8 sps:$4 sm:$0xff]   ;;  %v394_v9 = vmul.f32 %v392_v62, %v384_v58  ;;  %s267_s8 = sand.u32 1, %s1152_s25  }
  0x1f   : > { %631 = vmatpush1.bf16.msra.mxu0 %v1048_v13  ;;  %v397_v0 = vld [vmem:[#allocation2 + $0x12] ss:$4 sm:$0x3]  ;;  %975 = vmatprep.subr.bf16.mxu1 %v1086_v59  ;;  %v1090_v12 = vld [vmem:[%s1477_s5 + $0x60] sm:$0xff]   ;;  %v1092_v18 = vld [vmem:[%s1477_s5 + $0x68] sm:$0xff]   ;;  %s968_s15 = sshll.u32 %s1226_s28, 4 }
  0x20   : > { %632 = vmatprep.subr.bf16.mxu0 %v1049_v16  ;;  %v344_v60 = vadd.f32 %v343_v47, %v325_v54  ;;  %v1067_v11 = vld [vmem:[%s1475_s3 + $0xb4] ss:$8 sps:$4 sm:$0xff]   ;;  %v400_v14 = vmul.f32 %v398_v5, %v397_v0  ;;  %v1091_v16 = vld [vmem:[%s1477_s5 + $0x20] sm:$0xff]   ;;  %v1093_v25 = vld [vmem:[%s1477_s5 + $0x28] sm:$0xff]   ;;  %s268_s16 = scalar_lea.vmem [#allocation3], %s267_s8  ;;  %vm838_vm1 = vcmask 73728   ;;  %s1430_s20 = scalar_lea.hbm %s1479_s7, %s968_s15 }
  0x21   : > { %v345_v48 = vld [vmem:[#allocation2 + $0x9] ss:$4 sm:$0x3]  ;;  %v1073_v28 = vld [vmem:[%s1475_s3 + $0xd4] ss:$8 sps:$4 sm:$0xff]   ;;  %s853_s17 = sshll.u32 %s268_s16, 4  ;;  %s1432_s17 = int_to_ptr.vmem [resolvable:$true] %s853_s17 }
  0x22   : > { %v355_v55 = vmul.f32 %v353_v42, %v345_v48  ;;  %976 = vmatpush3.bf16.msra.mxu1 %v1087_v63  ;;  %v1072_v26 = vld [vmem:[%s1475_s3 + $0xc0] ss:$8 sps:$4 sm:$0xff]   ;;  %v1075_v30 = vld [vmem:[%s1475_s3 + $0xd0] ss:$8 sps:$4 sm:$0xff]   ;;  %v1076_v32 = vld [vmem:[%s1475_s3 + $0xe4] ss:$8 sps:$4 sm:$0xff]  }
  0x23   : > { %633 = vmatpush1.bf16.msra.mxu0 %v1051_v17  ;;  %977 = vmatprep.subr.bf16.mxu1 %v1088_v1  ;;  %v402_v17 = vld [vmem:[%s1474_s2] sm:$0x3]  ;;  %v1079_v35 = vld [vmem:[%s1475_s3 + $0xf4] ss:$8 sps:$4 sm:$0xff]   ;;  %v1081_v37 = vld [vmem:[%s1475_s3 + $0xf0] ss:$8 sps:$4 sm:$0xff]  }
  0x24   : > { %634 = vmatprep.subr.bf16.mxu0 %v1052_v19  ;;  %v356_v3 = vadd.f32 %v355_v55, %v344_v60  ;;  %v1078_v34 = vld [vmem:[%s1475_s3 + $0xe0] ss:$8 sps:$4 sm:$0xff]   ;;  %v1094_v15 = vld [vmem:[%s1477_s5 + $0x70] sm:$0xff]   ;;  %v1096_v40 = vld [vmem:[%s1477_s5 + $0x78] sm:$0xff]   ;;  %s841_s21 = scalar_lea.sflag [#allocation4], %s267_s8  ;;  %s1098_s28 = scalar_lea.vmem %s1432_s17, 16 }
  0x25   : > { %v1097_v41 = vld [vmem:[%s1477_s5 + $0x38] sm:$0xff]   ;;  %v450_v42 = vld [vmem:[%s1476_s4] sm:$0x3]  ;;  %p1099_p11 = scmp.ne.s32.totalorder %s1432_s17, %s1098_s28  ;;  %s1164_s22 = smov [#allocation3]  }
  0x26   : > { %v362_v8 = vadd.f32 %v361_v61, %v356_v3  ;;  %978 = vmatpush3.bf16.msra.mxu1 %v1089_v10  ;;  %v619_v44 = vrot.slane %v450_v42, %v412_v24  ;;  %v701_v56 = vld [vmem:[%s1478_s6] sm:$0x1]  ;;  %s1102_s23 = sshll.u32 %s1164_s22, 4  ;;  %s1103_s23 = int_to_ptr.vmem [resolvable:$false] %s1102_s23 }
  0x27   : > { %635 = vmatpush1.bf16.msra.mxu0 %v1054_v20  ;;  %979 = vmatprep.subr.bf16.mxu1 %v1090_v12  ;;  %v1069_v20 = vld [vmem:[%s1475_s3 + $0xb0] ss:$8 sps:$4 sm:$0xff]   ;;  %p1100_p12 = pnand %p1099_p11, %p1243_p5  ;;  %s1104_s29 = scalar_lea.vmem %s1103_s23, 32 }
  0x28   : > { %636 = vmatprep.subr.bf16.mxu0 %v1055_v22  ;;  %v382_v13 = vadd.f32 %v381_v4, %v362_v8  ;;  %v1070_v22 = vld [vmem:[%s1475_s3 + $0xc4] ss:$8 sps:$4 sm:$0xff]   ;;  %p1105_p0 = scmp.lt.s32.totalorder %s1432_s17, %s1103_s23  ;;  %p1106_p1 = scmp.lt.s32.totalorder %s1104_s29, %s1098_s28 }
  0x29   : > { %p1101_p13 = pneg %p1100_p12 }
  0x2a   : > { %v395_v19 = vadd.f32 %v394_v9, %v382_v13  ;;  %980 = vmatpush3.bf16.msra.mxu1 %v1091_v16  ;;  %p1107_p2 = por %p1106_p1, %p1105_p0 }
  0x2b   : > { %637 = vmatpush1.bf16.msra.mxu0 %v1057_v39  ;;  %981 = vmatprep.subr.bf16.mxu1 %v1092_v18  ;;  %v1095_v39 = vld [vmem:[%s1477_s5 + $0x30] sm:$0xff]  }
  0x2c   : > { %638 = vmatprep.subr.bf16.mxu0 %v1058_v43  ;;  %v401_v21 = vadd.f32 %v400_v14, %v395_v19  ;;  %v615_v43 = vrot.slane %v450_v42, %v408_v33  ;;  %p1108_p3 = pnand %p1107_p2, %p1101_p13 }
  0x2e   : > { %v403_v23 = vadd.f32 %v402_v17, %v401_v21  ;;  %982 = vmatpush3.bf16.msra.mxu1 %v1093_v25 }
  0x2f   : > { %639 = vmatpush1.bf16.msra.mxu0 %v1060_v45  ;;  %983 = vmatprep.subr.bf16.mxu1 %v1094_v15 }
  0x30   : > { %640 = vmatprep.subr.bf16.mxu0 %v1061_v52  ;;  %v404_v27 = vmax.f32 %v403_v23, 0.0 }
  0x32   : > { %v413_v29 = vrot.slane %v404_v27, %v412_v24  ;;  %v409_v36 = vrot.slane %v404_v27, %v408_v33  ;;  %984 = vmatpush3.bf16.msra.mxu1 %v1095_v39 }
  0x33   : > { %641 = vmatpush1.bf16.msra.mxu0 %v1063_v2  ;;  %985 = vmatprep.subr.bf16.mxu1 %v1096_v40 }
  0x34   : > { %642 = vmatprep.subr.bf16.mxu0 %v1064_v6  ;;  %v417_v31 = vpack.c.bf16 %v413_v29, %v413_v29  ;;  %v416_v38 = vpack.c.bf16 %v409_v36, %v409_v36 }
  0x36   : > { %654 = vmatprep.mubr.bf16.mxu0 %v417_v31  ;;  %986 = vmatpush3.bf16.msra.mxu1 %v1097_v41 }
  0x37   : > { %643 = vmatpush1.bf16.msra.mxu0 %v1066_v7 }
  0x38   : > { %644 = vmatprep.subr.bf16.mxu0 %v1067_v11 }
  0x3b   : > { %645 = vmatpush1.bf16.msra.mxu0 %v1069_v20 }
  0x3c   : > { %646 = vmatprep.subr.bf16.mxu0 %v1070_v22 }
  0x3f   : > { %647 = vmatpush1.bf16.msra.mxu0 %v1072_v26 }
  0x40   : > { %648 = vmatprep.subr.bf16.mxu0 %v1073_v28 }
  0x43   : > { %649 = vmatpush1.bf16.msra.mxu0 %v1075_v30 }
  0x44   : > { %650 = vmatprep.subr.bf16.mxu0 %v1076_v32 }
  0x47   : > { %651 = vmatpush1.bf16.msra.mxu0 %v1078_v34 }
  0x48   : > { %652 = vmatprep.subr.bf16.mxu0 %v1079_v35 }
  0x4b   : > { %653 = vmatpush1.bf16.msra.mxu0 %v1081_v37 }
  0x4e   : > { %655 = vmatmul.mubr.bf16.vlgmr.msra.gmra.mrb[0].mxu0 %v416_v38 }
 0x121   : > { %v656_v45 = vpop.f32.mrb[0].mxu0 }
 0x122   : > { %v657_v46 = vadd.f32 %v656_v45, %v615_v43  ;;  %v658_v47 = vpop.f32.mrb[1].mxu0 }
 0x123   : > { %v659_v48 = vadd.f32 %v658_v47, %v619_v44  ;;  %v660_v49 = vpop.f32.mrb[2].mxu0 }
 0x124   : > { %v663_v50 = vmax.f32 %v657_v46, 0.0  ;;  %v661_v51 = vpop.f32.mrb[3].mxu0 }
 0x125   : > { %v664_v52 = vmax.f32 %v659_v48, 0.0 }
 0x126   : > { %v667_v54 = vpack.c.bf16 %v663_v50, %v663_v50 }
 0x127   : > { %v668_v53 = vpack.c.bf16 %v664_v52, %v664_v52 }
 0x129   : > { %830 = vmatprep.mubr.bf16.mxu1 %v668_v53 }
 0x12a   : > { %831 = vmatmul.mubr.bf16.vlgmr.msra.gmra.mrb[0].mxu1 %v667_v54 }
 0x1fd   : > { %v987_v55 = vpop.f32.mrb[0].mxu1 }
 0x1fe   : > { %v988_v57 = vpop.f32.mrb[1].mxu1 }
 0x1ff   : > { %v989_v58 = vadd.f32 %v988_v57, %v987_v55  ;;  %v990_v59 = vpop.f32.mrb[2].mxu1 }
 0x200   : > { %v991_v60 = vpop.f32.mrb[3].mxu1 }
 0x201   : > { %v833_v61 = vadd.f32 %v989_v58, %v701_v56 }
 0x203   : > { %839 = vst.msk [vmem:[%s268_s16] sm:$0x1] %vm838_vm1, %v833_v61 }
 0x204   : > { %1111 = shalt.err (!%p1108_p3)
}
 0x205   : > { %s1112_s9 = scalar_lea.hbm %s1430_s20, 16  ;;  %s1116_s14 = scalar_lea.hbm %s1479_s7, 32 }
 0x206   : > { %p1113_p4 = scmp.ne.s32.totalorder %s1430_s20, %s1112_s9  ;;  %p1117_p9 = scmp.lt.u32.totalorder %s1430_s20, %s1479_s7 }
 0x207   : > { %p1118_p10 = scmp.lt.u32.totalorder %s1116_s14, %s1112_s9  ;;  %p1120_p12 = scmp.lt.u32.totalorder %s1112_s9, %s1430_s20 }
 0x208   : > { %p1114_p7 = pnand %p1113_p4, %p1243_p5 }
 0x209   : > { %p1119_p11 = por %p1118_p10, %p1117_p9 }
 0x20a   : > { %p1115_p8 = pneg %p1114_p7 }
 0x20b   : > { %p1121_p13 = por %p1120_p12, %p1119_p11 }
 0x20d   : > { %p1122_p0 = pnand %p1121_p13, %p1115_p8 }
 0x20f   : > { %1125 = shalt.err (!%p1122_p0)
}
 0x210   : > { %993 = dma.vmem_to_hbm [thread:$0]  (%p1243_p5), %s1432_s17, 16, %s1430_s20, %s841_s21  }
 0x211 PF: > { %p999_p1 = scmp.ge.s32.totalorder %s1160_s27, 2  ;;  %s865_s18 = sand.u32 1, %s1148_s24  }
 0x212   : > { %s866_s19 = scalar_lea.sflag [#allocation4], %s865_s18 }
 0x213   : > { %p996_p2 = pnand %p999_p1, %p1247_p6 }
 0x215   : > { %1143 = dma.done.wait (!%p996_p2), %s866_s19, 16  }
 0x216   : > { %1145 = vsyncadd (!%p996_p2), %s866_s19, 4294967280  ;;  %p17_p3 = scmp.ge.s32.totalorder %s1230_s30, 4   ;;  %s1482_s24 = smov %s1152_s25 }
 0x217   : > { %s1483_s25 = smov %s1156_s26  ;;  %s1484_s26 = smov %s1241_s10 }
 0x218   : > { %s1485_s27 = smov %s1230_s30  ;;  %19 = sbr.rel (!%p17_p3) target bundleno = 3 (0x3), region = 91 }
 0x21f   :  { %870 = vsyncpa [#allocation4], 1 }
 0x220   :  { %872 = vsyncpa [#allocation4 + $0x1], 1 }

</bundles_post_ra>
